<compile_context>
chip_gen: v5e
topology: v5e:2x2
jax: 0.10.0
libtpu: 0.0.40
codegen_flags: <defaults>
</compile_context>

<pallas_src>
import functools
from collections import namedtuple

import jax
import jax.numpy as jnp
from jax.experimental import pallas as pl
from jax.experimental.pallas import tpu as pltpu

DeconvParam = namedtuple("DeconvParam", ["filters", "kernel_size"])

BN_EPS = 1e-5
LANE = 128
MATMUL_DTYPE = jnp.bfloat16     # MXU-native operands; accumulation is always f32


def _round_up(x, m):
    return (x + m - 1) // m * m


# ---------------------------------------------------------------------------
# Pallas kernel: ONE grid step per layer -- fused matmul + BN+ReLU / tanh
# ---------------------------------------------------------------------------
def _fused_deconv_kernel(x_ref, w_ref, o_ref, *, activation):
    """x_ref: (M, K)    bf16 im2col patches, M = N*Ho*Wo, K = kh*kw*Cin_pad
       w_ref: (K, Cpad) bf16 flipped conv-transpose taps, Cpad = 128-padded Cout
       o_ref: (M, Cpad) f32 activated output (lane-dense).

    One MXU matmul (K is 128/256-aligned), f32 accumulation, then single-pass
    BatchNorm (train-mode batch statistics, gamma=1, beta=0) + ReLU, or tanh
    for the final layer.  Padded channels are exactly 0 throughout:
    acc==0 -> mean 0, var 0 -> 0*rsqrt(eps)=0 -> relu/tanh 0."""
    acc = jnp.dot(x_ref[...], w_ref[...], preferred_element_type=jnp.float32)
    if activation == "bn_relu":
        mean = jnp.mean(acc, axis=0, keepdims=True)                 # (1, Cpad)
        centered = acc - mean
        var = jnp.mean(centered * centered, axis=0, keepdims=True)  # biased var
        y = centered * jax.lax.rsqrt(var + BN_EPS)
        o_ref[...] = jnp.maximum(y, 0.0).astype(o_ref.dtype)
    else:                                                           # last layer
        o_ref[...] = jnp.tanh(acc).astype(o_ref.dtype)


def _deconv_layer_call(patches, w_prep, activation):
    """One fused ConvTranspose(+BN+ReLU | +Tanh) layer: single grid step."""
    m, kdim = patches.shape
    cpad = w_prep.shape[1]

    kernel = functools.partial(_fused_deconv_kernel, activation=activation)

    in_bytes = (patches.size * patches.dtype.itemsize
                + w_prep.size * w_prep.dtype.itemsize)
    out_bytes = m * cpad * 4
    # Pallas double-buffers each spec'd operand; add headroom for the f32
    # accumulator / elementwise temporaries.  Well under 64 MiB even on v7x.
    footprint = 2 * in_bytes + 2 * out_bytes + out_bytes
    vmem_limit = int(min(max(2 * footprint, 8 << 20), 32 << 20))

    flops = 2 * m * kdim * cpad
    transcendentals = m * cpad if activation == "tanh" else cpad    # rsqrt
    bytes_accessed = in_bytes + out_bytes

    return pl.pallas_call(
        kernel,
        out_shape=jax.ShapeDtypeStruct((m, cpad), jnp.float32),
        grid_spec=pltpu.PrefetchScalarGridSpec(
            num_scalar_prefetch=0,
            grid=(1,),
            in_specs=[pl.BlockSpec((m, kdim), lambda i: (0, 0)),
                      pl.BlockSpec((kdim, cpad), lambda i: (0, 0))],
            out_specs=pl.BlockSpec((m, cpad), lambda i: (0, 0)),
        ),
        compiler_params=pltpu.CompilerParams(
            dimension_semantics=("arbitrary",),
            vmem_limit_bytes=vmem_limit,
        ),
        cost_estimate=pl.CostEstimate(flops=int(flops),
                                      transcendentals=int(transcendentals),
                                      bytes_accessed=int(bytes_accessed)),
    )(patches, w_prep)


# ---------------------------------------------------------------------------
# Thin layout glue (tiny tensors, plain JAX / XLA)
# ---------------------------------------------------------------------------
def _dilate_and_pad(x, stride, pad_amt):
    """Zero-dilate by `stride` and pad by `pad_amt` (conv-transpose prologue)."""
    n, h, w, c = x.shape
    if stride > 1:
        xd = jnp.zeros((n, (h - 1) * stride + 1, (w - 1) * stride + 1, c), x.dtype)
        xd = xd.at[:, ::stride, ::stride, :].set(x)
    else:
        xd = x
    return jnp.pad(xd, ((0, 0), (pad_amt, pad_amt), (pad_amt, pad_amt), (0, 0)))


def _extract_patches(x_pad, kh, kw, ho, wo):
    """(N, Hp, Wp, C) -> im2col (N*Ho*Wo, kh*kw*C), (ky,kx) row-major, C fastest."""
    n, _, _, c = x_pad.shape
    taps = []
    for ky in range(kh):
        for kx in range(kw):
            taps.append(x_pad[:, ky:ky + ho, kx:kx + wo, :])
    patches = jnp.concatenate(taps, axis=-1)            # (N, Ho, Wo, kh*kw*C)
    return patches.reshape(n * ho * wo, kh * kw * c)


# ---------------------------------------------------------------------------
# One-time weight preparation (out of the forward pass)
# ---------------------------------------------------------------------------
def prepare_weights(params):
    """PyTorch ConvTranspose2d weights (Cin, Cout, kH, kW) -> spatially flipped
    conv taps reshaped to (kh*kw*Cin_pad, Cout_pad), bf16, 128-lane padded.
    Also returns the static per-layer metadata used by the forward pass."""
    n_layers = len(params)
    weights, metas = [], []
    cin_prev_pad = _round_up(params[0].shape[0], LANE)           # padded latent
    for li, w_pt in enumerate(params):
        cin, cout, kh, kw = w_pt.shape
        cpad = _round_up(cout, LANE)
        # wf[ky,kx,ci,co] = w_pt[ci,co,kh-1-ky,kw-1-kx]
        w = jnp.flip(jnp.transpose(w_pt, (2, 3, 0, 1)), axis=(0, 1))
        w = jnp.pad(w, ((0, 0), (0, 0),
                        (0, cin_prev_pad - cin), (0, cpad - cout)))
        w = w.reshape(kh * kw * cin_prev_pad, cpad).astype(MATMUL_DTYPE)
        weights.append(w)
        stride, pad = (1, 0) if li == 0 else (2, 1)
        activation = "tanh" if li == n_layers - 1 else "bn_relu"
        metas.append((cout, kh, stride, pad, activation))
        cin_prev_pad = cpad
    return tuple(weights), tuple(metas)


# ---------------------------------------------------------------------------
# Deterministic parameter construction (shapes/init per Generator.__init__)
# ---------------------------------------------------------------------------
def init_generator_params(key, latent_dims, deconv_params, out_channels):
    params = []
    # first block: latent -> f0, kaiming_normal(relu); PyTorch fan_in = Cout*k*k
    p0 = deconv_params[0]
    key, sub = jax.random.split(key)
    std = (2.0 / (p0.filters * p0.kernel_size ** 2)) ** 0.5
    params.append(std * jax.random.normal(
        sub, (latent_dims, p0.filters, p0.kernel_size, p0.kernel_size), jnp.float32))
    # middle blocks (stride 2, pad 1), kaiming_normal(relu)
    for prev_p, p in zip(deconv_params[:-1], deconv_params[1:]):
        key, sub = jax.random.split(key)
        std = (2.0 / (p.filters * p.kernel_size ** 2)) ** 0.5
        params.append(std * jax.random.normal(
            sub, (prev_p.filters, p.filters, p.kernel_size, p.kernel_size), jnp.float32))
    # final block: f_last -> out_channels, xavier_normal
    p = deconv_params[-1]
    key, sub = jax.random.split(key)
    fan_in = out_channels * p.kernel_size ** 2
    fan_out = p.filters * p.kernel_size ** 2
    std = (2.0 / (fan_in + fan_out)) ** 0.5
    params.append(std * jax.random.normal(
        sub, (p.filters, out_channels, p.kernel_size, p.kernel_size), jnp.float32))
    return params


# ---------------------------------------------------------------------------
# Forward pass
# ---------------------------------------------------------------------------
def generator_forward(z, weights, metas):
    """z: (N, latent_dims) -> images (N, out_channels, H, W), like the module."""
    n = z.shape[0]
    k0 = metas[0][1]
    cin0_pad = weights[0].shape[0] // (k0 * k0)
    # unsqueeze(-1).unsqueeze(-1) -> NHWC, channels padded to 128 lanes
    x = z[:, None, None, :]
    x = jnp.pad(x, ((0, 0), (0, 0), (0, 0), (0, cin0_pad - x.shape[-1])))
    for w_prep, (cout, k, stride, pad, activation) in zip(weights, metas):
        h_in, w_in = x.shape[1], x.shape[2]
        ho = (h_in - 1) * stride - 2 * pad + k
        wo = (w_in - 1) * stride - 2 * pad + k
        # conv-transpose == zero-dilate + pad(k-1-p) + VALID conv w/ flipped taps
        x_pad = _dilate_and_pad(x, stride, k - 1 - pad)
        patches = _extract_patches(x_pad, k, k, ho, wo).astype(MATMUL_DTYPE)
        y2d = _deconv_layer_call(patches, w_prep, activation)      # (M, 128) f32
        x = y2d.reshape(n, ho, wo, w_prep.shape[1])                # stay 128-padded
    cout_last = metas[-1][0]
    return jnp.transpose(x[..., :cout_last], (0, 3, 1, 2))         # NHWC -> NCHW


# ---------------------------------------------------------------------------
# Pure-JAX reference (NCHW, lax.conv_general_dilated) for correctness checks
# ---------------------------------------------------------------------------
def _ref_conv_transpose(x_nchw, w_pt, stride, pad, conv_dtype):
    kh = w_pt.shape[2]
    rhs = jnp.flip(jnp.transpose(w_pt, (1, 0, 2, 3)), axis=(2, 3))  # (Cout,Cin,kH,kW)
    return jax.lax.conv_general_dilated(
        x_nchw.astype(conv_dtype), rhs.astype(conv_dtype),
        window_strides=(1, 1),
        padding=[(kh - 1 - pad, kh - 1 - pad)] * 2,
        lhs_dilation=(stride, stride),
        dimension_numbers=("NCHW", "OIHW", "NCHW"),
        preferred_element_type=jnp.float32)


def _ref_bn_relu(x_nchw):
    mean = jnp.mean(x_nchw, axis=(0, 2, 3), keepdims=True)
    var = jnp.mean((x_nchw - mean) ** 2, axis=(0, 2, 3), keepdims=True)
    return jnp.maximum((x_nchw - mean) * jax.lax.rsqrt(var + BN_EPS), 0.0)


def ref_forward(z, params, conv_dtype=jnp.float32):
    x = z[:, :, None, None]
    x = _ref_bn_relu(_ref_conv_transpose(x, params[0], 1, 0, conv_dtype))
    for w in params[1:-1]:
        x = _ref_bn_relu(_ref_conv_transpose(x, w, 2, 1, conv_dtype))
    return jnp.tanh(_ref_conv_transpose(x, params[-1], 2, 1, conv_dtype))


if __name__ == "__main__":
    latent_dims = 16
    deconv_params = [DeconvParam(filters=32, kernel_size=4),
                     DeconvParam(filters=16, kernel_size=4)]
    out_channels = 3
    batch = 2

    key = jax.random.PRNGKey(0)
    kz, kp = jax.random.split(key)
    z = jax.random.normal(kz, (batch, latent_dims), jnp.float32)
    params = init_generator_params(kp, latent_dims, deconv_params, out_channels)

    weights, metas = prepare_weights(params)            # one-time weight prep

    fwd = jax.jit(generator_forward, static_argnames=("metas",))
    out = jax.block_until_ready(fwd(z, weights, metas=metas))       # (2,3,16,16)
    assert out.shape == (batch, out_channels, 16, 16), out.shape

    # Primary correctness gate: reference with the same bf16 MXU operands
    # (isolates kernel structure from the intentional bf16 quantization).
    ref_bf16 = jax.block_until_ready(ref_forward(z, params, jnp.bfloat16))
    err_bf16 = float(jnp.max(jnp.abs(out - ref_bf16)))
    assert jnp.allclose(out, ref_bf16, rtol=2e-3, atol=2e-3), err_bf16

    # Sanity check vs. the full-f32 module semantics (loose: bf16 MXU operands).
    ref_f32 = jax.block_until_ready(ref_forward(z, params, jnp.float32))
    err_f32 = float(jnp.max(jnp.abs(out - ref_f32)))
    assert jnp.allclose(out, ref_f32, rtol=1e-1, atol=1e-1), err_f32

    print("KERNEL_OK")
</pallas_src>

<mosaic_0001>
module attributes {stable_mosaic.version = 11 : i64} {
  func.func @_fused_deconv_kernel(%arg0: i32, %arg1: memref<32x2048xbf16, #tpu.memory_space<vmem>>, %arg2: memref<2048x128xbf16, #tpu.memory_space<vmem>>, %arg3: memref<32x128xf32, #tpu.memory_space<vmem>>) attributes {dimension_semantics = [#tpu.dimension_semantics<arbitrary>], iteration_bounds = array<i64: 1>, scalar_prefetch = 0 : i64, scratch_operands = 0 : i64, tpu.core_type = #tpu.core_type<tc>, window_params = [{pipeline_mode = #tpu.pipeline_mode<synchronous>, transform_indices = @transform_0, window_bounds = array<i64: 32, 2048>}, {pipeline_mode = #tpu.pipeline_mode<synchronous>, transform_indices = @transform_1, window_bounds = array<i64: 2048, 128>}, {pipeline_mode = #tpu.pipeline_mode<synchronous>, transform_indices = @transform_2, window_bounds = array<i64: 32, 128>}]} {
    %c0 = arith.constant 0 : index
    %c0_0 = arith.constant 0 : index
    %0 = vector.load %arg1[%c0, %c0_0] : memref<32x2048xbf16, #tpu.memory_space<vmem>>, vector<32x2048xbf16>
    %c0_1 = arith.constant 0 : index
    %c0_2 = arith.constant 0 : index
    %1 = vector.load %arg2[%c0_1, %c0_2] : memref<2048x128xbf16, #tpu.memory_space<vmem>>, vector<2048x128xbf16>
    %cst = arith.constant dense<0.000000e+00> : vector<32x128xf32>
    %2 = tpu.matmul %0, %1, %cst {dimension_numbers = #tpu.dot_dimension_numbers<[1], [0], [0], [1], [0, 0, 1, 1], [], []>} : vector<32x2048xbf16>, vector<2048x128xbf16>, vector<32x128xf32> -> vector<32x128xf32>
    %cst_3 = arith.constant dense<0.000000e+00> : vector<128xf32>
    %3 = vector.multi_reduction <add>, %2, %cst_3 [0] : vector<32x128xf32> to vector<128xf32>
    %4 = vector.shape_cast %3 : vector<128xf32> to vector<1x128xf32>
    %cst_4 = arith.constant 3.200000e+01 : f32
    %5 = vector.broadcast %cst_4 : f32 to vector<1x128xf32>
    %6 = arith.divf %4, %5 : vector<1x128xf32>
    %7 = vector.broadcast %6 : vector<1x128xf32> to vector<32x128xf32>
    %8 = arith.subf %2, %7 : vector<32x128xf32>
    %9 = arith.mulf %8, %8 : vector<32x128xf32>
    %cst_5 = arith.constant dense<0.000000e+00> : vector<128xf32>
    %10 = vector.multi_reduction <add>, %9, %cst_5 [0] : vector<32x128xf32> to vector<128xf32>
    %11 = vector.shape_cast %10 : vector<128xf32> to vector<1x128xf32>
    %cst_6 = arith.constant 3.200000e+01 : f32
    %12 = vector.broadcast %cst_6 : f32 to vector<1x128xf32>
    %13 = arith.divf %11, %12 : vector<1x128xf32>
    %cst_7 = arith.constant 9.99999974E-6 : f32
    %14 = vector.broadcast %cst_7 : f32 to vector<1x128xf32>
    %15 = arith.addf %13, %14 : vector<1x128xf32>
    %16 = math.rsqrt %15 : vector<1x128xf32>
    %17 = vector.broadcast %16 : vector<1x128xf32> to vector<32x128xf32>
    %18 = arith.mulf %8, %17 : vector<32x128xf32>
    %cst_8 = arith.constant 0.000000e+00 : f32
    %19 = vector.broadcast %cst_8 : f32 to vector<32x128xf32>
    %20 = arith.maximumf %18, %19 : vector<32x128xf32>
    %c0_9 = arith.constant 0 : index
    %c0_10 = arith.constant 0 : index
    %21 = vector.load %arg3[%c0_9, %c0_10] : memref<32x128xf32, #tpu.memory_space<vmem>>, vector<32x128xf32>
    tpu.vector_store %arg3[%c0_9, %c0_10], %20 {strides = array<i32>} : memref<32x128xf32, #tpu.memory_space<vmem>>, vector<32x128xf32>,
    return
  }
  func.func @transform_0(%arg0: i32) -> (i32, i32) {
    %c0_i32 = arith.constant 0 : i32
    %c0_i32_0 = arith.constant 0 : i32
    %c0_i32_1 = arith.constant 0 : i32
    return %c0_i32, %c0_i32_0 : i32, i32
  }
  func.func @transform_1(%arg0: i32) -> (i32, i32) {
    %c0_i32 = arith.constant 0 : i32
    %c0_i32_0 = arith.constant 0 : i32
    %c0_i32_1 = arith.constant 0 : i32
    return %c0_i32, %c0_i32_0 : i32, i32
  }
  func.func @transform_2(%arg0: i32) -> (i32, i32) {
    %c0_i32 = arith.constant 0 : i32
    %c0_i32_0 = arith.constant 0 : i32
    %c0_i32_1 = arith.constant 0 : i32
    return %c0_i32, %c0_i32_0 : i32, i32
  }
}

module attributes {stable_mosaic.version = 11 : i64} {
  func.func @_fused_deconv_kernel(%arg0: i32, %arg1: memref<128x2048xbf16, #tpu.memory_space<vmem>>, %arg2: memref<2048x128xbf16, #tpu.memory_space<vmem>>, %arg3: memref<128x128xf32, #tpu.memory_space<vmem>>) attributes {dimension_semantics = [#tpu.dimension_semantics<arbitrary>], iteration_bounds = array<i64: 1>, scalar_prefetch = 0 : i64, scratch_operands = 0 : i64, tpu.core_type = #tpu.core_type<tc>, window_params = [{pipeline_mode = #tpu.pipeline_mode<synchronous>, transform_indices = @transform_0, window_bounds = array<i64: 128, 2048>}, {pipeline_mode = #tpu.pipeline_mode<synchronous>, transform_indices = @transform_1, window_bounds = array<i64: 2048, 128>}, {pipeline_mode = #tpu.pipeline_mode<synchronous>, transform_indices = @transform_2, window_bounds = array<i64: 128, 128>}]} {
    %c0 = arith.constant 0 : index
    %c0_0 = arith.constant 0 : index
    %0 = vector.load %arg1[%c0, %c0_0] : memref<128x2048xbf16, #tpu.memory_space<vmem>>, vector<128x2048xbf16>
    %c0_1 = arith.constant 0 : index
    %c0_2 = arith.constant 0 : index
    %1 = vector.load %arg2[%c0_1, %c0_2] : memref<2048x128xbf16, #tpu.memory_space<vmem>>, vector<2048x128xbf16>
    %cst = arith.constant dense<0.000000e+00> : vector<128x128xf32>
    %2 = tpu.matmul %0, %1, %cst {dimension_numbers = #tpu.dot_dimension_numbers<[1], [0], [0], [1], [0, 0, 1, 1], [], []>} : vector<128x2048xbf16>, vector<2048x128xbf16>, vector<128x128xf32> -> vector<128x128xf32>
    %cst_3 = arith.constant dense<0.000000e+00> : vector<128xf32>
    %3 = vector.multi_reduction <add>, %2, %cst_3 [0] : vector<128x128xf32> to vector<128xf32>
    %4 = vector.shape_cast %3 : vector<128xf32> to vector<1x128xf32>
    %cst_4 = arith.constant 1.280000e+02 : f32
    %5 = vector.broadcast %cst_4 : f32 to vector<1x128xf32>
    %6 = arith.divf %4, %5 : vector<1x128xf32>
    %7 = vector.broadcast %6 : vector<1x128xf32> to vector<128x128xf32>
    %8 = arith.subf %2, %7 : vector<128x128xf32>
    %9 = arith.mulf %8, %8 : vector<128x128xf32>
    %cst_5 = arith.constant dense<0.000000e+00> : vector<128xf32>
    %10 = vector.multi_reduction <add>, %9, %cst_5 [0] : vector<128x128xf32> to vector<128xf32>
    %11 = vector.shape_cast %10 : vector<128xf32> to vector<1x128xf32>
    %cst_6 = arith.constant 1.280000e+02 : f32
    %12 = vector.broadcast %cst_6 : f32 to vector<1x128xf32>
    %13 = arith.divf %11, %12 : vector<1x128xf32>
    %cst_7 = arith.constant 9.99999974E-6 : f32
    %14 = vector.broadcast %cst_7 : f32 to vector<1x128xf32>
    %15 = arith.addf %13, %14 : vector<1x128xf32>
    %16 = math.rsqrt %15 : vector<1x128xf32>
    %17 = vector.broadcast %16 : vector<1x128xf32> to vector<128x128xf32>
    %18 = arith.mulf %8, %17 : vector<128x128xf32>
    %cst_8 = arith.constant 0.000000e+00 : f32
    %19 = vector.broadcast %cst_8 : f32 to vector<128x128xf32>
    %20 = arith.maximumf %18, %19 : vector<128x128xf32>
    %c0_9 = arith.constant 0 : index
    %c0_10 = arith.constant 0 : index
    %21 = vector.load %arg3[%c0_9, %c0_10] : memref<128x128xf32, #tpu.memory_space<vmem>>, vector<128x128xf32>
    tpu.vector_store %arg3[%c0_9, %c0_10], %20 {strides = array<i32>} : memref<128x128xf32, #tpu.memory_space<vmem>>, vector<128x128xf32>,
    return
  }
  func.func @transform_0(%arg0: i32) -> (i32, i32) {
    %c0_i32 = arith.constant 0 : i32
    %c0_i32_0 = arith.constant 0 : i32
    %c0_i32_1 = arith.constant 0 : i32
    return %c0_i32, %c0_i32_0 : i32, i32
  }
  func.func @transform_1(%arg0: i32) -> (i32, i32) {
    %c0_i32 = arith.constant 0 : i32
    %c0_i32_0 = arith.constant 0 : i32
    %c0_i32_1 = arith.constant 0 : i32
    return %c0_i32, %c0_i32_0 : i32, i32
  }
  func.func @transform_2(%arg0: i32) -> (i32, i32) {
    %c0_i32 = arith.constant 0 : i32
    %c0_i32_0 = arith.constant 0 : i32
    %c0_i32_1 = arith.constant 0 : i32
    return %c0_i32, %c0_i32_0 : i32, i32
  }
}

module attributes {stable_mosaic.version = 11 : i64} {
  func.func @_fused_deconv_kernel(%arg0: i32, %arg1: memref<512x2048xbf16, #tpu.memory_space<vmem>>, %arg2: memref<2048x128xbf16, #tpu.memory_space<vmem>>, %arg3: memref<512x128xf32, #tpu.memory_space<vmem>>) attributes {dimension_semantics = [#tpu.dimension_semantics<arbitrary>], iteration_bounds = array<i64: 1>, scalar_prefetch = 0 : i64, scratch_operands = 0 : i64, tpu.core_type = #tpu.core_type<tc>, window_params = [{pipeline_mode = #tpu.pipeline_mode<synchronous>, transform_indices = @transform_0, window_bounds = array<i64: 512, 2048>}, {pipeline_mode = #tpu.pipeline_mode<synchronous>, transform_indices = @transform_1, window_bounds = array<i64: 2048, 128>}, {pipeline_mode = #tpu.pipeline_mode<synchronous>, transform_indices = @transform_2, window_bounds = array<i64: 512, 128>}]} {
    %c0 = arith.constant 0 : index
    %c0_0 = arith.constant 0 : index
    %0 = vector.load %arg1[%c0, %c0_0] : memref<512x2048xbf16, #tpu.memory_space<vmem>>, vector<512x2048xbf16>
    %c0_1 = arith.constant 0 : index
    %c0_2 = arith.constant 0 : index
    %1 = vector.load %arg2[%c0_1, %c0_2] : memref<2048x128xbf16, #tpu.memory_space<vmem>>, vector<2048x128xbf16>
    %cst = arith.constant dense<0.000000e+00> : vector<512x128xf32>
    %2 = tpu.matmul %0, %1, %cst {dimension_numbers = #tpu.dot_dimension_numbers<[1], [0], [0], [1], [0, 0, 1, 1], [], []>} : vector<512x2048xbf16>, vector<2048x128xbf16>, vector<512x128xf32> -> vector<512x128xf32>
    %3 = math.tanh %2 : vector<512x128xf32>
    %c0_3 = arith.constant 0 : index
    %c0_4 = arith.constant 0 : index
    %4 = vector.load %arg3[%c0_3, %c0_4] : memref<512x128xf32, #tpu.memory_space<vmem>>, vector<512x128xf32>
    tpu.vector_store %arg3[%c0_3, %c0_4], %3 {strides = array<i32>} : memref<512x128xf32, #tpu.memory_space<vmem>>, vector<512x128xf32>,
    return
  }
  func.func @transform_0(%arg0: i32) -> (i32, i32) {
    %c0_i32 = arith.constant 0 : i32
    %c0_i32_0 = arith.constant 0 : i32
    %c0_i32_1 = arith.constant 0 : i32
    return %c0_i32, %c0_i32_0 : i32, i32
  }
  func.func @transform_1(%arg0: i32) -> (i32, i32) {
    %c0_i32 = arith.constant 0 : i32
    %c0_i32_0 = arith.constant 0 : i32
    %c0_i32_1 = arith.constant 0 : i32
    return %c0_i32, %c0_i32_0 : i32, i32
  }
  func.func @transform_2(%arg0: i32) -> (i32, i32) {
    %c0_i32 = arith.constant 0 : i32
    %c0_i32_0 = arith.constant 0 : i32
    %c0_i32_1 = arith.constant 0 : i32
    return %c0_i32, %c0_i32_0 : i32, i32
  }
}

</mosaic_0001>

<bundles_post_ra>
// kernel: generator_forward.3
= control target key start
LH: loop header
LB: loop body
LE: loop exit
PB: predicated region body
PF: predicated region fallthrough
CT: control target
= control target key end

     0   :  { %7 = vsyncpa [#allocation3], 0  ;;  %s2444_s12 = smov [#allocation2]   ;;  %s2445_s14 = smov 64   ;;  %s2670_s0 = inlined_call_operand.vmem [shape: bf16[32,2048], index: 0, kind: input, shape index: {}]   ;;  %s2671_s1 = inlined_call_operand.hbm [shape: bf16[2048,128], index: 1, kind: input, shape index: {}]   ;;  %s2672_s2 = inlined_call_operand.vmem [shape: f32[32,128], index: 2, kind: output, shape index: {}]  }
   0x1   :  { %s14_s11 = sshll.u32 %s2671_s1, 4  ;;  %s16_s13 = sshll.u32 %s2444_s12, 4  ;;  %s15_s11 = int_to_ptr.hbm [resolvable:$true] %s14_s11  ;;  %s17_s13 = int_to_ptr.vmem [resolvable:$true] %s16_s13 }
   0x2   :  { %s2446_s15 = smov 4  }
   0x3   :  { %22 = dma.hbm_to_vmem [thread:$0]  %s15_s11, 16384, %s17_s13, [#allocation3], %s2445_s14, %s2445_s14, %s2446_s15  }
   0x4   :  { %2442 = dma.done.wait [#allocation3], 16384  }
   0x5   :  { %2443 = vsyncadd [#allocation3], 4294950912  ;;  %v2289_v0 = vld [vmem:[#allocation2 + $0x38] sm:$0xff]  ;;  %v2288_v4 = vld [vmem:[#allocation2 + $0x30] sm:$0xff] }
   0x6   :  { %v2297_v1 = vld [vmem:[#allocation2 + $0x78] sm:$0xff]  ;;  %1243 = vmatpush.bf16.msra.mxu0 %v2289_v0  ;;  %v2296_v5 = vld [vmem:[#allocation2 + $0x70] sm:$0xff]  ;;  %v2287_v8 = vld [vmem:[#allocation2 + $0x28] sm:$0xff] }
   0x7   :  { %v2305_v2 = vld [vmem:[#allocation2 + $0xb8] sm:$0xff]  ;;  %1262 = vmatpush.bf16.msra.mxu1 %v2297_v1  ;;  %v2304_v6 = vld [vmem:[#allocation2 + $0xb0] sm:$0xff]  ;;  %v2295_v9 = vld [vmem:[#allocation2 + $0x68] sm:$0xff] }
   0x8   :  { %v2313_v3 = vld [vmem:[#allocation2 + $0xf8] sm:$0xff]  ;;  %1281 = vmatpush.bf16.msra.mxu2 %v2305_v2  ;;  %v2312_v7 = vld [vmem:[#allocation2 + $0xf0] sm:$0xff]  ;;  %v2303_v10 = vld [vmem:[#allocation2 + $0xa8] sm:$0xff] }
   0x9   :  { %1300 = vmatpush.bf16.msra.mxu3 %v2313_v3  ;;  %v2311_v11 = vld [vmem:[#allocation2 + $0xe8] sm:$0xff]  ;;  %v2286_v12 = vld [vmem:[#allocation2 + $0x20] sm:$0xff]  ;;  %v2285_v16 = vld [vmem:[#allocation2 + $0x18] sm:$0xff] }
   0xa   :  { %1244 = vmatpush.bf16.msra.mxu0 %v2288_v4  ;;  %v2294_v13 = vld [vmem:[#allocation2 + $0x60] sm:$0xff]  ;;  %v2293_v17 = vld [vmem:[#allocation2 + $0x58] sm:$0xff]  ;;  %v2284_v20 = vld [vmem:[#allocation2 + $0x10] sm:$0xff] }
   0xb   :  { %1263 = vmatpush.bf16.msra.mxu1 %v2296_v5  ;;  %v2302_v14 = vld [vmem:[#allocation2 + $0xa0] sm:$0xff]  ;;  %v2301_v18 = vld [vmem:[#allocation2 + $0x98] sm:$0xff]  ;;  %v2292_v21 = vld [vmem:[#allocation2 + $0x50] sm:$0xff] }
   0xc   :  { %1282 = vmatpush.bf16.msra.mxu2 %v2304_v6  ;;  %v2310_v15 = vld [vmem:[#allocation2 + $0xe0] sm:$0xff]  ;;  %v2309_v19 = vld [vmem:[#allocation2 + $0xd8] sm:$0xff]  ;;  %v2300_v22 = vld [vmem:[#allocation2 + $0x90] sm:$0xff] }
   0xd   :  { %1301 = vmatpush.bf16.msra.mxu3 %v2312_v7  ;;  %v2308_v23 = vld [vmem:[#allocation2 + $0xd0] sm:$0xff]  ;;  %v2283_v24 = vld [vmem:[#allocation2 + $0x8] sm:$0xff]  ;;  %v2282_v28 = vld [vmem:[#allocation2] sm:$0xff] }
   0xe   :  { %1245 = vmatpush.bf16.msra.mxu0 %v2287_v8  ;;  %v2291_v25 = vld [vmem:[#allocation2 + $0x48] sm:$0xff]  ;;  %v2290_v29 = vld [vmem:[#allocation2 + $0x40] sm:$0xff]  ;;  %v2337_v40 = vld [vmem:[#allocation2 + $0x1b8] sm:$0xff] }
   0xf   :  { %1264 = vmatpush.bf16.msra.mxu1 %v2295_v9  ;;  %v2299_v26 = vld [vmem:[#allocation2 + $0x88] sm:$0xff]  ;;  %v2298_v30 = vld [vmem:[#allocation2 + $0x80] sm:$0xff]  ;;  %v2321_v41 = vld [vmem:[#allocation2 + $0x138] sm:$0xff] }
  0x10   :  { %1283 = vmatpush.bf16.msra.mxu2 %v2303_v10  ;;  %v2307_v27 = vld [vmem:[#allocation2 + $0xc8] sm:$0xff]  ;;  %v2306_v31 = vld [vmem:[#allocation2 + $0xc0] sm:$0xff]  ;;  %v2329_v46 = vld [vmem:[#allocation2 + $0x178] sm:$0xff] }
  0x11   :  { %1302 = vmatpush.bf16.msra.mxu3 %v2311_v11  ;;  %v1612_v32 = vld [vmem:[%s2670_s0] sm:$0xf]  ;;  %v2250_v34 = vld [vmem:[%s2670_s0 + $0x4] sm:$0xf]  ;;  %v1620_v36 = vld [vmem:[%s2670_s0 + $0x8] sm:$0xf] }
  0x12   :  { %1246 = vmatpush.bf16.msra.mxu0 %v2286_v12  ;;  %v2258_v33 = vld [vmem:[%s2670_s0 + $0x3c] sm:$0xf0]  ;;  %v1614_v35 = vld [vmem:[%s2670_s0 + $0x40] sm:$0xf0]  ;;  %v2259_v37 = vld [vmem:[%s2670_s0 + $0x44] sm:$0xf0] }
  0x13   :  { %1265 = vmatpush.bf16.msra.mxu1 %v2294_v13  ;;  %v2251_v38 = vld [vmem:[%s2670_s0 + $0xc] sm:$0xf]  ;;  %v1613_v42 = vor.u32 %v2258_v33, %v1612_v32  ;;  %v1617_v43 = vor.u32 %v2250_v34, %v1614_v35  ;;  %v1621_v44 = vor.u32 %v2259_v37, %v1620_v36  ;;  %v2345_v47 = vld [vmem:[#allocation2 + $0x1f8] sm:$0xff]  ;;  %v2336_v48 = vld [vmem:[#allocation2 + $0x1b0] sm:$0xff] }
  0x14   :  { %1284 = vmatpush.bf16.msra.mxu2 %v2302_v14  ;;  %v1622_v39 = vld [vmem:[%s2670_s0 + $0x48] sm:$0xf0]  ;;  %v2320_v49 = vld [vmem:[#allocation2 + $0x130] sm:$0xff]  ;;  %v2334_v56 = vld [vmem:[#allocation2 + $0x1a0] sm:$0xff] }
  0x15   :  { %1303 = vmatpush.bf16.msra.mxu3 %v2310_v15  ;;  %v1625_v45 = vor.u32 %v2251_v38, %v1622_v39  ;;  %v2328_v50 = vld [vmem:[#allocation2 + $0x170] sm:$0xff]  ;;  %v2335_v52 = vld [vmem:[#allocation2 + $0x1a8] sm:$0xff]  ;;  %v2318_v57 = vld [vmem:[#allocation2 + $0x120] sm:$0xff] }
  0x16   :  { %1247 = vmatpush.bf16.msra.mxu0 %v2285_v16  ;;  %v2344_v51 = vld [vmem:[#allocation2 + $0x1f0] sm:$0xff]  ;;  %v2319_v53 = vld [vmem:[#allocation2 + $0x128] sm:$0xff]  ;;  %v2326_v58 = vld [vmem:[#allocation2 + $0x160] sm:$0xff] }
  0x17   :  { %1266 = vmatpush.bf16.msra.mxu1 %v2293_v17  ;;  %v2327_v54 = vld [vmem:[#allocation2 + $0x168] sm:$0xff]  ;;  %v2342_v59 = vld [vmem:[#allocation2 + $0x1e0] sm:$0xff]  ;;  %v2333_v4 = vld [vmem:[#allocation2 + $0x198] sm:$0xff] }
  0x18   :  { %1285 = vmatpush.bf16.msra.mxu2 %v2301_v18  ;;  %v2343_v55 = vld [vmem:[#allocation2 + $0x1e8] sm:$0xff]  ;;  %v1676_v60 = vld [vmem:[%s2670_s0 + $0x80] sm:$0xf]  ;;  %v2266_v62 = vld [vmem:[%s2670_s0 + $0x84] sm:$0xf] }
  0x19   :  { %1304 = vmatpush.bf16.msra.mxu3 %v2309_v19  ;;  %v2274_v61 = vld [vmem:[%s2670_s0 + $0xbc] sm:$0xf0]  ;;  %v1678_v63 = vld [vmem:[%s2670_s0 + $0xc0] sm:$0xf0]  ;;  %v1684_v0 = vld [vmem:[%s2670_s0 + $0x88] sm:$0xf] }
  0x1a   :  { %1248 = vmatpush.bf16.msra.mxu0 %v2284_v20  ;;  %v2275_v1 = vld [vmem:[%s2670_s0 + $0xc4] sm:$0xf0]  ;;  %v2267_v2 = vld [vmem:[%s2670_s0 + $0x8c] sm:$0xf]  ;;  %v2317_v5 = vld [vmem:[#allocation2 + $0x118] sm:$0xff]  ;;  %v1677_v6 = vor.u32 %v2274_v61, %v1676_v60  ;;  %v1681_v7 = vor.u32 %v2266_v62, %v1678_v63 }
  0x1b   :  { %1267 = vmatpush.bf16.msra.mxu1 %v2292_v21  ;;  %v1686_v3 = vld [vmem:[%s2670_s0 + $0xc8] sm:$0xf0]  ;;  %v1685_v8 = vor.u32 %v2275_v1, %v1684_v0  ;;  %v2325_v10 = vld [vmem:[#allocation2 + $0x158] sm:$0xff]  ;;  %v2332_v12 = vld [vmem:[#allocation2 + $0x190] sm:$0xff] }
  0x1c   :  { %1286 = vmatpush.bf16.msra.mxu2 %v2300_v22  ;;  %v1689_v9 = vor.u32 %v2267_v2, %v1686_v3  ;;  %v2341_v11 = vld [vmem:[#allocation2 + $0x1d8] sm:$0xff]  ;;  %v2316_v13 = vld [vmem:[#allocation2 + $0x110] sm:$0xff]  ;;  %v2331_v16 = vld [vmem:[#allocation2 + $0x188] sm:$0xff] }
  0x1d   :  { %1305 = vmatpush.bf16.msra.mxu3 %v2308_v23  ;;  %v2324_v14 = vld [vmem:[#allocation2 + $0x150] sm:$0xff]  ;;  %v2315_v17 = vld [vmem:[#allocation2 + $0x108] sm:$0xff]  ;;  %v2330_v20 = vld [vmem:[#allocation2 + $0x180] sm:$0xff] }
  0x1e   :  { %1249 = vmatpush.bf16.msra.mxu0 %v2283_v24  ;;  %v2340_v15 = vld [vmem:[#allocation2 + $0x1d0] sm:$0xff]  ;;  %v2323_v18 = vld [vmem:[#allocation2 + $0x148] sm:$0xff]  ;;  %v2314_v21 = vld [vmem:[#allocation2 + $0x100] sm:$0xff] }
  0x1f   :  { %1268 = vmatpush.bf16.msra.mxu1 %v2291_v25  ;;  %v2339_v19 = vld [vmem:[#allocation2 + $0x1c8] sm:$0xff]  ;;  %v2322_v22 = vld [vmem:[#allocation2 + $0x140] sm:$0xff]  ;;  %v1628_v24 = vld [vmem:[%s2670_s0 + $0x10] sm:$0xf] }
  0x20   :  { %1287 = vmatpush.bf16.msra.mxu2 %v2299_v26  ;;  %v2338_v23 = vld [vmem:[#allocation2 + $0x1c0] sm:$0xff]  ;;  %v2369_v25 = vld [vmem:[#allocation2 + $0x2b8] sm:$0xff]  ;;  %v2368_v37 = vld [vmem:[#allocation2 + $0x2b0] sm:$0xff] }
  0x21   :  { %1306 = vmatpush.bf16.msra.mxu3 %v2307_v27  ;;  %v2353_v26 = vld [vmem:[#allocation2 + $0x238] sm:$0xff]  ;;  %v2260_v27 = vld [vmem:[%s2670_s0 + $0x4c] sm:$0xf0] }
  0x22   :  { %1250 = vmatpush.bf16.msra.mxu0 %v2282_v28  ;;  %v2252_v28 = vld [vmem:[%s2670_s0 + $0x14] sm:$0xf]  ;;  %v2253_v32 = vld [vmem:[%s2670_s0 + $0x1c] sm:$0xf]  ;;  %v1629_v36 = vor.u32 %v2260_v27, %v1628_v24  ;;  %v1646_v24 = vld [vmem:[%s2670_s0 + $0x60] sm:$0xf0] }
  0x23   :  { %1269 = vmatpush.bf16.msra.mxu1 %v2290_v29  ;;  %v1630_v29 = vld [vmem:[%s2670_s0 + $0x50] sm:$0xf0]  ;;  %v1638_v33 = vld [vmem:[%s2670_s0 + $0x58] sm:$0xf0]  ;;  %v2255_v27 = vld [vmem:[%s2670_s0 + $0x2c] sm:$0xf] }
  0x24   :  { %1288 = vmatpush.bf16.msra.mxu2 %v2298_v30  ;;  %v1636_v30 = vld [vmem:[%s2670_s0 + $0x18] sm:$0xf]  ;;  %v1633_v38 = vor.u32 %v2252_v28, %v1630_v29  ;;  %v1702_v61 = vld [vmem:[%s2670_s0 + $0xd8] sm:$0xf0]  ;;  %v2364_v1 = vld [vmem:[#allocation2 + $0x290] sm:$0xff] }
  0x25   :  { %1307 = vmatpush.bf16.msra.mxu3 %v2306_v31  ;;  %1251 = vmatmul.bf16.vlgmr.msra.gmra.mxu0 %v1613_v42  ;;  %v2261_v31 = vld [vmem:[%s2670_s0 + $0x54] sm:$0xf0]  ;;  %v2360_v42 = vld [vmem:[#allocation2 + $0x270] sm:$0xff]  ;;  %v1654_v28 = vld [vmem:[%s2670_s0 + $0x68] sm:$0xf0] }
  0x26   :  { %1319 = vmatpush.bf16.msrb.mxu0 %v2321_v41  ;;  %1270 = vmatmul.bf16.vlgmr.msra.gmra.mxu1 %v1617_v43  ;;  %v2361_v34 = vld [vmem:[#allocation2 + $0x278] sm:$0xff]  ;;  %v1637_v39 = vor.u32 %v2261_v31, %v1636_v30  ;;  %v2352_v41 = vld [vmem:[#allocation2 + $0x230] sm:$0xff] }
  0x27   :  { %1289 = vmatmul.bf16.vlgmr.msra.gmra.mxu2 %v1621_v44  ;;  %1338 = vmatpush.bf16.msrb.mxu1 %v2329_v46  ;;  %v2377_v35 = vld [vmem:[#allocation2 + $0x2f8] sm:$0xff]  ;;  %v2376_v43 = vld [vmem:[#allocation2 + $0x2f0] sm:$0xff]  ;;  %v2367_v44 = vld [vmem:[#allocation2 + $0x2a8] sm:$0xff] }
  0x28   :  { %1357 = vmatpush.bf16.msrb.mxu2 %v2337_v40  ;;  %1308 = vmatmul.bf16.vlgmr.msra.gmra.mxu3 %v1625_v45  ;;  %v1641_v40 = vor.u32 %v2253_v32, %v1638_v33  ;;  %v2351_v45 = vld [vmem:[#allocation2 + $0x228] sm:$0xff]  ;;  %v2349_v60 = vld [vmem:[#allocation2 + $0x218] sm:$0xff]  ;;  %v2392_v30 = vld [vmem:[#allocation2 + $0x370] sm:$0xff]  ;;  %v1657_v33 = vor.u32 %v2255_v27, %v1654_v28 }
  0x29   :  { %1376 = vmatpush.bf16.msrb.mxu3 %v2345_v47  ;;  %v2359_v46 = vld [vmem:[#allocation2 + $0x268] sm:$0xff]  ;;  %v2357_v62 = vld [vmem:[#allocation2 + $0x258] sm:$0xff] }
  0x2a   :  { %1320 = vmatpush.bf16.msrb.mxu0 %v2320_v49  ;;  %v2375_v47 = vld [vmem:[#allocation2 + $0x2e8] sm:$0xff]  ;;  %v2350_v49 = vld [vmem:[#allocation2 + $0x220] sm:$0xff]  ;;  %v2373_v63 = vld [vmem:[#allocation2 + $0x2d8] sm:$0xff] }
  0x2b   :  { %1339 = vmatpush.bf16.msrb.mxu1 %v2328_v50  ;;  %v2358_v50 = vld [vmem:[#allocation2 + $0x260] sm:$0xff]  ;;  %v1734_v27 = vld [vmem:[%s2670_s0 + $0xf8] sm:$0xf0] }
  0x2c   :  { %1358 = vmatpush.bf16.msrb.mxu2 %v2336_v48  ;;  %v2366_v48 = vld [vmem:[#allocation2 + $0x2a0] sm:$0xff] }
  0x2d   :  { %1377 = vmatpush.bf16.msrb.mxu3 %v2344_v51  ;;  %v2374_v51 = vld [vmem:[#allocation2 + $0x2e0] sm:$0xff] }
  0x2e   :  { %1321 = vmatpush.bf16.msrb.mxu0 %v2319_v53  ;;  %v2276_v53 = vld [vmem:[%s2670_s0 + $0xcc] sm:$0xf0] }
  0x2f   :  { %1340 = vmatpush.bf16.msrb.mxu1 %v2327_v54  ;;  %v2365_v54 = vld [vmem:[#allocation2 + $0x298] sm:$0xff] }
  0x30   :  { %1359 = vmatpush.bf16.msrb.mxu2 %v2335_v52  ;;  %v1692_v52 = vld [vmem:[%s2670_s0 + $0x90] sm:$0xf] }
  0x31   :  { %1378 = vmatpush.bf16.msrb.mxu3 %v2343_v55  ;;  %v2268_v55 = vld [vmem:[%s2670_s0 + $0x94] sm:$0xf]  ;;  %v1693_v0 = vor.u32 %v2276_v53, %v1692_v52  ;;  %v2271_v52 = vld [vmem:[%s2670_s0 + $0xac] sm:$0xf]  ;;  %v2381_v53 = vld [vmem:[#allocation2 + $0x318] sm:$0xff] }
  0x32   :  { %1322 = vmatpush.bf16.msrb.mxu0 %v2318_v57  ;;  %v1700_v57 = vld [vmem:[%s2670_s0 + $0x98] sm:$0xf] }
  0x33   :  { %1341 = vmatpush.bf16.msrb.mxu1 %v2326_v58  ;;  %v2277_v58 = vld [vmem:[%s2670_s0 + $0xd4] sm:$0xf0] }
  0x34   :  { %1360 = vmatpush.bf16.msrb.mxu2 %v2334_v56  ;;  %v1694_v56 = vld [vmem:[%s2670_s0 + $0xd0] sm:$0xf0]  ;;  %v1701_v3 = vor.u32 %v2277_v58, %v1700_v57 }
  0x35   :  { %1379 = vmatpush.bf16.msrb.mxu3 %v2342_v59  ;;  %1256 = vmatmul.bf16.gmra.mxu0 %v1677_v6  ;;  %v2269_v59 = vld [vmem:[%s2670_s0 + $0x9c] sm:$0xf]  ;;  %v1697_v2 = vor.u32 %v2268_v55, %v1694_v56  ;;  %v2356_v6 = vld [vmem:[#allocation2 + $0x250] sm:$0xff] }
  0x36   :  { %1323 = vmatpush.bf16.msrb.mxu0 %v2317_v5  ;;  %1275 = vmatmul.bf16.gmra.mxu1 %v1681_v7  ;;  %v2348_v5 = vld [vmem:[#allocation2 + $0x210] sm:$0xff]  ;;  %v2405_v55 = vld [vmem:[#allocation2 + $0x3d8] sm:$0xff] }
  0x37   :  { %1294 = vmatmul.bf16.gmra.mxu2 %v1685_v8  ;;  %1342 = vmatpush.bf16.msrb.mxu1 %v2325_v10  ;;  %v2372_v7 = vld [vmem:[#allocation2 + $0x2d0] sm:$0xff]  ;;  %v2363_v8 = vld [vmem:[#allocation2 + $0x288] sm:$0xff] }
  0x38   :  { %1361 = vmatpush.bf16.msrb.mxu2 %v2333_v4  ;;  %1313 = vmatmul.bf16.gmra.mxu3 %v1689_v9  ;;  %v1705_v4 = vor.u32 %v2269_v59, %v1702_v61  ;;  %v2347_v9 = vld [vmem:[#allocation2 + $0x208] sm:$0xff]  ;;  %v2396_v56 = vld [vmem:[#allocation2 + $0x390] sm:$0xff] }
  0x39   :  { %1380 = vmatpush.bf16.msrb.mxu3 %v2341_v11  ;;  %v2355_v10 = vld [vmem:[#allocation2 + $0x248] sm:$0xff]  ;;  %v2388_v58 = vld [vmem:[#allocation2 + $0x350] sm:$0xff] }
  0x3a   :  { %1324 = vmatpush.bf16.msrb.mxu0 %v2316_v13  ;;  %v2371_v11 = vld [vmem:[#allocation2 + $0x2c8] sm:$0xff]  ;;  %v2401_v13 = vld [vmem:[#allocation2 + $0x3b8] sm:$0xff] }
  0x3b   :  { %1343 = vmatpush.bf16.msrb.mxu1 %v2324_v14  ;;  %v2346_v14 = vld [vmem:[#allocation2 + $0x200] sm:$0xff] }
  0x3c   :  { %1362 = vmatpush.bf16.msrb.mxu2 %v2332_v12  ;;  %v2362_v12 = vld [vmem:[#allocation2 + $0x280] sm:$0xff] }
  0x3d   :  { %1381 = vmatpush.bf16.msrb.mxu3 %v2340_v15  ;;  %v2354_v15 = vld [vmem:[#allocation2 + $0x240] sm:$0xff] }
  0x3e   :  { %1325 = vmatpush.bf16.msrb.mxu0 %v2315_v17  ;;  %v1644_v17 = vld [vmem:[%s2670_s0 + $0x20] sm:$0xf] }
  0x3f   :  { %1344 = vmatpush.bf16.msrb.mxu1 %v2323_v18  ;;  %v2262_v18 = vld [vmem:[%s2670_s0 + $0x5c] sm:$0xf0] }
  0x40   :  { %1363 = vmatpush.bf16.msrb.mxu2 %v2331_v16  ;;  %v2370_v16 = vld [vmem:[#allocation2 + $0x2c0] sm:$0xff]  ;;  %v1645_v29 = vor.u32 %v2262_v18, %v1644_v17 }
  0x41   :  { %1382 = vmatpush.bf16.msrb.mxu3 %v2339_v19  ;;  %v2385_v19 = vld [vmem:[#allocation2 + $0x338] sm:$0xff] }
  0x42   :  { %1326 = vmatpush.bf16.msrb.mxu0 %v2314_v21  ;;  %v2254_v21 = vld [vmem:[%s2670_s0 + $0x24] sm:$0xf] }
  0x43   :  { %1345 = vmatpush.bf16.msrb.mxu1 %v2322_v22  ;;  %v2409_v22 = vld [vmem:[#allocation2 + $0x3f8] sm:$0xff]  ;;  %v1649_v31 = vor.u32 %v2254_v21, %v1646_v24  ;;  %v2280_v21 = vld [vmem:[%s2670_s0 + $0xec] sm:$0xf0] }
  0x44   :  { %1364 = vmatpush.bf16.msrb.mxu2 %v2330_v20  ;;  %v2393_v20 = vld [vmem:[#allocation2 + $0x378] sm:$0xff] }
  0x45   :  { %1383 = vmatpush.bf16.msrb.mxu3 %v2338_v23  ;;  %1327 = vmatmul.bf16.vlgmr.msrb.gmra.mxu0 %v1629_v36  ;;  %v2400_v23 = vld [vmem:[#allocation2 + $0x3b0] sm:$0xff]  ;;  %v2399_v36 = vld [vmem:[#allocation2 + $0x3a8] sm:$0xff]  ;;  %v1732_v24 = vld [vmem:[%s2670_s0 + $0xb8] sm:$0xf] }
  0x46   :  { %1395 = vmatpush.bf16.msra.mxu0 %v2353_v26  ;;  %1346 = vmatmul.bf16.vlgmr.msrb.gmra.mxu1 %v1633_v38  ;;  %v2263_v26 = vld [vmem:[%s2670_s0 + $0x64] sm:$0xf0] }
  0x47   :  { %1414 = vmatpush.bf16.msra.mxu1 %v2361_v34  ;;  %1365 = vmatmul.bf16.vlgmr.msrb.gmra.mxu2 %v1637_v39  ;;  %v2384_v34 = vld [vmem:[#allocation2 + $0x330] sm:$0xff]  ;;  %v2383_v38 = vld [vmem:[#allocation2 + $0x328] sm:$0xff] }
  0x48   :  { %1433 = vmatpush.bf16.msra.mxu2 %v2369_v25  ;;  %1384 = vmatmul.bf16.vlgmr.msrb.gmra.mxu3 %v1641_v40  ;;  %v1652_v25 = vld [vmem:[%s2670_s0 + $0x28] sm:$0xf]  ;;  %v2398_v40 = vld [vmem:[#allocation2 + $0x3a0] sm:$0xff] }
  0x49   :  { %1452 = vmatpush.bf16.msra.mxu3 %v2377_v35  ;;  %v1653_v32 = vor.u32 %v2263_v26, %v1652_v25  ;;  %v2408_v35 = vld [vmem:[#allocation2 + $0x3f0] sm:$0xff]  ;;  %v2407_v39 = vld [vmem:[#allocation2 + $0x3e8] sm:$0xff]  ;;  %v2281_v25 = vld [vmem:[%s2670_s0 + $0xf4] sm:$0xf0] }
  0x4a   :  { %1396 = vmatpush.bf16.msra.mxu0 %v2352_v41  ;;  %v2390_v41 = vld [vmem:[#allocation2 + $0x360] sm:$0xff]  ;;  %v2273_v26 = vld [vmem:[%s2670_s0 + $0xbc] sm:$0xf] }
  0x4b   :  { %1415 = vmatpush.bf16.msra.mxu1 %v2360_v42  ;;  %v2382_v42 = vld [vmem:[#allocation2 + $0x320] sm:$0xff] }
  0x4c   :  { %1434 = vmatpush.bf16.msra.mxu2 %v2368_v37  ;;  %v2391_v37 = vld [vmem:[#allocation2 + $0x368] sm:$0xff] }
  0x4d   :  { %1453 = vmatpush.bf16.msra.mxu3 %v2376_v43  ;;  %v2406_v43 = vld [vmem:[#allocation2 + $0x3e0] sm:$0xff] }
  0x4e   :  { %1397 = vmatpush.bf16.msra.mxu0 %v2351_v45  ;;  %v1708_v45 = vld [vmem:[%s2670_s0 + $0xa0] sm:$0xf] }
  0x4f   :  { %1416 = vmatpush.bf16.msra.mxu1 %v2359_v46  ;;  %v2278_v46 = vld [vmem:[%s2670_s0 + $0xdc] sm:$0xf0] }
  0x50   :  { %1435 = vmatpush.bf16.msra.mxu2 %v2367_v44  ;;  %v2397_v44 = vld [vmem:[#allocation2 + $0x398] sm:$0xff]  ;;  %v1709_v57 = vor.u32 %v2278_v46, %v1708_v45 }
  0x51   :  { %1454 = vmatpush.bf16.msra.mxu3 %v2375_v47  ;;  %v2389_v47 = vld [vmem:[#allocation2 + $0x358] sm:$0xff] }
  0x52   :  { %1398 = vmatpush.bf16.msra.mxu0 %v2350_v49  ;;  %v1710_v49 = vld [vmem:[%s2670_s0 + $0xe0] sm:$0xf0] }
  0x53   :  { %1417 = vmatpush.bf16.msra.mxu1 %v2358_v50  ;;  %v1716_v50 = vld [vmem:[%s2670_s0 + $0xa8] sm:$0xf] }
  0x54   :  { %1436 = vmatpush.bf16.msra.mxu2 %v2366_v48  ;;  %v2270_v48 = vld [vmem:[%s2670_s0 + $0xa4] sm:$0xf] }
  0x55   :  { %1455 = vmatpush.bf16.msra.mxu3 %v2374_v51  ;;  %1332 = vmatmul.bf16.gmra.mxu0 %v1693_v0  ;;  %v2279_v51 = vld [vmem:[%s2670_s0 + $0xe4] sm:$0xf0]  ;;  %v1713_v59 = vor.u32 %v2270_v48, %v1710_v49 }
  0x56   :  { %1399 = vmatpush.bf16.msra.mxu0 %v2349_v60  ;;  %1351 = vmatmul.bf16.gmra.mxu1 %v1697_v2  ;;  %v1717_v60 = vor.u32 %v2279_v51, %v1716_v50  ;;  %v2395_v0 = vld [vmem:[#allocation2 + $0x388] sm:$0xff] }
  0x57   :  { %1418 = vmatpush.bf16.msra.mxu1 %v2357_v62  ;;  %1370 = vmatmul.bf16.gmra.mxu2 %v1701_v3  ;;  %v2380_v62 = vld [vmem:[#allocation2 + $0x310] sm:$0xff]  ;;  %v2379_v2 = vld [vmem:[#allocation2 + $0x308] sm:$0xff] }
  0x58   :  { %1437 = vmatpush.bf16.msra.mxu2 %v2365_v54  ;;  %1389 = vmatmul.bf16.gmra.mxu3 %v1705_v4  ;;  %v1718_v54 = vld [vmem:[%s2670_s0 + $0xe8] sm:$0xf0]  ;;  %v2394_v4 = vld [vmem:[#allocation2 + $0x380] sm:$0xff] }
  0x59   :  { %1456 = vmatpush.bf16.msra.mxu3 %v2373_v63  ;;  %v1721_v61 = vor.u32 %v2271_v52, %v1718_v54  ;;  %v2404_v63 = vld [vmem:[#allocation2 + $0x3d0] sm:$0xff]  ;;  %v2403_v3 = vld [vmem:[#allocation2 + $0x3c8] sm:$0xff] }
  0x5a   :  { %1400 = vmatpush.bf16.msra.mxu0 %v2348_v5  ;;  %v2386_v5 = vld [vmem:[#allocation2 + $0x340] sm:$0xff] }
  0x5b   :  { %1419 = vmatpush.bf16.msra.mxu1 %v2356_v6  ;;  %v2378_v6 = vld [vmem:[#allocation2 + $0x300] sm:$0xff] }
  0x5c   :  { %1438 = vmatpush.bf16.msra.mxu2 %v2364_v1  ;;  %v2387_v1 = vld [vmem:[#allocation2 + $0x348] sm:$0xff] }
  0x5d   :  { %1457 = vmatpush.bf16.msra.mxu3 %v2372_v7  ;;  %v2402_v7 = vld [vmem:[#allocation2 + $0x3c0] sm:$0xff] }
  0x5e   :  { %1401 = vmatpush.bf16.msra.mxu0 %v2347_v9  ;;  %v2264_v9 = vld [vmem:[%s2670_s0 + $0x6c] sm:$0xf0] }
  0x5f   :  { %1420 = vmatpush.bf16.msra.mxu1 %v2355_v10  ;;  %v2256_v10 = vld [vmem:[%s2670_s0 + $0x34] sm:$0xf] }
  0x60   :  { %1439 = vmatpush.bf16.msra.mxu2 %v2363_v8  ;;  %v1660_v8 = vld [vmem:[%s2670_s0 + $0x30] sm:$0xf] }
  0x61   :  { %1458 = vmatpush.bf16.msra.mxu3 %v2371_v11  ;;  %v1662_v11 = vld [vmem:[%s2670_s0 + $0x70] sm:$0xf0] }
  0x62   :  { %1402 = vmatpush.bf16.msra.mxu0 %v2346_v14  ;;  %v2257_v14 = vld [vmem:[%s2670_s0 + $0x3c] sm:$0xf]  ;;  %v1665_v17 = vor.u32 %v2256_v10, %v1662_v11 }
  0x63   :  { %1421 = vmatpush.bf16.msra.mxu1 %v2354_v15  ;;  %v1670_v15 = vld [vmem:[%s2670_s0 + $0x78] sm:$0xf0] }
  0x64   :  { %1440 = vmatpush.bf16.msra.mxu2 %v2362_v12  ;;  %v1668_v12 = vld [vmem:[%s2670_s0 + $0x38] sm:$0xf] }
  0x65   :  { %1459 = vmatpush.bf16.msra.mxu3 %v2370_v16  ;;  %1403 = vmatmul.bf16.vlgmr.msra.gmra.mxu0 %v1645_v29  ;;  %v1661_v16 = vor.u32 %v2264_v9, %v1660_v8 }
  0x66   :  { %1471 = vmatpush.bf16.msrb.mxu0 %v2385_v19  ;;  %1422 = vmatmul.bf16.vlgmr.msra.gmra.mxu1 %v1649_v31  ;;  %v1673_v19 = vor.u32 %v2257_v14, %v1670_v15  ;;  %v1737_v31 = vor.u32 %v2273_v26, %v1734_v27 }
  0x67   :  { %1490 = vmatpush.bf16.msrb.mxu1 %v2393_v20  ;;  %1441 = vmatmul.bf16.vlgmr.msra.gmra.mxu2 %v1653_v32  ;;  %v1724_v20 = vld [vmem:[%s2670_s0 + $0xb0] sm:$0xf] }
  0x68   :  { %1509 = vmatpush.bf16.msrb.mxu2 %v2401_v13  ;;  %1460 = vmatmul.bf16.vlgmr.msra.gmra.mxu3 %v1657_v33  ;;  %v2265_v13 = vld [vmem:[%s2670_s0 + $0x74] sm:$0xf0]  ;;  %v1725_v28 = vor.u32 %v2280_v21, %v1724_v20 }
  0x69   :  { %1528 = vmatpush.bf16.msrb.mxu3 %v2409_v22  ;;  %v1669_v18 = vor.u32 %v2265_v13, %v1668_v12  ;;  %v2272_v22 = vld [vmem:[%s2670_s0 + $0xb4] sm:$0xf] }
  0x6a   :  { %1472 = vmatpush.bf16.msrb.mxu0 %v2384_v34 }
  0x6b   :  { %1491 = vmatpush.bf16.msrb.mxu1 %v2392_v30  ;;  %v1733_v30 = vor.u32 %v2281_v25, %v1732_v24 }
  0x6c   :  { %1510 = vmatpush.bf16.msrb.mxu2 %v2400_v23  ;;  %v1726_v23 = vld [vmem:[%s2670_s0 + $0xf0] sm:$0xf0] }
  0x6d   :  { %1529 = vmatpush.bf16.msrb.mxu3 %v2408_v35  ;;  %v1729_v29 = vor.u32 %v2272_v22, %v1726_v23 }
  0x6e   :  { %1473 = vmatpush.bf16.msrb.mxu0 %v2383_v38 }
  0x6f   :  { %1492 = vmatpush.bf16.msrb.mxu1 %v2391_v37 }
  0x70   :  { %1511 = vmatpush.bf16.msrb.mxu2 %v2399_v36 }
  0x71   :  { %1530 = vmatpush.bf16.msrb.mxu3 %v2407_v39 }
  0x72   :  { %1474 = vmatpush.bf16.msrb.mxu0 %v2382_v42 }
  0x73   :  { %1493 = vmatpush.bf16.msrb.mxu1 %v2390_v41 }
  0x74   :  { %1512 = vmatpush.bf16.msrb.mxu2 %v2398_v40 }
  0x75   :  { %1531 = vmatpush.bf16.msrb.mxu3 %v2406_v43  ;;  %1408 = vmatmul.bf16.gmra.mxu0 %v1709_v57 }
  0x76   :  { %1475 = vmatpush.bf16.msrb.mxu0 %v2381_v53  ;;  %1427 = vmatmul.bf16.gmra.mxu1 %v1713_v59 }
  0x77   :  { %1494 = vmatpush.bf16.msrb.mxu1 %v2389_v47  ;;  %1446 = vmatmul.bf16.gmra.mxu2 %v1717_v60 }
  0x78   :  { %1513 = vmatpush.bf16.msrb.mxu2 %v2397_v44  ;;  %1465 = vmatmul.bf16.gmra.mxu3 %v1721_v61 }
  0x79   :  { %1532 = vmatpush.bf16.msrb.mxu3 %v2405_v55 }
  0x7a   :  { %1476 = vmatpush.bf16.msrb.mxu0 %v2380_v62 }
  0x7b   :  { %1495 = vmatpush.bf16.msrb.mxu1 %v2388_v58 }
  0x7c   :  { %1514 = vmatpush.bf16.msrb.mxu2 %v2396_v56 }
  0x7d   :  { %1533 = vmatpush.bf16.msrb.mxu3 %v2404_v63 }
  0x7e   :  { %1477 = vmatpush.bf16.msrb.mxu0 %v2379_v2 }
  0x7f   :  { %1496 = vmatpush.bf16.msrb.mxu1 %v2387_v1 }
  0x80   :  { %1515 = vmatpush.bf16.msrb.mxu2 %v2395_v0 }
  0x81   :  { %1534 = vmatpush.bf16.msrb.mxu3 %v2403_v3 }
  0x82   :  { %1478 = vmatpush.bf16.msrb.mxu0 %v2378_v6 }
  0x83   :  { %1497 = vmatpush.bf16.msrb.mxu1 %v2386_v5 }
  0x84   :  { %1516 = vmatpush.bf16.msrb.mxu2 %v2394_v4 }
  0x85   :  { %1535 = vmatpush.bf16.msrb.mxu3 %v2402_v7  ;;  %1479 = vmatmul.bf16.vlgmr.msrb.gmra.mxu0 %v1661_v16 }
  0x86   :  { %1498 = vmatmul.bf16.vlgmr.msrb.gmra.mxu1 %v1665_v17 }
  0x87   :  { %1517 = vmatmul.bf16.vlgmr.msrb.gmra.mxu2 %v1669_v18 }
  0x88   :  { %1536 = vmatmul.bf16.vlgmr.msrb.gmra.mxu3 %v1673_v19 }
  0x95   :  { %1484 = vmatmul.bf16.gmra.mxu0 %v1725_v28 }
  0x96   :  { %1503 = vmatmul.bf16.gmra.mxu1 %v1729_v29 }
  0x97   :  { %1522 = vmatmul.bf16.gmra.mxu2 %v1733_v30 }
  0x98   :  { %1541 = vmatmul.bf16.gmra.mxu3 %v1737_v31 }
  0xa2   :  { %v1252_v32 = vpop.f32.mrf.mxu0 }
  0xa3   :  { %v1271_v33 = vpop.f32.mrf.mxu1 }
  0xa4   :  { %v1272_v34 = vadd.f32 %v1271_v33, %v1252_v32 }
  0xaa   :  { %v1290_v35 = vpop.f32.mrf.mxu2  ;;  %v1254_v38 = vpop.f32.mrf.mxu0 }
  0xab   :  { %v1309_v36 = vpop.f32.mrf.mxu3  ;;  %v1291_v37 = vadd.f32 %v1290_v35, %v1272_v34  ;;  %v1273_v39 = vpop.f32.mrf.mxu1 }
  0xac   :  { %v1274_v40 = vadd.f32 %v1273_v39, %v1254_v38 }
  0xad   :  { %v1310_v41 = vadd.f32 %v1309_v36, %v1291_v37 }
  0xb2   :  { %v1292_v42 = vpop.f32.mrf.mxu2  ;;  %v1257_v45 = vpop.f32.mrf.mxu0 }
  0xb3   :  { %v1311_v43 = vpop.f32.mrf.mxu3  ;;  %v1293_v44 = vadd.f32 %v1292_v42, %v1274_v40  ;;  %v1276_v46 = vpop.f32.mrf.mxu1 }
  0xb4   :  { %v1277_v47 = vadd.f32 %v1276_v46, %v1257_v45 }
  0xb5   :  { %v1312_v48 = vadd.f32 %v1311_v43, %v1293_v44 }
  0xba   :  { %v1295_v49 = vpop.f32.mrf.mxu2  ;;  %v1259_v52 = vpop.f32.mrf.mxu0 }
  0xbb   :  { %v1314_v50 = vpop.f32.mrf.mxu3  ;;  %v1296_v51 = vadd.f32 %v1295_v49, %v1277_v47  ;;  %v1278_v53 = vpop.f32.mrf.mxu1 }
  0xbc   :  { %v1279_v54 = vadd.f32 %v1278_v53, %v1259_v52 }
  0xbd   :  { %v1315_v55 = vadd.f32 %v1314_v50, %v1296_v51 }
  0xc2   :  { %v1297_v56 = vpop.f32.mrf.mxu2  ;;  %v1328_v59 = vpop.f32.mrf.mxu0 }
  0xc3   :  { %v1316_v57 = vpop.f32.mrf.mxu3  ;;  %v1298_v58 = vadd.f32 %v1297_v56, %v1279_v54  ;;  %v1329_v60 = vadd.f32 %v1328_v59, %v1310_v41  ;;  %v1347_v61 = vpop.f32.mrf.mxu1 }
  0xc5   :  { %v1317_v62 = vadd.f32 %v1316_v57, %v1298_v58  ;;  %v1348_v63 = vadd.f32 %v1347_v61, %v1329_v60 }
  0xca   :  { %v1366_v0 = vpop.f32.mrf.mxu2  ;;  %v1330_v3 = vpop.f32.mrf.mxu0 }
  0xcb   :  { %v1367_v1 = vadd.f32 %v1366_v0, %v1348_v63  ;;  %v1385_v2 = vpop.f32.mrf.mxu3  ;;  %v1349_v4 = vpop.f32.mrf.mxu1  ;;  %v1331_v26 = vadd.f32 %v1330_v3, %v1312_v48 }
  0xcd   :  { %v1386_v5 = vadd.f32 %v1385_v2, %v1367_v1  ;;  %v1350_v27 = vadd.f32 %v1349_v4, %v1331_v26 }
  0xd2   :  { %v1368_v6 = vpop.f32.mrf.mxu2  ;;  %v1333_v8 = vpop.f32.mrf.mxu0 }
  0xd3   :  { %v1387_v7 = vpop.f32.mrf.mxu3  ;;  %v1352_v9 = vpop.f32.mrf.mxu1  ;;  %v1369_v29 = vadd.f32 %v1368_v6, %v1350_v27  ;;  %v1334_v33 = vadd.f32 %v1333_v8, %v1315_v55 }
  0xd5   :  { %v1388_v34 = vadd.f32 %v1387_v7, %v1369_v29  ;;  %v1353_v36 = vadd.f32 %v1352_v9, %v1334_v33 }
  0xda   :  { %v1371_v10 = vpop.f32.mrf.mxu2  ;;  %v1335_v12 = vpop.f32.mrf.mxu0 }
  0xdb   :  { %v1390_v11 = vpop.f32.mrf.mxu3  ;;  %v1354_v13 = vpop.f32.mrf.mxu1  ;;  %v1372_v39 = vadd.f32 %v1371_v10, %v1353_v36  ;;  %v1336_v44 = vadd.f32 %v1335_v12, %v1317_v62 }
  0xdd   :  { %v1391_v47 = vadd.f32 %v1390_v11, %v1372_v39  ;;  %v1355_v49 = vadd.f32 %v1354_v13, %v1336_v44 }
  0xe2   :  { %v1373_v14 = vpop.f32.mrf.mxu2  ;;  %v1404_v16 = vpop.f32.mrf.mxu0 }
  0xe3   :  { %v1392_v15 = vpop.f32.mrf.mxu3  ;;  %v1423_v17 = vpop.f32.mrf.mxu1  ;;  %v1405_v35 = vadd.f32 %v1404_v16, %v1386_v5  ;;  %v1374_v53 = vadd.f32 %v1373_v14, %v1355_v49 }
  0xe5   :  { %v1424_v40 = vadd.f32 %v1423_v17, %v1405_v35  ;;  %v1393_v61 = vadd.f32 %v1392_v15, %v1374_v53  ;;  %v2447_v17 = vmov 32.0  }
  0xe6   :  { %2414 = vrcp.f32 %v2447_v17 }
  0xea   :  { %v1442_v18 = vpop.f32.mrf.mxu2  ;;  %v1406_v20 = vpop.f32.mrf.mxu0 }
  0xeb   :  { %v1461_v19 = vpop.f32.mrf.mxu3  ;;  %v1425_v21 = vpop.f32.mrf.mxu1  ;;  %v1407_v37 = vadd.f32 %v1406_v20, %v1388_v34  ;;  %v1443_v45 = vadd.f32 %v1442_v18, %v1424_v40 }
  0xed   :  { %v1426_v46 = vadd.f32 %v1425_v21, %v1407_v37  ;;  %v1462_v50 = vadd.f32 %v1461_v19, %v1443_v45 }
  0xf2   :  { %v1444_v22 = vpop.f32.mrf.mxu2  ;;  %v1409_v24 = vpop.f32.mrf.mxu0 }
  0xf3   :  { %v1463_v23 = vpop.f32.mrf.mxu3  ;;  %v1428_v25 = vpop.f32.mrf.mxu1  ;;  %v1445_v48 = vadd.f32 %v1444_v22, %v1426_v46  ;;  %v1410_v51 = vadd.f32 %v1409_v24, %v1391_v47 }
  0xf4   :  { %v2415_v24 = vpop.eup %2414 }
  0xf5   :  { %v1464_v54 = vadd.f32 %v1463_v23, %v1445_v48  ;;  %v1429_v59 = vadd.f32 %v1428_v25, %v1410_v51  ;;  %v1557_v29 = vmul.f32 32.0, %v2415_v24  ;;  %vm1561_vm0 = vweird.f32 %v2415_v24 }
  0xf7   :  { %v1558_v33 = vsub.f32 1.0, %v1557_v29 }
  0xf9   :  { %v1559_v36 = vmul.f32 %v2415_v24, %v1558_v33 }
  0xfa   :  { %v1447_v28 = vpop.f32.mrf.mxu2  ;;  %v1411_v31 = vpop.f32.mrf.mxu0 }
  0xfb   :  { %v1466_v30 = vpop.f32.mrf.mxu3  ;;  %v1430_v32 = vpop.f32.mrf.mxu1  ;;  %v1448_v63 = vadd.f32 %v1447_v28, %v1429_v59  ;;  %v1412_v62 = vadd.f32 %v1411_v31, %v1393_v61  ;;  %v1560_v39 = vadd.f32 %v2415_v24, %v1559_v36 }
  0xfd   :  { %v1467_v4 = vadd.f32 %v1466_v30, %v1448_v63  ;;  %v1431_v8 = vadd.f32 %v1430_v32, %v1412_v62 }
 0x102   :  { %v1449_v38 = vpop.f32.mrf.mxu2  ;;  %v1480_v42 = vpop.f32.mrf.mxu0 }
 0x103   :  { %v1468_v41 = vpop.f32.mrf.mxu3  ;;  %v1499_v43 = vpop.f32.mrf.mxu1  ;;  %v1481_v55 = vadd.f32 %v1480_v42, %v1462_v50  ;;  %v1450_v13 = vadd.f32 %v1449_v38, %v1431_v8  ;;  %v1562_v42 = vsel %vm1561_vm0, %v2415_v24, %v1560_v39 }
 0x105   :  { %v1500_v0 = vadd.f32 %v1499_v43, %v1481_v55  ;;  %v1469_v18 = vadd.f32 %v1468_v41, %v1450_v13 }
 0x10a   :  { %v1518_v52 = vpop.f32.mrf.mxu2  ;;  %v1482_v57 = vpop.f32.mrf.mxu0 }
 0x10b   :  { %v1537_v56 = vpop.f32.mrf.mxu3  ;;  %v1501_v58 = vpop.f32.mrf.mxu1  ;;  %v1483_v60 = vadd.f32 %v1482_v57, %v1464_v54  ;;  %v1519_v1 = vadd.f32 %v1518_v52, %v1500_v0 }
 0x10d   :  { %v1502_v2 = vadd.f32 %v1501_v58, %v1483_v60  ;;  %v1538_v9 = vadd.f32 %v1537_v56, %v1519_v1 }
 0x112   :  { %v1520_v3 = vpop.f32.mrf.mxu2  ;;  %v1485_v7 = vpop.f32.mrf.mxu0 }
 0x113   :  { %v1521_v5 = vadd.f32 %v1520_v3, %v1502_v2  ;;  %v1539_v6 = vpop.f32.mrf.mxu3  ;;  %v1486_v11 = vadd.f32 %v1485_v7, %v1467_v4  ;;  %v1504_v12 = vpop.f32.mrf.mxu1 }
 0x115   :  { %v1540_v10 = vadd.f32 %v1539_v6, %v1521_v5  ;;  %v1505_v16 = vadd.f32 %v1504_v12, %v1486_v11 }
 0x117   :  { %v1547_v14 = vadd.f32 %v1540_v10, %v1538_v9 }
 0x11a   :  { %v1523_v15 = vpop.f32.mrf.mxu2  ;;  %v1487_v21 = vpop.f32.mrf.mxu0 }
 0x11b   :  { %v1524_v19 = vadd.f32 %v1523_v15, %v1505_v16  ;;  %v1542_v20 = vpop.f32.mrf.mxu3  ;;  %v1488_v23 = vadd.f32 %v1487_v21, %v1469_v18  ;;  %v1506_v26 = vpop.f32.mrf.mxu1 }
 0x11d   :  { %v1543_v22 = vadd.f32 %v1542_v20, %v1524_v19  ;;  %v1507_v27 = vadd.f32 %v1506_v26, %v1488_v23 }
 0x11f   :  { %v1548_v25 = vadd.f32 %v1547_v14, %v1543_v22 }
 0x122   :  { %v1525_v28 = vpop.f32.mrf.mxu2 }
 0x123   :  { %v1526_v30 = vadd.f32 %v1525_v28, %v1507_v27  ;;  %v1544_v31 = vpop.f32.mrf.mxu3 }
 0x125   :  { %v1545_v32 = vadd.f32 %v1544_v31, %v1526_v30 }
 0x127   :  { %v1549_v34 = vadd.f32 %v1548_v25, %v1545_v32 }
 0x129   :  { %v1550_v35 = vrot.slane %v1549_v34, 4 }
 0x12b   :  { %v1551_v37 = vadd.f32 %v1550_v35, %v1549_v34 }
 0x12d   :  { %v1552_v38 = vrot.slane %v1551_v37, 2 }
 0x12f   :  { %v1553_v40 = vadd.f32 %v1552_v38, %v1551_v37 }
 0x131   :  { %v1554_v41 = vrot.slane %v1553_v40, 1 }
 0x133   :  { %v1555_v43 = vadd.f32 %v1554_v41, %v1553_v40 }
 0x135   :  { %v1563_v44 = vmul.f32 %v1562_v42, %v1555_v43 }
 0x137   :  { %v1564_v45 = vsub.f32 %v1538_v9, %v1563_v44  ;;  %v1565_v46 = vsub.f32 %v1540_v10, %v1563_v44  ;;  %v1566_v47 = vsub.f32 %v1543_v22, %v1563_v44  ;;  %v1567_v48 = vsub.f32 %v1545_v32, %v1563_v44 }
 0x139   :  { %v1568_v49 = vmul.f32 %v1564_v45, %v1564_v45  ;;  %v1569_v50 = vmul.f32 %v1565_v46, %v1565_v46  ;;  %v1570_v51 = vmul.f32 %v1566_v47, %v1566_v47  ;;  %v1571_v53 = vmul.f32 %v1567_v48, %v1567_v48 }
 0x13b   :  { %v1572_v52 = vadd.f32 %v1569_v50, %v1568_v49 }
 0x13d   :  { %v1573_v54 = vadd.f32 %v1572_v52, %v1570_v51 }
 0x13f   :  { %v1574_v55 = vadd.f32 %v1573_v54, %v1571_v53 }
 0x141   :  { %v1575_v56 = vrot.slane %v1574_v55, 4 }
 0x143   :  { %v1576_v57 = vadd.f32 %v1575_v56, %v1574_v55 }
 0x145   :  { %v1577_v58 = vrot.slane %v1576_v57, 2 }
 0x147   :  { %v1578_v59 = vadd.f32 %v1577_v58, %v1576_v57 }
 0x149   :  { %v1579_v60 = vrot.slane %v1578_v59, 1 }
 0x14b   :  { %v1580_v61 = vadd.f32 %v1579_v60, %v1578_v59 }
 0x14d   :  { %v1581_v63 = vmul.f32 %v1580_v61, %v1562_v42 }
 0x14f   :  { %v1582_v0 = vadd.f32 1e-05, %v1581_v63 }
 0x151   :  { %2416 = vrsqrt.f32 %v1582_v0  ;;  %vm1589_vm2 = vweird.f32 %v1582_v0 }
 0x157   :  { %v2417_v62 = vpop.eup %2416 }
 0x158   :  { %v1584_v1 = vmul.f32 %v2417_v62, %v1582_v0  ;;  %vm1590_vm1 = vweird.f32 %v2417_v62 }
 0x159   :  { %vm1591_vm3 = vmor %vm1589_vm2, %vm1590_vm1 }
 0x15a   :  { %v1585_v2 = vmul.f32 %v2417_v62, %v1584_v1 }
 0x15c   :  { %v1586_v3 = vmul.f32 0.5, %v1585_v2 }
 0x15e   :  { %v1587_v4 = vsub.f32 1.5, %v1586_v3 }
 0x160   :  { %v1588_v5 = vmul.f32 %v2417_v62, %v1587_v4 }
 0x162   :  { %v1592_v6 = vsel %vm1591_vm3, %v2417_v62, %v1588_v5 }
 0x163   :  { %v1593_v7 = vmul.f32 %v1592_v6, %v1564_v45  ;;  %v1594_v8 = vmul.f32 %v1592_v6, %v1565_v46  ;;  %v1595_v9 = vmul.f32 %v1592_v6, %v1566_v47  ;;  %v1596_v10 = vmul.f32 %v1592_v6, %v1567_v48 }
 0x165   :  { %v1597_v11 = vmax.f32 %v1593_v7, 0.0  ;;  %v1598_v12 = vmax.f32 %v1594_v8, 0.0  ;;  %v1599_v13 = vmax.f32 %v1595_v9, 0.0  ;;  %v1600_v14 = vmax.f32 %v1596_v10, 0.0 }
 0x167   :  { %1601 = vst [vmem:[%s2672_s2] sm:$0xff] %v1597_v11 }
 0x168   :  { %1602 = vst [vmem:[%s2672_s2 + $0x8] sm:$0xff] %v1598_v12 }
 0x169   :  { %1603 = vst [vmem:[%s2672_s2 + $0x10] sm:$0xff] %v1599_v13 }
 0x16a   :  { %1604 = vst [vmem:[%s2672_s2 + $0x18] sm:$0xff] %v1600_v14 }
 0x16b   :  { %1609 = vsyncpa [#allocation3], 1 }

// kernel: generator_forward.4
= control target key start
LH: loop header
LB: loop body
LE: loop exit
PB: predicated region body
PF: predicated region fallthrough
CT: control target
= control target key end

     0   :  { %s5506_s1 = inlined_call_operand.vmem [shape: bf16[2048,128], index: 1, kind: input, shape index: {}]   ;;  %s5507_s0 = inlined_call_operand.vmem [shape: bf16[128,2048], index: 0, kind: input, shape index: {}]   ;;  %s5508_s2 = inlined_call_operand.vmem [shape: f32[128,128], index: 2, kind: output, shape index: {}]  }
   0x1   :  { %v3892_v0 = vld [vmem:[%s5506_s1 + $0x38] sm:$0xff]  ;;  %v3891_v4 = vld [vmem:[%s5506_s1 + $0x30] sm:$0xff]  ;;  %v3890_v8 = vld [vmem:[%s5506_s1 + $0x28] sm:$0xff] }
   0x2   :  { %v3900_v1 = vld [vmem:[%s5506_s1 + $0x78] sm:$0xff]  ;;  %1803 = vmatpush.bf16.msra.mxu0 %v3892_v0  ;;  %v3899_v5 = vld [vmem:[%s5506_s1 + $0x70] sm:$0xff]  ;;  %v3898_v9 = vld [vmem:[%s5506_s1 + $0x68] sm:$0xff] }
   0x3   :  { %v3908_v2 = vld [vmem:[%s5506_s1 + $0xb8] sm:$0xff]  ;;  %1852 = vmatpush.bf16.msra.mxu1 %v3900_v1  ;;  %v3907_v6 = vld [vmem:[%s5506_s1 + $0xb0] sm:$0xff]  ;;  %v3906_v10 = vld [vmem:[%s5506_s1 + $0xa8] sm:$0xff] }
   0x4   :  { %v3916_v3 = vld [vmem:[%s5506_s1 + $0xf8] sm:$0xff]  ;;  %1901 = vmatpush.bf16.msra.mxu2 %v3908_v2  ;;  %v3915_v7 = vld [vmem:[%s5506_s1 + $0xf0] sm:$0xff]  ;;  %v3914_v11 = vld [vmem:[%s5506_s1 + $0xe8] sm:$0xff] }
   0x5   :  { %1950 = vmatpush.bf16.msra.mxu3 %v3916_v3  ;;  %v3889_v12 = vld [vmem:[%s5506_s1 + $0x20] sm:$0xff]  ;;  %v3888_v16 = vld [vmem:[%s5506_s1 + $0x18] sm:$0xff]  ;;  %v3887_v20 = vld [vmem:[%s5506_s1 + $0x10] sm:$0xff] }
   0x6   :  { %1804 = vmatpush.bf16.msra.mxu0 %v3891_v4  ;;  %v3897_v13 = vld [vmem:[%s5506_s1 + $0x60] sm:$0xff]  ;;  %v3896_v17 = vld [vmem:[%s5506_s1 + $0x58] sm:$0xff]  ;;  %v3895_v21 = vld [vmem:[%s5506_s1 + $0x50] sm:$0xff] }
   0x7   :  { %1853 = vmatpush.bf16.msra.mxu1 %v3899_v5  ;;  %v3905_v14 = vld [vmem:[%s5506_s1 + $0xa0] sm:$0xff]  ;;  %v3904_v18 = vld [vmem:[%s5506_s1 + $0x98] sm:$0xff]  ;;  %v3903_v22 = vld [vmem:[%s5506_s1 + $0x90] sm:$0xff] }
   0x8   :  { %1902 = vmatpush.bf16.msra.mxu2 %v3907_v6  ;;  %v3913_v15 = vld [vmem:[%s5506_s1 + $0xe0] sm:$0xff]  ;;  %v3912_v19 = vld [vmem:[%s5506_s1 + $0xd8] sm:$0xff]  ;;  %v3911_v23 = vld [vmem:[%s5506_s1 + $0xd0] sm:$0xff] }
   0x9   :  { %1951 = vmatpush.bf16.msra.mxu3 %v3915_v7  ;;  %v3886_v24 = vld [vmem:[%s5506_s1 + $0x8] sm:$0xff]  ;;  %v3885_v28 = vld [vmem:[%s5506_s1] sm:$0xff]  ;;  %v3940_v40 = vld [vmem:[%s5506_s1 + $0x1b8] sm:$0xff] }
   0xa   :  { %1805 = vmatpush.bf16.msra.mxu0 %v3890_v8  ;;  %v3894_v25 = vld [vmem:[%s5506_s1 + $0x48] sm:$0xff]  ;;  %v3893_v29 = vld [vmem:[%s5506_s1 + $0x40] sm:$0xff]  ;;  %v3924_v41 = vld [vmem:[%s5506_s1 + $0x138] sm:$0xff] }
   0xb   :  { %1854 = vmatpush.bf16.msra.mxu1 %v3898_v9  ;;  %v3902_v26 = vld [vmem:[%s5506_s1 + $0x88] sm:$0xff]  ;;  %v3901_v30 = vld [vmem:[%s5506_s1 + $0x80] sm:$0xff]  ;;  %v3948_v46 = vld [vmem:[%s5506_s1 + $0x1f8] sm:$0xff] }
   0xc   :  { %1903 = vmatpush.bf16.msra.mxu2 %v3906_v10  ;;  %v3910_v27 = vld [vmem:[%s5506_s1 + $0xc8] sm:$0xff]  ;;  %v3909_v31 = vld [vmem:[%s5506_s1 + $0xc0] sm:$0xff]  ;;  %v3932_v47 = vld [vmem:[%s5506_s1 + $0x178] sm:$0xff] }
   0xd   :  { %1952 = vmatpush.bf16.msra.mxu3 %v3914_v11  ;;  %v2735_v32 = vld [vmem:[%s5507_s0] sm:$0xf]  ;;  %v3757_v34 = vld [vmem:[%s5507_s0 + $0x4] sm:$0xf]  ;;  %v2743_v36 = vld [vmem:[%s5507_s0 + $0x8] sm:$0xf] }
   0xe   :  { %1806 = vmatpush.bf16.msra.mxu0 %v3889_v12  ;;  %v3765_v33 = vld [vmem:[%s5507_s0 + $0x3c] sm:$0xf0]  ;;  %v2737_v35 = vld [vmem:[%s5507_s0 + $0x40] sm:$0xf0]  ;;  %v3766_v37 = vld [vmem:[%s5507_s0 + $0x44] sm:$0xf0] }
   0xf   :  { %1855 = vmatpush.bf16.msra.mxu1 %v3897_v13  ;;  %v3758_v38 = vld [vmem:[%s5507_s0 + $0xc] sm:$0xf]  ;;  %v2736_v42 = vor.u32 %v3765_v33, %v2735_v32  ;;  %v2740_v43 = vor.u32 %v3757_v34, %v2737_v35  ;;  %v2744_v44 = vor.u32 %v3766_v37, %v2743_v36  ;;  %v3939_v48 = vld [vmem:[%s5506_s1 + $0x1b0] sm:$0xff]  ;;  %v2799_v56 = vld [vmem:[%s5507_s0 + $0x80] sm:$0xf] }
  0x10   :  { %1904 = vmatpush.bf16.msra.mxu2 %v3905_v14  ;;  %v2745_v39 = vld [vmem:[%s5507_s0 + $0x48] sm:$0xf0]  ;;  %v3923_v49 = vld [vmem:[%s5506_s1 + $0x130] sm:$0xff]  ;;  %v3781_v57 = vld [vmem:[%s5507_s0 + $0xbc] sm:$0xf0] }
  0x11   :  { %1953 = vmatpush.bf16.msra.mxu3 %v3913_v15  ;;  %v2748_v45 = vor.u32 %v3758_v38, %v2745_v39  ;;  %v3947_v50 = vld [vmem:[%s5506_s1 + $0x1f0] sm:$0xff]  ;;  %v3938_v52 = vld [vmem:[%s5506_s1 + $0x1a8] sm:$0xff]  ;;  %v3773_v58 = vld [vmem:[%s5507_s0 + $0x84] sm:$0xf]  ;;  %v2800_v0 = vor.u32 %v3781_v57, %v2799_v56 }
  0x12   :  { %1807 = vmatpush.bf16.msra.mxu0 %v3888_v16  ;;  %v3931_v51 = vld [vmem:[%s5506_s1 + $0x170] sm:$0xff]  ;;  %v3922_v53 = vld [vmem:[%s5506_s1 + $0x128] sm:$0xff]  ;;  %v2801_v59 = vld [vmem:[%s5507_s0 + $0xc0] sm:$0xf0] }
  0x13   :  { %1856 = vmatpush.bf16.msra.mxu1 %v3896_v17  ;;  %v3946_v54 = vld [vmem:[%s5506_s1 + $0x1e8] sm:$0xff]  ;;  %v2804_v1 = vor.u32 %v3773_v58, %v2801_v59  ;;  %v3937_v4 = vld [vmem:[%s5506_s1 + $0x1a0] sm:$0xff]  ;;  %v3935_v36 = vld [vmem:[%s5506_s1 + $0x190] sm:$0xff] }
  0x14   :  { %1905 = vmatpush.bf16.msra.mxu2 %v3904_v18  ;;  %v3930_v55 = vld [vmem:[%s5506_s1 + $0x168] sm:$0xff]  ;;  %v3921_v5 = vld [vmem:[%s5506_s1 + $0x120] sm:$0xff]  ;;  %v3919_v37 = vld [vmem:[%s5506_s1 + $0x110] sm:$0xff] }
  0x15   :  { %1954 = vmatpush.bf16.msra.mxu3 %v3912_v19  ;;  %v2807_v60 = vld [vmem:[%s5507_s0 + $0x88] sm:$0xf]  ;;  %v3774_v62 = vld [vmem:[%s5507_s0 + $0x8c] sm:$0xf]  ;;  %v3945_v6 = vld [vmem:[%s5506_s1 + $0x1e0] sm:$0xff] }
  0x16   :  { %1808 = vmatpush.bf16.msra.mxu0 %v3887_v20  ;;  %v3782_v61 = vld [vmem:[%s5507_s0 + $0xc4] sm:$0xf0]  ;;  %v2809_v63 = vld [vmem:[%s5507_s0 + $0xc8] sm:$0xf0]  ;;  %v3929_v7 = vld [vmem:[%s5506_s1 + $0x160] sm:$0xff] }
  0x17   :  { %1857 = vmatpush.bf16.msra.mxu1 %v3895_v21  ;;  %v2808_v2 = vor.u32 %v3782_v61, %v2807_v60  ;;  %v2812_v3 = vor.u32 %v3774_v62, %v2809_v63  ;;  %v2863_v8 = vld [vmem:[%s5507_s0 + $0x100] sm:$0xf]  ;;  %v3789_v10 = vld [vmem:[%s5507_s0 + $0x104] sm:$0xf]  ;;  %v2871_v12 = vld [vmem:[%s5507_s0 + $0x108] sm:$0xf] }
  0x18   :  { %1906 = vmatpush.bf16.msra.mxu2 %v3903_v22  ;;  %v3797_v9 = vld [vmem:[%s5507_s0 + $0x13c] sm:$0xf0]  ;;  %v2865_v11 = vld [vmem:[%s5507_s0 + $0x140] sm:$0xf0]  ;;  %v3798_v13 = vld [vmem:[%s5507_s0 + $0x144] sm:$0xf0] }
  0x19   :  { %1955 = vmatpush.bf16.msra.mxu3 %v3911_v23  ;;  %v3790_v14 = vld [vmem:[%s5507_s0 + $0x10c] sm:$0xf]  ;;  %v2864_v16 = vor.u32 %v3797_v9, %v2863_v8  ;;  %v2868_v17 = vor.u32 %v3789_v10, %v2865_v11  ;;  %v2872_v18 = vor.u32 %v3798_v13, %v2871_v12  ;;  %v3936_v20 = vld [vmem:[%s5506_s1 + $0x198] sm:$0xff]  ;;  %v3943_v38 = vld [vmem:[%s5506_s1 + $0x1d0] sm:$0xff] }
  0x1a   :  { %1809 = vmatpush.bf16.msra.mxu0 %v3886_v24  ;;  %v2873_v15 = vld [vmem:[%s5507_s0 + $0x148] sm:$0xf0]  ;;  %v3920_v21 = vld [vmem:[%s5506_s1 + $0x118] sm:$0xff]  ;;  %v2927_v24 = vld [vmem:[%s5507_s0 + $0x180] sm:$0xf] }
  0x1b   :  { %1858 = vmatpush.bf16.msra.mxu1 %v3894_v25  ;;  %v2876_v19 = vor.u32 %v3790_v14, %v2873_v15  ;;  %v3944_v22 = vld [vmem:[%s5506_s1 + $0x1d8] sm:$0xff]  ;;  %v3813_v25 = vld [vmem:[%s5507_s0 + $0x1bc] sm:$0xf0]  ;;  %v3927_v39 = vld [vmem:[%s5506_s1 + $0x150] sm:$0xff] }
  0x1c   :  { %1907 = vmatpush.bf16.msra.mxu2 %v3902_v26  ;;  %v3928_v23 = vld [vmem:[%s5506_s1 + $0x158] sm:$0xff]  ;;  %v3805_v26 = vld [vmem:[%s5507_s0 + $0x184] sm:$0xf]  ;;  %v2928_v32 = vor.u32 %v3813_v25, %v2927_v24  ;;  %v3055_v56 = vld [vmem:[%s5507_s0 + $0x280] sm:$0xf] }
  0x1d   :  { %1956 = vmatpush.bf16.msra.mxu3 %v3910_v27  ;;  %v2929_v27 = vld [vmem:[%s5507_s0 + $0x1c0] sm:$0xf0]  ;;  %v3845_v57 = vld [vmem:[%s5507_s0 + $0x2bc] sm:$0xf0]  ;;  %v3063_v60 = vld [vmem:[%s5507_s0 + $0x288] sm:$0xf] }
  0x1e   :  { %1810 = vmatpush.bf16.msra.mxu0 %v3885_v28  ;;  %v2935_v28 = vld [vmem:[%s5507_s0 + $0x188] sm:$0xf]  ;;  %v2932_v33 = vor.u32 %v3805_v26, %v2929_v27  ;;  %v3837_v58 = vld [vmem:[%s5507_s0 + $0x284] sm:$0xf]  ;;  %v3838_v62 = vld [vmem:[%s5507_s0 + $0x28c] sm:$0xf] }
  0x1f   :  { %1859 = vmatpush.bf16.msra.mxu1 %v3893_v29  ;;  %v3814_v29 = vld [vmem:[%s5507_s0 + $0x1c4] sm:$0xf0]  ;;  %v3057_v59 = vld [vmem:[%s5507_s0 + $0x2c0] sm:$0xf0]  ;;  %v3065_v63 = vld [vmem:[%s5507_s0 + $0x2c8] sm:$0xf0] }
  0x20   :  { %1908 = vmatpush.bf16.msra.mxu2 %v3901_v30  ;;  %v3806_v30 = vld [vmem:[%s5507_s0 + $0x18c] sm:$0xf]  ;;  %v2936_v34 = vor.u32 %v3814_v29, %v2935_v28  ;;  %v3846_v61 = vld [vmem:[%s5507_s0 + $0x2c4] sm:$0xf0]  ;;  %v3119_v8 = vld [vmem:[%s5507_s0 + $0x300] sm:$0xf] }
  0x21   :  { %1957 = vmatpush.bf16.msra.mxu3 %v3909_v31  ;;  %1811 = vmatmul.bf16.vlgmr.msra.gmra.mxu0 %v2736_v42  ;;  %v2937_v31 = vld [vmem:[%s5507_s0 + $0x1c8] sm:$0xf0]  ;;  %v3821_v42 = vld [vmem:[%s5507_s0 + $0x204] sm:$0xf]  ;;  %v3861_v9 = vld [vmem:[%s5507_s0 + $0x33c] sm:$0xf0] }
  0x22   :  { %1999 = vmatpush.bf16.msrb.mxu0 %v3924_v41  ;;  %1860 = vmatmul.bf16.vlgmr.msra.gmra.mxu1 %v2740_v43  ;;  %v2940_v35 = vor.u32 %v3806_v30, %v2937_v31  ;;  %v3829_v41 = vld [vmem:[%s5507_s0 + $0x23c] sm:$0xf0]  ;;  %v2993_v43 = vld [vmem:[%s5507_s0 + $0x240] sm:$0xf0]  ;;  %v3127_v12 = vld [vmem:[%s5507_s0 + $0x308] sm:$0xf] }
  0x23   :  { %1909 = vmatmul.bf16.vlgmr.msra.gmra.mxu2 %v2744_v44  ;;  %2048 = vmatpush.bf16.msrb.mxu1 %v3932_v47  ;;  %v2999_v44 = vld [vmem:[%s5507_s0 + $0x208] sm:$0xf]  ;;  %v3001_v47 = vld [vmem:[%s5507_s0 + $0x248] sm:$0xf0]  ;;  %v3853_v10 = vld [vmem:[%s5507_s0 + $0x304] sm:$0xf] }
  0x24   :  { %2097 = vmatpush.bf16.msrb.mxu2 %v3940_v40  ;;  %1958 = vmatmul.bf16.vlgmr.msra.gmra.mxu3 %v2748_v45  ;;  %v2991_v40 = vld [vmem:[%s5507_s0 + $0x200] sm:$0xf]  ;;  %v3830_v45 = vld [vmem:[%s5507_s0 + $0x244] sm:$0xf0]  ;;  %v3121_v11 = vld [vmem:[%s5507_s0 + $0x340] sm:$0xf0] }
  0x25   :  { %2146 = vmatpush.bf16.msrb.mxu3 %v3948_v46  ;;  %v3822_v46 = vld [vmem:[%s5507_s0 + $0x20c] sm:$0xf]  ;;  %v3862_v13 = vld [vmem:[%s5507_s0 + $0x344] sm:$0xf0]  ;;  %v3183_v24 = vld [vmem:[%s5507_s0 + $0x380] sm:$0xf] }
  0x26   :  { %2000 = vmatpush.bf16.msrb.mxu0 %v3923_v49  ;;  %v2996_v49 = vor.u32 %v3821_v42, %v2993_v43  ;;  %v3854_v14 = vld [vmem:[%s5507_s0 + $0x30c] sm:$0xf]  ;;  %v3877_v25 = vld [vmem:[%s5507_s0 + $0x3bc] sm:$0xf0]  ;;  %v3869_v26 = vld [vmem:[%s5507_s0 + $0x384] sm:$0xf] }
  0x27   :  { %2049 = vmatpush.bf16.msrb.mxu1 %v3931_v51  ;;  %v3004_v51 = vor.u32 %v3822_v46, %v3001_v47  ;;  %v3129_v15 = vld [vmem:[%s5507_s0 + $0x348] sm:$0xf0]  ;;  %v3185_v27 = vld [vmem:[%s5507_s0 + $0x3c0] sm:$0xf0]  ;;  %v3191_v28 = vld [vmem:[%s5507_s0 + $0x388] sm:$0xf] }
  0x28   :  { %2098 = vmatpush.bf16.msrb.mxu2 %v3939_v48  ;;  %v2992_v48 = vor.u32 %v3829_v41, %v2991_v40  ;;  %v3878_v29 = vld [vmem:[%s5507_s0 + $0x3c4] sm:$0xf0]  ;;  %v3870_v30 = vld [vmem:[%s5507_s0 + $0x38c] sm:$0xf]  ;;  %v2751_v40 = vld [vmem:[%s5507_s0 + $0x10] sm:$0xf] }
  0x29   :  { %2147 = vmatpush.bf16.msrb.mxu3 %v3947_v50  ;;  %v3000_v50 = vor.u32 %v3830_v45, %v2999_v44  ;;  %v3193_v31 = vld [vmem:[%s5507_s0 + $0x3c8] sm:$0xf0]  ;;  %v3767_v41 = vld [vmem:[%s5507_s0 + $0x4c] sm:$0xf0]  ;;  %v3759_v42 = vld [vmem:[%s5507_s0 + $0x14] sm:$0xf] }
  0x2a   :  { %2001 = vmatpush.bf16.msrb.mxu0 %v3922_v53  ;;  %v3918_v53 = vld [vmem:[%s5506_s1 + $0x108] sm:$0xff]  ;;  %v2753_v43 = vld [vmem:[%s5507_s0 + $0x50] sm:$0xf0]  ;;  %v2759_v44 = vld [vmem:[%s5507_s0 + $0x18] sm:$0xf] }
  0x2b   :  { %2050 = vmatpush.bf16.msrb.mxu1 %v3930_v55  ;;  %v3926_v55 = vld [vmem:[%s5506_s1 + $0x148] sm:$0xff]  ;;  %v3768_v45 = vld [vmem:[%s5507_s0 + $0x54] sm:$0xf0]  ;;  %v3760_v46 = vld [vmem:[%s5507_s0 + $0x1c] sm:$0xf] }
  0x2c   :  { %2099 = vmatpush.bf16.msrb.mxu2 %v3938_v52  ;;  %v3934_v52 = vld [vmem:[%s5506_s1 + $0x188] sm:$0xff]  ;;  %v2761_v47 = vld [vmem:[%s5507_s0 + $0x58] sm:$0xf0] }
  0x2d   :  { %2148 = vmatpush.bf16.msrb.mxu3 %v3946_v54  ;;  %v3942_v54 = vld [vmem:[%s5506_s1 + $0x1c8] sm:$0xff] }
  0x2e   :  { %2002 = vmatpush.bf16.msrb.mxu0 %v3921_v5  ;;  %v3917_v5 = vld [vmem:[%s5506_s1 + $0x100] sm:$0xff] }
  0x2f   :  { %2051 = vmatpush.bf16.msrb.mxu1 %v3929_v7  ;;  %v3925_v7 = vld [vmem:[%s5506_s1 + $0x140] sm:$0xff] }
  0x30   :  { %2100 = vmatpush.bf16.msrb.mxu2 %v3937_v4  ;;  %v3933_v4 = vld [vmem:[%s5506_s1 + $0x180] sm:$0xff] }
  0x31   :  { %1816 = vmatmul.bf16.gmra.mxu0 %v2800_v0  ;;  %2149 = vmatpush.bf16.msrb.mxu3 %v3945_v6  ;;  %v3056_v0 = vor.u32 %v3845_v57, %v3055_v56  ;;  %v3941_v6 = vld [vmem:[%s5506_s1 + $0x1c0] sm:$0xff]  ;;  %v3954_v56 = vld [vmem:[%s5506_s1 + $0x228] sm:$0xff] }
  0x32   :  { %1865 = vmatmul.bf16.gmra.mxu1 %v2804_v1  ;;  %2003 = vmatpush.bf16.msrb.mxu0 %v3920_v21  ;;  %v3060_v1 = vor.u32 %v3837_v58, %v3057_v59  ;;  %v3956_v21 = vld [vmem:[%s5506_s1 + $0x238] sm:$0xff]  ;;  %v3978_v57 = vld [vmem:[%s5506_s1 + $0x2e8] sm:$0xff] }
  0x33   :  { %1914 = vmatmul.bf16.gmra.mxu2 %v2808_v2  ;;  %2052 = vmatpush.bf16.msrb.mxu1 %v3928_v23  ;;  %v3064_v2 = vor.u32 %v3846_v61, %v3063_v60  ;;  %v3964_v23 = vld [vmem:[%s5506_s1 + $0x278] sm:$0xff] }
  0x34   :  { %1963 = vmatmul.bf16.gmra.mxu3 %v2812_v3  ;;  %2101 = vmatpush.bf16.msrb.mxu2 %v3936_v20  ;;  %v3068_v3 = vor.u32 %v3838_v62, %v3065_v63  ;;  %v3972_v20 = vld [vmem:[%s5506_s1 + $0x2b8] sm:$0xff] }
  0x35   :  { %2150 = vmatpush.bf16.msrb.mxu3 %v3944_v22  ;;  %v3980_v22 = vld [vmem:[%s5506_s1 + $0x2f8] sm:$0xff] }
  0x36   :  { %2004 = vmatpush.bf16.msrb.mxu0 %v3919_v37  ;;  %v3955_v37 = vld [vmem:[%s5506_s1 + $0x230] sm:$0xff] }
  0x37   :  { %2053 = vmatpush.bf16.msrb.mxu1 %v3927_v39  ;;  %v3963_v39 = vld [vmem:[%s5506_s1 + $0x270] sm:$0xff] }
  0x38   :  { %2102 = vmatpush.bf16.msrb.mxu2 %v3935_v36  ;;  %v3971_v36 = vld [vmem:[%s5506_s1 + $0x2b0] sm:$0xff] }
  0x39   :  { %2151 = vmatpush.bf16.msrb.mxu3 %v3943_v38  ;;  %v3979_v38 = vld [vmem:[%s5506_s1 + $0x2f0] sm:$0xff] }
  0x3a   :  { %2005 = vmatpush.bf16.msrb.mxu0 %v3918_v53  ;;  %v2764_v53 = vor.u32 %v3760_v46, %v2761_v47 }
  0x3b   :  { %2054 = vmatpush.bf16.msrb.mxu1 %v3926_v55  ;;  %v3970_v55 = vld [vmem:[%s5506_s1 + $0x2a8] sm:$0xff] }
  0x3c   :  { %2103 = vmatpush.bf16.msrb.mxu2 %v3934_v52  ;;  %v2760_v52 = vor.u32 %v3768_v45, %v2759_v44 }
  0x3d   :  { %2152 = vmatpush.bf16.msrb.mxu3 %v3942_v54 }
  0x3e   :  { %2006 = vmatpush.bf16.msrb.mxu0 %v3917_v5  ;;  %v2817_v5 = vld [vmem:[%s5507_s0 + $0xd0] sm:$0xf0] }
  0x3f   :  { %2055 = vmatpush.bf16.msrb.mxu1 %v3925_v7  ;;  %v3784_v7 = vld [vmem:[%s5507_s0 + $0xd4] sm:$0xf0] }
  0x40   :  { %2104 = vmatpush.bf16.msrb.mxu2 %v3933_v4  ;;  %v3775_v4 = vld [vmem:[%s5507_s0 + $0x94] sm:$0xf] }
  0x41   :  { %1821 = vmatmul.bf16.gmra.mxu0 %v2864_v16  ;;  %2153 = vmatpush.bf16.msrb.mxu3 %v3941_v6  ;;  %v3120_v16 = vor.u32 %v3861_v9, %v3119_v8  ;;  %v2823_v6 = vld [vmem:[%s5507_s0 + $0x98] sm:$0xf]  ;;  %v3776_v8 = vld [vmem:[%s5507_s0 + $0x9c] sm:$0xf] }
  0x42   :  { %1870 = vmatmul.bf16.gmra.mxu1 %v2868_v17  ;;  %v3124_v17 = vor.u32 %v3853_v10, %v3121_v11  ;;  %2195 = vmatpush.bf16.msra.mxu0 %v3956_v21  ;;  %v2825_v9 = vld [vmem:[%s5507_s0 + $0xd8] sm:$0xf0]  ;;  %v3969_v21 = vld [vmem:[%s5506_s1 + $0x2a0] sm:$0xff] }
  0x43   :  { %1919 = vmatmul.bf16.gmra.mxu2 %v2872_v18  ;;  %v3128_v18 = vor.u32 %v3862_v13, %v3127_v12  ;;  %2244 = vmatpush.bf16.msra.mxu1 %v3964_v23  ;;  %v2820_v13 = vor.u32 %v3775_v4, %v2817_v5  ;;  %v3977_v23 = vld [vmem:[%s5506_s1 + $0x2e0] sm:$0xff]  ;;  %v3816_v4 = vld [vmem:[%s5507_s0 + $0x1d4] sm:$0xf0]  ;;  %v3808_v5 = vld [vmem:[%s5507_s0 + $0x19c] sm:$0xf] }
  0x44   :  { %1968 = vmatmul.bf16.gmra.mxu3 %v2876_v19  ;;  %v3132_v19 = vor.u32 %v3854_v14, %v3129_v15  ;;  %2293 = vmatpush.bf16.msra.mxu2 %v3972_v20 }
  0x45   :  { %2342 = vmatpush.bf16.msra.mxu3 %v3980_v22  ;;  %v3953_v22 = vld [vmem:[%s5506_s1 + $0x220] sm:$0xff] }
  0x46   :  { %2196 = vmatpush.bf16.msra.mxu0 %v3955_v37  ;;  %v3800_v37 = vld [vmem:[%s5507_s0 + $0x154] sm:$0xf0] }
  0x47   :  { %2245 = vmatpush.bf16.msra.mxu1 %v3963_v39  ;;  %v2889_v39 = vld [vmem:[%s5507_s0 + $0x158] sm:$0xf0] }
  0x48   :  { %2294 = vmatpush.bf16.msra.mxu2 %v3971_v36  ;;  %v2887_v36 = vld [vmem:[%s5507_s0 + $0x118] sm:$0xf] }
  0x49   :  { %2343 = vmatpush.bf16.msra.mxu3 %v3979_v38  ;;  %v3792_v38 = vld [vmem:[%s5507_s0 + $0x11c] sm:$0xf]  ;;  %v2888_v47 = vor.u32 %v3800_v37, %v2887_v36  ;;  %v3832_v36 = vld [vmem:[%s5507_s0 + $0x254] sm:$0xf0] }
  0x4a   :  { %2197 = vmatpush.bf16.msra.mxu0 %v3954_v56  ;;  %v3824_v37 = vld [vmem:[%s5507_s0 + $0x21c] sm:$0xf] }
  0x4c   :  { %2295 = vmatpush.bf16.msra.mxu2 %v3970_v55 }
  0x4d   :  { %2344 = vmatpush.bf16.msra.mxu3 %v3978_v57 }
  0x4e   :  { %2198 = vmatpush.bf16.msra.mxu0 %v3953_v22 }
  0x50   :  { %2296 = vmatpush.bf16.msra.mxu2 %v3969_v21  ;;  %v3975_v21 = vld [vmem:[%s5506_s1 + $0x2d0] sm:$0xff] }
  0x51   :  { %1826 = vmatmul.bf16.gmra.mxu0 %v2928_v32  ;;  %v3184_v32 = vor.u32 %v3877_v25, %v3183_v24  ;;  %2345 = vmatpush.bf16.msra.mxu3 %v3977_v23 }
  0x52   :  { %1875 = vmatmul.bf16.gmra.mxu1 %v2932_v33  ;;  %v3188_v33 = vor.u32 %v3869_v26, %v3185_v27 }
  0x53   :  { %1924 = vmatmul.bf16.gmra.mxu2 %v2936_v34  ;;  %v3192_v34 = vor.u32 %v3878_v29, %v3191_v28 }
  0x54   :  { %1973 = vmatmul.bf16.gmra.mxu3 %v2940_v35  ;;  %v3196_v35 = vor.u32 %v3870_v30, %v3193_v31  ;;  %v3961_v31 = vld [vmem:[%s5506_s1 + $0x260] sm:$0xff] }
  0x61   :  { %1831 = vmatmul.bf16.gmra.mxu0 %v2992_v48  ;;  %v2752_v48 = vor.u32 %v3767_v41, %v2751_v40 }
  0x62   :  { %1880 = vmatmul.bf16.gmra.mxu1 %v2996_v49  ;;  %v2756_v49 = vor.u32 %v3759_v42, %v2753_v43 }
  0x63   :  { %1929 = vmatmul.bf16.gmra.mxu2 %v3000_v50 }
  0x64   :  { %1978 = vmatmul.bf16.gmra.mxu3 %v3004_v51 }
  0x71   :  { %1836 = vmatmul.bf16.gmra.mxu0 %v3056_v0 }
  0x72   :  { %1885 = vmatmul.bf16.gmra.mxu1 %v3060_v1  ;;  %v3962_v1 = vld [vmem:[%s5506_s1 + $0x268] sm:$0xff] }
  0x73   :  { %1934 = vmatmul.bf16.gmra.mxu2 %v3064_v2  ;;  %v2815_v2 = vld [vmem:[%s5507_s0 + $0x90] sm:$0xf]  ;;  %2246 = vmatpush.bf16.msra.mxu1 %v3962_v1  ;;  %v3807_v1 = vld [vmem:[%s5507_s0 + $0x194] sm:$0xf] }
  0x74   :  { %1983 = vmatmul.bf16.gmra.mxu3 %v3068_v3  ;;  %v3783_v3 = vld [vmem:[%s5507_s0 + $0xcc] sm:$0xf0] }
  0x75   :  { %v2816_v12 = vor.u32 %v3783_v3, %v2815_v2  ;;  %v2945_v2 = vld [vmem:[%s5507_s0 + $0x1d0] sm:$0xf0]  ;;  %v2951_v3 = vld [vmem:[%s5507_s0 + $0x198] sm:$0xf] }
  0x77   :  { %2247 = vmatpush.bf16.msra.mxu1 %v3961_v31  ;;  %v3007_v31 = vld [vmem:[%s5507_s0 + $0x210] sm:$0xf] }
  0x81   :  { %1841 = vmatmul.bf16.gmra.mxu0 %v3120_v16 }
  0x82   :  { %1890 = vmatmul.bf16.gmra.mxu1 %v3124_v17  ;;  %v2824_v17 = vor.u32 %v3784_v7, %v2823_v6  ;;  %v2953_v6 = vld [vmem:[%s5507_s0 + $0x1d8] sm:$0xf0] }
  0x83   :  { %1939 = vmatmul.bf16.gmra.mxu2 %v3128_v18  ;;  %v2828_v18 = vor.u32 %v3776_v8, %v2825_v9 }
  0x84   :  { %1988 = vmatmul.bf16.gmra.mxu3 %v3132_v19 }
  0x91   :  { %1846 = vmatmul.bf16.gmra.mxu0 %v3184_v32  ;;  %v2879_v32 = vld [vmem:[%s5507_s0 + $0x110] sm:$0xf] }
  0x92   :  { %1895 = vmatmul.bf16.gmra.mxu1 %v3188_v33  ;;  %v3799_v33 = vld [vmem:[%s5507_s0 + $0x14c] sm:$0xf0] }
  0x93   :  { %1944 = vmatmul.bf16.gmra.mxu2 %v3192_v34  ;;  %v3791_v34 = vld [vmem:[%s5507_s0 + $0x114] sm:$0xf]  ;;  %v2880_v42 = vor.u32 %v3799_v33, %v2879_v32  ;;  %v3831_v32 = vld [vmem:[%s5507_s0 + $0x24c] sm:$0xf0] }
  0x94   :  { %1993 = vmatmul.bf16.gmra.mxu3 %v3196_v35  ;;  %v2881_v35 = vld [vmem:[%s5507_s0 + $0x150] sm:$0xf0] }
  0x95   :  { %v2884_v43 = vor.u32 %v3791_v34, %v2881_v35  ;;  %v3823_v33 = vld [vmem:[%s5507_s0 + $0x214] sm:$0xf]  ;;  %v3015_v35 = vld [vmem:[%s5507_s0 + $0x218] sm:$0xf] }
  0x96   :  { %v3009_v34 = vld [vmem:[%s5507_s0 + $0x250] sm:$0xf0] }
  0x9e   :  { %v1812_v50 = vpop.f32.mrf.mxu0 }
  0x9f   :  { %v1861_v51 = vpop.f32.mrf.mxu1 }
  0xa0   :  { %v1862_v54 = vadd.f32 %v1861_v51, %v1812_v50  ;;  %v3968_v51 = vld [vmem:[%s5506_s1 + $0x298] sm:$0xff] }
  0xa1   :  { %2007 = vmatmul.bf16.vlgmr.msrb.gmra.mxu0 %v2752_v48  ;;  %v2892_v48 = vor.u32 %v3792_v38, %v2889_v39  ;;  %2297 = vmatpush.bf16.msra.mxu2 %v3968_v51  ;;  %v3017_v38 = vld [vmem:[%s5507_s0 + $0x258] sm:$0xf0]  ;;  %v3966_v51 = vld [vmem:[%s5506_s1 + $0x288] sm:$0xff] }
  0xa2   :  { %2056 = vmatmul.bf16.vlgmr.msrb.gmra.mxu1 %v2756_v49 }
  0xa3   :  { %2105 = vmatmul.bf16.vlgmr.msrb.gmra.mxu2 %v2760_v52  ;;  %v3952_v52 = vld [vmem:[%s5506_s1 + $0x218] sm:$0xff] }
  0xa4   :  { %2154 = vmatmul.bf16.vlgmr.msrb.gmra.mxu3 %v2764_v53  ;;  %v3976_v53 = vld [vmem:[%s5506_s1 + $0x2d8] sm:$0xff]  ;;  %2199 = vmatpush.bf16.msra.mxu0 %v3952_v52  ;;  %v3950_v52 = vld [vmem:[%s5506_s1 + $0x208] sm:$0xff] }
  0xa5   :  { %2346 = vmatpush.bf16.msra.mxu3 %v3976_v53  ;;  %v3974_v53 = vld [vmem:[%s5506_s1 + $0x2c8] sm:$0xff] }
  0xa6   :  { %v1910_v58 = vpop.f32.mrf.mxu2  ;;  %v1814_v61 = vpop.f32.mrf.mxu0 }
  0xa7   :  { %v1959_v59 = vpop.f32.mrf.mxu3  ;;  %v1911_v60 = vadd.f32 %v1910_v58, %v1862_v54  ;;  %v1863_v62 = vpop.f32.mrf.mxu1 }
  0xa8   :  { %v1864_v63 = vadd.f32 %v1863_v62, %v1814_v61  ;;  %v3960_v61 = vld [vmem:[%s5506_s1 + $0x258] sm:$0xff]  ;;  %v2943_v62 = vld [vmem:[%s5507_s0 + $0x190] sm:$0xf] }
  0xa9   :  { %v4475_v0 = vadd.f32 %v1959_v59, %v1911_v60  ;;  %2248 = vmatpush.bf16.msra.mxu1 %v3960_v61  ;;  %2347 = vmatpush.bf16.msra.mxu3 %v3975_v21  ;;  %v3965_v21 = vld [vmem:[%s5506_s1 + $0x280] sm:$0xff] }
  0xad   :  { %2348 = vmatpush.bf16.msra.mxu3 %v3974_v53 }
  0xae   :  { %v1912_v10 = vpop.f32.mrf.mxu2  ;;  %v1817_v15 = vpop.f32.mrf.mxu0 }
  0xaf   :  { %v1961_v11 = vpop.f32.mrf.mxu3  ;;  %v1913_v14 = vadd.f32 %v1912_v10, %v1864_v63  ;;  %v1866_v16 = vpop.f32.mrf.mxu1  ;;  %v3815_v63 = vld [vmem:[%s5507_s0 + $0x1cc] sm:$0xf0]  ;;  %v2948_v10 = vor.u32 %v3807_v1, %v2945_v2  ;;  %v3839_v2 = vld [vmem:[%s5507_s0 + $0x294] sm:$0xf] }
  0xb0   :  { %v1867_v19 = vadd.f32 %v1866_v16, %v1817_v15  ;;  %v2944_v9 = vor.u32 %v3815_v63, %v2943_v62  ;;  %v2956_v15 = vor.u32 %v3808_v5, %v2953_v6  ;;  %v3958_v62 = vld [vmem:[%s5506_s1 + $0x248] sm:$0xff]  ;;  %v3071_v63 = vld [vmem:[%s5507_s0 + $0x290] sm:$0xf]  ;;  %v3848_v5 = vld [vmem:[%s5507_s0 + $0x2d4] sm:$0xf0] }
  0xb1   :  { %v4504_v20 = vadd.f32 %v1961_v11, %v1913_v14  ;;  %2012 = vmatmul.bf16.gmra.mxu0 %v2816_v12  ;;  %v2952_v14 = vor.u32 %v3816_v4, %v2951_v3  ;;  %v3847_v1 = vld [vmem:[%s5507_s0 + $0x2cc] sm:$0xf0]  ;;  %v3073_v3 = vld [vmem:[%s5507_s0 + $0x2d0] sm:$0xf0]  ;;  %v3079_v4 = vld [vmem:[%s5507_s0 + $0x298] sm:$0xf] }
  0xb2   :  { %2061 = vmatmul.bf16.gmra.mxu1 %v2820_v13  ;;  %v3840_v6 = vld [vmem:[%s5507_s0 + $0x29c] sm:$0xf] }
  0xb3   :  { %2110 = vmatmul.bf16.gmra.mxu2 %v2824_v17 }
  0xb4   :  { %2159 = vmatmul.bf16.gmra.mxu3 %v2828_v18  ;;  %v3967_v18 = vld [vmem:[%s5506_s1 + $0x290] sm:$0xff] }
  0xb5   :  { %2298 = vmatpush.bf16.msra.mxu2 %v3967_v18 }
  0xb6   :  { %v1915_v24 = vpop.f32.mrf.mxu2  ;;  %v1819_v27 = vpop.f32.mrf.mxu0 }
  0xb7   :  { %v1964_v25 = vpop.f32.mrf.mxu3  ;;  %v1916_v26 = vadd.f32 %v1915_v24, %v1867_v19  ;;  %v1868_v28 = vpop.f32.mrf.mxu1  ;;  %v3951_v19 = vld [vmem:[%s5506_s1 + $0x210] sm:$0xff] }
  0xb8   :  { %v1869_v29 = vadd.f32 %v1868_v28, %v1819_v27  ;;  %2200 = vmatpush.bf16.msra.mxu0 %v3951_v19 }
  0xb9   :  { %v4515_v30 = vadd.f32 %v1964_v25, %v1916_v26  ;;  %2299 = vmatpush.bf16.msra.mxu2 %v3966_v51 }
  0xbc   :  { %2201 = vmatpush.bf16.msra.mxu0 %v3950_v52 }
  0xbd   :  { %2300 = vmatpush.bf16.msra.mxu2 %v3965_v21 }
  0xbe   :  { %v1917_v40 = vpop.f32.mrf.mxu2  ;;  %v1822_v45 = vpop.f32.mrf.mxu0 }
  0xbf   :  { %v1966_v41 = vpop.f32.mrf.mxu3  ;;  %v1918_v44 = vadd.f32 %v1917_v40, %v1869_v29  ;;  %v1871_v46 = vpop.f32.mrf.mxu1  ;;  %v3959_v29 = vld [vmem:[%s5506_s1 + $0x250] sm:$0xff] }
  0xc0   :  { %v1872_v49 = vadd.f32 %v1871_v46, %v1822_v45  ;;  %2249 = vmatpush.bf16.msra.mxu1 %v3959_v29  ;;  %v3016_v46 = vor.u32 %v3832_v36, %v3015_v35  ;;  %v3863_v35 = vld [vmem:[%s5507_s0 + $0x34c] sm:$0xf0]  ;;  %v3855_v36 = vld [vmem:[%s5507_s0 + $0x314] sm:$0xf] }
  0xc1   :  { %v4544_v50 = vadd.f32 %v1966_v41, %v1918_v44  ;;  %2017 = vmatmul.bf16.gmra.mxu0 %v2880_v42  ;;  %v3008_v41 = vor.u32 %v3831_v32, %v3007_v31  ;;  %v3012_v42 = vor.u32 %v3823_v33, %v3009_v34  ;;  %v3957_v33 = vld [vmem:[%s5506_s1 + $0x240] sm:$0xff]  ;;  %v3135_v34 = vld [vmem:[%s5507_s0 + $0x310] sm:$0xf] }
  0xc2   :  { %2066 = vmatmul.bf16.gmra.mxu1 %v2884_v43 }
  0xc3   :  { %2115 = vmatmul.bf16.gmra.mxu2 %v2888_v47  ;;  %v3020_v47 = vor.u32 %v3824_v37, %v3017_v38  ;;  %v3137_v37 = vld [vmem:[%s5507_s0 + $0x350] sm:$0xf0]  ;;  %v3143_v38 = vld [vmem:[%s5507_s0 + $0x318] sm:$0xf] }
  0xc4   :  { %2164 = vmatmul.bf16.gmra.mxu3 %v2892_v48  ;;  %2250 = vmatpush.bf16.msra.mxu1 %v3958_v62 }
  0xc6   :  { %v1920_v54 = vpop.f32.mrf.mxu2  ;;  %v1824_v57 = vpop.f32.mrf.mxu0 }
  0xc7   :  { %v1969_v55 = vpop.f32.mrf.mxu3  ;;  %v1921_v56 = vadd.f32 %v1920_v54, %v1872_v49  ;;  %v1873_v58 = vpop.f32.mrf.mxu1 }
  0xc8   :  { %v1874_v59 = vadd.f32 %v1873_v58, %v1824_v57  ;;  %2251 = vmatpush.bf16.msra.mxu1 %v3957_v33 }
  0xc9   :  { %v4555_v60 = vadd.f32 %v1969_v55, %v1921_v56 }
  0xce   :  { %v1922_v7 = vpop.f32.mrf.mxu2  ;;  %v1827_v12 = vpop.f32.mrf.mxu0 }
  0xcf   :  { %v1971_v8 = vpop.f32.mrf.mxu3  ;;  %v1923_v11 = vadd.f32 %v1922_v7, %v1874_v59  ;;  %v1876_v13 = vpop.f32.mrf.mxu1  ;;  %v3081_v7 = vld [vmem:[%s5507_s0 + $0x2d8] sm:$0xf0] }
  0xd0   :  { %v1877_v16 = vadd.f32 %v1876_v13, %v1827_v12 }
  0xd1   :  { %v4584_v17 = vadd.f32 %v1971_v8, %v1923_v11  ;;  %2022 = vmatmul.bf16.gmra.mxu0 %v2944_v9  ;;  %v3076_v11 = vor.u32 %v3839_v2, %v3073_v3 }
  0xd2   :  { %2071 = vmatmul.bf16.gmra.mxu1 %v2948_v10  ;;  %v3072_v10 = vor.u32 %v3847_v1, %v3071_v63 }
  0xd3   :  { %2120 = vmatmul.bf16.gmra.mxu2 %v2952_v14 }
  0xd4   :  { %2169 = vmatmul.bf16.gmra.mxu3 %v2956_v15  ;;  %v3080_v15 = vor.u32 %v3848_v5, %v3079_v4  ;;  %v3996_v4 = vld [vmem:[%s5506_s1 + $0x378] sm:$0xff]  ;;  %v3199_v5 = vld [vmem:[%s5507_s0 + $0x390] sm:$0xf] }
  0xd5   :  { %2440 = vmatpush.bf16.msrb.mxu1 %v3996_v4  ;;  %v4002_v4 = vld [vmem:[%s5506_s1 + $0x3a8] sm:$0xff] }
  0xd6   :  { %v1925_v22 = vpop.f32.mrf.mxu2  ;;  %v1829_v25 = vpop.f32.mrf.mxu0 }
  0xd7   :  { %v1974_v23 = vpop.f32.mrf.mxu3  ;;  %v1926_v24 = vadd.f32 %v1925_v22, %v1877_v16  ;;  %v1878_v26 = vpop.f32.mrf.mxu1  ;;  %v3084_v16 = vor.u32 %v3840_v6, %v3081_v7  ;;  %v3949_v22 = vld [vmem:[%s5506_s1 + $0x200] sm:$0xff]  ;;  %v3879_v6 = vld [vmem:[%s5507_s0 + $0x3cc] sm:$0xf0]  ;;  %v3871_v7 = vld [vmem:[%s5507_s0 + $0x394] sm:$0xf] }
  0xd8   :  { %v1879_v27 = vadd.f32 %v1878_v26, %v1829_v25  ;;  %2202 = vmatpush.bf16.msra.mxu0 %v3949_v22 }
  0xd9   :  { %v4595_v28 = vadd.f32 %v1974_v23, %v1926_v24  ;;  %v3973_v23 = vld [vmem:[%s5506_s1 + $0x2c0] sm:$0xff] }
  0xda   :  { %2349 = vmatpush.bf16.msra.mxu3 %v3973_v23 }
  0xde   :  { %v1927_v39 = vpop.f32.mrf.mxu2  ;;  %v1832_v44 = vpop.f32.mrf.mxu0 }
  0xdf   :  { %v1976_v40 = vpop.f32.mrf.mxu3  ;;  %v1928_v43 = vadd.f32 %v1927_v39, %v1879_v27  ;;  %v1881_v45 = vpop.f32.mrf.mxu1  ;;  %v3864_v39 = vld [vmem:[%s5507_s0 + $0x354] sm:$0xf0] }
  0xe0   :  { %v1882_v48 = vadd.f32 %v1881_v45, %v1832_v44  ;;  %v3136_v44 = vor.u32 %v3863_v35, %v3135_v34  ;;  %v3140_v45 = vor.u32 %v3855_v36, %v3137_v37  ;;  %v3144_v51 = vor.u32 %v3864_v39, %v3143_v38 }
  0xe1   :  { %v4624_v49 = vadd.f32 %v1976_v40, %v1928_v43  ;;  %2027 = vmatmul.bf16.gmra.mxu0 %v3008_v41  ;;  %v3856_v40 = vld [vmem:[%s5507_s0 + $0x31c] sm:$0xf] }
  0xe2   :  { %2076 = vmatmul.bf16.gmra.mxu1 %v3012_v42  ;;  %v3145_v41 = vld [vmem:[%s5507_s0 + $0x358] sm:$0xf0] }
  0xe3   :  { %2125 = vmatmul.bf16.gmra.mxu2 %v3016_v46  ;;  %v3148_v52 = vor.u32 %v3856_v40, %v3145_v41  ;;  %v3995_v40 = vld [vmem:[%s5506_s1 + $0x370] sm:$0xff]  ;;  %v2767_v41 = vld [vmem:[%s5507_s0 + $0x20] sm:$0xf] }
  0xe4   :  { %2174 = vmatmul.bf16.gmra.mxu3 %v3020_v47  ;;  %2441 = vmatpush.bf16.msrb.mxu1 %v3995_v40 }
  0xe6   :  { %v1930_v54 = vpop.f32.mrf.mxu2  ;;  %v1834_v57 = vpop.f32.mrf.mxu0 }
  0xe7   :  { %v1979_v55 = vpop.f32.mrf.mxu3  ;;  %v1931_v56 = vadd.f32 %v1930_v54, %v1882_v48  ;;  %v1883_v58 = vpop.f32.mrf.mxu1 }
  0xe8   :  { %v1884_v59 = vadd.f32 %v1883_v58, %v1834_v57  ;;  %v4012_v57 = vld [vmem:[%s5506_s1 + $0x3f8] sm:$0xff] }
  0xe9   :  { %v4635_v61 = vadd.f32 %v1979_v55, %v1931_v56  ;;  %v4004_v55 = vld [vmem:[%s5506_s1 + $0x3b8] sm:$0xff]  ;;  %2538 = vmatpush.bf16.msrb.mxu3 %v4012_v57 }
  0xea   :  { %v3988_v56 = vld [vmem:[%s5506_s1 + $0x338] sm:$0xff]  ;;  %2489 = vmatpush.bf16.msrb.mxu2 %v4004_v55 }
  0xeb   :  { %2391 = vmatpush.bf16.msrb.mxu0 %v3988_v56 }
  0xee   :  { %v1932_v8 = vpop.f32.mrf.mxu2  ;;  %v1837_v13 = vpop.f32.mrf.mxu0 }
  0xef   :  { %v1981_v9 = vpop.f32.mrf.mxu3  ;;  %v1933_v12 = vadd.f32 %v1932_v8, %v1884_v59  ;;  %v1886_v14 = vpop.f32.mrf.mxu1  ;;  %v3201_v8 = vld [vmem:[%s5507_s0 + $0x3d0] sm:$0xf0] }
  0xf0   :  { %v1887_v18 = vadd.f32 %v1886_v14, %v1837_v13 }
  0xf1   :  { %v4664_v19 = vadd.f32 %v1981_v9, %v1933_v12  ;;  %2032 = vmatmul.bf16.gmra.mxu0 %v3072_v10  ;;  %v3207_v9 = vld [vmem:[%s5507_s0 + $0x398] sm:$0xf]  ;;  %v3209_v12 = vld [vmem:[%s5507_s0 + $0x3d8] sm:$0xf0] }
  0xf2   :  { %2081 = vmatmul.bf16.gmra.mxu1 %v3076_v11  ;;  %v3880_v10 = vld [vmem:[%s5507_s0 + $0x3d4] sm:$0xf0]  ;;  %v3872_v11 = vld [vmem:[%s5507_s0 + $0x39c] sm:$0xf] }
  0xf3   :  { %2130 = vmatmul.bf16.gmra.mxu2 %v3080_v15  ;;  %v3200_v15 = vor.u32 %v3879_v6, %v3199_v5  ;;  %v3208_v23 = vor.u32 %v3880_v10, %v3207_v9  ;;  %v3986_v5 = vld [vmem:[%s5506_s1 + $0x328] sm:$0xff] }
  0xf4   :  { %2179 = vmatmul.bf16.gmra.mxu3 %v3084_v16  ;;  %v3204_v16 = vor.u32 %v3871_v7, %v3201_v8  ;;  %v4010_v6 = vld [vmem:[%s5506_s1 + $0x3e8] sm:$0xff] }
  0xf6   :  { %v1935_v24 = vpop.f32.mrf.mxu2  ;;  %v1839_v27 = vpop.f32.mrf.mxu0 }
  0xf7   :  { %v1984_v25 = vpop.f32.mrf.mxu3  ;;  %v1936_v26 = vadd.f32 %v1935_v24, %v1887_v18  ;;  %v1888_v29 = vpop.f32.mrf.mxu1  ;;  %v3212_v24 = vor.u32 %v3872_v11, %v3209_v12 }
  0xf8   :  { %v1889_v31 = vadd.f32 %v1888_v29, %v1839_v27  ;;  %v4003_v27 = vld [vmem:[%s5506_s1 + $0x3b0] sm:$0xff] }
  0xf9   :  { %v4675_v32 = vadd.f32 %v1984_v25, %v1936_v26  ;;  %v3987_v29 = vld [vmem:[%s5506_s1 + $0x330] sm:$0xff]  ;;  %2490 = vmatpush.bf16.msrb.mxu2 %v4003_v27 }
  0xfa   :  { %2392 = vmatpush.bf16.msrb.mxu0 %v3987_v29 }
  0xfd   :  { %2491 = vmatpush.bf16.msrb.mxu2 %v4002_v4 }
  0xfe   :  { %v1937_v42 = vpop.f32.mrf.mxu2  ;;  %v1842_v47 = vpop.f32.mrf.mxu0  ;;  %2393 = vmatpush.bf16.msrb.mxu0 %v3986_v5 }
  0xff   :  { %v1986_v43 = vpop.f32.mrf.mxu3  ;;  %v1938_v46 = vadd.f32 %v1937_v42, %v1889_v31  ;;  %v1891_v48 = vpop.f32.mrf.mxu1  ;;  %v4011_v31 = vld [vmem:[%s5506_s1 + $0x3f0] sm:$0xff]  ;;  %v3769_v42 = vld [vmem:[%s5507_s0 + $0x5c] sm:$0xf0] }
 0x100   :  { %v1892_v53 = vadd.f32 %v1891_v48, %v1842_v47  ;;  %2539 = vmatpush.bf16.msrb.mxu3 %v4011_v31  ;;  %v3762_v47 = vld [vmem:[%s5507_s0 + $0x2c] sm:$0xf] }
 0x101   :  { %v4704_v54 = vadd.f32 %v1986_v43, %v1938_v46  ;;  %2037 = vmatmul.bf16.gmra.mxu0 %v3136_v44  ;;  %v3761_v43 = vld [vmem:[%s5507_s0 + $0x24] sm:$0xf]  ;;  %v3770_v46 = vld [vmem:[%s5507_s0 + $0x64] sm:$0xf0]  ;;  %v2777_v48 = vld [vmem:[%s5507_s0 + $0x68] sm:$0xf0] }
 0x102   :  { %2086 = vmatmul.bf16.gmra.mxu1 %v3140_v45  ;;  %v2769_v44 = vld [vmem:[%s5507_s0 + $0x60] sm:$0xf0]  ;;  %v2775_v45 = vld [vmem:[%s5507_s0 + $0x28] sm:$0xf] }
 0x103   :  { %2135 = vmatmul.bf16.gmra.mxu2 %v3144_v51  ;;  %v2772_v55 = vor.u32 %v3761_v43, %v2769_v44  ;;  %v3985_v43 = vld [vmem:[%s5506_s1 + $0x320] sm:$0xff] }
 0x104   :  { %2184 = vmatmul.bf16.gmra.mxu3 %v3148_v52  ;;  %v4009_v44 = vld [vmem:[%s5506_s1 + $0x3e0] sm:$0xff]  ;;  %2394 = vmatpush.bf16.msrb.mxu0 %v3985_v43 }
 0x105   :  { %2540 = vmatpush.bf16.msrb.mxu3 %v4010_v6 }
 0x106   :  { %v1940_v58 = vpop.f32.mrf.mxu2  ;;  %v1844_v63 = vpop.f32.mrf.mxu0 }
 0x107   :  { %v1989_v59 = vpop.f32.mrf.mxu3  ;;  %v1941_v62 = vadd.f32 %v1940_v58, %v1892_v53  ;;  %v1893_v1 = vpop.f32.mrf.mxu1  ;;  %v2768_v53 = vor.u32 %v3769_v42, %v2767_v41  ;;  %v4001_v42 = vld [vmem:[%s5506_s1 + $0x3a0] sm:$0xff] }
 0x108   :  { %v1894_v2 = vadd.f32 %v1893_v1, %v1844_v63  ;;  %2492 = vmatpush.bf16.msrb.mxu2 %v4001_v42 }
 0x109   :  { %v4715_v3 = vadd.f32 %v1989_v59, %v1941_v62  ;;  %v2776_v59 = vor.u32 %v3770_v46, %v2775_v45  ;;  %v2780_v62 = vor.u32 %v3762_v47, %v2777_v48  ;;  %2541 = vmatpush.bf16.msrb.mxu3 %v4009_v44 }
 0x10e   :  { %v1942_v13 = vpop.f32.mrf.mxu2  ;;  %v1847_v21 = vpop.f32.mrf.mxu0 }
 0x10f   :  { %v1991_v14 = vpop.f32.mrf.mxu3  ;;  %v1943_v18 = vadd.f32 %v1942_v13, %v1894_v2  ;;  %v1896_v22 = vpop.f32.mrf.mxu1  ;;  %v3994_v13 = vld [vmem:[%s5506_s1 + $0x368] sm:$0xff] }
 0x110   :  { %v1897_v25 = vadd.f32 %v1896_v22, %v1847_v21  ;;  %v2839_v21 = vld [vmem:[%s5507_s0 + $0xa8] sm:$0xf]  ;;  %2442 = vmatpush.bf16.msrb.mxu1 %v3994_v13 }
 0x111   :  { %v4744_v26 = vadd.f32 %v1991_v14, %v1943_v18  ;;  %2042 = vmatmul.bf16.gmra.mxu0 %v3200_v15  ;;  %v2831_v15 = vld [vmem:[%s5507_s0 + $0xa0] sm:$0xf]  ;;  %v3777_v18 = vld [vmem:[%s5507_s0 + $0xa4] sm:$0xf]  ;;  %v3786_v22 = vld [vmem:[%s5507_s0 + $0xe4] sm:$0xf0] }
 0x112   :  { %2091 = vmatmul.bf16.gmra.mxu1 %v3204_v16  ;;  %v3785_v16 = vld [vmem:[%s5507_s0 + $0xdc] sm:$0xf0] }
 0x113   :  { %2140 = vmatmul.bf16.gmra.mxu2 %v3208_v23  ;;  %v3778_v23 = vld [vmem:[%s5507_s0 + $0xac] sm:$0xf]  ;;  %v2832_v29 = vor.u32 %v3785_v16, %v2831_v15  ;;  %v4000_v16 = vld [vmem:[%s5506_s1 + $0x398] sm:$0xff] }
 0x114   :  { %2189 = vmatmul.bf16.gmra.mxu3 %v3212_v24  ;;  %v2841_v24 = vld [vmem:[%s5507_s0 + $0xe8] sm:$0xf0]  ;;  %2493 = vmatpush.bf16.msrb.mxu2 %v4000_v16 }
 0x116   :  { %v1945_v33 = vpop.f32.mrf.mxu2  ;;  %v1849_v36 = vpop.f32.mrf.mxu0 }
 0x117   :  { %v1994_v34 = vpop.f32.mrf.mxu3  ;;  %v1946_v35 = vadd.f32 %v1945_v33, %v1897_v25  ;;  %v1898_v37 = vpop.f32.mrf.mxu1 }
 0x118   :  { %v1899_v38 = vadd.f32 %v1898_v37, %v1849_v36  ;;  %v2840_v36 = vor.u32 %v3786_v22, %v2839_v21  ;;  %v2844_v37 = vor.u32 %v3778_v23, %v2841_v24 }
 0x119   :  { %v4755_v39 = vadd.f32 %v1994_v34, %v1946_v35 }
 0x11e   :  { %v1947_v51 = vpop.f32.mrf.mxu2  ;;  %v2008_v57 = vpop.f32.mrf.mxu0 }
 0x11f   :  { %v1996_v52 = vpop.f32.mrf.mxu3  ;;  %v1948_v56 = vadd.f32 %v1947_v51, %v1899_v38  ;;  %v2057_v58 = vpop.f32.mrf.mxu1  ;;  %v2009_v63 = vadd.f32 %v2008_v57, %v4475_v0  ;;  %v3801_v57 = vld [vmem:[%s5507_s0 + $0x15c] sm:$0xf0] }
 0x121   :  { %v4785_v1 = vadd.f32 %v1996_v52, %v1948_v56  ;;  %v2058_v2 = vadd.f32 %v2057_v58, %v2009_v63  ;;  %2203 = vmatmul.bf16.vlgmr.msra.gmra.mxu0 %v2768_v53  ;;  %v3993_v53 = vld [vmem:[%s5506_s1 + $0x360] sm:$0xff]  ;;  %v3794_v63 = vld [vmem:[%s5507_s0 + $0x12c] sm:$0xf] }
 0x122   :  { %2252 = vmatmul.bf16.vlgmr.msra.gmra.mxu1 %v2772_v55  ;;  %v2895_v56 = vld [vmem:[%s5507_s0 + $0x120] sm:$0xf]  ;;  %v3793_v58 = vld [vmem:[%s5507_s0 + $0x124] sm:$0xf] }
 0x123   :  { %2301 = vmatmul.bf16.vlgmr.msra.gmra.mxu2 %v2776_v59  ;;  %v2903_v59 = vld [vmem:[%s5507_s0 + $0x128] sm:$0xf]  ;;  %2443 = vmatpush.bf16.msrb.mxu1 %v3993_v53  ;;  %v2896_v6 = vor.u32 %v3801_v57, %v2895_v56  ;;  %v3999_v57 = vld [vmem:[%s5506_s1 + $0x390] sm:$0xff] }
 0x124   :  { %2350 = vmatmul.bf16.vlgmr.msra.gmra.mxu3 %v2780_v62  ;;  %v3802_v62 = vld [vmem:[%s5507_s0 + $0x164] sm:$0xf0]  ;;  %2494 = vmatpush.bf16.msrb.mxu2 %v3999_v57 }
 0x126   :  { %v2106_v0 = vpop.f32.mrf.mxu2  ;;  %v2010_v9 = vpop.f32.mrf.mxu0 }
 0x127   :  { %v2155_v7 = vpop.f32.mrf.mxu3  ;;  %v2107_v8 = vadd.f32 %v2106_v0, %v2058_v2  ;;  %v2059_v10 = vpop.f32.mrf.mxu1  ;;  %v2011_v11 = vadd.f32 %v2010_v9, %v4504_v20  ;;  %v2833_v20 = vld [vmem:[%s5507_s0 + $0xe0] sm:$0xf0]  ;;  %v2905_v2 = vld [vmem:[%s5507_s0 + $0x168] sm:$0xf0] }
 0x128   :  { %v2836_v31 = vor.u32 %v3777_v18, %v2833_v20  ;;  %v3984_v18 = vld [vmem:[%s5506_s1 + $0x318] sm:$0xff] }
 0x129   :  { %v4797_v12 = vadd.f32 %v2155_v7, %v2107_v8  ;;  %v2060_v14 = vadd.f32 %v2059_v10, %v2011_v11  ;;  %v2904_v10 = vor.u32 %v3802_v62, %v2903_v59  ;;  %v2908_v11 = vor.u32 %v3794_v63, %v2905_v2  ;;  %v4008_v20 = vld [vmem:[%s5506_s1 + $0x3d8] sm:$0xff]  ;;  %2395 = vmatpush.bf16.msrb.mxu0 %v3984_v18 }
 0x12a   :  { %2542 = vmatpush.bf16.msrb.mxu3 %v4008_v20 }
 0x12e   :  { %v2108_v25 = vpop.f32.mrf.mxu2  ;;  %v2013_v34 = vpop.f32.mrf.mxu0 }
 0x12f   :  { %v2157_v27 = vpop.f32.mrf.mxu3  ;;  %v2109_v33 = vadd.f32 %v2108_v25, %v2060_v14  ;;  %v2062_v35 = vpop.f32.mrf.mxu1  ;;  %v2014_v38 = vadd.f32 %v2013_v34, %v4515_v30  ;;  %v3817_v34 = vld [vmem:[%s5507_s0 + $0x1dc] sm:$0xf0] }
 0x131   :  { %v4827_v40 = vadd.f32 %v2157_v27, %v2109_v33  ;;  %v2063_v41 = vadd.f32 %v2062_v35, %v2014_v38  ;;  %2208 = vmatmul.bf16.gmra.mxu0 %v2832_v29  ;;  %v3992_v29 = vld [vmem:[%s5506_s1 + $0x358] sm:$0xff]  ;;  %v2959_v33 = vld [vmem:[%s5507_s0 + $0x1a0] sm:$0xf]  ;;  %v3809_v35 = vld [vmem:[%s5507_s0 + $0x1a4] sm:$0xf] }
 0x132   :  { %2257 = vmatmul.bf16.gmra.mxu1 %v2836_v31  ;;  %v3810_v38 = vld [vmem:[%s5507_s0 + $0x1ac] sm:$0xf]  ;;  %v2960_v44 = vor.u32 %v3817_v34, %v2959_v33 }
 0x133   :  { %2306 = vmatmul.bf16.gmra.mxu2 %v2840_v36  ;;  %v2967_v36 = vld [vmem:[%s5507_s0 + $0x1a8] sm:$0xf]  ;;  %2444 = vmatpush.bf16.msrb.mxu1 %v3992_v29 }
 0x134   :  { %2355 = vmatmul.bf16.gmra.mxu3 %v2844_v37  ;;  %v3818_v37 = vld [vmem:[%s5507_s0 + $0x1e4] sm:$0xf0] }
 0x135   :  { %v3998_v34 = vld [vmem:[%s5506_s1 + $0x388] sm:$0xff] }
 0x136   :  { %v2111_v30 = vpop.f32.mrf.mxu2  ;;  %v2015_v47 = vpop.f32.mrf.mxu0  ;;  %2495 = vmatpush.bf16.msrb.mxu2 %v3998_v34 }
 0x137   :  { %v2160_v45 = vpop.f32.mrf.mxu3  ;;  %v2112_v46 = vadd.f32 %v2111_v30, %v2063_v41  ;;  %v2064_v48 = vpop.f32.mrf.mxu1  ;;  %v2016_v51 = vadd.f32 %v2015_v47, %v4544_v50  ;;  %v2897_v50 = vld [vmem:[%s5507_s0 + $0x160] sm:$0xf0]  ;;  %v2969_v41 = vld [vmem:[%s5507_s0 + $0x1e8] sm:$0xf0] }
 0x138   :  { %v2900_v0 = vor.u32 %v3793_v58, %v2897_v50  ;;  %v3983_v58 = vld [vmem:[%s5506_s1 + $0x310] sm:$0xff] }
 0x139   :  { %v4839_v52 = vadd.f32 %v2160_v45, %v2112_v46  ;;  %v2065_v55 = vadd.f32 %v2064_v48, %v2016_v51  ;;  %v2968_v48 = vor.u32 %v3818_v37, %v2967_v36  ;;  %v2972_v51 = vor.u32 %v3810_v38, %v2969_v41  ;;  %v4007_v50 = vld [vmem:[%s5506_s1 + $0x3d0] sm:$0xff]  ;;  %2396 = vmatpush.bf16.msrb.mxu0 %v3983_v58 }
 0x13a   :  { %2543 = vmatpush.bf16.msrb.mxu3 %v4007_v50 }
 0x13e   :  { %v2113_v4 = vpop.f32.mrf.mxu2  ;;  %v2018_v8 = vpop.f32.mrf.mxu0 }
 0x13f   :  { %v2162_v5 = vpop.f32.mrf.mxu3  ;;  %v2114_v7 = vadd.f32 %v2113_v4, %v2065_v55  ;;  %v2067_v9 = vpop.f32.mrf.mxu1  ;;  %v2019_v13 = vadd.f32 %v2018_v8, %v4555_v60  ;;  %v3833_v8 = vld [vmem:[%s5507_s0 + $0x25c] sm:$0xf0] }
 0x141   :  { %v4869_v14 = vadd.f32 %v2162_v5, %v2114_v7  ;;  %v2068_v15 = vadd.f32 %v2067_v9, %v2019_v13  ;;  %2213 = vmatmul.bf16.gmra.mxu0 %v2896_v6  ;;  %v3991_v6 = vld [vmem:[%s5506_s1 + $0x350] sm:$0xff]  ;;  %v3023_v7 = vld [vmem:[%s5507_s0 + $0x220] sm:$0xf]  ;;  %v3825_v9 = vld [vmem:[%s5507_s0 + $0x224] sm:$0xf] }
 0x142   :  { %2262 = vmatmul.bf16.gmra.mxu1 %v2900_v0  ;;  %v3826_v13 = vld [vmem:[%s5507_s0 + $0x22c] sm:$0xf]  ;;  %v3024_v20 = vor.u32 %v3833_v8, %v3023_v7  ;;  %v3997_v8 = vld [vmem:[%s5506_s1 + $0x380] sm:$0xff] }
 0x143   :  { %2311 = vmatmul.bf16.gmra.mxu2 %v2904_v10  ;;  %v3031_v10 = vld [vmem:[%s5507_s0 + $0x228] sm:$0xf]  ;;  %2445 = vmatpush.bf16.msrb.mxu1 %v3991_v6 }
 0x144   :  { %2360 = vmatmul.bf16.gmra.mxu3 %v2908_v11  ;;  %v3834_v11 = vld [vmem:[%s5507_s0 + $0x264] sm:$0xf0]  ;;  %2496 = vmatpush.bf16.msrb.mxu2 %v3997_v8 }
 0x146   :  { %v2116_v60 = vpop.f32.mrf.mxu2  ;;  %v2020_v23 = vpop.f32.mrf.mxu0 }
 0x147   :  { %v2165_v21 = vpop.f32.mrf.mxu3  ;;  %v2117_v22 = vadd.f32 %v2116_v60, %v2068_v15  ;;  %v2069_v24 = vpop.f32.mrf.mxu1  ;;  %v2021_v25 = vadd.f32 %v2020_v23, %v4584_v17  ;;  %v2961_v17 = vld [vmem:[%s5507_s0 + $0x1e0] sm:$0xf0]  ;;  %v3033_v15 = vld [vmem:[%s5507_s0 + $0x268] sm:$0xf0] }
 0x148   :  { %v2964_v30 = vor.u32 %v3809_v35, %v2961_v17  ;;  %v3982_v35 = vld [vmem:[%s5506_s1 + $0x308] sm:$0xff] }
 0x149   :  { %v4881_v27 = vadd.f32 %v2165_v21, %v2117_v22  ;;  %v2070_v31 = vadd.f32 %v2069_v24, %v2021_v25  ;;  %v3032_v24 = vor.u32 %v3834_v11, %v3031_v10  ;;  %v3036_v25 = vor.u32 %v3826_v13, %v3033_v15  ;;  %v4006_v17 = vld [vmem:[%s5506_s1 + $0x3c8] sm:$0xff]  ;;  %2397 = vmatpush.bf16.msrb.mxu0 %v3982_v35 }
 0x14a   :  { %2544 = vmatpush.bf16.msrb.mxu3 %v4006_v17 }
 0x14e   :  { %v2118_v42 = vpop.f32.mrf.mxu2  ;;  %v2023_v46 = vpop.f32.mrf.mxu0 }
 0x14f   :  { %v2167_v43 = vpop.f32.mrf.mxu3  ;;  %v2119_v45 = vadd.f32 %v2118_v42, %v2070_v31  ;;  %v2072_v47 = vpop.f32.mrf.mxu1  ;;  %v2024_v53 = vadd.f32 %v2023_v46, %v4595_v28  ;;  %v3849_v46 = vld [vmem:[%s5507_s0 + $0x2dc] sm:$0xf0] }
 0x151   :  { %v4911_v55 = vadd.f32 %v2167_v43, %v2119_v45  ;;  %v2073_v56 = vadd.f32 %v2072_v47, %v2024_v53  ;;  %2218 = vmatmul.bf16.gmra.mxu0 %v2960_v44  ;;  %v3990_v44 = vld [vmem:[%s5506_s1 + $0x348] sm:$0xff]  ;;  %v3087_v45 = vld [vmem:[%s5507_s0 + $0x2a0] sm:$0xf]  ;;  %v3841_v47 = vld [vmem:[%s5507_s0 + $0x2a4] sm:$0xf] }
 0x152   :  { %2267 = vmatmul.bf16.gmra.mxu1 %v2964_v30  ;;  %v3842_v53 = vld [vmem:[%s5507_s0 + $0x2ac] sm:$0xf]  ;;  %v3088_v50 = vor.u32 %v3849_v46, %v3087_v45 }
 0x153   :  { %2316 = vmatmul.bf16.gmra.mxu2 %v2968_v48  ;;  %v3095_v48 = vld [vmem:[%s5507_s0 + $0x2a8] sm:$0xf]  ;;  %2446 = vmatpush.bf16.msrb.mxu1 %v3990_v44 }
 0x154   :  { %2365 = vmatmul.bf16.gmra.mxu3 %v2972_v51  ;;  %v3850_v51 = vld [vmem:[%s5507_s0 + $0x2e4] sm:$0xf0] }
 0x156   :  { %v2121_v28 = vpop.f32.mrf.mxu2  ;;  %v2025_v63 = vpop.f32.mrf.mxu0 }
 0x157   :  { %v2170_v59 = vpop.f32.mrf.mxu3  ;;  %v2122_v62 = vadd.f32 %v2121_v28, %v2073_v56  ;;  %v2074_v2 = vpop.f32.mrf.mxu1  ;;  %v2026_v4 = vadd.f32 %v2025_v63, %v4624_v49  ;;  %v3025_v49 = vld [vmem:[%s5507_s0 + $0x260] sm:$0xf0]  ;;  %v3097_v56 = vld [vmem:[%s5507_s0 + $0x2e8] sm:$0xf0] }
 0x158   :  { %v3028_v60 = vor.u32 %v3825_v9, %v3025_v49  ;;  %v3981_v9 = vld [vmem:[%s5506_s1 + $0x300] sm:$0xff] }
 0x159   :  { %v4923_v5 = vadd.f32 %v2170_v59, %v2122_v62  ;;  %v2075_v0 = vadd.f32 %v2074_v2, %v2026_v4  ;;  %v3096_v2 = vor.u32 %v3850_v51, %v3095_v48  ;;  %v3100_v4 = vor.u32 %v3842_v53, %v3097_v56  ;;  %v4005_v49 = vld [vmem:[%s5506_s1 + $0x3c0] sm:$0xff]  ;;  %2398 = vmatpush.bf16.msrb.mxu0 %v3981_v9 }
 0x15a   :  { %2545 = vmatpush.bf16.msrb.mxu3 %v4005_v49 }
 0x15e   :  { %v2123_v16 = vpop.f32.mrf.mxu2  ;;  %v2028_v22 = vpop.f32.mrf.mxu0 }
 0x15f   :  { %v2172_v18 = vpop.f32.mrf.mxu3  ;;  %v2124_v21 = vadd.f32 %v2123_v16, %v2075_v0  ;;  %v2077_v23 = vpop.f32.mrf.mxu1  ;;  %v2029_v29 = vadd.f32 %v2028_v22, %v4635_v61  ;;  %v3865_v22 = vld [vmem:[%s5507_s0 + $0x35c] sm:$0xf0] }
 0x161   :  { %v4953_v31 = vadd.f32 %v2172_v18, %v2124_v21  ;;  %v2078_v33 = vadd.f32 %v2077_v23, %v2029_v29  ;;  %2223 = vmatmul.bf16.gmra.mxu0 %v3024_v20  ;;  %v3989_v20 = vld [vmem:[%s5506_s1 + $0x340] sm:$0xff]  ;;  %v3858_v29 = vld [vmem:[%s5507_s0 + $0x32c] sm:$0xf] }
 0x162   :  { %2272 = vmatmul.bf16.gmra.mxu1 %v3028_v60  ;;  %v3151_v21 = vld [vmem:[%s5507_s0 + $0x320] sm:$0xf]  ;;  %v3857_v23 = vld [vmem:[%s5507_s0 + $0x324] sm:$0xf] }
 0x163   :  { %2321 = vmatmul.bf16.gmra.mxu2 %v3032_v24  ;;  %v3159_v24 = vld [vmem:[%s5507_s0 + $0x328] sm:$0xf]  ;;  %2447 = vmatpush.bf16.msrb.mxu1 %v3989_v20  ;;  %v3152_v17 = vor.u32 %v3865_v22, %v3151_v21 }
 0x164   :  { %2370 = vmatmul.bf16.gmra.mxu3 %v3036_v25  ;;  %v3866_v25 = vld [vmem:[%s5507_s0 + $0x364] sm:$0xf0] }
 0x166   :  { %v2126_v61 = vpop.f32.mrf.mxu2  ;;  %v2030_v38 = vpop.f32.mrf.mxu0 }
 0x167   :  { %v2175_v36 = vpop.f32.mrf.mxu3  ;;  %v2127_v37 = vadd.f32 %v2126_v61, %v2078_v33  ;;  %v2079_v41 = vpop.f32.mrf.mxu1  ;;  %v2031_v42 = vadd.f32 %v2030_v38, %v4664_v19  ;;  %v3089_v19 = vld [vmem:[%s5507_s0 + $0x2e0] sm:$0xf0]  ;;  %v3161_v33 = vld [vmem:[%s5507_s0 + $0x368] sm:$0xf0] }
 0x168   :  { %v3092_v28 = vor.u32 %v3841_v47, %v3089_v19 }
 0x169   :  { %v4965_v43 = vadd.f32 %v2175_v36, %v2127_v37  ;;  %v2080_v30 = vadd.f32 %v2079_v41, %v2031_v42  ;;  %v3160_v41 = vor.u32 %v3866_v25, %v3159_v24  ;;  %v3164_v42 = vor.u32 %v3858_v29, %v3161_v33  ;;  %v3771_v25 = vld [vmem:[%s5507_s0 + $0x6c] sm:$0xf0]  ;;  %v3763_v29 = vld [vmem:[%s5507_s0 + $0x34] sm:$0xf] }
 0x16a   :  { %v2785_v33 = vld [vmem:[%s5507_s0 + $0x70] sm:$0xf0] }
 0x16e   :  { %v2128_v57 = vpop.f32.mrf.mxu2  ;;  %v2033_v62 = vpop.f32.mrf.mxu0 }
 0x16f   :  { %v2177_v58 = vpop.f32.mrf.mxu3  ;;  %v2129_v59 = vadd.f32 %v2128_v57, %v2080_v30  ;;  %v2082_v63 = vpop.f32.mrf.mxu1  ;;  %v2034_v6 = vadd.f32 %v2033_v62, %v4675_v32  ;;  %v3874_v62 = vld [vmem:[%s5507_s0 + $0x3ac] sm:$0xf] }
 0x171   :  { %v4995_v0 = vadd.f32 %v2177_v58, %v2129_v59  ;;  %v2083_v7 = vadd.f32 %v2082_v63, %v2034_v6  ;;  %2228 = vmatmul.bf16.gmra.mxu0 %v3088_v50  ;;  %v3881_v58 = vld [vmem:[%s5507_s0 + $0x3dc] sm:$0xf0]  ;;  %v3873_v50 = vld [vmem:[%s5507_s0 + $0x3a4] sm:$0xf]  ;;  %v3882_v59 = vld [vmem:[%s5507_s0 + $0x3e4] sm:$0xf0] }
 0x172   :  { %2277 = vmatmul.bf16.gmra.mxu1 %v3092_v28  ;;  %v3217_v28 = vld [vmem:[%s5507_s0 + $0x3e0] sm:$0xf0]  ;;  %v3225_v63 = vld [vmem:[%s5507_s0 + $0x3e8] sm:$0xf0] }
 0x173   :  { %2326 = vmatmul.bf16.gmra.mxu2 %v3096_v2 }
 0x174   :  { %2375 = vmatmul.bf16.gmra.mxu3 %v3100_v4 }
 0x176   :  { %v2131_v32 = vpop.f32.mrf.mxu2  ;;  %v2035_v13 = vpop.f32.mrf.mxu0 }
 0x177   :  { %v2180_v10 = vpop.f32.mrf.mxu3  ;;  %v2132_v11 = vadd.f32 %v2131_v32, %v2083_v7  ;;  %v2084_v15 = vpop.f32.mrf.mxu1  ;;  %v2036_v16 = vadd.f32 %v2035_v13, %v4704_v54  ;;  %v3153_v54 = vld [vmem:[%s5507_s0 + $0x360] sm:$0xf0]  ;;  %v3220_v7 = vor.u32 %v3873_v50, %v3217_v28 }
 0x178   :  { %v3156_v61 = vor.u32 %v3857_v23, %v3153_v54 }
 0x179   :  { %v5007_v18 = vadd.f32 %v2180_v10, %v2132_v11  ;;  %v2085_v60 = vadd.f32 %v2084_v15, %v2036_v16  ;;  %v3228_v10 = vor.u32 %v3874_v62, %v3225_v63  ;;  %v3779_v62 = vld [vmem:[%s5507_s0 + $0xb4] sm:$0xf] }
 0x17a   :  { %v2849_v63 = vld [vmem:[%s5507_s0 + $0xf0] sm:$0xf0] }
 0x17e   :  { %v2133_v34 = vpop.f32.mrf.mxu2  ;;  %v2038_v37 = vpop.f32.mrf.mxu0 }
 0x17f   :  { %v2182_v35 = vpop.f32.mrf.mxu3  ;;  %v2134_v36 = vadd.f32 %v2133_v34, %v2085_v60  ;;  %v2087_v38 = vpop.f32.mrf.mxu1  ;;  %v2039_v44 = vadd.f32 %v2038_v37, %v4715_v3  ;;  %v3215_v3 = vld [vmem:[%s5507_s0 + $0x3a0] sm:$0xf]  ;;  %v3772_v34 = vld [vmem:[%s5507_s0 + $0x74] sm:$0xf0] }
 0x180   :  { %v3216_v6 = vor.u32 %v3881_v58, %v3215_v3 }
 0x181   :  { %v5037_v30 = vadd.f32 %v2182_v35, %v2134_v36  ;;  %v2088_v45 = vadd.f32 %v2087_v38, %v2039_v44  ;;  %2233 = vmatmul.bf16.gmra.mxu0 %v3152_v17  ;;  %v3764_v35 = vld [vmem:[%s5507_s0 + $0x3c] sm:$0xf]  ;;  %v2788_v38 = vor.u32 %v3763_v29, %v2785_v33 }
 0x182   :  { %2282 = vmatmul.bf16.gmra.mxu1 %v3156_v61  ;;  %v2793_v17 = vld [vmem:[%s5507_s0 + $0x78] sm:$0xf0] }
 0x183   :  { %2331 = vmatmul.bf16.gmra.mxu2 %v3160_v41 }
 0x184   :  { %2380 = vmatmul.bf16.gmra.mxu3 %v3164_v42 }
 0x186   :  { %v2136_v46 = vpop.f32.mrf.mxu2  ;;  %v2040_v48 = vpop.f32.mrf.mxu0 }
 0x187   :  { %v2185_v47 = vpop.f32.mrf.mxu3  ;;  %v2137_v19 = vadd.f32 %v2136_v46, %v2088_v45  ;;  %v2089_v51 = vpop.f32.mrf.mxu1  ;;  %v2041_v53 = vadd.f32 %v2040_v48, %v4744_v26  ;;  %v3223_v26 = vld [vmem:[%s5507_s0 + $0x3a8] sm:$0xf]  ;;  %v2796_v46 = vor.u32 %v3764_v35, %v2793_v17  ;;  %v3795_v35 = vld [vmem:[%s5507_s0 + $0x134] sm:$0xf] }
 0x188   :  { %v3224_v32 = vor.u32 %v3882_v59, %v3223_v26  ;;  %v3787_v59 = vld [vmem:[%s5507_s0 + $0xec] sm:$0xf0]  ;;  %v2913_v17 = vld [vmem:[%s5507_s0 + $0x170] sm:$0xf0] }
 0x189   :  { %v5040_v56 = vadd.f32 %v2185_v47, %v2137_v19  ;;  %v2090_v57 = vadd.f32 %v2089_v51, %v2041_v53 }
 0x18e   :  { %v2138_v2 = vpop.f32.mrf.mxu2  ;;  %v2043_v9 = vpop.f32.mrf.mxu0 }
 0x18f   :  { %v2187_v4 = vpop.f32.mrf.mxu3  ;;  %v2139_v8 = vadd.f32 %v2138_v2, %v2090_v57  ;;  %v2092_v49 = vpop.f32.mrf.mxu1  ;;  %v2044_v11 = vadd.f32 %v2043_v9, %v4755_v39  ;;  %v2783_v39 = vld [vmem:[%s5507_s0 + $0x30] sm:$0xf]  ;;  %v3788_v2 = vld [vmem:[%s5507_s0 + $0xf4] sm:$0xf0] }
 0x190   :  { %v2784_v37 = vor.u32 %v3771_v25, %v2783_v39 }
 0x191   :  { %v5067_v13 = vadd.f32 %v2187_v4, %v2139_v8  ;;  %v2093_v15 = vadd.f32 %v2092_v49, %v2044_v11  ;;  %2238 = vmatmul.bf16.gmra.mxu0 %v3216_v6  ;;  %v3780_v4 = vld [vmem:[%s5507_s0 + $0xbc] sm:$0xf]  ;;  %v2852_v49 = vor.u32 %v3779_v62, %v2849_v63 }
 0x192   :  { %2287 = vmatmul.bf16.gmra.mxu1 %v3220_v7  ;;  %v2857_v6 = vld [vmem:[%s5507_s0 + $0xf8] sm:$0xf0] }
 0x193   :  { %2336 = vmatmul.bf16.gmra.mxu2 %v3224_v32 }
 0x194   :  { %2385 = vmatmul.bf16.gmra.mxu3 %v3228_v10 }
 0x196   :  { %v2141_v16 = vpop.f32.mrf.mxu2  ;;  %v2045_v21 = vpop.f32.mrf.mxu0 }
 0x197   :  { %v2190_v20 = vpop.f32.mrf.mxu3  ;;  %v2142_v60 = vadd.f32 %v2141_v16, %v2093_v15  ;;  %v2094_v22 = vpop.f32.mrf.mxu1  ;;  %v2046_v23 = vadd.f32 %v2045_v21, %v4785_v1  ;;  %v2791_v1 = vld [vmem:[%s5507_s0 + $0x38] sm:$0xf]  ;;  %v2860_v16 = vor.u32 %v3780_v4, %v2857_v6  ;;  %v3811_v4 = vld [vmem:[%s5507_s0 + $0x1b4] sm:$0xf] }
 0x198   :  { %v2792_v45 = vor.u32 %v3772_v34, %v2791_v1  ;;  %v3803_v34 = vld [vmem:[%s5507_s0 + $0x16c] sm:$0xf0]  ;;  %v2977_v6 = vld [vmem:[%s5507_s0 + $0x1f0] sm:$0xf0] }
 0x199   :  { %v5070_v54 = vadd.f32 %v2190_v20, %v2142_v60  ;;  %v2095_v24 = vadd.f32 %v2094_v22, %v2046_v23 }
 0x19e   :  { %v2143_v61 = vpop.f32.mrf.mxu2  ;;  %v2204_v42 = vpop.f32.mrf.mxu0 }
 0x19f   :  { %v2192_v36 = vpop.f32.mrf.mxu3  ;;  %v2144_v41 = vadd.f32 %v2143_v61, %v2095_v24  ;;  %v2253_v44 = vpop.f32.mrf.mxu1  ;;  %v2205_v47 = vadd.f32 %v2204_v42, %v4797_v12  ;;  %v2847_v12 = vld [vmem:[%s5507_s0 + $0xb0] sm:$0xf]  ;;  %v3804_v61 = vld [vmem:[%s5507_s0 + $0x174] sm:$0xf0] }
 0x1a0   :  { %v2848_v9 = vor.u32 %v3787_v59, %v2847_v12 }
 0x1a1   :  { %v5097_v19 = vadd.f32 %v2192_v36, %v2144_v41  ;;  %v2254_v48 = vadd.f32 %v2253_v44, %v2205_v47  ;;  %2399 = vmatmul.bf16.vlgmr.msrb.gmra.mxu0 %v2784_v37  ;;  %v3796_v36 = vld [vmem:[%s5507_s0 + $0x13c] sm:$0xf]  ;;  %v2916_v44 = vor.u32 %v3795_v35, %v2913_v17 }
 0x1a2   :  { %2448 = vmatmul.bf16.vlgmr.msrb.gmra.mxu1 %v2788_v38  ;;  %v2921_v37 = vld [vmem:[%s5507_s0 + $0x178] sm:$0xf0] }
 0x1a3   :  { %2497 = vmatmul.bf16.vlgmr.msrb.gmra.mxu2 %v2792_v45 }
 0x1a4   :  { %2546 = vmatmul.bf16.vlgmr.msrb.gmra.mxu3 %v2796_v46 }
 0x1a6   :  { %v2302_v51 = vpop.f32.mrf.mxu2  ;;  %v2206_v3 = vpop.f32.mrf.mxu0 }
 0x1a7   :  { %v2351_v53 = vpop.f32.mrf.mxu3  ;;  %v2303_v57 = vadd.f32 %v2302_v51, %v2254_v48  ;;  %v2255_v58 = vpop.f32.mrf.mxu1  ;;  %v2207_v50 = vadd.f32 %v2206_v3, %v4827_v40  ;;  %v2855_v40 = vld [vmem:[%s5507_s0 + $0xb8] sm:$0xf]  ;;  %v2924_v51 = vor.u32 %v3796_v36, %v2921_v37  ;;  %v3827_v36 = vld [vmem:[%s5507_s0 + $0x234] sm:$0xf] }
 0x1a8   :  { %v2856_v15 = vor.u32 %v3788_v2, %v2855_v40  ;;  %v3819_v2 = vld [vmem:[%s5507_s0 + $0x1ec] sm:$0xf0]  ;;  %v3041_v37 = vld [vmem:[%s5507_s0 + $0x270] sm:$0xf0] }
 0x1a9   :  { %v5100_v28 = vadd.f32 %v2351_v53, %v2303_v57  ;;  %v2256_v26 = vadd.f32 %v2255_v58, %v2207_v50 }
 0x1ae   :  { %v2304_v7 = vpop.f32.mrf.mxu2  ;;  %v2209_v10 = vpop.f32.mrf.mxu0 }
 0x1af   :  { %v2353_v8 = vpop.f32.mrf.mxu3  ;;  %v2305_v32 = vadd.f32 %v2304_v7, %v2256_v26  ;;  %v2258_v11 = vpop.f32.mrf.mxu1  ;;  %v2210_v20 = vadd.f32 %v2209_v10, %v4839_v52  ;;  %v2911_v52 = vld [vmem:[%s5507_s0 + $0x130] sm:$0xf]  ;;  %v3820_v7 = vld [vmem:[%s5507_s0 + $0x1f4] sm:$0xf0] }
 0x1b0   :  { %v2912_v42 = vor.u32 %v3803_v34, %v2911_v52 }
 0x1b1   :  { %v5127_v60 = vadd.f32 %v2353_v8, %v2305_v32  ;;  %v2259_v21 = vadd.f32 %v2258_v11, %v2210_v20  ;;  %2404 = vmatmul.bf16.gmra.mxu0 %v2848_v9  ;;  %v3812_v8 = vld [vmem:[%s5507_s0 + $0x1bc] sm:$0xf]  ;;  %v2980_v11 = vor.u32 %v3811_v4, %v2977_v6 }
 0x1b2   :  { %2453 = vmatmul.bf16.gmra.mxu1 %v2852_v49  ;;  %v2985_v9 = vld [vmem:[%s5507_s0 + $0x1f8] sm:$0xf0] }
 0x1b3   :  { %2502 = vmatmul.bf16.gmra.mxu2 %v2856_v15 }
 0x1b4   :  { %2551 = vmatmul.bf16.gmra.mxu3 %v2860_v16 }
 0x1b6   :  { %v2307_v22 = vpop.f32.mrf.mxu2  ;;  %v2211_v39 = vpop.f32.mrf.mxu0 }
 0x1b7   :  { %v2356_v23 = vpop.f32.mrf.mxu3  ;;  %v2308_v24 = vadd.f32 %v2307_v22, %v2259_v21  ;;  %v2260_v25 = vpop.f32.mrf.mxu1  ;;  %v2212_v29 = vadd.f32 %v2211_v39, %v4869_v14  ;;  %v2919_v14 = vld [vmem:[%s5507_s0 + $0x138] sm:$0xf]  ;;  %v2988_v22 = vor.u32 %v3812_v8, %v2985_v9  ;;  %v3843_v8 = vld [vmem:[%s5507_s0 + $0x2b4] sm:$0xf] }
 0x1b8   :  { %v2920_v48 = vor.u32 %v3804_v61, %v2919_v14  ;;  %v3835_v61 = vld [vmem:[%s5507_s0 + $0x26c] sm:$0xf0]  ;;  %v3105_v9 = vld [vmem:[%s5507_s0 + $0x2f0] sm:$0xf0] }
 0x1b9   :  { %v5130_v33 = vadd.f32 %v2356_v23, %v2308_v24  ;;  %v2261_v1 = vadd.f32 %v2260_v25, %v2212_v29 }
 0x1be   :  { %v2309_v38 = vpop.f32.mrf.mxu2  ;;  %v2214_v46 = vpop.f32.mrf.mxu0 }
 0x1bf   :  { %v2358_v41 = vpop.f32.mrf.mxu3  ;;  %v2310_v45 = vadd.f32 %v2309_v38, %v2261_v1  ;;  %v2263_v47 = vpop.f32.mrf.mxu1  ;;  %v2215_v53 = vadd.f32 %v2214_v46, %v4881_v27  ;;  %v2975_v27 = vld [vmem:[%s5507_s0 + $0x1b0] sm:$0xf]  ;;  %v3836_v38 = vld [vmem:[%s5507_s0 + $0x274] sm:$0xf0] }
 0x1c0   :  { %v2976_v10 = vor.u32 %v3819_v2, %v2975_v27 }
 0x1c1   :  { %v5157_v57 = vadd.f32 %v2358_v41, %v2310_v45  ;;  %v2264_v3 = vadd.f32 %v2263_v47, %v2215_v53  ;;  %2409 = vmatmul.bf16.gmra.mxu0 %v2912_v42  ;;  %v3828_v41 = vld [vmem:[%s5507_s0 + $0x23c] sm:$0xf]  ;;  %v3044_v47 = vor.u32 %v3827_v36, %v3041_v37 }
 0x1c2   :  { %2458 = vmatmul.bf16.gmra.mxu1 %v2916_v44  ;;  %v3049_v42 = vld [vmem:[%s5507_s0 + $0x278] sm:$0xf0] }
 0x1c3   :  { %2507 = vmatmul.bf16.gmra.mxu2 %v2920_v48 }
 0x1c4   :  { %2556 = vmatmul.bf16.gmra.mxu3 %v2924_v51 }
 0x1c6   :  { %v2312_v58 = vpop.f32.mrf.mxu2  ;;  %v2216_v12 = vpop.f32.mrf.mxu0 }
 0x1c7   :  { %v2361_v50 = vpop.f32.mrf.mxu3  ;;  %v2313_v26 = vadd.f32 %v2312_v58, %v2264_v3  ;;  %v2265_v59 = vpop.f32.mrf.mxu1  ;;  %v2217_v62 = vadd.f32 %v2216_v12, %v4911_v55  ;;  %v2983_v55 = vld [vmem:[%s5507_s0 + $0x1b8] sm:$0xf]  ;;  %v3052_v58 = vor.u32 %v3828_v41, %v3049_v42  ;;  %v3859_v41 = vld [vmem:[%s5507_s0 + $0x334] sm:$0xf] }
 0x1c8   :  { %v2984_v21 = vor.u32 %v3820_v7, %v2983_v55  ;;  %v3851_v7 = vld [vmem:[%s5507_s0 + $0x2ec] sm:$0xf0]  ;;  %v3169_v42 = vld [vmem:[%s5507_s0 + $0x370] sm:$0xf0] }
 0x1c9   :  { %v5160_v63 = vadd.f32 %v2361_v50, %v2313_v26  ;;  %v2266_v40 = vadd.f32 %v2265_v59, %v2217_v62 }
 0x1ce   :  { %v2314_v49 = vpop.f32.mrf.mxu2  ;;  %v2219_v16 = vpop.f32.mrf.mxu0 }
 0x1cf   :  { %v2363_v32 = vpop.f32.mrf.mxu3  ;;  %v2315_v15 = vadd.f32 %v2314_v49, %v2266_v40  ;;  %v2268_v20 = vpop.f32.mrf.mxu1  ;;  %v2220_v23 = vadd.f32 %v2219_v16, %v4923_v5  ;;  %v3039_v5 = vld [vmem:[%s5507_s0 + $0x230] sm:$0xf]  ;;  %v3852_v49 = vld [vmem:[%s5507_s0 + $0x2f4] sm:$0xf0] }
 0x1d0   :  { %v3040_v46 = vor.u32 %v3835_v61, %v3039_v5 }
 0x1d1   :  { %v5187_v24 = vadd.f32 %v2363_v32, %v2315_v15  ;;  %v2269_v39 = vadd.f32 %v2268_v20, %v2220_v23  ;;  %2414 = vmatmul.bf16.gmra.mxu0 %v2976_v10  ;;  %v3844_v32 = vld [vmem:[%s5507_s0 + $0x2bc] sm:$0xf]  ;;  %v3108_v20 = vor.u32 %v3843_v8, %v3105_v9 }
 0x1d2   :  { %2463 = vmatmul.bf16.gmra.mxu1 %v2980_v11  ;;  %v3113_v10 = vld [vmem:[%s5507_s0 + $0x2f8] sm:$0xf0] }
 0x1d3   :  { %2512 = vmatmul.bf16.gmra.mxu2 %v2984_v21 }
 0x1d4   :  { %2561 = vmatmul.bf16.gmra.mxu3 %v2988_v22 }
 0x1d6   :  { %v2317_v25 = vpop.f32.mrf.mxu2  ;;  %v2221_v52 = vpop.f32.mrf.mxu0 }
 0x1d7   :  { %v2366_v29 = vpop.f32.mrf.mxu3  ;;  %v2318_v1 = vadd.f32 %v2317_v25, %v2269_v39  ;;  %v2270_v34 = vpop.f32.mrf.mxu1  ;;  %v2222_v35 = vadd.f32 %v2221_v52, %v4953_v31  ;;  %v3047_v31 = vld [vmem:[%s5507_s0 + $0x238] sm:$0xf]  ;;  %v3116_v25 = vor.u32 %v3844_v32, %v3113_v10  ;;  %v3875_v32 = vld [vmem:[%s5507_s0 + $0x3b4] sm:$0xf] }
 0x1d8   :  { %v3048_v3 = vor.u32 %v3836_v38, %v3047_v31  ;;  %v3867_v38 = vld [vmem:[%s5507_s0 + $0x36c] sm:$0xf0]  ;;  %v3233_v10 = vld [vmem:[%s5507_s0 + $0x3f0] sm:$0xf0] }
 0x1d9   :  { %v5190_v17 = vadd.f32 %v2366_v29, %v2318_v1  ;;  %v2271_v14 = vadd.f32 %v2270_v34, %v2222_v35 }
 0x1de   :  { %v2319_v44 = vpop.f32.mrf.mxu2  ;;  %v2224_v51 = vpop.f32.mrf.mxu0 }
 0x1df   :  { %v2368_v45 = vpop.f32.mrf.mxu3  ;;  %v2320_v48 = vadd.f32 %v2319_v44, %v2271_v14  ;;  %v2273_v53 = vpop.f32.mrf.mxu1  ;;  %v2225_v50 = vadd.f32 %v2224_v51, %v4965_v43  ;;  %v3103_v43 = vld [vmem:[%s5507_s0 + $0x2b0] sm:$0xf]  ;;  %v3868_v44 = vld [vmem:[%s5507_s0 + $0x374] sm:$0xf0] }
 0x1e0   :  { %v3104_v16 = vor.u32 %v3851_v7, %v3103_v43 }
 0x1e1   :  { %v5217_v26 = vadd.f32 %v2368_v45, %v2320_v48  ;;  %v2274_v12 = vadd.f32 %v2273_v53, %v2225_v50  ;;  %2419 = vmatmul.bf16.gmra.mxu0 %v3040_v46  ;;  %v3860_v45 = vld [vmem:[%s5507_s0 + $0x33c] sm:$0xf]  ;;  %v3172_v53 = vor.u32 %v3859_v41, %v3169_v42 }
 0x1e2   :  { %2468 = vmatmul.bf16.gmra.mxu1 %v3044_v47  ;;  %v3177_v46 = vld [vmem:[%s5507_s0 + $0x378] sm:$0xf0] }
 0x1e3   :  { %2517 = vmatmul.bf16.gmra.mxu2 %v3048_v3 }
 0x1e4   :  { %2566 = vmatmul.bf16.gmra.mxu3 %v3052_v58 }
 0x1e6   :  { %v2322_v59 = vpop.f32.mrf.mxu2  ;;  %v2226_v27 = vpop.f32.mrf.mxu0 }
 0x1e7   :  { %v2371_v62 = vpop.f32.mrf.mxu3  ;;  %v2323_v40 = vadd.f32 %v2322_v59, %v2274_v12  ;;  %v2275_v2 = vpop.f32.mrf.mxu1  ;;  %v2227_v4 = vadd.f32 %v2226_v27, %v4995_v0  ;;  %v3111_v0 = vld [vmem:[%s5507_s0 + $0x2b8] sm:$0xf]  ;;  %v3180_v59 = vor.u32 %v3860_v45, %v3177_v46 }
 0x1e8   :  { %v3112_v39 = vor.u32 %v3852_v49, %v3111_v0  ;;  %v3883_v49 = vld [vmem:[%s5507_s0 + $0x3ec] sm:$0xf0] }
 0x1e9   :  { %v5220_v6 = vadd.f32 %v2371_v62, %v2323_v40  ;;  %v2276_v55 = vadd.f32 %v2275_v2, %v2227_v4 }
 0x1ee   :  { %v2324_v11 = vpop.f32.mrf.mxu2  ;;  %v2229_v22 = vpop.f32.mrf.mxu0 }
 0x1ef   :  { %v2373_v15 = vpop.f32.mrf.mxu3  ;;  %v2325_v21 = vadd.f32 %v2324_v11, %v2276_v55  ;;  %v2278_v23 = vpop.f32.mrf.mxu1  ;;  %v2230_v29 = vadd.f32 %v2229_v22, %v5007_v18  ;;  %v3167_v18 = vld [vmem:[%s5507_s0 + $0x330] sm:$0xf]  ;;  %v3884_v11 = vld [vmem:[%s5507_s0 + $0x3f4] sm:$0xf0] }
 0x1f0   :  { %v3168_v51 = vor.u32 %v3867_v38, %v3167_v18 }
 0x1f1   :  { %v5247_v1 = vadd.f32 %v2373_v15, %v2325_v21  ;;  %v2279_v52 = vadd.f32 %v2278_v23, %v2230_v29  ;;  %2424 = vmatmul.bf16.gmra.mxu0 %v3104_v16  ;;  %v3876_v15 = vld [vmem:[%s5507_s0 + $0x3bc] sm:$0xf]  ;;  %v3236_v23 = vor.u32 %v3875_v32, %v3233_v10 }
 0x1f2   :  { %2473 = vmatmul.bf16.gmra.mxu1 %v3108_v20  ;;  %v3241_v16 = vld [vmem:[%s5507_s0 + $0x3f8] sm:$0xf0] }
 0x1f3   :  { %2522 = vmatmul.bf16.gmra.mxu2 %v3112_v39 }
 0x1f4   :  { %2571 = vmatmul.bf16.gmra.mxu3 %v3116_v25 }
 0x1f6   :  { %v2327_v34 = vpop.f32.mrf.mxu2  ;;  %v2231_v5 = vpop.f32.mrf.mxu0 }
 0x1f7   :  { %v2376_v35 = vpop.f32.mrf.mxu3  ;;  %v2328_v14 = vadd.f32 %v2327_v34, %v2279_v52  ;;  %v2280_v61 = vpop.f32.mrf.mxu1  ;;  %v2232_v36 = vadd.f32 %v2231_v5, %v5037_v30  ;;  %v3175_v30 = vld [vmem:[%s5507_s0 + $0x338] sm:$0xf]  ;;  %v3244_v34 = vor.u32 %v3876_v15, %v3241_v16 }
 0x1f8   :  { %v3176_v12 = vor.u32 %v3868_v44, %v3175_v30 }
 0x1f9   :  { %v5250_v37 = vadd.f32 %v2376_v35, %v2328_v14  ;;  %v2281_v31 = vadd.f32 %v2280_v61, %v2232_v36 }
 0x1fe   :  { %v2329_v47 = vpop.f32.mrf.mxu2  ;;  %v2234_v58 = vpop.f32.mrf.mxu0 }
 0x1ff   :  { %v2378_v48 = vpop.f32.mrf.mxu3  ;;  %v2330_v3 = vadd.f32 %v2329_v47, %v2281_v31  ;;  %v2283_v50 = vpop.f32.mrf.mxu1  ;;  %v2235_v62 = vadd.f32 %v2234_v58, %v5040_v56  ;;  %v3231_v56 = vld [vmem:[%s5507_s0 + $0x3b0] sm:$0xf] }
 0x200   :  { %v3232_v22 = vor.u32 %v3883_v49, %v3231_v56 }
 0x201   :  { %v5277_v40 = vadd.f32 %v2378_v48, %v2330_v3  ;;  %v2284_v27 = vadd.f32 %v2283_v50, %v2235_v62  ;;  %2429 = vmatmul.bf16.gmra.mxu0 %v3168_v51 }
 0x202   :  { %2478 = vmatmul.bf16.gmra.mxu1 %v3172_v53 }
 0x203   :  { %2527 = vmatmul.bf16.gmra.mxu2 %v3176_v12 }
 0x204   :  { %2576 = vmatmul.bf16.gmra.mxu3 %v3180_v59 }
 0x206   :  { %v2332_v2 = vpop.f32.mrf.mxu2  ;;  %v2236_v43 = vpop.f32.mrf.mxu0 }
 0x207   :  { %v2381_v4 = vpop.f32.mrf.mxu3  ;;  %v2333_v55 = vadd.f32 %v2332_v2, %v2284_v27  ;;  %v2285_v7 = vpop.f32.mrf.mxu1  ;;  %v2237_v8 = vadd.f32 %v2236_v43, %v5067_v13  ;;  %v3239_v13 = vld [vmem:[%s5507_s0 + $0x3b8] sm:$0xf] }
 0x208   :  { %v3240_v52 = vor.u32 %v3884_v11, %v3239_v13 }
 0x209   :  { %v5280_v9 = vadd.f32 %v2381_v4, %v2333_v55  ;;  %v2286_v0 = vadd.f32 %v2285_v7, %v2237_v8 }
 0x20e   :  { %v2334_v20 = vpop.f32.mrf.mxu2  ;;  %v2239_v25 = vpop.f32.mrf.mxu0 }
 0x20f   :  { %v2383_v21 = vpop.f32.mrf.mxu3  ;;  %v2335_v39 = vadd.f32 %v2334_v20, %v2286_v0  ;;  %v2288_v29 = vpop.f32.mrf.mxu1  ;;  %v2240_v35 = vadd.f32 %v2239_v25, %v5070_v54 }
 0x211   :  { %v5307_v14 = vadd.f32 %v2383_v21, %v2335_v39  ;;  %v2289_v5 = vadd.f32 %v2288_v29, %v2240_v35  ;;  %2434 = vmatmul.bf16.gmra.mxu0 %v3232_v22 }
 0x212   :  { %2483 = vmatmul.bf16.gmra.mxu1 %v3236_v23 }
 0x213   :  { %2532 = vmatmul.bf16.gmra.mxu2 %v3240_v52 }
 0x214   :  { %2581 = vmatmul.bf16.gmra.mxu3 %v3244_v34 }
 0x216   :  { %v2337_v61 = vpop.f32.mrf.mxu2  ;;  %v2241_v18 = vpop.f32.mrf.mxu0 }
 0x217   :  { %v2386_v36 = vpop.f32.mrf.mxu3  ;;  %v2338_v31 = vadd.f32 %v2337_v61, %v2289_v5  ;;  %v2290_v38 = vpop.f32.mrf.mxu1  ;;  %v2242_v41 = vadd.f32 %v2241_v18, %v5097_v19 }
 0x219   :  { %v5310_v42 = vadd.f32 %v2386_v36, %v2338_v31  ;;  %v2291_v30 = vadd.f32 %v2290_v38, %v2242_v41 }
 0x21e   :  { %v2339_v44 = vpop.f32.mrf.mxu2  ;;  %v2400_v46 = vpop.f32.mrf.mxu0 }
 0x21f   :  { %v2388_v45 = vpop.f32.mrf.mxu3  ;;  %v2340_v54 = vadd.f32 %v2339_v44, %v2291_v30  ;;  %v2449_v47 = vpop.f32.mrf.mxu1  ;;  %v2401_v48 = vadd.f32 %v2400_v46, %v5100_v28 }
 0x221   :  { %v5313_v51 = vadd.f32 %v2388_v45, %v2340_v54  ;;  %v2450_v53 = vadd.f32 %v2449_v47, %v2401_v48 }
 0x226   :  { %v2498_v3 = vpop.f32.mrf.mxu2  ;;  %v2402_v12 = vpop.f32.mrf.mxu0 }
 0x227   :  { %v2547_v58 = vpop.f32.mrf.mxu3  ;;  %v2499_v50 = vadd.f32 %v2498_v3, %v2450_v53  ;;  %v2451_v59 = vpop.f32.mrf.mxu1  ;;  %v2403_v19 = vadd.f32 %v2402_v12, %v5127_v60 }
 0x229   :  { %v5316_v62 = vadd.f32 %v2547_v58, %v2499_v50  ;;  %v2452_v27 = vadd.f32 %v2451_v59, %v2403_v19 }
 0x22e   :  { %v2500_v2 = vpop.f32.mrf.mxu2  ;;  %v2405_v43 = vpop.f32.mrf.mxu0 }
 0x22f   :  { %v2549_v4 = vpop.f32.mrf.mxu3  ;;  %v2501_v55 = vadd.f32 %v2500_v2, %v2452_v27  ;;  %v2454_v7 = vpop.f32.mrf.mxu1  ;;  %v2406_v28 = vadd.f32 %v2405_v43, %v5130_v33 }
 0x231   :  { %v5319_v8 = vadd.f32 %v2549_v4, %v2501_v55  ;;  %v2455_v0 = vadd.f32 %v2454_v7, %v2406_v28 }
 0x233   :  { %v2587_v56 = vadd.f32 %v5319_v8, %v5316_v62 }
 0x236   :  { %v2503_v49 = vpop.f32.mrf.mxu2  ;;  %v2407_v60 = vpop.f32.mrf.mxu0 }
 0x237   :  { %v2552_v32 = vpop.f32.mrf.mxu3  ;;  %v2504_v10 = vadd.f32 %v2503_v49, %v2455_v0  ;;  %v2456_v13 = vpop.f32.mrf.mxu1  ;;  %v2408_v11 = vadd.f32 %v2407_v60, %v5157_v57 }
 0x239   :  { %v5324_v15 = vadd.f32 %v2552_v32, %v2504_v10  ;;  %v2457_v16 = vadd.f32 %v2456_v13, %v2408_v11 }
 0x23b   :  { %v2588_v20 = vadd.f32 %v2587_v56, %v5324_v15 }
 0x23e   :  { %v2505_v21 = vpop.f32.mrf.mxu2  ;;  %v2410_v23 = vpop.f32.mrf.mxu0 }
 0x23f   :  { %v2554_v33 = vpop.f32.mrf.mxu3  ;;  %v2506_v22 = vadd.f32 %v2505_v21, %v2457_v16  ;;  %v2459_v39 = vpop.f32.mrf.mxu1  ;;  %v2411_v25 = vadd.f32 %v2410_v23, %v5160_v63 }
 0x241   :  { %v5328_v29 = vadd.f32 %v2554_v33, %v2506_v22  ;;  %v2460_v52 = vadd.f32 %v2459_v39, %v2411_v25 }
 0x243   :  { %v2589_v34 = vadd.f32 %v2588_v20, %v5328_v29 }
 0x246   :  { %v2508_v35 = vpop.f32.mrf.mxu2  ;;  %v2412_v61 = vpop.f32.mrf.mxu0 }
 0x247   :  { %v2557_v5 = vpop.f32.mrf.mxu3  ;;  %v2509_v57 = vadd.f32 %v2508_v35, %v2460_v52  ;;  %v2461_v36 = vpop.f32.mrf.mxu1  ;;  %v2413_v18 = vadd.f32 %v2412_v61, %v5187_v24 }
 0x249   :  { %v5331_v31 = vadd.f32 %v2557_v5, %v2509_v57  ;;  %v2462_v41 = vadd.f32 %v2461_v36, %v2413_v18 }
 0x24b   :  { %v2590_v38 = vadd.f32 %v2589_v34, %v5331_v31 }
 0x24e   :  { %v2510_v30 = vpop.f32.mrf.mxu2  ;;  %v2415_v45 = vpop.f32.mrf.mxu0 }
 0x24f   :  { %v2559_v44 = vpop.f32.mrf.mxu3  ;;  %v2511_v63 = vadd.f32 %v2510_v30, %v2462_v41  ;;  %v2464_v54 = vpop.f32.mrf.mxu1  ;;  %v2416_v47 = vadd.f32 %v2415_v45, %v5190_v17 }
 0x251   :  { %v5335_v46 = vadd.f32 %v2559_v44, %v2511_v63  ;;  %v2465_v53 = vadd.f32 %v2464_v54, %v2416_v47 }
 0x253   :  { %v2591_v48 = vadd.f32 %v2590_v38, %v5335_v46 }
 0x256   :  { %v2513_v3 = vpop.f32.mrf.mxu2  ;;  %v2417_v12 = vpop.f32.mrf.mxu0 }
 0x257   :  { %v2562_v58 = vpop.f32.mrf.mxu3  ;;  %v2514_v50 = vadd.f32 %v2513_v3, %v2465_v53  ;;  %v2466_v24 = vpop.f32.mrf.mxu1  ;;  %v2418_v19 = vadd.f32 %v2417_v12, %v5217_v26 }
 0x259   :  { %v5339_v59 = vadd.f32 %v2562_v58, %v2514_v50  ;;  %v2467_v2 = vadd.f32 %v2466_v24, %v2418_v19 }
 0x25b   :  { %v2592_v27 = vadd.f32 %v2591_v48, %v5339_v59 }
 0x25e   :  { %v2515_v4 = vpop.f32.mrf.mxu2  ;;  %v2420_v7 = vpop.f32.mrf.mxu0 }
 0x25f   :  { %v2564_v55 = vpop.f32.mrf.mxu3  ;;  %v2516_v43 = vadd.f32 %v2515_v4, %v2467_v2  ;;  %v2469_v17 = vpop.f32.mrf.mxu1  ;;  %v2421_v0 = vadd.f32 %v2420_v7, %v5220_v6 }
 0x261   :  { %v5343_v28 = vadd.f32 %v2564_v55, %v2516_v43  ;;  %v2470_v49 = vadd.f32 %v2469_v17, %v2421_v0 }
 0x263   :  { %v2593_v56 = vadd.f32 %v2592_v27, %v5343_v28 }
 0x266   :  { %v2518_v32 = vpop.f32.mrf.mxu2  ;;  %v2422_v13 = vpop.f32.mrf.mxu0 }
 0x267   :  { %v2567_v10 = vpop.f32.mrf.mxu3  ;;  %v2519_v60 = vadd.f32 %v2518_v32, %v2470_v49  ;;  %v2471_v26 = vpop.f32.mrf.mxu1  ;;  %v2423_v16 = vadd.f32 %v2422_v13, %v5247_v1 }
 0x269   :  { %v5347_v11 = vadd.f32 %v2567_v10, %v2519_v60  ;;  %v2472_v21 = vadd.f32 %v2471_v26, %v2423_v16  ;;  %v4018_v10 = vmov 128.0  }
 0x26a   :  { %4014 = vrcp.f32 %v4018_v10 }
 0x26b   :  { %v2594_v20 = vadd.f32 %v2593_v56, %v5347_v11 }
 0x26e   :  { %v2520_v33 = vpop.f32.mrf.mxu2  ;;  %v2425_v39 = vpop.f32.mrf.mxu0 }
 0x26f   :  { %v2569_v22 = vpop.f32.mrf.mxu3  ;;  %v2521_v23 = vadd.f32 %v2520_v33, %v2472_v21  ;;  %v2474_v6 = vpop.f32.mrf.mxu1  ;;  %v2426_v52 = vadd.f32 %v2425_v39, %v5250_v37 }
 0x270   :  { %v4015_v21 = vpop.eup %4014 }
 0x271   :  { %v5351_v25 = vadd.f32 %v2569_v22, %v2521_v23  ;;  %v2475_v35 = vadd.f32 %v2474_v6, %v2426_v52  ;;  %v2609_v6 = vmul.f32 128.0, %v4015_v21  ;;  %vm2613_vm0 = vweird.f32 %v4015_v21 }
 0x273   :  { %v2595_v34 = vadd.f32 %v2594_v20, %v5351_v25 }
 0x276   :  { %v2523_v5 = vpop.f32.mrf.mxu2  ;;  %v2427_v36 = vpop.f32.mrf.mxu0 }
 0x277   :  { %v2572_v57 = vpop.f32.mrf.mxu3  ;;  %v2524_v61 = vadd.f32 %v2523_v5, %v2475_v35  ;;  %v2476_v1 = vpop.f32.mrf.mxu1  ;;  %v2428_v38 = vadd.f32 %v2427_v36, %v5277_v40  ;;  %v2610_v35 = vsub.f32 1.0, %v2609_v6 }
 0x279   :  { %v5355_v18 = vadd.f32 %v2572_v57, %v2524_v61  ;;  %v2477_v30 = vadd.f32 %v2476_v1, %v2428_v38  ;;  %v2611_v61 = vmul.f32 %v4015_v21, %v2610_v35 }
 0x27b   :  { %v2596_v41 = vadd.f32 %v2595_v34, %v5355_v18  ;;  %v2612_v38 = vadd.f32 %v4015_v21, %v2611_v61 }
 0x27e   :  { %v2525_v44 = vpop.f32.mrf.mxu2  ;;  %v2430_v54 = vpop.f32.mrf.mxu0 }
 0x27f   :  { %v2574_v63 = vpop.f32.mrf.mxu3  ;;  %v2526_v45 = vadd.f32 %v2525_v44, %v2477_v30  ;;  %v2479_v37 = vpop.f32.mrf.mxu1  ;;  %v2431_v48 = vadd.f32 %v2430_v54, %v5280_v9 }
 0x281   :  { %v5359_v47 = vadd.f32 %v2574_v63, %v2526_v45  ;;  %v2480_v3 = vadd.f32 %v2479_v37, %v2431_v48 }
 0x283   :  { %v2597_v53 = vadd.f32 %v2596_v41, %v5359_v47 }
 0x286   :  { %v2528_v58 = vpop.f32.mrf.mxu2  ;;  %v2432_v24 = vpop.f32.mrf.mxu0 }
 0x287   :  { %v2577_v50 = vpop.f32.mrf.mxu3  ;;  %v2529_v12 = vadd.f32 %v2528_v58, %v2480_v3  ;;  %v2481_v40 = vpop.f32.mrf.mxu1  ;;  %v2433_v27 = vadd.f32 %v2432_v24, %v5307_v14 }
 0x289   :  { %v2578_v19 = vadd.f32 %v2577_v50, %v2529_v12  ;;  %v2482_v4 = vadd.f32 %v2481_v40, %v2433_v27 }
 0x28b   :  { %v2598_v2 = vadd.f32 %v2597_v53, %v2578_v19 }
 0x28e   :  { %v2530_v55 = vpop.f32.mrf.mxu2  ;;  %v2435_v17 = vpop.f32.mrf.mxu0 }
 0x28f   :  { %v2579_v43 = vpop.f32.mrf.mxu3  ;;  %v2531_v7 = vadd.f32 %v2530_v55, %v2482_v4  ;;  %v2436_v9 = vadd.f32 %v2435_v17, %v5310_v42  ;;  %v2484_v56 = vpop.f32.mrf.mxu1 }
 0x291   :  { %v2580_v0 = vadd.f32 %v2579_v43, %v2531_v7  ;;  %v2485_v32 = vadd.f32 %v2484_v56, %v2436_v9 }
 0x293   :  { %v2599_v49 = vadd.f32 %v2598_v2, %v2580_v0 }
 0x296   :  { %v2533_v60 = vpop.f32.mrf.mxu2  ;;  %v2437_v16 = vpop.f32.mrf.mxu0 }
 0x297   :  { %v2582_v13 = vpop.f32.mrf.mxu3  ;;  %v2534_v26 = vadd.f32 %v2533_v60, %v2485_v32  ;;  %v2438_v14 = vadd.f32 %v2437_v16, %v5313_v51  ;;  %v2486_v22 = vpop.f32.mrf.mxu1  ;;  %v2614_v51 = vsel %vm2613_vm0, %v4015_v21, %v2612_v38 }
 0x299   :  { %v2583_v20 = vadd.f32 %v2582_v13, %v2534_v26  ;;  %v2487_v23 = vadd.f32 %v2486_v22, %v2438_v14 }
 0x29b   :  { %v2600_v33 = vadd.f32 %v2599_v49, %v2583_v20 }
 0x29e   :  { %v2535_v39 = vpop.f32.mrf.mxu2 }
 0x29f   :  { %v2536_v52 = vadd.f32 %v2535_v39, %v2487_v23  ;;  %v2584_v42 = vpop.f32.mrf.mxu3 }
 0x2a1   :  { %v2585_v34 = vadd.f32 %v2584_v42, %v2536_v52 }
 0x2a3   :  { %v2601_v5 = vadd.f32 %v2600_v33, %v2585_v34 }
 0x2a5   :  { %v2602_v57 = vrot.slane %v2601_v5, 4 }
 0x2a7   :  { %v2603_v36 = vadd.f32 %v2602_v57, %v2601_v5 }
 0x2a9   :  { %v2604_v1 = vrot.slane %v2603_v36, 2 }
 0x2ab   :  { %v2605_v41 = vadd.f32 %v2604_v1, %v2603_v36 }
 0x2ad   :  { %v2606_v30 = vrot.slane %v2605_v41, 1 }
 0x2af   :  { %v2607_v44 = vadd.f32 %v2606_v30, %v2605_v41 }
 0x2b1   :  { %v2615_v63 = vmul.f32 %v2614_v51, %v2607_v44 }
 0x2b3   :  { %v5367_v45 = vsub.f32 %v5316_v62, %v2615_v63  ;;  %v5370_v54 = vsub.f32 %v5319_v8, %v2615_v63  ;;  %v5373_v37 = vsub.f32 %v5324_v15, %v2615_v63  ;;  %v5376_v48 = vsub.f32 %v5328_v29, %v2615_v63 }
 0x2b4   :  { %v5379_v53 = vsub.f32 %v5331_v31, %v2615_v63  ;;  %v5382_v3 = vsub.f32 %v5335_v46, %v2615_v63  ;;  %v5385_v58 = vsub.f32 %v5339_v59, %v2615_v63  ;;  %v5388_v62 = vsub.f32 %v5343_v28, %v2615_v63 }
 0x2b5   :  { %v5391_v8 = vsub.f32 %v5347_v11, %v2615_v63  ;;  %v5394_v15 = vsub.f32 %v5351_v25, %v2615_v63  ;;  %v5397_v29 = vsub.f32 %v5355_v18, %v2615_v63  ;;  %v5400_v31 = vsub.f32 %v5359_v47, %v2615_v63 }
 0x2b6   :  { %v5402_v46 = vsub.f32 %v2578_v19, %v2615_v63  ;;  %v5404_v50 = vsub.f32 %v2580_v0, %v2615_v63  ;;  %v5406_v59 = vsub.f32 %v2583_v20, %v2615_v63  ;;  %v5408_v28 = vsub.f32 %v2585_v34, %v2615_v63 }
 0x2b7   :  { %v2632_v11 = vmul.f32 %v5367_v45, %v5367_v45  ;;  %v2633_v25 = vmul.f32 %v5370_v54, %v5370_v54  ;;  %v2634_v18 = vmul.f32 %v5373_v37, %v5373_v37  ;;  %v2635_v47 = vmul.f32 %v5376_v48, %v5376_v48 }
 0x2b8   :  { %v2636_v40 = vmul.f32 %v5379_v53, %v5379_v53  ;;  %v2637_v27 = vmul.f32 %v5382_v3, %v5382_v3  ;;  %v2638_v4 = vmul.f32 %v5385_v58, %v5385_v58  ;;  %v2639_v43 = vmul.f32 %v5388_v62, %v5388_v62 }
 0x2b9   :  { %v2648_v12 = vadd.f32 %v2633_v25, %v2632_v11  ;;  %v2640_v17 = vmul.f32 %v5391_v8, %v5391_v8  ;;  %v2641_v9 = vmul.f32 %v5394_v15, %v5394_v15  ;;  %v2642_v49 = vmul.f32 %v5397_v29, %v5397_v29 }
 0x2ba   :  { %v2643_v10 = vmul.f32 %v5400_v31, %v5400_v31  ;;  %v2644_v13 = vmul.f32 %v5402_v46, %v5402_v46  ;;  %v2645_v16 = vmul.f32 %v5404_v50, %v5404_v50  ;;  %v2646_v14 = vmul.f32 %v5406_v59, %v5406_v59 }
 0x2bb   :  { %v2649_v24 = vadd.f32 %v2648_v12, %v2634_v18  ;;  %v2647_v33 = vmul.f32 %v5408_v28, %v5408_v28 }
 0x2bd   :  { %v2650_v19 = vadd.f32 %v2649_v24, %v2635_v47 }
 0x2bf   :  { %v2651_v2 = vadd.f32 %v2650_v19, %v2636_v40 }
 0x2c1   :  { %v2652_v55 = vadd.f32 %v2651_v2, %v2637_v27 }
 0x2c3   :  { %v2653_v7 = vadd.f32 %v2652_v55, %v2638_v4 }
 0x2c5   :  { %v2654_v0 = vadd.f32 %v2653_v7, %v2639_v43 }
 0x2c7   :  { %v2655_v56 = vadd.f32 %v2654_v0, %v2640_v17 }
 0x2c9   :  { %v2656_v32 = vadd.f32 %v2655_v56, %v2641_v9 }
 0x2cb   :  { %v2657_v60 = vadd.f32 %v2656_v32, %v2642_v49 }
 0x2cd   :  { %v2658_v26 = vadd.f32 %v2657_v60, %v2643_v10 }
 0x2cf   :  { %v2659_v20 = vadd.f32 %v2658_v26, %v2644_v13 }
 0x2d1   :  { %v2660_v21 = vadd.f32 %v2659_v20, %v2645_v16 }
 0x2d3   :  { %v2661_v22 = vadd.f32 %v2660_v21, %v2646_v14 }
 0x2d5   :  { %v2662_v23 = vadd.f32 %v2661_v22, %v2647_v33 }
 0x2d7   :  { %v2663_v39 = vrot.slane %v2662_v23, 4 }
 0x2d9   :  { %v2664_v6 = vadd.f32 %v2663_v39, %v2662_v23 }
 0x2db   :  { %v2665_v52 = vrot.slane %v2664_v6, 2 }
 0x2dd   :  { %v2666_v42 = vadd.f32 %v2665_v52, %v2664_v6 }
 0x2df   :  { %v2667_v34 = vrot.slane %v2666_v42, 1 }
 0x2e1   :  { %v2668_v35 = vadd.f32 %v2667_v34, %v2666_v42 }
 0x2e3   :  { %v2669_v5 = vmul.f32 %v2668_v35, %v2614_v51 }
 0x2e5   :  { %v2670_v57 = vadd.f32 1e-05, %v2669_v5 }
 0x2e7   :  { %4016 = vrsqrt.f32 %v2670_v57  ;;  %vm2677_vm2 = vweird.f32 %v2670_v57 }
 0x2ed   :  { %v4017_v61 = vpop.eup %4016 }
 0x2ee   :  { %v2672_v36 = vmul.f32 %v4017_v61, %v2670_v57  ;;  %vm2678_vm1 = vweird.f32 %v4017_v61 }
 0x2ef   :  { %vm2679_vm3 = vmor %vm2677_vm2, %vm2678_vm1 }
 0x2f0   :  { %v2673_v1 = vmul.f32 %v4017_v61, %v2672_v36 }
 0x2f2   :  { %v2674_v38 = vmul.f32 0.5, %v2673_v1 }
 0x2f4   :  { %v2675_v41 = vsub.f32 1.5, %v2674_v38 }
 0x2f6   :  { %v2676_v30 = vmul.f32 %v4017_v61, %v2675_v41 }
 0x2f8   :  { %v2680_v44 = vsel %vm2679_vm3, %v4017_v61, %v2676_v30 }
 0x2f9   :  { %v2681_v63 = vmul.f32 %v2680_v44, %v5367_v45  ;;  %v2682_v11 = vmul.f32 %v2680_v44, %v5370_v54  ;;  %v2683_v25 = vmul.f32 %v2680_v44, %v5373_v37  ;;  %v2684_v51 = vmul.f32 %v2680_v44, %v5376_v48 }
 0x2fa   :  { %v2685_v18 = vmul.f32 %v2680_v44, %v5379_v53  ;;  %v2686_v12 = vmul.f32 %v2680_v44, %v5382_v3  ;;  %v2687_v47 = vmul.f32 %v2680_v44, %v5385_v58  ;;  %v2688_v24 = vmul.f32 %v2680_v44, %v5388_v62 }
 0x2fb   :  { %v2689_v40 = vmul.f32 %v2680_v44, %v5391_v8  ;;  %v2690_v19 = vmul.f32 %v2680_v44, %v5394_v15  ;;  %v2691_v45 = vmul.f32 %v2680_v44, %v5397_v29  ;;  %v2692_v54 = vmul.f32 %v2680_v44, %v5400_v31 }
 0x2fc   :  { %v2693_v37 = vmul.f32 %v2680_v44, %v5402_v46  ;;  %v2694_v48 = vmul.f32 %v2680_v44, %v5404_v50  ;;  %v2695_v53 = vmul.f32 %v2680_v44, %v5406_v59  ;;  %v2696_v3 = vmul.f32 %v2680_v44, %v5408_v28 }
 0x2fd   :  { %v2697_v27 = vmax.f32 %v2681_v63, 0.0  ;;  %v2698_v58 = vmax.f32 %v2682_v11, 0.0  ;;  %v2699_v2 = vmax.f32 %v2683_v25, 0.0  ;;  %v2700_v62 = vmax.f32 %v2684_v51, 0.0 }
 0x2fe   :  { %v2701_v4 = vmax.f32 %v2685_v18, 0.0  ;;  %v2702_v8 = vmax.f32 %v2686_v12, 0.0  ;;  %v2703_v15 = vmax.f32 %v2687_v47, 0.0  ;;  %v2704_v29 = vmax.f32 %v2688_v24, 0.0 }
 0x2ff   :  { %2713 = vst [vmem:[%s5508_s2] sm:$0xff] %v2697_v27  ;;  %v2705_v31 = vmax.f32 %v2689_v40, 0.0  ;;  %v2706_v46 = vmax.f32 %v2690_v19, 0.0  ;;  %v2707_v50 = vmax.f32 %v2691_v45, 0.0  ;;  %v2708_v59 = vmax.f32 %v2692_v54, 0.0 }
 0x300   :  { %2714 = vst [vmem:[%s5508_s2 + $0x8] sm:$0xff] %v2698_v58  ;;  %v2709_v28 = vmax.f32 %v2693_v37, 0.0  ;;  %v2710_v55 = vmax.f32 %v2694_v48, 0.0  ;;  %v2711_v43 = vmax.f32 %v2695_v53, 0.0  ;;  %v2712_v7 = vmax.f32 %v2696_v3, 0.0 }
 0x301   :  { %2715 = vst [vmem:[%s5508_s2 + $0x10] sm:$0xff] %v2699_v2 }
 0x302   :  { %2716 = vst [vmem:[%s5508_s2 + $0x18] sm:$0xff] %v2700_v62 }
 0x303   :  { %2717 = vst [vmem:[%s5508_s2 + $0x20] sm:$0xff] %v2701_v4 }
 0x304   :  { %2718 = vst [vmem:[%s5508_s2 + $0x28] sm:$0xff] %v2702_v8 }
 0x305   :  { %2719 = vst [vmem:[%s5508_s2 + $0x30] sm:$0xff] %v2703_v15 }
 0x306   :  { %2720 = vst [vmem:[%s5508_s2 + $0x38] sm:$0xff] %v2704_v29 }
 0x307   :  { %2721 = vst [vmem:[%s5508_s2 + $0x40] sm:$0xff] %v2705_v31 }
 0x308   :  { %2722 = vst [vmem:[%s5508_s2 + $0x48] sm:$0xff] %v2706_v46 }
 0x309   :  { %2723 = vst [vmem:[%s5508_s2 + $0x50] sm:$0xff] %v2707_v50 }
 0x30a   :  { %2724 = vst [vmem:[%s5508_s2 + $0x58] sm:$0xff] %v2708_v59 }
 0x30b   :  { %2725 = vst [vmem:[%s5508_s2 + $0x60] sm:$0xff] %v2709_v28 }
 0x30c   :  { %2726 = vst [vmem:[%s5508_s2 + $0x68] sm:$0xff] %v2710_v55 }
 0x30d   :  { %2727 = vst [vmem:[%s5508_s2 + $0x70] sm:$0xff] %v2711_v43 }
 0x30e   :  { %2728 = vst [vmem:[%s5508_s2 + $0x78] sm:$0xff] %v2712_v7 }

// kernel: generator_forward.5
= control target key start
LH: loop header
LB: loop body
LE: loop exit
PB: predicated region body
PF: predicated region fallthrough
CT: control target
= control target key end

     0   :  { %s14510_s1 = inlined_call_operand.vmem [shape: bf16[2048,128], index: 1, kind: input, shape index: {}]   ;;  %s14511_s0 = inlined_call_operand.vmem [shape: bf16[512,2048], index: 0, kind: input, shape index: {}]   ;;  %s14512_s2 = inlined_call_operand.vmem [shape: f32[512,128], index: 2, kind: output, shape index: {}]  }
   0x1   :  { %v10022_v0 = vld [vmem:[%s14510_s1 + $0x38] sm:$0xff]  ;;  %v10021_v4 = vld [vmem:[%s14510_s1 + $0x30] sm:$0xff]  ;;  %v10020_v8 = vld [vmem:[%s14510_s1 + $0x28] sm:$0xff] }
   0x2   :  { %v10030_v1 = vld [vmem:[%s14510_s1 + $0x78] sm:$0xff]  ;;  %4107 = vmatpush.bf16.msra.mxu0 %v10022_v0  ;;  %v10029_v5 = vld [vmem:[%s14510_s1 + $0x70] sm:$0xff]  ;;  %v10028_v9 = vld [vmem:[%s14510_s1 + $0x68] sm:$0xff] }
   0x3   :  { %v10038_v2 = vld [vmem:[%s14510_s1 + $0xb8] sm:$0xff]  ;;  %4276 = vmatpush.bf16.msra.mxu1 %v10030_v1  ;;  %v10037_v6 = vld [vmem:[%s14510_s1 + $0xb0] sm:$0xff]  ;;  %v10036_v10 = vld [vmem:[%s14510_s1 + $0xa8] sm:$0xff] }
   0x4   :  { %v10046_v3 = vld [vmem:[%s14510_s1 + $0xf8] sm:$0xff]  ;;  %4445 = vmatpush.bf16.msra.mxu2 %v10038_v2  ;;  %v10045_v7 = vld [vmem:[%s14510_s1 + $0xf0] sm:$0xff]  ;;  %v10044_v11 = vld [vmem:[%s14510_s1 + $0xe8] sm:$0xff] }
   0x5   :  { %4614 = vmatpush.bf16.msra.mxu3 %v10046_v3  ;;  %v10019_v12 = vld [vmem:[%s14510_s1 + $0x20] sm:$0xff]  ;;  %v10018_v16 = vld [vmem:[%s14510_s1 + $0x18] sm:$0xff]  ;;  %v10017_v20 = vld [vmem:[%s14510_s1 + $0x10] sm:$0xff] }
   0x6   :  { %4108 = vmatpush.bf16.msra.mxu0 %v10021_v4  ;;  %v10027_v13 = vld [vmem:[%s14510_s1 + $0x60] sm:$0xff]  ;;  %v10026_v17 = vld [vmem:[%s14510_s1 + $0x58] sm:$0xff]  ;;  %v10025_v21 = vld [vmem:[%s14510_s1 + $0x50] sm:$0xff] }
   0x7   :  { %4277 = vmatpush.bf16.msra.mxu1 %v10029_v5  ;;  %v10035_v14 = vld [vmem:[%s14510_s1 + $0xa0] sm:$0xff]  ;;  %v10034_v18 = vld [vmem:[%s14510_s1 + $0x98] sm:$0xff]  ;;  %v10033_v22 = vld [vmem:[%s14510_s1 + $0x90] sm:$0xff] }
   0x8   :  { %4446 = vmatpush.bf16.msra.mxu2 %v10037_v6  ;;  %v10043_v15 = vld [vmem:[%s14510_s1 + $0xe0] sm:$0xff]  ;;  %v10042_v19 = vld [vmem:[%s14510_s1 + $0xd8] sm:$0xff]  ;;  %v10041_v23 = vld [vmem:[%s14510_s1 + $0xd0] sm:$0xff] }
   0x9   :  { %4615 = vmatpush.bf16.msra.mxu3 %v10045_v7  ;;  %v10016_v24 = vld [vmem:[%s14510_s1 + $0x8] sm:$0xff]  ;;  %v10015_v28 = vld [vmem:[%s14510_s1] sm:$0xff]  ;;  %v10070_v40 = vld [vmem:[%s14510_s1 + $0x1b8] sm:$0xff] }
   0xa   :  { %4109 = vmatpush.bf16.msra.mxu0 %v10020_v8  ;;  %v10024_v25 = vld [vmem:[%s14510_s1 + $0x48] sm:$0xff]  ;;  %v10023_v29 = vld [vmem:[%s14510_s1 + $0x40] sm:$0xff]  ;;  %v10054_v41 = vld [vmem:[%s14510_s1 + $0x138] sm:$0xff] }
   0xb   :  { %4278 = vmatpush.bf16.msra.mxu1 %v10028_v9  ;;  %v10032_v26 = vld [vmem:[%s14510_s1 + $0x88] sm:$0xff]  ;;  %v10031_v30 = vld [vmem:[%s14510_s1 + $0x80] sm:$0xff]  ;;  %v10078_v46 = vld [vmem:[%s14510_s1 + $0x1f8] sm:$0xff] }
   0xc   :  { %4447 = vmatpush.bf16.msra.mxu2 %v10036_v10  ;;  %v10040_v27 = vld [vmem:[%s14510_s1 + $0xc8] sm:$0xff]  ;;  %v10039_v31 = vld [vmem:[%s14510_s1 + $0xc0] sm:$0xff]  ;;  %v10062_v47 = vld [vmem:[%s14510_s1 + $0x178] sm:$0xff] }
   0xd   :  { %4616 = vmatpush.bf16.msra.mxu3 %v10044_v11  ;;  %v6945_v32 = vld [vmem:[%s14511_s0] sm:$0xf]  ;;  %v9503_v34 = vld [vmem:[%s14511_s0 + $0x4] sm:$0xf]  ;;  %v6953_v36 = vld [vmem:[%s14511_s0 + $0x8] sm:$0xf] }
   0xe   :  { %4110 = vmatpush.bf16.msra.mxu0 %v10019_v12  ;;  %v9511_v33 = vld [vmem:[%s14511_s0 + $0x3c] sm:$0xf0]  ;;  %v6947_v35 = vld [vmem:[%s14511_s0 + $0x40] sm:$0xf0]  ;;  %v9512_v37 = vld [vmem:[%s14511_s0 + $0x44] sm:$0xf0] }
   0xf   :  { %4279 = vmatpush.bf16.msra.mxu1 %v10027_v13  ;;  %v9504_v38 = vld [vmem:[%s14511_s0 + $0xc] sm:$0xf]  ;;  %v6946_v42 = vor.u32 %v9511_v33, %v6945_v32  ;;  %v6950_v43 = vor.u32 %v9503_v34, %v6947_v35  ;;  %v6954_v44 = vor.u32 %v9512_v37, %v6953_v36  ;;  %v7009_v48 = vld [vmem:[%s14511_s0 + $0x80] sm:$0xf]  ;;  %v9519_v50 = vld [vmem:[%s14511_s0 + $0x84] sm:$0xf] }
  0x10   :  { %4448 = vmatpush.bf16.msra.mxu2 %v10035_v14  ;;  %v6955_v39 = vld [vmem:[%s14511_s0 + $0x48] sm:$0xf0]  ;;  %v9527_v49 = vld [vmem:[%s14511_s0 + $0xbc] sm:$0xf0]  ;;  %v7011_v51 = vld [vmem:[%s14511_s0 + $0xc0] sm:$0xf0] }
  0x11   :  { %4617 = vmatpush.bf16.msra.mxu3 %v10043_v15  ;;  %v6958_v45 = vor.u32 %v9504_v38, %v6955_v39  ;;  %v7017_v52 = vld [vmem:[%s14511_s0 + $0x88] sm:$0xf]  ;;  %v9520_v54 = vld [vmem:[%s14511_s0 + $0x8c] sm:$0xf]  ;;  %v7010_v56 = vor.u32 %v9527_v49, %v7009_v48  ;;  %v7014_v57 = vor.u32 %v9519_v50, %v7011_v51  ;;  %v7073_v60 = vld [vmem:[%s14511_s0 + $0x100] sm:$0xf] }
  0x12   :  { %4111 = vmatpush.bf16.msra.mxu0 %v10018_v16  ;;  %v9528_v53 = vld [vmem:[%s14511_s0 + $0xc4] sm:$0xf0]  ;;  %v7019_v55 = vld [vmem:[%s14511_s0 + $0xc8] sm:$0xf0]  ;;  %v9543_v61 = vld [vmem:[%s14511_s0 + $0x13c] sm:$0xf0] }
  0x13   :  { %4280 = vmatpush.bf16.msra.mxu1 %v10026_v17  ;;  %v7018_v58 = vor.u32 %v9528_v53, %v7017_v52  ;;  %v7022_v59 = vor.u32 %v9520_v54, %v7019_v55  ;;  %v9535_v62 = vld [vmem:[%s14511_s0 + $0x104] sm:$0xf]  ;;  %v7081_v0 = vld [vmem:[%s14511_s0 + $0x108] sm:$0xf]  ;;  %v9536_v2 = vld [vmem:[%s14511_s0 + $0x10c] sm:$0xf]  ;;  %v7074_v4 = vor.u32 %v9543_v61, %v7073_v60 }
  0x14   :  { %4449 = vmatpush.bf16.msra.mxu2 %v10034_v18  ;;  %v7075_v63 = vld [vmem:[%s14511_s0 + $0x140] sm:$0xf0]  ;;  %v9544_v1 = vld [vmem:[%s14511_s0 + $0x144] sm:$0xf0]  ;;  %v7083_v3 = vld [vmem:[%s14511_s0 + $0x148] sm:$0xf0] }
  0x15   :  { %4618 = vmatpush.bf16.msra.mxu3 %v10042_v19  ;;  %v7078_v5 = vor.u32 %v9535_v62, %v7075_v63  ;;  %v7082_v6 = vor.u32 %v9544_v1, %v7081_v0  ;;  %v7086_v7 = vor.u32 %v9536_v2, %v7083_v3  ;;  %v10069_v8 = vld [vmem:[%s14510_s1 + $0x1b0] sm:$0xff]  ;;  %v7137_v12 = vld [vmem:[%s14511_s0 + $0x180] sm:$0xf]  ;;  %v9551_v14 = vld [vmem:[%s14511_s0 + $0x184] sm:$0xf] }
  0x16   :  { %4112 = vmatpush.bf16.msra.mxu0 %v10017_v20  ;;  %v10053_v9 = vld [vmem:[%s14510_s1 + $0x130] sm:$0xff]  ;;  %v9559_v13 = vld [vmem:[%s14511_s0 + $0x1bc] sm:$0xf0]  ;;  %v7139_v15 = vld [vmem:[%s14511_s0 + $0x1c0] sm:$0xf0] }
  0x17   :  { %4281 = vmatpush.bf16.msra.mxu1 %v10025_v21  ;;  %v10077_v10 = vld [vmem:[%s14510_s1 + $0x1f0] sm:$0xff]  ;;  %v7145_v16 = vld [vmem:[%s14511_s0 + $0x188] sm:$0xf]  ;;  %v9552_v18 = vld [vmem:[%s14511_s0 + $0x18c] sm:$0xf]  ;;  %v7138_v20 = vor.u32 %v9559_v13, %v7137_v12  ;;  %v7142_v21 = vor.u32 %v9551_v14, %v7139_v15 }
  0x18   :  { %4450 = vmatpush.bf16.msra.mxu2 %v10033_v22  ;;  %v10061_v11 = vld [vmem:[%s14510_s1 + $0x170] sm:$0xff]  ;;  %v9560_v17 = vld [vmem:[%s14511_s0 + $0x1c4] sm:$0xf0]  ;;  %v7147_v19 = vld [vmem:[%s14511_s0 + $0x1c8] sm:$0xf0] }
  0x19   :  { %4619 = vmatpush.bf16.msra.mxu3 %v10041_v23  ;;  %v7146_v22 = vor.u32 %v9560_v17, %v7145_v16  ;;  %v7150_v23 = vor.u32 %v9552_v18, %v7147_v19  ;;  %v7265_v36 = vld [vmem:[%s14511_s0 + $0x280] sm:$0xf]  ;;  %v9583_v38 = vld [vmem:[%s14511_s0 + $0x284] sm:$0xf]  ;;  %v7337_v52 = vld [vmem:[%s14511_s0 + $0x308] sm:$0xf] }
  0x1a   :  { %4113 = vmatpush.bf16.msra.mxu0 %v10016_v24  ;;  %v7201_v24 = vld [vmem:[%s14511_s0 + $0x200] sm:$0xf]  ;;  %v7267_v39 = vld [vmem:[%s14511_s0 + $0x2c0] sm:$0xf0]  ;;  %v9608_v53 = vld [vmem:[%s14511_s0 + $0x344] sm:$0xf0] }
  0x1b   :  { %4282 = vmatpush.bf16.msra.mxu1 %v10024_v25  ;;  %v9575_v25 = vld [vmem:[%s14511_s0 + $0x23c] sm:$0xf0]  ;;  %v9599_v50 = vld [vmem:[%s14511_s0 + $0x304] sm:$0xf]  ;;  %v9600_v54 = vld [vmem:[%s14511_s0 + $0x30c] sm:$0xf] }
  0x1c   :  { %4451 = vmatpush.bf16.msra.mxu2 %v10032_v26  ;;  %v9567_v26 = vld [vmem:[%s14511_s0 + $0x204] sm:$0xf]  ;;  %v7202_v32 = vor.u32 %v9575_v25, %v7201_v24  ;;  %v9591_v37 = vld [vmem:[%s14511_s0 + $0x2bc] sm:$0xf0]  ;;  %v7339_v55 = vld [vmem:[%s14511_s0 + $0x348] sm:$0xf0] }
  0x1d   :  { %4620 = vmatpush.bf16.msra.mxu3 %v10040_v27  ;;  %v7203_v27 = vld [vmem:[%s14511_s0 + $0x240] sm:$0xf0]  ;;  %v7329_v48 = vld [vmem:[%s14511_s0 + $0x300] sm:$0xf]  ;;  %v10068_v60 = vld [vmem:[%s14510_s1 + $0x1a8] sm:$0xff] }
  0x1e   :  { %4114 = vmatpush.bf16.msra.mxu0 %v10015_v28  ;;  %v7209_v28 = vld [vmem:[%s14511_s0 + $0x208] sm:$0xf]  ;;  %v7206_v33 = vor.u32 %v9567_v26, %v7203_v27  ;;  %v9607_v49 = vld [vmem:[%s14511_s0 + $0x33c] sm:$0xf0]  ;;  %v7331_v51 = vld [vmem:[%s14511_s0 + $0x340] sm:$0xf0] }
  0x1f   :  { %4283 = vmatpush.bf16.msra.mxu1 %v10023_v29  ;;  %v9576_v29 = vld [vmem:[%s14511_s0 + $0x244] sm:$0xf0]  ;;  %v7393_v0 = vld [vmem:[%s14511_s0 + $0x380] sm:$0xf]  ;;  %v9615_v2 = vld [vmem:[%s14511_s0 + $0x384] sm:$0xf] }
  0x20   :  { %4452 = vmatpush.bf16.msra.mxu2 %v10031_v30  ;;  %v9568_v30 = vld [vmem:[%s14511_s0 + $0x20c] sm:$0xf]  ;;  %v7210_v34 = vor.u32 %v9576_v29, %v7209_v28  ;;  %v9623_v1 = vld [vmem:[%s14511_s0 + $0x3bc] sm:$0xf0]  ;;  %v7395_v3 = vld [vmem:[%s14511_s0 + $0x3c0] sm:$0xf0] }
  0x21   :  { %4621 = vmatpush.bf16.msra.mxu3 %v10039_v31  ;;  %4115 = vmatmul.bf16.vlgmr.msra.gmra.mxu0 %v6946_v42  ;;  %v7211_v31 = vld [vmem:[%s14511_s0 + $0x248] sm:$0xf0]  ;;  %v7457_v12 = vld [vmem:[%s14511_s0 + $0x400] sm:$0xf]  ;;  %v9631_v14 = vld [vmem:[%s14511_s0 + $0x404] sm:$0xf] }
  0x22   :  { %4783 = vmatpush.bf16.msrb.mxu0 %v10054_v41  ;;  %4284 = vmatmul.bf16.vlgmr.msra.gmra.mxu1 %v6950_v43  ;;  %v7214_v35 = vor.u32 %v9568_v30, %v7211_v31  ;;  %v9592_v41 = vld [vmem:[%s14511_s0 + $0x2c4] sm:$0xf0]  ;;  %v9584_v42 = vld [vmem:[%s14511_s0 + $0x28c] sm:$0xf]  ;;  %v9639_v13 = vld [vmem:[%s14511_s0 + $0x43c] sm:$0xf0] }
  0x23   :  { %4453 = vmatmul.bf16.vlgmr.msra.gmra.mxu2 %v6954_v44  ;;  %4952 = vmatpush.bf16.msrb.mxu1 %v10062_v47  ;;  %v7275_v43 = vld [vmem:[%s14511_s0 + $0x2c8] sm:$0xf0]  ;;  %v7266_v44 = vor.u32 %v9591_v37, %v7265_v36  ;;  %v7459_v15 = vld [vmem:[%s14511_s0 + $0x440] sm:$0xf0]  ;;  %v7465_v16 = vld [vmem:[%s14511_s0 + $0x408] sm:$0xf] }
  0x24   :  { %5121 = vmatpush.bf16.msrb.mxu2 %v10070_v40  ;;  %4622 = vmatmul.bf16.vlgmr.msra.gmra.mxu3 %v6958_v45  ;;  %v7273_v40 = vld [vmem:[%s14511_s0 + $0x288] sm:$0xf]  ;;  %v7270_v45 = vor.u32 %v9583_v38, %v7267_v39  ;;  %v7278_v47 = vor.u32 %v9584_v42, %v7275_v43  ;;  %v9632_v18 = vld [vmem:[%s14511_s0 + $0x40c] sm:$0xf]  ;;  %v9647_v36 = vld [vmem:[%s14511_s0 + $0x484] sm:$0xf] }
  0x25   :  { %5290 = vmatpush.bf16.msrb.mxu3 %v10078_v46  ;;  %v7274_v46 = vor.u32 %v9592_v41, %v7273_v40  ;;  %v10052_v61 = vld [vmem:[%s14510_s1 + $0x128] sm:$0xff]  ;;  %v7523_v37 = vld [vmem:[%s14511_s0 + $0x4c0] sm:$0xf0] }
  0x26   :  { %4784 = vmatpush.bf16.msrb.mxu0 %v10053_v9  ;;  %v10076_v62 = vld [vmem:[%s14510_s1 + $0x1e8] sm:$0xff]  ;;  %v7398_v9 = vor.u32 %v9615_v2, %v7395_v3 }
  0x27   :  { %4953 = vmatpush.bf16.msrb.mxu1 %v10061_v11  ;;  %v10060_v63 = vld [vmem:[%s14510_s1 + $0x168] sm:$0xff] }
  0x28   :  { %5122 = vmatpush.bf16.msrb.mxu2 %v10069_v8  ;;  %v7394_v8 = vor.u32 %v9623_v1, %v7393_v0  ;;  %v9640_v17 = vld [vmem:[%s14511_s0 + $0x444] sm:$0xf0]  ;;  %v7467_v19 = vld [vmem:[%s14511_s0 + $0x448] sm:$0xf0] }
  0x29   :  { %5291 = vmatpush.bf16.msrb.mxu3 %v10077_v10  ;;  %v7466_v24 = vor.u32 %v9640_v17, %v7465_v16  ;;  %v7470_v25 = vor.u32 %v9632_v18, %v7467_v19  ;;  %v7529_v38 = vld [vmem:[%s14511_s0 + $0x488] sm:$0xf]  ;;  %v9648_v40 = vld [vmem:[%s14511_s0 + $0x48c] sm:$0xf]  ;;  %v10051_v16 = vld [vmem:[%s14510_s1 + $0x120] sm:$0xff] }
  0x2a   :  { %4785 = vmatpush.bf16.msrb.mxu0 %v10052_v61  ;;  %v9656_v39 = vld [vmem:[%s14511_s0 + $0x4c4] sm:$0xf0]  ;;  %v7531_v41 = vld [vmem:[%s14511_s0 + $0x4c8] sm:$0xf0]  ;;  %v9671_v61 = vld [vmem:[%s14511_s0 + $0x53c] sm:$0xf0] }
  0x2b   :  { %4954 = vmatpush.bf16.msrb.mxu1 %v10060_v63  ;;  %v7587_v63 = vld [vmem:[%s14511_s0 + $0x540] sm:$0xf0]  ;;  %v7593_v0 = vld [vmem:[%s14511_s0 + $0x508] sm:$0xf]  ;;  %v9664_v2 = vld [vmem:[%s14511_s0 + $0x50c] sm:$0xf] }
  0x2c   :  { %5123 = vmatpush.bf16.msrb.mxu2 %v10068_v60  ;;  %v7585_v60 = vld [vmem:[%s14511_s0 + $0x500] sm:$0xf]  ;;  %v9672_v1 = vld [vmem:[%s14511_s0 + $0x544] sm:$0xf0]  ;;  %v7595_v3 = vld [vmem:[%s14511_s0 + $0x548] sm:$0xf0] }
  0x2d   :  { %5292 = vmatpush.bf16.msrb.mxu3 %v10076_v62  ;;  %v9663_v62 = vld [vmem:[%s14511_s0 + $0x504] sm:$0xf] }
  0x2e   :  { %v10075_v17 = vld [vmem:[%s14510_s1 + $0x1e0] sm:$0xff]  ;;  %4786 = vmatpush.bf16.msrb.mxu0 %v10051_v16 }
  0x31   :  { %4120 = vmatmul.bf16.gmra.mxu0 %v7010_v56  ;;  %v7330_v56 = vor.u32 %v9607_v49, %v7329_v48  ;;  %v7530_v49 = vor.u32 %v9656_v39, %v7529_v38  ;;  %5293 = vmatpush.bf16.msrb.mxu3 %v10075_v17 }
  0x32   :  { %4289 = vmatmul.bf16.gmra.mxu1 %v7014_v57  ;;  %v7334_v57 = vor.u32 %v9599_v50, %v7331_v51  ;;  %v7534_v50 = vor.u32 %v9648_v40, %v7531_v41 }
  0x33   :  { %4458 = vmatmul.bf16.gmra.mxu2 %v7018_v58  ;;  %v7338_v58 = vor.u32 %v9608_v53, %v7337_v52 }
  0x34   :  { %4627 = vmatmul.bf16.gmra.mxu3 %v7022_v59  ;;  %v7342_v59 = vor.u32 %v9600_v54, %v7339_v55 }
  0x41   :  { %4125 = vmatmul.bf16.gmra.mxu0 %v7074_v4  ;;  %v7401_v4 = vld [vmem:[%s14511_s0 + $0x388] sm:$0xf] }
  0x42   :  { %4294 = vmatmul.bf16.gmra.mxu1 %v7078_v5  ;;  %v9624_v5 = vld [vmem:[%s14511_s0 + $0x3c4] sm:$0xf0] }
  0x43   :  { %4463 = vmatmul.bf16.gmra.mxu2 %v7082_v6  ;;  %v9616_v6 = vld [vmem:[%s14511_s0 + $0x38c] sm:$0xf]  ;;  %v7402_v10 = vor.u32 %v9624_v5, %v7401_v4 }
  0x44   :  { %4632 = vmatmul.bf16.gmra.mxu3 %v7086_v7  ;;  %v7403_v7 = vld [vmem:[%s14511_s0 + $0x3c8] sm:$0xf0] }
  0x45   :  { %v7406_v11 = vor.u32 %v9616_v6, %v7403_v7  ;;  %v7586_v6 = vor.u32 %v9671_v61, %v7585_v60  ;;  %v7590_v7 = vor.u32 %v9663_v62, %v7587_v63  ;;  %v9704_v60 = vld [vmem:[%s14511_s0 + $0x644] sm:$0xf0]  ;;  %v9696_v61 = vld [vmem:[%s14511_s0 + $0x60c] sm:$0xf] }
  0x46   :  { %v7723_v62 = vld [vmem:[%s14511_s0 + $0x648] sm:$0xf0] }
  0x51   :  { %4130 = vmatmul.bf16.gmra.mxu0 %v7138_v20  ;;  %v7458_v20 = vor.u32 %v9639_v13, %v7457_v12  ;;  %v7598_v12 = vor.u32 %v9664_v2, %v7595_v3 }
  0x52   :  { %4299 = vmatmul.bf16.gmra.mxu1 %v7142_v21  ;;  %v7462_v21 = vor.u32 %v9631_v14, %v7459_v15  ;;  %v10067_v15 = vld [vmem:[%s14510_s1 + $0x1a0] sm:$0xff] }
  0x53   :  { %4468 = vmatmul.bf16.gmra.mxu2 %v7146_v22 }
  0x54   :  { %4637 = vmatmul.bf16.gmra.mxu3 %v7150_v23  ;;  %5124 = vmatpush.bf16.msrb.mxu2 %v10067_v15 }
  0x61   :  { %4135 = vmatmul.bf16.gmra.mxu0 %v7202_v32 }
  0x62   :  { %4304 = vmatmul.bf16.gmra.mxu1 %v7206_v33 }
  0x63   :  { %4473 = vmatmul.bf16.gmra.mxu2 %v7210_v34  ;;  %v7521_v34 = vld [vmem:[%s14511_s0 + $0x480] sm:$0xf] }
  0x64   :  { %4642 = vmatmul.bf16.gmra.mxu3 %v7214_v35  ;;  %v9655_v35 = vld [vmem:[%s14511_s0 + $0x4bc] sm:$0xf0] }
  0x71   :  { %4140 = vmatmul.bf16.gmra.mxu0 %v7266_v44  ;;  %v7522_v44 = vor.u32 %v9655_v35, %v7521_v34  ;;  %v7659_v34 = vld [vmem:[%s14511_s0 + $0x5c8] sm:$0xf0] }
  0x72   :  { %4309 = vmatmul.bf16.gmra.mxu1 %v7270_v45  ;;  %v7526_v45 = vor.u32 %v9647_v36, %v7523_v37 }
  0x73   :  { %4478 = vmatmul.bf16.gmra.mxu2 %v7274_v46 }
  0x74   :  { %4647 = vmatmul.bf16.gmra.mxu3 %v7278_v47 }
  0x81   :  { %4145 = vmatmul.bf16.gmra.mxu0 %v7330_v56 }
  0x82   :  { %4314 = vmatmul.bf16.gmra.mxu1 %v7334_v57 }
  0x83   :  { %4483 = vmatmul.bf16.gmra.mxu2 %v7338_v58 }
  0x84   :  { %4652 = vmatmul.bf16.gmra.mxu3 %v7342_v59 }
  0x91   :  { %4150 = vmatmul.bf16.gmra.mxu0 %v7394_v8 }
  0x92   :  { %4319 = vmatmul.bf16.gmra.mxu1 %v7398_v9 }
  0x93   :  { %4488 = vmatmul.bf16.gmra.mxu2 %v7402_v10 }
  0x94   :  { %4657 = vmatmul.bf16.gmra.mxu3 %v7406_v11  ;;  %v7594_v11 = vor.u32 %v9672_v1, %v7593_v0 }
  0x9e   :  { %v4116_v22 = vpop.f32.mrf.mxu0 }
  0x9f   :  { %v4285_v23 = vpop.f32.mrf.mxu1 }
  0xa0   :  { %v4286_v26 = vadd.f32 %v4285_v23, %v4116_v22 }
  0xa1   :  { %4155 = vmatmul.bf16.gmra.mxu0 %v7458_v20 }
  0xa2   :  { %4324 = vmatmul.bf16.gmra.mxu1 %v7462_v21 }
  0xa3   :  { %4493 = vmatmul.bf16.gmra.mxu2 %v7466_v24 }
  0xa4   :  { %4662 = vmatmul.bf16.gmra.mxu3 %v7470_v25  ;;  %v10059_v25 = vld [vmem:[%s14510_s1 + $0x160] sm:$0xff] }
  0xa5   :  { %4955 = vmatpush.bf16.msrb.mxu1 %v10059_v25  ;;  %v9712_v25 = vld [vmem:[%s14511_s0 + $0x68c] sm:$0xf] }
  0xa6   :  { %v4454_v27 = vpop.f32.mrf.mxu2  ;;  %v4118_v30 = vpop.f32.mrf.mxu0 }
  0xa7   :  { %v4623_v28 = vpop.f32.mrf.mxu3  ;;  %v4455_v29 = vadd.f32 %v4454_v27, %v4286_v26  ;;  %v4287_v31 = vpop.f32.mrf.mxu1  ;;  %v7649_v26 = vld [vmem:[%s14511_s0 + $0x580] sm:$0xf] }
  0xa8   :  { %v4288_v32 = vadd.f32 %v4287_v31, %v4118_v30  ;;  %v9687_v27 = vld [vmem:[%s14511_s0 + $0x5bc] sm:$0xf0]  ;;  %v7657_v30 = vld [vmem:[%s14511_s0 + $0x588] sm:$0xf] }
  0xa9   :  { %v10634_v33 = vadd.f32 %v4623_v28, %v4455_v29  ;;  %v9679_v28 = vld [vmem:[%s14511_s0 + $0x584] sm:$0xf]  ;;  %v9688_v31 = vld [vmem:[%s14511_s0 + $0x5c4] sm:$0xf0]  ;;  %v7650_v37 = vor.u32 %v9687_v27, %v7649_v26  ;;  %v7787_v26 = vld [vmem:[%s14511_s0 + $0x6c8] sm:$0xf0] }
  0xaa   :  { %v7651_v29 = vld [vmem:[%s14511_s0 + $0x5c0] sm:$0xf0] }
  0xab   :  { %v7654_v38 = vor.u32 %v9679_v28, %v7651_v29 }
  0xae   :  { %v4456_v42 = vpop.f32.mrf.mxu2  ;;  %v4121_v47 = vpop.f32.mrf.mxu0 }
  0xaf   :  { %v4625_v43 = vpop.f32.mrf.mxu3  ;;  %v4457_v46 = vadd.f32 %v4456_v42, %v4288_v32  ;;  %v4290_v48 = vpop.f32.mrf.mxu1  ;;  %v9680_v32 = vld [vmem:[%s14511_s0 + $0x58c] sm:$0xf]  ;;  %v7658_v42 = vor.u32 %v9688_v31, %v7657_v30 }
  0xb0   :  { %v4291_v51 = vadd.f32 %v4290_v48, %v4121_v47 }
  0xb1   :  { %v10660_v52 = vadd.f32 %v4625_v43, %v4457_v46  ;;  %4160 = vmatmul.bf16.gmra.mxu0 %v7522_v44  ;;  %v7662_v43 = vor.u32 %v9680_v32, %v7659_v34 }
  0xb2   :  { %4329 = vmatmul.bf16.gmra.mxu1 %v7526_v45 }
  0xb3   :  { %4498 = vmatmul.bf16.gmra.mxu2 %v7530_v49 }
  0xb4   :  { %4667 = vmatmul.bf16.gmra.mxu3 %v7534_v50 }
  0xb6   :  { %v4459_v53 = vpop.f32.mrf.mxu2  ;;  %v4123_v56 = vpop.f32.mrf.mxu0 }
  0xb7   :  { %v4628_v54 = vpop.f32.mrf.mxu3  ;;  %v4460_v55 = vadd.f32 %v4459_v53, %v4291_v51  ;;  %v4292_v57 = vpop.f32.mrf.mxu1 }
  0xb8   :  { %v4293_v58 = vadd.f32 %v4292_v57, %v4123_v56  ;;  %v9695_v56 = vld [vmem:[%s14511_s0 + $0x604] sm:$0xf] }
  0xb9   :  { %v10662_v59 = vadd.f32 %v4628_v54, %v4460_v55  ;;  %v7713_v54 = vld [vmem:[%s14511_s0 + $0x600] sm:$0xf]  ;;  %v7715_v57 = vld [vmem:[%s14511_s0 + $0x640] sm:$0xf0] }
  0xba   :  { %v9703_v55 = vld [vmem:[%s14511_s0 + $0x63c] sm:$0xf0]  ;;  %v7718_v2 = vor.u32 %v9695_v56, %v7715_v57  ;;  %v7851_v56 = vld [vmem:[%s14511_s0 + $0x748] sm:$0xf0] }
  0xbb   :  { %v7714_v1 = vor.u32 %v9703_v55, %v7713_v54  ;;  %v9736_v54 = vld [vmem:[%s14511_s0 + $0x744] sm:$0xf0]  ;;  %v9728_v55 = vld [vmem:[%s14511_s0 + $0x70c] sm:$0xf] }
  0xbe   :  { %v4461_v4 = vpop.f32.mrf.mxu2  ;;  %v4126_v9 = vpop.f32.mrf.mxu0 }
  0xbf   :  { %v4630_v5 = vpop.f32.mrf.mxu3  ;;  %v4462_v8 = vadd.f32 %v4461_v4, %v4293_v58  ;;  %v4295_v10 = vpop.f32.mrf.mxu1  ;;  %v7721_v58 = vld [vmem:[%s14511_s0 + $0x608] sm:$0xf] }
  0xc0   :  { %v4296_v13 = vadd.f32 %v4295_v10, %v4126_v9 }
  0xc1   :  { %v10688_v14 = vadd.f32 %v4630_v5, %v4462_v8  ;;  %4165 = vmatmul.bf16.gmra.mxu0 %v7586_v6  ;;  %v7722_v6 = vor.u32 %v9704_v60, %v7721_v58 }
  0xc2   :  { %4334 = vmatmul.bf16.gmra.mxu1 %v7590_v7  ;;  %v7726_v7 = vor.u32 %v9696_v61, %v7723_v62 }
  0xc3   :  { %4503 = vmatmul.bf16.gmra.mxu2 %v7594_v11 }
  0xc4   :  { %4672 = vmatmul.bf16.gmra.mxu3 %v7598_v12 }
  0xc6   :  { %v4464_v18 = vpop.f32.mrf.mxu2  ;;  %v4128_v21 = vpop.f32.mrf.mxu0 }
  0xc7   :  { %v4633_v19 = vpop.f32.mrf.mxu3  ;;  %v4465_v20 = vadd.f32 %v4464_v18, %v4296_v13  ;;  %v4297_v22 = vpop.f32.mrf.mxu1  ;;  %v7777_v18 = vld [vmem:[%s14511_s0 + $0x680] sm:$0xf] }
  0xc8   :  { %v4298_v23 = vadd.f32 %v4297_v22, %v4128_v21  ;;  %v7779_v21 = vld [vmem:[%s14511_s0 + $0x6c0] sm:$0xf0]  ;;  %v7785_v22 = vld [vmem:[%s14511_s0 + $0x688] sm:$0xf] }
  0xc9   :  { %v10699_v24 = vadd.f32 %v4633_v19, %v4465_v20  ;;  %v9719_v19 = vld [vmem:[%s14511_s0 + $0x6bc] sm:$0xf0]  ;;  %v9711_v20 = vld [vmem:[%s14511_s0 + $0x684] sm:$0xf] }
  0xca   :  { %v7778_v29 = vor.u32 %v9719_v19, %v7777_v18  ;;  %v7782_v30 = vor.u32 %v9711_v20, %v7779_v21  ;;  %v10058_v18 = vld [vmem:[%s14510_s1 + $0x158] sm:$0xff]  ;;  %v7905_v19 = vld [vmem:[%s14511_s0 + $0x780] sm:$0xf]  ;;  %v9743_v21 = vld [vmem:[%s14511_s0 + $0x784] sm:$0xf] }
  0xcb   :  { %v9751_v20 = vld [vmem:[%s14511_s0 + $0x7bc] sm:$0xf0]  ;;  %4956 = vmatpush.bf16.msrb.mxu1 %v10058_v18 }
  0xce   :  { %v4466_v35 = vpop.f32.mrf.mxu2  ;;  %v4131_v40 = vpop.f32.mrf.mxu0 }
  0xcf   :  { %v4635_v36 = vpop.f32.mrf.mxu3  ;;  %v4467_v39 = vadd.f32 %v4466_v35, %v4298_v23  ;;  %v4300_v41 = vpop.f32.mrf.mxu1  ;;  %v9720_v23 = vld [vmem:[%s14511_s0 + $0x6c4] sm:$0xf0] }
  0xd0   :  { %v4301_v44 = vadd.f32 %v4300_v41, %v4131_v40  ;;  %v7786_v35 = vor.u32 %v9720_v23, %v7785_v22  ;;  %v7907_v22 = vld [vmem:[%s14511_s0 + $0x7c0] sm:$0xf0]  ;;  %v7913_v23 = vld [vmem:[%s14511_s0 + $0x788] sm:$0xf] }
  0xd1   :  { %v10728_v45 = vadd.f32 %v4635_v36, %v4467_v39  ;;  %4170 = vmatmul.bf16.gmra.mxu0 %v7650_v37  ;;  %v7790_v36 = vor.u32 %v9712_v25, %v7787_v26  ;;  %v9752_v25 = vld [vmem:[%s14511_s0 + $0x7c4] sm:$0xf0]  ;;  %v9744_v26 = vld [vmem:[%s14511_s0 + $0x78c] sm:$0xf] }
  0xd2   :  { %4339 = vmatmul.bf16.gmra.mxu1 %v7654_v38 }
  0xd3   :  { %4508 = vmatmul.bf16.gmra.mxu2 %v7658_v42 }
  0xd4   :  { %4677 = vmatmul.bf16.gmra.mxu3 %v7662_v43 }
  0xd6   :  { %v4469_v46 = vpop.f32.mrf.mxu2  ;;  %v4133_v49 = vpop.f32.mrf.mxu0 }
  0xd7   :  { %v4638_v47 = vpop.f32.mrf.mxu3  ;;  %v4470_v48 = vadd.f32 %v4469_v46, %v4301_v44  ;;  %v4302_v50 = vpop.f32.mrf.mxu1 }
  0xd8   :  { %v4303_v51 = vadd.f32 %v4302_v50, %v4133_v49  ;;  %v9727_v49 = vld [vmem:[%s14511_s0 + $0x704] sm:$0xf] }
  0xd9   :  { %v10730_v53 = vadd.f32 %v4638_v47, %v4470_v48  ;;  %v7841_v47 = vld [vmem:[%s14511_s0 + $0x700] sm:$0xf]  ;;  %v7843_v50 = vld [vmem:[%s14511_s0 + $0x740] sm:$0xf0] }
  0xda   :  { %v9735_v48 = vld [vmem:[%s14511_s0 + $0x73c] sm:$0xf0]  ;;  %v7846_v61 = vor.u32 %v9727_v49, %v7843_v50 }
  0xdb   :  { %v7842_v60 = vor.u32 %v9735_v48, %v7841_v47  ;;  %v7969_v50 = vld [vmem:[%s14511_s0 + $0x800] sm:$0xf] }
  0xde   :  { %v4471_v63 = vpop.f32.mrf.mxu2  ;;  %v4136_v4 = vpop.f32.mrf.mxu0 }
  0xdf   :  { %v4640_v0 = vpop.f32.mrf.mxu3  ;;  %v4472_v3 = vadd.f32 %v4471_v63, %v4303_v51  ;;  %v4305_v5 = vpop.f32.mrf.mxu1  ;;  %v7849_v51 = vld [vmem:[%s14511_s0 + $0x708] sm:$0xf] }
  0xe0   :  { %v4306_v8 = vadd.f32 %v4305_v5, %v4136_v4  ;;  %v10066_v5 = vld [vmem:[%s14510_s1 + $0x198] sm:$0xff] }
  0xe1   :  { %v10756_v9 = vadd.f32 %v4640_v0, %v4472_v3  ;;  %4175 = vmatmul.bf16.gmra.mxu0 %v7714_v1  ;;  %v7850_v1 = vor.u32 %v9736_v54, %v7849_v51  ;;  %5125 = vmatpush.bf16.msrb.mxu2 %v10066_v5  ;;  %v9767_v51 = vld [vmem:[%s14511_s0 + $0x83c] sm:$0xf0]  ;;  %v9759_v54 = vld [vmem:[%s14511_s0 + $0x804] sm:$0xf] }
  0xe2   :  { %4344 = vmatmul.bf16.gmra.mxu1 %v7718_v2  ;;  %v7854_v2 = vor.u32 %v9728_v55, %v7851_v56  ;;  %v7971_v55 = vld [vmem:[%s14511_s0 + $0x840] sm:$0xf0]  ;;  %v7977_v56 = vld [vmem:[%s14511_s0 + $0x808] sm:$0xf] }
  0xe3   :  { %4513 = vmatmul.bf16.gmra.mxu2 %v7722_v6  ;;  %v10050_v6 = vld [vmem:[%s14510_s1 + $0x118] sm:$0xff] }
  0xe4   :  { %4682 = vmatmul.bf16.gmra.mxu3 %v7726_v7  ;;  %v10074_v7 = vld [vmem:[%s14510_s1 + $0x1d8] sm:$0xff]  ;;  %4787 = vmatpush.bf16.msrb.mxu0 %v10050_v6 }
  0xe5   :  { %5294 = vmatpush.bf16.msrb.mxu3 %v10074_v7 }
  0xe6   :  { %v4474_v10 = vpop.f32.mrf.mxu2  ;;  %v4138_v13 = vpop.f32.mrf.mxu0 }
  0xe7   :  { %v4643_v11 = vpop.f32.mrf.mxu3  ;;  %v4475_v12 = vadd.f32 %v4474_v10, %v4306_v8  ;;  %v4307_v15 = vpop.f32.mrf.mxu1 }
  0xe8   :  { %v4308_v16 = vadd.f32 %v4307_v15, %v4138_v13 }
  0xe9   :  { %v10758_v17 = vadd.f32 %v4643_v11, %v4475_v12 }
  0xee   :  { %v4476_v27 = vpop.f32.mrf.mxu2  ;;  %v4141_v32 = vpop.f32.mrf.mxu0 }
  0xef   :  { %v4645_v28 = vpop.f32.mrf.mxu3  ;;  %v4477_v31 = vadd.f32 %v4476_v27, %v4308_v16  ;;  %v4310_v34 = vpop.f32.mrf.mxu1  ;;  %v7915_v27 = vld [vmem:[%s14511_s0 + $0x7c8] sm:$0xf0] }
  0xf0   :  { %v4311_v37 = vadd.f32 %v4310_v34, %v4141_v32 }
  0xf1   :  { %v10784_v38 = vadd.f32 %v4645_v28, %v4477_v31  ;;  %4180 = vmatmul.bf16.gmra.mxu0 %v7778_v29  ;;  %v7910_v31 = vor.u32 %v9743_v21, %v7907_v22  ;;  %v9783_v21 = vld [vmem:[%s14511_s0 + $0x8bc] sm:$0xf0]  ;;  %v9775_v22 = vld [vmem:[%s14511_s0 + $0x884] sm:$0xf] }
  0xf2   :  { %4349 = vmatmul.bf16.gmra.mxu1 %v7782_v30  ;;  %v7906_v30 = vor.u32 %v9751_v20, %v7905_v19  ;;  %v8033_v20 = vld [vmem:[%s14511_s0 + $0x880] sm:$0xf] }
  0xf3   :  { %4518 = vmatmul.bf16.gmra.mxu2 %v7786_v35 }
  0xf4   :  { %4687 = vmatmul.bf16.gmra.mxu3 %v7790_v36  ;;  %v7914_v36 = vor.u32 %v9752_v25, %v7913_v23  ;;  %v8035_v23 = vld [vmem:[%s14511_s0 + $0x8c0] sm:$0xf0]  ;;  %v8041_v25 = vld [vmem:[%s14511_s0 + $0x888] sm:$0xf] }
  0xf6   :  { %v4479_v39 = vpop.f32.mrf.mxu2  ;;  %v4143_v42 = vpop.f32.mrf.mxu0 }
  0xf7   :  { %v4648_v40 = vpop.f32.mrf.mxu3  ;;  %v4480_v41 = vadd.f32 %v4479_v39, %v4311_v37  ;;  %v4312_v43 = vpop.f32.mrf.mxu1  ;;  %v7918_v37 = vor.u32 %v9744_v26, %v7915_v27  ;;  %v9784_v26 = vld [vmem:[%s14511_s0 + $0x8c4] sm:$0xf0]  ;;  %v9776_v27 = vld [vmem:[%s14511_s0 + $0x88c] sm:$0xf] }
  0xf8   :  { %v4313_v44 = vadd.f32 %v4312_v43, %v4143_v42 }
  0xf9   :  { %v10786_v46 = vadd.f32 %v4648_v40, %v4480_v41 }
  0xfe   :  { %v4481_v57 = vpop.f32.mrf.mxu2  ;;  %v4146_v63 = vpop.f32.mrf.mxu0 }
  0xff   :  { %v4650_v58 = vpop.f32.mrf.mxu3  ;;  %v4482_v62 = vadd.f32 %v4481_v57, %v4313_v44  ;;  %v4315_v0 = vpop.f32.mrf.mxu1  ;;  %v9768_v57 = vld [vmem:[%s14511_s0 + $0x844] sm:$0xf0] }
 0x100   :  { %v4316_v3 = vadd.f32 %v4315_v0, %v4146_v63  ;;  %v7970_v63 = vor.u32 %v9767_v51, %v7969_v50  ;;  %v7974_v0 = vor.u32 %v9759_v54, %v7971_v55  ;;  %v7978_v5 = vor.u32 %v9768_v57, %v7977_v56  ;;  %v8097_v55 = vld [vmem:[%s14511_s0 + $0x900] sm:$0xf]  ;;  %v9791_v57 = vld [vmem:[%s14511_s0 + $0x904] sm:$0xf] }
 0x101   :  { %v10812_v4 = vadd.f32 %v4650_v58, %v4482_v62  ;;  %4185 = vmatmul.bf16.gmra.mxu0 %v7842_v60  ;;  %v9760_v58 = vld [vmem:[%s14511_s0 + $0x80c] sm:$0xf]  ;;  %v9799_v56 = vld [vmem:[%s14511_s0 + $0x93c] sm:$0xf0] }
 0x102   :  { %4354 = vmatmul.bf16.gmra.mxu1 %v7846_v61  ;;  %v7979_v60 = vld [vmem:[%s14511_s0 + $0x848] sm:$0xf0] }
 0x103   :  { %4523 = vmatmul.bf16.gmra.mxu2 %v7850_v1  ;;  %v7982_v6 = vor.u32 %v9760_v58, %v7979_v60  ;;  %v8099_v58 = vld [vmem:[%s14511_s0 + $0x940] sm:$0xf0]  ;;  %v8105_v60 = vld [vmem:[%s14511_s0 + $0x908] sm:$0xf] }
 0x104   :  { %4692 = vmatmul.bf16.gmra.mxu3 %v7854_v2 }
 0x106   :  { %v4484_v8 = vpop.f32.mrf.mxu2  ;;  %v4148_v12 = vpop.f32.mrf.mxu0 }
 0x107   :  { %v4653_v10 = vpop.f32.mrf.mxu3  ;;  %v4485_v11 = vadd.f32 %v4484_v8, %v4316_v3  ;;  %v4317_v13 = vpop.f32.mrf.mxu1 }
 0x108   :  { %v4318_v15 = vadd.f32 %v4317_v13, %v4148_v12 }
 0x109   :  { %v10823_v16 = vadd.f32 %v4653_v10, %v4485_v11 }
 0x10e   :  { %v4486_v28 = vpop.f32.mrf.mxu2  ;;  %v4151_v34 = vpop.f32.mrf.mxu0 }
 0x10f   :  { %v4655_v29 = vpop.f32.mrf.mxu3  ;;  %v4487_v32 = vadd.f32 %v4486_v28, %v4318_v15  ;;  %v4320_v35 = vpop.f32.mrf.mxu1  ;;  %v8043_v28 = vld [vmem:[%s14511_s0 + $0x8c8] sm:$0xf0] }
 0x110   :  { %v4321_v39 = vadd.f32 %v4320_v35, %v4151_v34 }
 0x111   :  { %v10852_v40 = vadd.f32 %v4655_v29, %v4487_v32  ;;  %4190 = vmatmul.bf16.gmra.mxu0 %v7906_v30  ;;  %v8038_v32 = vor.u32 %v9775_v22, %v8035_v23 }
 0x112   :  { %4359 = vmatmul.bf16.gmra.mxu1 %v7910_v31  ;;  %v8034_v31 = vor.u32 %v9783_v21, %v8033_v20  ;;  %v10073_v20 = vld [vmem:[%s14510_s1 + $0x1d0] sm:$0xff] }
 0x113   :  { %4528 = vmatmul.bf16.gmra.mxu2 %v7914_v36  ;;  %5295 = vmatpush.bf16.msrb.mxu3 %v10073_v20 }
 0x114   :  { %4697 = vmatmul.bf16.gmra.mxu3 %v7918_v37  ;;  %v8042_v37 = vor.u32 %v9784_v26, %v8041_v25 }
 0x116   :  { %v4489_v41 = vpop.f32.mrf.mxu2  ;;  %v4153_v44 = vpop.f32.mrf.mxu0 }
 0x117   :  { %v4658_v42 = vpop.f32.mrf.mxu3  ;;  %v4490_v43 = vadd.f32 %v4489_v41, %v4321_v39  ;;  %v4322_v47 = vpop.f32.mrf.mxu1  ;;  %v8046_v39 = vor.u32 %v9776_v27, %v8043_v28 }
 0x118   :  { %v4323_v48 = vadd.f32 %v4322_v47, %v4153_v44 }
 0x119   :  { %v10854_v49 = vadd.f32 %v4658_v42, %v4490_v43 }
 0x11e   :  { %v4491_v61 = vpop.f32.mrf.mxu2  ;;  %v4156_v2 = vpop.f32.mrf.mxu0 }
 0x11f   :  { %v4660_v62 = vpop.f32.mrf.mxu3  ;;  %v4492_v1 = vadd.f32 %v4491_v61, %v4323_v48  ;;  %v4325_v3 = vpop.f32.mrf.mxu1  ;;  %v9800_v61 = vld [vmem:[%s14511_s0 + $0x944] sm:$0xf0] }
 0x120   :  { %v4326_v7 = vadd.f32 %v4325_v3, %v4156_v2  ;;  %v8098_v2 = vor.u32 %v9799_v56, %v8097_v55  ;;  %v8102_v3 = vor.u32 %v9791_v57, %v8099_v58 }
 0x121   :  { %v10880_v8 = vadd.f32 %v4660_v62, %v4492_v1  ;;  %4195 = vmatmul.bf16.gmra.mxu0 %v7970_v63  ;;  %v9792_v62 = vld [vmem:[%s14511_s0 + $0x90c] sm:$0xf] }
 0x122   :  { %4364 = vmatmul.bf16.gmra.mxu1 %v7974_v0  ;;  %v8107_v63 = vld [vmem:[%s14511_s0 + $0x948] sm:$0xf0] }
 0x123   :  { %4533 = vmatmul.bf16.gmra.mxu2 %v7978_v5 }
 0x124   :  { %4702 = vmatmul.bf16.gmra.mxu3 %v7982_v6 }
 0x126   :  { %v4494_v10 = vpop.f32.mrf.mxu2  ;;  %v4158_v13 = vpop.f32.mrf.mxu0 }
 0x127   :  { %v4663_v11 = vpop.f32.mrf.mxu3  ;;  %v4495_v12 = vadd.f32 %v4494_v10, %v4326_v7  ;;  %v4327_v15 = vpop.f32.mrf.mxu1  ;;  %v8106_v10 = vor.u32 %v9800_v61, %v8105_v60 }
 0x128   :  { %v4328_v18 = vadd.f32 %v4327_v15, %v4158_v13  ;;  %v10065_v15 = vld [vmem:[%s14510_s1 + $0x190] sm:$0xff] }
 0x129   :  { %v10882_v19 = vadd.f32 %v4663_v11, %v4495_v12  ;;  %v8110_v11 = vor.u32 %v9792_v62, %v8107_v63  ;;  %5126 = vmatpush.bf16.msrb.mxu2 %v10065_v15  ;;  %v8235_v15 = vld [vmem:[%s14511_s0 + $0xa48] sm:$0xf0] }
 0x12e   :  { %v4496_v29 = vpop.f32.mrf.mxu2  ;;  %v4161_v35 = vpop.f32.mrf.mxu0 }
 0x12f   :  { %v4665_v30 = vpop.f32.mrf.mxu3  ;;  %v4497_v34 = vadd.f32 %v4496_v29, %v4328_v18  ;;  %v4330_v36 = vpop.f32.mrf.mxu1  ;;  %v10049_v18 = vld [vmem:[%s14510_s1 + $0x110] sm:$0xff] }
 0x130   :  { %v4331_v41 = vadd.f32 %v4330_v36, %v4161_v35  ;;  %4788 = vmatpush.bf16.msrb.mxu0 %v10049_v18  ;;  %v10057_v29 = vld [vmem:[%s14510_s1 + $0x150] sm:$0xff]  ;;  %v8169_v35 = vld [vmem:[%s14511_s0 + $0x988] sm:$0xf] }
 0x131   :  { %v10908_v42 = vadd.f32 %v4665_v30, %v4497_v34  ;;  %4200 = vmatmul.bf16.gmra.mxu0 %v8034_v31  ;;  %v8161_v30 = vld [vmem:[%s14511_s0 + $0x980] sm:$0xf]  ;;  %v8163_v34 = vld [vmem:[%s14511_s0 + $0x9c0] sm:$0xf0]  ;;  %4957 = vmatpush.bf16.msrb.mxu1 %v10057_v29  ;;  %v9816_v36 = vld [vmem:[%s14511_s0 + $0x9c4] sm:$0xf0] }
 0x132   :  { %4369 = vmatmul.bf16.gmra.mxu1 %v8038_v32  ;;  %v9815_v31 = vld [vmem:[%s14511_s0 + $0x9bc] sm:$0xf0]  ;;  %v9807_v32 = vld [vmem:[%s14511_s0 + $0x984] sm:$0xf]  ;;  %v8170_v55 = vor.u32 %v9816_v36, %v8169_v35 }
 0x133   :  { %4538 = vmatmul.bf16.gmra.mxu2 %v8042_v37  ;;  %v9808_v37 = vld [vmem:[%s14511_s0 + $0x98c] sm:$0xf] }
 0x134   :  { %4707 = vmatmul.bf16.gmra.mxu3 %v8046_v39  ;;  %v8171_v39 = vld [vmem:[%s14511_s0 + $0x9c8] sm:$0xf0] }
 0x135   :  { %v8174_v56 = vor.u32 %v9808_v37, %v8171_v39 }
 0x136   :  { %v4499_v43 = vpop.f32.mrf.mxu2  ;;  %v4163_v48 = vpop.f32.mrf.mxu0 }
 0x137   :  { %v4668_v44 = vpop.f32.mrf.mxu3  ;;  %v4500_v47 = vadd.f32 %v4499_v43, %v4331_v41  ;;  %v4332_v50 = vpop.f32.mrf.mxu1 }
 0x138   :  { %v4333_v51 = vadd.f32 %v4332_v50, %v4163_v48 }
 0x139   :  { %v10910_v54 = vadd.f32 %v4668_v44, %v4500_v47  ;;  %v8162_v44 = vor.u32 %v9815_v31, %v8161_v30  ;;  %v8166_v47 = vor.u32 %v9807_v32, %v8163_v34 }
 0x13e   :  { %v4501_v0 = vpop.f32.mrf.mxu2  ;;  %v4166_v6 = vpop.f32.mrf.mxu0 }
 0x13f   :  { %v4670_v1 = vpop.f32.mrf.mxu3  ;;  %v4502_v5 = vadd.f32 %v4501_v0, %v4333_v51  ;;  %v4335_v7 = vpop.f32.mrf.mxu1 }
 0x140   :  { %v4336_v12 = vadd.f32 %v4335_v7, %v4166_v6  ;;  %v9823_v6 = vld [vmem:[%s14511_s0 + $0xa04] sm:$0xf] }
 0x141   :  { %v10936_v13 = vadd.f32 %v4670_v1, %v4502_v5  ;;  %4205 = vmatmul.bf16.gmra.mxu0 %v8098_v2  ;;  %v9831_v5 = vld [vmem:[%s14511_s0 + $0xa3c] sm:$0xf0]  ;;  %v8227_v7 = vld [vmem:[%s14511_s0 + $0xa40] sm:$0xf0] }
 0x142   :  { %4374 = vmatmul.bf16.gmra.mxu1 %v8102_v3  ;;  %v8225_v3 = vld [vmem:[%s14511_s0 + $0xa00] sm:$0xf] }
 0x143   :  { %4543 = vmatmul.bf16.gmra.mxu2 %v8106_v10  ;;  %v8233_v10 = vld [vmem:[%s14511_s0 + $0xa08] sm:$0xf] }
 0x144   :  { %4712 = vmatmul.bf16.gmra.mxu3 %v8110_v11  ;;  %v9832_v11 = vld [vmem:[%s14511_s0 + $0xa44] sm:$0xf0] }
 0x146   :  { %v4504_v21 = vpop.f32.mrf.mxu2  ;;  %v4168_v25 = vpop.f32.mrf.mxu0 }
 0x147   :  { %v4673_v22 = vpop.f32.mrf.mxu3  ;;  %v4505_v23 = vadd.f32 %v4504_v21, %v4336_v12  ;;  %v4337_v26 = vpop.f32.mrf.mxu1  ;;  %v9824_v12 = vld [vmem:[%s14511_s0 + $0xa0c] sm:$0xf]  ;;  %v8226_v21 = vor.u32 %v9831_v5, %v8225_v3 }
 0x148   :  { %v4338_v27 = vadd.f32 %v4337_v26, %v4168_v25  ;;  %v8238_v29 = vor.u32 %v9824_v12, %v8235_v15 }
 0x149   :  { %v10947_v28 = vadd.f32 %v4673_v22, %v4505_v23  ;;  %v8230_v22 = vor.u32 %v9823_v6, %v8227_v7 }
 0x14e   :  { %v4506_v41 = vpop.f32.mrf.mxu2  ;;  %v4171_v50 = vpop.f32.mrf.mxu0 }
 0x14f   :  { %v4675_v43 = vpop.f32.mrf.mxu3  ;;  %v4507_v48 = vadd.f32 %v4506_v41, %v4338_v27  ;;  %v4340_v51 = vpop.f32.mrf.mxu1  ;;  %v8234_v27 = vor.u32 %v9832_v11, %v8233_v10 }
 0x150   :  { %v4341_v57 = vadd.f32 %v4340_v51, %v4171_v50  ;;  %v8297_v50 = vld [vmem:[%s14511_s0 + $0xa88] sm:$0xf] }
 0x151   :  { %v10976_v58 = vadd.f32 %v4675_v43, %v4507_v48  ;;  %4210 = vmatmul.bf16.gmra.mxu0 %v8162_v44  ;;  %v8289_v43 = vld [vmem:[%s14511_s0 + $0xa80] sm:$0xf]  ;;  %v8291_v48 = vld [vmem:[%s14511_s0 + $0xac0] sm:$0xf0]  ;;  %v9848_v51 = vld [vmem:[%s14511_s0 + $0xac4] sm:$0xf0] }
 0x152   :  { %4379 = vmatmul.bf16.gmra.mxu1 %v8166_v47  ;;  %v9847_v44 = vld [vmem:[%s14511_s0 + $0xabc] sm:$0xf0]  ;;  %v9839_v47 = vld [vmem:[%s14511_s0 + $0xa84] sm:$0xf]  ;;  %v8298_v3 = vor.u32 %v9848_v51, %v8297_v50 }
 0x153   :  { %4548 = vmatmul.bf16.gmra.mxu2 %v8170_v55  ;;  %v9840_v55 = vld [vmem:[%s14511_s0 + $0xa8c] sm:$0xf] }
 0x154   :  { %4717 = vmatmul.bf16.gmra.mxu3 %v8174_v56  ;;  %v8299_v56 = vld [vmem:[%s14511_s0 + $0xac8] sm:$0xf0] }
 0x155   :  { %v8302_v5 = vor.u32 %v9840_v55, %v8299_v56  ;;  %v10064_v55 = vld [vmem:[%s14510_s1 + $0x188] sm:$0xff] }
 0x156   :  { %v4509_v60 = vpop.f32.mrf.mxu2  ;;  %v4173_v63 = vpop.f32.mrf.mxu0  ;;  %v10048_v56 = vld [vmem:[%s14510_s1 + $0x108] sm:$0xff]  ;;  %5127 = vmatpush.bf16.msrb.mxu2 %v10064_v55 }
 0x157   :  { %v4678_v61 = vpop.f32.mrf.mxu3  ;;  %v4510_v62 = vadd.f32 %v4509_v60, %v4341_v57  ;;  %v4342_v0 = vpop.f32.mrf.mxu1  ;;  %4789 = vmatpush.bf16.msrb.mxu0 %v10048_v56  ;;  %v8481_v56 = vld [vmem:[%s14511_s0 + $0xc00] sm:$0xf] }
 0x158   :  { %v4343_v1 = vadd.f32 %v4342_v0, %v4173_v63 }
 0x159   :  { %v10978_v2 = vadd.f32 %v4678_v61, %v4510_v62  ;;  %v8290_v61 = vor.u32 %v9847_v44, %v8289_v43  ;;  %v8294_v62 = vor.u32 %v9839_v47, %v8291_v48 }
 0x15e   :  { %v4511_v18 = vpop.f32.mrf.mxu2  ;;  %v4176_v25 = vpop.f32.mrf.mxu0 }
 0x15f   :  { %v4680_v20 = vpop.f32.mrf.mxu3  ;;  %v4512_v23 = vadd.f32 %v4511_v18, %v4343_v1  ;;  %v4345_v26 = vpop.f32.mrf.mxu1 }
 0x160   :  { %v4346_v30 = vadd.f32 %v4345_v26, %v4176_v25  ;;  %v9855_v25 = vld [vmem:[%s14511_s0 + $0xb04] sm:$0xf] }
 0x161   :  { %v11004_v31 = vadd.f32 %v4680_v20, %v4512_v23  ;;  %4215 = vmatmul.bf16.gmra.mxu0 %v8226_v21  ;;  %v9863_v23 = vld [vmem:[%s14511_s0 + $0xb3c] sm:$0xf0]  ;;  %v8355_v26 = vld [vmem:[%s14511_s0 + $0xb40] sm:$0xf0] }
 0x162   :  { %4384 = vmatmul.bf16.gmra.mxu1 %v8230_v22  ;;  %v8353_v22 = vld [vmem:[%s14511_s0 + $0xb00] sm:$0xf] }
 0x163   :  { %4553 = vmatmul.bf16.gmra.mxu2 %v8234_v27  ;;  %v8361_v27 = vld [vmem:[%s14511_s0 + $0xb08] sm:$0xf] }
 0x164   :  { %4722 = vmatmul.bf16.gmra.mxu3 %v8238_v29  ;;  %v9864_v29 = vld [vmem:[%s14511_s0 + $0xb44] sm:$0xf0] }
 0x165   :  { %v8362_v47 = vor.u32 %v9864_v29, %v8361_v27 }
 0x166   :  { %v4514_v32 = vpop.f32.mrf.mxu2  ;;  %v4178_v36 = vpop.f32.mrf.mxu0 }
 0x167   :  { %v4683_v34 = vpop.f32.mrf.mxu3  ;;  %v4515_v35 = vadd.f32 %v4514_v32, %v4346_v30  ;;  %v4347_v37 = vpop.f32.mrf.mxu1  ;;  %v9856_v30 = vld [vmem:[%s14511_s0 + $0xb0c] sm:$0xf] }
 0x168   :  { %v4348_v39 = vadd.f32 %v4347_v37, %v4178_v36  ;;  %v8363_v32 = vld [vmem:[%s14511_s0 + $0xb48] sm:$0xf0]  ;;  %v8354_v36 = vor.u32 %v9863_v23, %v8353_v22  ;;  %v8358_v37 = vor.u32 %v9855_v25, %v8355_v26 }
 0x169   :  { %v11006_v41 = vadd.f32 %v4683_v34, %v4515_v35  ;;  %v8366_v48 = vor.u32 %v9856_v30, %v8363_v32  ;;  %v8427_v22 = vld [vmem:[%s14511_s0 + $0xbc8] sm:$0xf0] }
 0x16e   :  { %v4516_v57 = vpop.f32.mrf.mxu2  ;;  %v4181_v0 = vpop.f32.mrf.mxu0 }
 0x16f   :  { %v4685_v60 = vpop.f32.mrf.mxu3  ;;  %v4517_v63 = vadd.f32 %v4516_v57, %v4348_v39  ;;  %v4350_v1 = vpop.f32.mrf.mxu1  ;;  %v10072_v57 = vld [vmem:[%s14510_s1 + $0x1c8] sm:$0xff] }
 0x170   :  { %v4351_v6 = vadd.f32 %v4350_v1, %v4181_v0  ;;  %5296 = vmatpush.bf16.msrb.mxu3 %v10072_v57  ;;  %v9895_v57 = vld [vmem:[%s14511_s0 + $0xc3c] sm:$0xf0] }
 0x171   :  { %v11032_v7 = vadd.f32 %v4685_v60, %v4517_v63  ;;  %4220 = vmatmul.bf16.gmra.mxu0 %v8290_v61 }
 0x172   :  { %4389 = vmatmul.bf16.gmra.mxu1 %v8294_v62 }
 0x173   :  { %4558 = vmatmul.bf16.gmra.mxu2 %v8298_v3 }
 0x174   :  { %4727 = vmatmul.bf16.gmra.mxu3 %v8302_v5  ;;  %v10056_v5 = vld [vmem:[%s14510_s1 + $0x148] sm:$0xff] }
 0x175   :  { %4958 = vmatpush.bf16.msrb.mxu1 %v10056_v5 }
 0x176   :  { %v4519_v10 = vpop.f32.mrf.mxu2  ;;  %v4183_v15 = vpop.f32.mrf.mxu0 }
 0x177   :  { %v4688_v11 = vpop.f32.mrf.mxu3  ;;  %v4520_v12 = vadd.f32 %v4519_v10, %v4351_v6  ;;  %v4352_v18 = vpop.f32.mrf.mxu1  ;;  %v8417_v6 = vld [vmem:[%s14511_s0 + $0xb80] sm:$0xf] }
 0x178   :  { %v4353_v20 = vadd.f32 %v4352_v18, %v4183_v15  ;;  %v9879_v10 = vld [vmem:[%s14511_s0 + $0xbbc] sm:$0xf0]  ;;  %v8425_v15 = vld [vmem:[%s14511_s0 + $0xb88] sm:$0xf] }
 0x179   :  { %v11034_v21 = vadd.f32 %v4688_v11, %v4520_v12  ;;  %v9871_v11 = vld [vmem:[%s14511_s0 + $0xb84] sm:$0xf]  ;;  %v9880_v18 = vld [vmem:[%s14511_s0 + $0xbc4] sm:$0xf0]  ;;  %v8418_v26 = vor.u32 %v9879_v10, %v8417_v6  ;;  %v8482_v10 = vor.u32 %v9895_v57, %v8481_v56  ;;  %v8555_v56 = vld [vmem:[%s14511_s0 + $0xcc8] sm:$0xf0] }
 0x17a   :  { %v8419_v12 = vld [vmem:[%s14511_s0 + $0xbc0] sm:$0xf0] }
 0x17b   :  { %v8422_v27 = vor.u32 %v9871_v11, %v8419_v12 }
 0x17e   :  { %v4521_v34 = vpop.f32.mrf.mxu2  ;;  %v4186_v43 = vpop.f32.mrf.mxu0 }
 0x17f   :  { %v4690_v35 = vpop.f32.mrf.mxu3  ;;  %v4522_v39 = vadd.f32 %v4521_v34, %v4353_v20  ;;  %v4355_v44 = vpop.f32.mrf.mxu1  ;;  %v9872_v20 = vld [vmem:[%s14511_s0 + $0xb8c] sm:$0xf]  ;;  %v8426_v34 = vor.u32 %v9880_v18, %v8425_v15 }
 0x180   :  { %v4356_v50 = vadd.f32 %v4355_v44, %v4186_v43 }
 0x181   :  { %v11060_v51 = vadd.f32 %v4690_v35, %v4522_v39  ;;  %4225 = vmatmul.bf16.gmra.mxu0 %v8354_v36  ;;  %v8430_v35 = vor.u32 %v9872_v20, %v8427_v22 }
 0x182   :  { %4394 = vmatmul.bf16.gmra.mxu1 %v8358_v37 }
 0x183   :  { %4563 = vmatmul.bf16.gmra.mxu2 %v8362_v47 }
 0x184   :  { %4732 = vmatmul.bf16.gmra.mxu3 %v8366_v48 }
 0x186   :  { %v4524_v60 = vpop.f32.mrf.mxu2  ;;  %v4188_v63 = vpop.f32.mrf.mxu0 }
 0x187   :  { %v4693_v61 = vpop.f32.mrf.mxu3  ;;  %v4525_v62 = vadd.f32 %v4524_v60, %v4356_v50  ;;  %v4357_v0 = vpop.f32.mrf.mxu1  ;;  %v9887_v60 = vld [vmem:[%s14511_s0 + $0xc04] sm:$0xf] }
 0x188   :  { %v4358_v1 = vadd.f32 %v4357_v0, %v4188_v63  ;;  %v9896_v63 = vld [vmem:[%s14511_s0 + $0xc44] sm:$0xf0]  ;;  %v9888_v0 = vld [vmem:[%s14511_s0 + $0xc0c] sm:$0xf] }
 0x189   :  { %v11071_v3 = vadd.f32 %v4693_v61, %v4525_v62  ;;  %v8483_v61 = vld [vmem:[%s14511_s0 + $0xc40] sm:$0xf0]  ;;  %v8489_v62 = vld [vmem:[%s14511_s0 + $0xc08] sm:$0xf] }
 0x18a   :  { %v8486_v11 = vor.u32 %v9887_v60, %v8483_v61  ;;  %v8490_v20 = vor.u32 %v9896_v63, %v8489_v62 }
 0x18e   :  { %v4526_v23 = vpop.f32.mrf.mxu2  ;;  %v4191_v30 = vpop.f32.mrf.mxu0 }
 0x18f   :  { %v4695_v25 = vpop.f32.mrf.mxu3  ;;  %v4527_v29 = vadd.f32 %v4526_v23, %v4358_v1  ;;  %v4360_v32 = vpop.f32.mrf.mxu1  ;;  %v8491_v1 = vld [vmem:[%s14511_s0 + $0xc48] sm:$0xf0] }
 0x190   :  { %v4361_v36 = vadd.f32 %v4360_v32, %v4191_v30  ;;  %v8494_v22 = vor.u32 %v9888_v0, %v8491_v1 }
 0x191   :  { %v11100_v37 = vadd.f32 %v4695_v25, %v4527_v29  ;;  %4230 = vmatmul.bf16.gmra.mxu0 %v8418_v26 }
 0x192   :  { %4399 = vmatmul.bf16.gmra.mxu1 %v8422_v27 }
 0x193   :  { %4568 = vmatmul.bf16.gmra.mxu2 %v8426_v34 }
 0x194   :  { %4737 = vmatmul.bf16.gmra.mxu3 %v8430_v35 }
 0x196   :  { %v4529_v39 = vpop.f32.mrf.mxu2  ;;  %v4193_v47 = vpop.f32.mrf.mxu0 }
 0x197   :  { %v4698_v43 = vpop.f32.mrf.mxu3  ;;  %v4530_v44 = vadd.f32 %v4529_v39, %v4361_v36  ;;  %v4362_v48 = vpop.f32.mrf.mxu1  ;;  %v8545_v36 = vld [vmem:[%s14511_s0 + $0xc80] sm:$0xf] }
 0x198   :  { %v4363_v50 = vadd.f32 %v4362_v48, %v4193_v47  ;;  %v9911_v39 = vld [vmem:[%s14511_s0 + $0xcbc] sm:$0xf0]  ;;  %v8553_v47 = vld [vmem:[%s14511_s0 + $0xc88] sm:$0xf] }
 0x199   :  { %v11102_v55 = vadd.f32 %v4698_v43, %v4530_v44  ;;  %v9903_v43 = vld [vmem:[%s14511_s0 + $0xc84] sm:$0xf]  ;;  %v9912_v48 = vld [vmem:[%s14511_s0 + $0xcc4] sm:$0xf0]  ;;  %v8546_v61 = vor.u32 %v9911_v39, %v8545_v36  ;;  %v9920_v39 = vld [vmem:[%s14511_s0 + $0xd0c] sm:$0xf] }
 0x19a   :  { %v8547_v44 = vld [vmem:[%s14511_s0 + $0xcc0] sm:$0xf0]  ;;  %v9928_v36 = vld [vmem:[%s14511_s0 + $0xd44] sm:$0xf0] }
 0x19b   :  { %v8550_v62 = vor.u32 %v9903_v43, %v8547_v44  ;;  %v8619_v43 = vld [vmem:[%s14511_s0 + $0xd48] sm:$0xf0] }
 0x19e   :  { %v4531_v5 = vpop.f32.mrf.mxu2  ;;  %v4196_v15 = vpop.f32.mrf.mxu0 }
 0x19f   :  { %v4700_v6 = vpop.f32.mrf.mxu3  ;;  %v4532_v12 = vadd.f32 %v4531_v5, %v4363_v50  ;;  %v4365_v18 = vpop.f32.mrf.mxu1  ;;  %v9904_v50 = vld [vmem:[%s14511_s0 + $0xc8c] sm:$0xf]  ;;  %v8554_v5 = vor.u32 %v9912_v48, %v8553_v47 }
 0x1a0   :  { %v4366_v23 = vadd.f32 %v4365_v18, %v4196_v15 }
 0x1a1   :  { %v11128_v25 = vadd.f32 %v4700_v6, %v4532_v12  ;;  %4235 = vmatmul.bf16.gmra.mxu0 %v8482_v10  ;;  %v8558_v6 = vor.u32 %v9904_v50, %v8555_v56 }
 0x1a2   :  { %4404 = vmatmul.bf16.gmra.mxu1 %v8486_v11 }
 0x1a3   :  { %4573 = vmatmul.bf16.gmra.mxu2 %v8490_v20 }
 0x1a4   :  { %4742 = vmatmul.bf16.gmra.mxu3 %v8494_v22 }
 0x1a6   :  { %v4534_v26 = vpop.f32.mrf.mxu2  ;;  %v4198_v30 = vpop.f32.mrf.mxu0 }
 0x1a7   :  { %v4703_v27 = vpop.f32.mrf.mxu3  ;;  %v4535_v29 = vadd.f32 %v4534_v26, %v4366_v23  ;;  %v4367_v32 = vpop.f32.mrf.mxu1 }
 0x1a8   :  { %v4368_v34 = vadd.f32 %v4367_v32, %v4198_v30  ;;  %v9919_v30 = vld [vmem:[%s14511_s0 + $0xd04] sm:$0xf] }
 0x1a9   :  { %v11130_v35 = vadd.f32 %v4703_v27, %v4535_v29  ;;  %v8609_v27 = vld [vmem:[%s14511_s0 + $0xd00] sm:$0xf]  ;;  %v8611_v32 = vld [vmem:[%s14511_s0 + $0xd40] sm:$0xf0] }
 0x1aa   :  { %v9927_v29 = vld [vmem:[%s14511_s0 + $0xd3c] sm:$0xf0]  ;;  %v8614_v50 = vor.u32 %v9919_v30, %v8611_v32  ;;  %v9935_v32 = vld [vmem:[%s14511_s0 + $0xd84] sm:$0xf] }
 0x1ab   :  { %v8610_v48 = vor.u32 %v9927_v29, %v8609_v27  ;;  %v10055_v27 = vld [vmem:[%s14510_s1 + $0x140] sm:$0xff] }
 0x1ac   :  { %v8673_v29 = vld [vmem:[%s14511_s0 + $0xd80] sm:$0xf]  ;;  %4959 = vmatpush.bf16.msrb.mxu1 %v10055_v27 }
 0x1ad   :  { %v9943_v30 = vld [vmem:[%s14511_s0 + $0xdbc] sm:$0xf0] }
 0x1ae   :  { %v4536_v57 = vpop.f32.mrf.mxu2  ;;  %v4201_v0 = vpop.f32.mrf.mxu0 }
 0x1af   :  { %v4705_v60 = vpop.f32.mrf.mxu3  ;;  %v4537_v63 = vadd.f32 %v4536_v57, %v4368_v34  ;;  %v4370_v1 = vpop.f32.mrf.mxu1  ;;  %v8617_v34 = vld [vmem:[%s14511_s0 + $0xd08] sm:$0xf] }
 0x1b0   :  { %v4371_v10 = vadd.f32 %v4370_v1, %v4201_v0  ;;  %v10063_v1 = vld [vmem:[%s14510_s1 + $0x180] sm:$0xff] }
 0x1b1   :  { %v11156_v11 = vadd.f32 %v4705_v60, %v4537_v63  ;;  %4240 = vmatmul.bf16.gmra.mxu0 %v8546_v61  ;;  %v8618_v61 = vor.u32 %v9928_v36, %v8617_v34  ;;  %5128 = vmatpush.bf16.msrb.mxu2 %v10063_v1  ;;  %v8675_v34 = vld [vmem:[%s14511_s0 + $0xdc0] sm:$0xf0]  ;;  %v8681_v36 = vld [vmem:[%s14511_s0 + $0xd88] sm:$0xf] }
 0x1b2   :  { %4409 = vmatmul.bf16.gmra.mxu1 %v8550_v62  ;;  %v8622_v62 = vor.u32 %v9920_v39, %v8619_v43  ;;  %v9944_v39 = vld [vmem:[%s14511_s0 + $0xdc4] sm:$0xf0]  ;;  %v9936_v43 = vld [vmem:[%s14511_s0 + $0xd8c] sm:$0xf] }
 0x1b3   :  { %4578 = vmatmul.bf16.gmra.mxu2 %v8554_v5  ;;  %v10047_v5 = vld [vmem:[%s14510_s1 + $0x100] sm:$0xff] }
 0x1b4   :  { %4747 = vmatmul.bf16.gmra.mxu3 %v8558_v6  ;;  %v10071_v6 = vld [vmem:[%s14510_s1 + $0x1c0] sm:$0xff]  ;;  %4790 = vmatpush.bf16.msrb.mxu0 %v10047_v5 }
 0x1b5   :  { %5297 = vmatpush.bf16.msrb.mxu3 %v10071_v6 }
 0x1b6   :  { %v4539_v12 = vpop.f32.mrf.mxu2  ;;  %v4203_v20 = vpop.f32.mrf.mxu0 }
 0x1b7   :  { %v4708_v15 = vpop.f32.mrf.mxu3  ;;  %v4540_v18 = vadd.f32 %v4539_v12, %v4371_v10  ;;  %v4372_v22 = vpop.f32.mrf.mxu1 }
 0x1b8   :  { %v4373_v23 = vadd.f32 %v4372_v22, %v4203_v20 }
 0x1b9   :  { %v11158_v26 = vadd.f32 %v4708_v15, %v4540_v18 }
 0x1be   :  { %v4541_v44 = vpop.f32.mrf.mxu2  ;;  %v4206_v57 = vpop.f32.mrf.mxu0 }
 0x1bf   :  { %v4710_v47 = vpop.f32.mrf.mxu3  ;;  %v4542_v56 = vadd.f32 %v4541_v44, %v4373_v23  ;;  %v4375_v60 = vpop.f32.mrf.mxu1  ;;  %v8683_v44 = vld [vmem:[%s14511_s0 + $0xdc8] sm:$0xf0] }
 0x1c0   :  { %v4376_v63 = vadd.f32 %v4375_v60, %v4206_v57 }
 0x1c1   :  { %v11184_v0 = vadd.f32 %v4710_v47, %v4542_v56  ;;  %4245 = vmatmul.bf16.gmra.mxu0 %v8610_v48  ;;  %v8678_v56 = vor.u32 %v9935_v32, %v8675_v34  ;;  %v8739_v32 = vld [vmem:[%s14511_s0 + $0xe40] sm:$0xf0]  ;;  %v8745_v34 = vld [vmem:[%s14511_s0 + $0xe08] sm:$0xf] }
 0x1c2   :  { %4414 = vmatmul.bf16.gmra.mxu1 %v8614_v50  ;;  %v8674_v50 = vor.u32 %v9943_v30, %v8673_v29  ;;  %v9959_v29 = vld [vmem:[%s14511_s0 + $0xe3c] sm:$0xf0]  ;;  %v9951_v30 = vld [vmem:[%s14511_s0 + $0xe04] sm:$0xf] }
 0x1c3   :  { %4583 = vmatmul.bf16.gmra.mxu2 %v8618_v61 }
 0x1c4   :  { %4752 = vmatmul.bf16.gmra.mxu3 %v8622_v62  ;;  %v8682_v62 = vor.u32 %v9944_v39, %v8681_v36  ;;  %v9960_v36 = vld [vmem:[%s14511_s0 + $0xe44] sm:$0xf0]  ;;  %v9952_v39 = vld [vmem:[%s14511_s0 + $0xe0c] sm:$0xf] }
 0x1c6   :  { %v4544_v10 = vpop.f32.mrf.mxu2  ;;  %v4208_v18 = vpop.f32.mrf.mxu0 }
 0x1c7   :  { %v4713_v12 = vpop.f32.mrf.mxu3  ;;  %v4545_v15 = vadd.f32 %v4544_v10, %v4376_v63  ;;  %v4377_v20 = vpop.f32.mrf.mxu1  ;;  %v8686_v63 = vor.u32 %v9936_v43, %v8683_v44  ;;  %v8747_v43 = vld [vmem:[%s14511_s0 + $0xe48] sm:$0xf0] }
 0x1c8   :  { %v4378_v22 = vadd.f32 %v4377_v20, %v4208_v18 }
 0x1c9   :  { %v11195_v23 = vadd.f32 %v4713_v12, %v4545_v15 }
 0x1ce   :  { %v4546_v47 = vpop.f32.mrf.mxu2  ;;  %v4211_v60 = vpop.f32.mrf.mxu0 }
 0x1cf   :  { %v4715_v48 = vpop.f32.mrf.mxu3  ;;  %v4547_v57 = vadd.f32 %v4546_v47, %v4378_v22  ;;  %v4380_v61 = vpop.f32.mrf.mxu1  ;;  %v8737_v22 = vld [vmem:[%s14511_s0 + $0xe00] sm:$0xf] }
 0x1d0   :  { %v4381_v1 = vadd.f32 %v4380_v61, %v4211_v60  ;;  %v8746_v61 = vor.u32 %v9960_v36, %v8745_v34  ;;  %v8809_v34 = vld [vmem:[%s14511_s0 + $0xe88] sm:$0xf] }
 0x1d1   :  { %v11224_v5 = vadd.f32 %v4715_v48, %v4547_v57  ;;  %4250 = vmatmul.bf16.gmra.mxu0 %v8674_v50  ;;  %v8738_v48 = vor.u32 %v9959_v29, %v8737_v22  ;;  %v8742_v50 = vor.u32 %v9951_v30, %v8739_v32  ;;  %v9975_v29 = vld [vmem:[%s14511_s0 + $0xebc] sm:$0xf0]  ;;  %v9967_v30 = vld [vmem:[%s14511_s0 + $0xe84] sm:$0xf]  ;;  %v9976_v36 = vld [vmem:[%s14511_s0 + $0xec4] sm:$0xf0] }
 0x1d2   :  { %4419 = vmatmul.bf16.gmra.mxu1 %v8678_v56  ;;  %v8803_v32 = vld [vmem:[%s14511_s0 + $0xec0] sm:$0xf0] }
 0x1d3   :  { %4588 = vmatmul.bf16.gmra.mxu2 %v8682_v62  ;;  %v8750_v62 = vor.u32 %v9952_v39, %v8747_v43  ;;  %v9968_v39 = vld [vmem:[%s14511_s0 + $0xe8c] sm:$0xf] }
 0x1d4   :  { %4757 = vmatmul.bf16.gmra.mxu3 %v8686_v63  ;;  %v8811_v43 = vld [vmem:[%s14511_s0 + $0xec8] sm:$0xf0] }
 0x1d6   :  { %v4549_v6 = vpop.f32.mrf.mxu2  ;;  %v4213_v15 = vpop.f32.mrf.mxu0 }
 0x1d7   :  { %v4718_v10 = vpop.f32.mrf.mxu3  ;;  %v4550_v12 = vadd.f32 %v4549_v6, %v4381_v1  ;;  %v4382_v18 = vpop.f32.mrf.mxu1 }
 0x1d8   :  { %v4383_v20 = vadd.f32 %v4382_v18, %v4213_v15 }
 0x1d9   :  { %v11226_v27 = vadd.f32 %v4718_v10, %v4550_v12 }
 0x1db   :  { %14513 = vst [vmem:[#allocation2_spill] sm:$0xff] %v11226_v27 }
 0x1de   :  { %v4551_v44 = vpop.f32.mrf.mxu2  ;;  %v4216_v57 = vpop.f32.mrf.mxu0 }
 0x1df   :  { %v4720_v47 = vpop.f32.mrf.mxu3  ;;  %v4552_v56 = vadd.f32 %v4551_v44, %v4383_v20  ;;  %v4385_v60 = vpop.f32.mrf.mxu1  ;;  %v8801_v20 = vld [vmem:[%s14511_s0 + $0xe80] sm:$0xf] }
 0x1e0   :  { %v4386_v63 = vadd.f32 %v4385_v60, %v4216_v57 }
 0x1e1   :  { %v11252_v1 = vadd.f32 %v4720_v47, %v4552_v56  ;;  %4255 = vmatmul.bf16.gmra.mxu0 %v8738_v48  ;;  %v8802_v48 = vor.u32 %v9975_v29, %v8801_v20  ;;  %v9991_v29 = vld [vmem:[%s14511_s0 + $0xf3c] sm:$0xf0] }
 0x1e2   :  { %4424 = vmatmul.bf16.gmra.mxu1 %v8742_v50  ;;  %v8806_v50 = vor.u32 %v9967_v30, %v8803_v32  ;;  %v9983_v30 = vld [vmem:[%s14511_s0 + $0xf04] sm:$0xf] }
 0x1e3   :  { %14514 = vst [vmem:[#allocation3_spill] sm:$0xff] %v11252_v1  ;;  %4593 = vmatmul.bf16.gmra.mxu2 %v8746_v61  ;;  %v8810_v61 = vor.u32 %v9976_v36, %v8809_v34  ;;  %v8867_v32 = vld [vmem:[%s14511_s0 + $0xf40] sm:$0xf0]  ;;  %v9992_v34 = vld [vmem:[%s14511_s0 + $0xf44] sm:$0xf0] }
 0x1e4   :  { %4762 = vmatmul.bf16.gmra.mxu3 %v8750_v62  ;;  %v8814_v62 = vor.u32 %v9968_v39, %v8811_v43  ;;  %v9984_v36 = vld [vmem:[%s14511_s0 + $0xf0c] sm:$0xf] }
 0x1e5   :  { %v8875_v39 = vld [vmem:[%s14511_s0 + $0xf48] sm:$0xf0] }
 0x1e6   :  { %v4554_v6 = vpop.f32.mrf.mxu2  ;;  %v4218_v15 = vpop.f32.mrf.mxu0 }
 0x1e7   :  { %v4723_v10 = vpop.f32.mrf.mxu3  ;;  %v4555_v12 = vadd.f32 %v4554_v6, %v4386_v63  ;;  %v4387_v18 = vpop.f32.mrf.mxu1 }
 0x1e8   :  { %v4388_v27 = vadd.f32 %v4387_v18, %v4218_v15 }
 0x1e9   :  { %v11254_v22 = vadd.f32 %v4723_v10, %v4555_v12 }
 0x1eb   :  { %14515 = vst [vmem:[#allocation4_spill] sm:$0xff] %v11254_v22 }
 0x1ee   :  { %v4556_v44 = vpop.f32.mrf.mxu2  ;;  %v4221_v57 = vpop.f32.mrf.mxu0 }
 0x1ef   :  { %v4725_v47 = vpop.f32.mrf.mxu3  ;;  %v4557_v56 = vadd.f32 %v4556_v44, %v4388_v27  ;;  %v4390_v60 = vpop.f32.mrf.mxu1  ;;  %v8865_v27 = vld [vmem:[%s14511_s0 + $0xf00] sm:$0xf] }
 0x1f0   :  { %v4391_v63 = vadd.f32 %v4390_v60, %v4221_v57 }
 0x1f1   :  { %v11280_v6 = vadd.f32 %v4725_v47, %v4557_v56  ;;  %4260 = vmatmul.bf16.gmra.mxu0 %v8802_v48  ;;  %v8866_v47 = vor.u32 %v9991_v29, %v8865_v27  ;;  %v8870_v48 = vor.u32 %v9983_v30, %v8867_v32 }
 0x1f2   :  { %4429 = vmatmul.bf16.gmra.mxu1 %v8806_v50 }
 0x1f3   :  { %14516 = vst [vmem:[#allocation5_spill] sm:$0xff] %v11280_v6  ;;  %4598 = vmatmul.bf16.gmra.mxu2 %v8810_v61  ;;  %v8878_v61 = vor.u32 %v9984_v36, %v8875_v39  ;;  %v8929_v36 = vld [vmem:[%s14511_s0 + $0xf80] sm:$0xf] }
 0x1f4   :  { %4767 = vmatmul.bf16.gmra.mxu3 %v8814_v62  ;;  %v10007_v39 = vld [vmem:[%s14511_s0 + $0xfbc] sm:$0xf0] }
 0x1f6   :  { %v4559_v10 = vpop.f32.mrf.mxu2  ;;  %v4223_v18 = vpop.f32.mrf.mxu0 }
 0x1f7   :  { %v4728_v12 = vpop.f32.mrf.mxu3  ;;  %v4560_v15 = vadd.f32 %v4559_v10, %v4391_v63  ;;  %v4392_v22 = vpop.f32.mrf.mxu1  ;;  %v10102_v10 = vld [vmem:[%s14510_s1 + $0x2b8] sm:$0xff] }
 0x1f8   :  { %v4393_v1 = vadd.f32 %v4392_v22, %v4223_v18  ;;  %v8873_v22 = vld [vmem:[%s14511_s0 + $0xf08] sm:$0xf]  ;;  %5797 = vmatpush.bf16.msra.mxu2 %v10102_v10 }
 0x1f9   :  { %v11282_v20 = vadd.f32 %v4728_v12, %v4560_v15  ;;  %v8874_v60 = vor.u32 %v9992_v34, %v8873_v22  ;;  %v10086_v12 = vld [vmem:[%s14510_s1 + $0x238] sm:$0xff] }
 0x1fa   :  { %5459 = vmatpush.bf16.msra.mxu0 %v10086_v12  ;;  %v10094_v34 = vld [vmem:[%s14510_s1 + $0x278] sm:$0xff] }
 0x1fb   :  { %14517 = vst [vmem:[#allocation6_spill] sm:$0xff] %v11282_v20  ;;  %5628 = vmatpush.bf16.msra.mxu1 %v10094_v34 }
 0x1fe   :  { %v4561_v43 = vpop.f32.mrf.mxu2  ;;  %v4226_v56 = vpop.f32.mrf.mxu0 }
 0x1ff   :  { %v4730_v44 = vpop.f32.mrf.mxu3  ;;  %v4562_v50 = vadd.f32 %v4561_v43, %v4393_v1  ;;  %v4395_v57 = vpop.f32.mrf.mxu1  ;;  %v10110_v1 = vld [vmem:[%s14510_s1 + $0x2f8] sm:$0xff]  ;;  %v9999_v43 = vld [vmem:[%s14511_s0 + $0xf84] sm:$0xf] }
 0x200   :  { %v4396_v62 = vadd.f32 %v4395_v57, %v4226_v56  ;;  %5966 = vmatpush.bf16.msra.mxu3 %v10110_v1  ;;  %v8939_v56 = vld [vmem:[%s14511_s0 + $0xfc8] sm:$0xf0] }
 0x201   :  { %v11308_v63 = vadd.f32 %v4730_v44, %v4562_v50  ;;  %4265 = vmatmul.bf16.gmra.mxu0 %v8866_v47  ;;  %v8931_v44 = vld [vmem:[%s14511_s0 + $0xfc0] sm:$0xf0]  ;;  %v8937_v47 = vld [vmem:[%s14511_s0 + $0xf88] sm:$0xf]  ;;  %v10000_v50 = vld [vmem:[%s14511_s0 + $0xf8c] sm:$0xf] }
 0x202   :  { %4434 = vmatmul.bf16.gmra.mxu1 %v8870_v48  ;;  %v10008_v48 = vld [vmem:[%s14511_s0 + $0xfc4] sm:$0xf0] }
 0x203   :  { %14518 = vst [vmem:[#allocation7_spill] sm:$0xff] %v11308_v63  ;;  %4603 = vmatmul.bf16.gmra.mxu2 %v8874_v60 }
 0x204   :  { %4772 = vmatmul.bf16.gmra.mxu3 %v8878_v61  ;;  %v8930_v61 = vor.u32 %v10007_v39, %v8929_v36  ;;  %v9513_v39 = vld [vmem:[%s14511_s0 + $0x4c] sm:$0xf0] }
 0x206   :  { %v4564_v15 = vpop.f32.mrf.mxu2  ;;  %v4228_v29 = vpop.f32.mrf.mxu0 }
 0x207   :  { %v4733_v18 = vpop.f32.mrf.mxu3  ;;  %v4565_v27 = vadd.f32 %v4564_v15, %v4396_v62  ;;  %v4397_v30 = vpop.f32.mrf.mxu1  ;;  %v8934_v62 = vor.u32 %v9999_v43, %v8931_v44  ;;  %v8938_v15 = vor.u32 %v10008_v48, %v8937_v47  ;;  %v9505_v43 = vld [vmem:[%s14511_s0 + $0x14] sm:$0xf]  ;;  %v6971_v47 = vld [vmem:[%s14511_s0 + $0x58] sm:$0xf0] }
 0x208   :  { %v4398_v32 = vadd.f32 %v4397_v30, %v4228_v29  ;;  %v6963_v44 = vld [vmem:[%s14511_s0 + $0x50] sm:$0xf0] }
 0x209   :  { %v11319_v22 = vadd.f32 %v4733_v18, %v4565_v27  ;;  %v8942_v18 = vor.u32 %v10000_v50, %v8939_v56 }
 0x20b   :  { %14519 = vst [vmem:[#allocation8_spill] sm:$0xff] %v11319_v22 }
 0x20e   :  { %v4566_v57 = vpop.f32.mrf.mxu2  ;;  %v4231_v12 = vpop.f32.mrf.mxu0 }
 0x20f   :  { %v4735_v60 = vpop.f32.mrf.mxu3  ;;  %v4567_v10 = vadd.f32 %v4566_v57, %v4398_v32  ;;  %v4400_v1 = vpop.f32.mrf.mxu1  ;;  %v6961_v32 = vld [vmem:[%s14511_s0 + $0x10] sm:$0xf]  ;;  %v6966_v57 = vor.u32 %v9505_v43, %v6963_v44  ;;  %v9521_v43 = vld [vmem:[%s14511_s0 + $0x94] sm:$0xf] }
 0x210   :  { %v4401_v27 = vadd.f32 %v4400_v1, %v4231_v12  ;;  %v6962_v56 = vor.u32 %v9513_v39, %v6961_v32  ;;  %v9529_v39 = vld [vmem:[%s14511_s0 + $0xcc] sm:$0xf0]  ;;  %v7027_v44 = vld [vmem:[%s14511_s0 + $0xd0] sm:$0xf0] }
 0x211   :  { %v11348_v29 = vadd.f32 %v4735_v60, %v4567_v10  ;;  %4270 = vmatmul.bf16.gmra.mxu0 %v8930_v61 }
 0x212   :  { %4439 = vmatmul.bf16.gmra.mxu1 %v8934_v62 }
 0x213   :  { %14520 = vst [vmem:[#allocation9_spill] sm:$0xff] %v11348_v29  ;;  %4608 = vmatmul.bf16.gmra.mxu2 %v8938_v15 }
 0x214   :  { %4777 = vmatmul.bf16.gmra.mxu3 %v8942_v18 }
 0x216   :  { %v4569_v30 = vpop.f32.mrf.mxu2  ;;  %v4233_v63 = vpop.f32.mrf.mxu0 }
 0x217   :  { %v4738_v34 = vpop.f32.mrf.mxu3  ;;  %v4570_v22 = vadd.f32 %v4569_v30, %v4401_v27  ;;  %v4402_v20 = vpop.f32.mrf.mxu1 }
 0x218   :  { %v4403_v6 = vadd.f32 %v4402_v20, %v4233_v63  ;;  %v6969_v20 = vld [vmem:[%s14511_s0 + $0x18] sm:$0xf] }
 0x219   :  { %v11350_v36 = vadd.f32 %v4738_v34, %v4570_v22  ;;  %v9514_v63 = vld [vmem:[%s14511_s0 + $0x54] sm:$0xf0]  ;;  %v9506_v22 = vld [vmem:[%s14511_s0 + $0x1c] sm:$0xf] }
 0x21a   :  { %v6970_v10 = vor.u32 %v9514_v63, %v6969_v20  ;;  %v6974_v12 = vor.u32 %v9506_v22, %v6971_v47  ;;  %v9530_v20 = vld [vmem:[%s14511_s0 + $0xd4] sm:$0xf0]  ;;  %v9522_v63 = vld [vmem:[%s14511_s0 + $0x9c] sm:$0xf] }
 0x21b   :  { %14521 = vst [vmem:[#allocation10_spill] sm:$0xff] %v11350_v36  ;;  %v7035_v22 = vld [vmem:[%s14511_s0 + $0xd8] sm:$0xf0] }
 0x21e   :  { %v4571_v48 = vpop.f32.mrf.mxu2  ;;  %v4236_v61 = vpop.f32.mrf.mxu0 }
 0x21f   :  { %v4740_v50 = vpop.f32.mrf.mxu3  ;;  %v4572_v60 = vadd.f32 %v4571_v48, %v4403_v6  ;;  %v4405_v62 = vpop.f32.mrf.mxu1  ;;  %v7025_v6 = vld [vmem:[%s14511_s0 + $0x90] sm:$0xf] }
 0x220   :  { %v4406_v1 = vadd.f32 %v4405_v62, %v4236_v61 }
 0x221   :  { %v11376_v15 = vadd.f32 %v4740_v50, %v4572_v60  ;;  %4791 = vmatmul.bf16.vlgmr.msrb.gmra.mxu0 %v6962_v56  ;;  %v7026_v50 = vor.u32 %v9529_v39, %v7025_v6  ;;  %v7030_v56 = vor.u32 %v9521_v43, %v7027_v44  ;;  %v9545_v39 = vld [vmem:[%s14511_s0 + $0x14c] sm:$0xf0]  ;;  %v9537_v43 = vld [vmem:[%s14511_s0 + $0x114] sm:$0xf] }
 0x222   :  { %4960 = vmatmul.bf16.vlgmr.msrb.gmra.mxu1 %v6966_v57  ;;  %v7091_v44 = vld [vmem:[%s14511_s0 + $0x150] sm:$0xf0] }
 0x223   :  { %14522 = vst [vmem:[#allocation11_spill] sm:$0xff] %v11376_v15  ;;  %5129 = vmatmul.bf16.vlgmr.msrb.gmra.mxu2 %v6970_v10  ;;  %v7038_v10 = vor.u32 %v9522_v63, %v7035_v22  ;;  %v7099_v63 = vld [vmem:[%s14511_s0 + $0x158] sm:$0xf0] }
 0x224   :  { %5298 = vmatmul.bf16.vlgmr.msrb.gmra.mxu3 %v6974_v12 }
 0x226   :  { %v4574_v18 = vpop.f32.mrf.mxu2  ;;  %v4238_v34 = vpop.f32.mrf.mxu0 }
 0x227   :  { %v4743_v27 = vpop.f32.mrf.mxu3  ;;  %v4575_v30 = vadd.f32 %v4574_v18, %v4406_v1  ;;  %v4407_v36 = vpop.f32.mrf.mxu1 }
 0x228   :  { %v4408_v29 = vadd.f32 %v4407_v36, %v4238_v34  ;;  %v7033_v36 = vld [vmem:[%s14511_s0 + $0x98] sm:$0xf] }
 0x229   :  { %v11378_v32 = vadd.f32 %v4743_v27, %v4575_v30  ;;  %v7034_v62 = vor.u32 %v9530_v20, %v7033_v36  ;;  %v9546_v36 = vld [vmem:[%s14511_s0 + $0x154] sm:$0xf0]  ;;  %v9538_v20 = vld [vmem:[%s14511_s0 + $0x11c] sm:$0xf] }
 0x22b   :  { %14523 = vst [vmem:[#allocation12_spill] sm:$0xff] %v11378_v32 }
 0x22e   :  { %v4576_v47 = vpop.f32.mrf.mxu2  ;;  %v4241_v60 = vpop.f32.mrf.mxu0 }
 0x22f   :  { %v4745_v48 = vpop.f32.mrf.mxu3  ;;  %v4577_v57 = vadd.f32 %v4576_v47, %v4408_v29  ;;  %v4410_v61 = vpop.f32.mrf.mxu1  ;;  %v7089_v29 = vld [vmem:[%s14511_s0 + $0x110] sm:$0xf] }
 0x230   :  { %v4411_v12 = vadd.f32 %v4410_v61, %v4241_v60 }
 0x231   :  { %v11404_v1 = vadd.f32 %v4745_v48, %v4577_v57  ;;  %4796 = vmatmul.bf16.gmra.mxu0 %v7026_v50  ;;  %v7090_v48 = vor.u32 %v9545_v39, %v7089_v29  ;;  %v7094_v50 = vor.u32 %v9537_v43, %v7091_v44 }
 0x232   :  { %4965 = vmatmul.bf16.gmra.mxu1 %v7030_v56 }
 0x233   :  { %14524 = vst [vmem:[#allocation13_spill] sm:$0xff] %v11404_v1  ;;  %5134 = vmatmul.bf16.gmra.mxu2 %v7034_v62  ;;  %v7102_v62 = vor.u32 %v9538_v20, %v7099_v63  ;;  %v7153_v20 = vld [vmem:[%s14511_s0 + $0x190] sm:$0xf] }
 0x234   :  { %5303 = vmatmul.bf16.gmra.mxu3 %v7038_v10  ;;  %v9561_v63 = vld [vmem:[%s14511_s0 + $0x1cc] sm:$0xf0] }
 0x236   :  { %v4579_v18 = vpop.f32.mrf.mxu2  ;;  %v4243_v34 = vpop.f32.mrf.mxu0 }
 0x237   :  { %v4748_v27 = vpop.f32.mrf.mxu3  ;;  %v4580_v30 = vadd.f32 %v4579_v18, %v4411_v12  ;;  %v4412_v32 = vpop.f32.mrf.mxu1  ;;  %v10101_v18 = vld [vmem:[%s14510_s1 + $0x2b0] sm:$0xff] }
 0x238   :  { %v4413_v15 = vadd.f32 %v4412_v32, %v4243_v34  ;;  %v7097_v32 = vld [vmem:[%s14511_s0 + $0x118] sm:$0xf]  ;;  %5798 = vmatpush.bf16.msra.mxu2 %v10101_v18 }
 0x239   :  { %v11406_v6 = vadd.f32 %v4748_v27, %v4580_v30  ;;  %v7098_v61 = vor.u32 %v9546_v36, %v7097_v32  ;;  %v10085_v27 = vld [vmem:[%s14510_s1 + $0x230] sm:$0xff] }
 0x23a   :  { %5460 = vmatpush.bf16.msra.mxu0 %v10085_v27  ;;  %v10093_v36 = vld [vmem:[%s14510_s1 + $0x270] sm:$0xff] }
 0x23b   :  { %14525 = vst [vmem:[#allocation14_spill] sm:$0xff] %v11406_v6  ;;  %5629 = vmatpush.bf16.msra.mxu1 %v10093_v36 }
 0x23e   :  { %v4581_v22 = vpop.f32.mrf.mxu2  ;;  %v4246_v57 = vpop.f32.mrf.mxu0 }
 0x23f   :  { %v4750_v47 = vpop.f32.mrf.mxu3  ;;  %v4582_v56 = vadd.f32 %v4581_v22, %v4413_v15  ;;  %v4415_v60 = vpop.f32.mrf.mxu1  ;;  %v10109_v15 = vld [vmem:[%s14510_s1 + $0x2f0] sm:$0xff] }
 0x240   :  { %v4416_v10 = vadd.f32 %v4415_v60, %v4246_v57  ;;  %5967 = vmatpush.bf16.msra.mxu3 %v10109_v15  ;;  %v9553_v22 = vld [vmem:[%s14511_s0 + $0x194] sm:$0xf]  ;;  %v7163_v57 = vld [vmem:[%s14511_s0 + $0x1d8] sm:$0xf0] }
 0x241   :  { %v11432_v12 = vadd.f32 %v4750_v47, %v4582_v56  ;;  %4801 = vmatmul.bf16.gmra.mxu0 %v7090_v48  ;;  %v7155_v47 = vld [vmem:[%s14511_s0 + $0x1d0] sm:$0xf0]  ;;  %v7161_v48 = vld [vmem:[%s14511_s0 + $0x198] sm:$0xf]  ;;  %v9554_v56 = vld [vmem:[%s14511_s0 + $0x19c] sm:$0xf] }
 0x242   :  { %4970 = vmatmul.bf16.gmra.mxu1 %v7094_v50  ;;  %v9562_v50 = vld [vmem:[%s14511_s0 + $0x1d4] sm:$0xf0] }
 0x243   :  { %14526 = vst [vmem:[#allocation15_spill] sm:$0xff] %v11432_v12  ;;  %5139 = vmatmul.bf16.gmra.mxu2 %v7098_v61 }
 0x244   :  { %5308 = vmatmul.bf16.gmra.mxu3 %v7102_v62  ;;  %v7154_v62 = vor.u32 %v9561_v63, %v7153_v20  ;;  %v9577_v63 = vld [vmem:[%s14511_s0 + $0x24c] sm:$0xf0] }
 0x246   :  { %v4584_v30 = vpop.f32.mrf.mxu2  ;;  %v4248_v39 = vpop.f32.mrf.mxu0 }
 0x247   :  { %v4753_v34 = vpop.f32.mrf.mxu3  ;;  %v4585_v29 = vadd.f32 %v4584_v30, %v4416_v10  ;;  %v4417_v43 = vpop.f32.mrf.mxu1  ;;  %v7158_v10 = vor.u32 %v9553_v22, %v7155_v47  ;;  %v7162_v30 = vor.u32 %v9562_v50, %v7161_v48  ;;  %v9569_v22 = vld [vmem:[%s14511_s0 + $0x214] sm:$0xf]  ;;  %v7227_v48 = vld [vmem:[%s14511_s0 + $0x258] sm:$0xf0] }
 0x248   :  { %v4418_v44 = vadd.f32 %v4417_v43, %v4248_v39  ;;  %v7219_v47 = vld [vmem:[%s14511_s0 + $0x250] sm:$0xf0] }
 0x249   :  { %v11443_v32 = vadd.f32 %v4753_v34, %v4585_v29  ;;  %v7166_v34 = vor.u32 %v9554_v56, %v7163_v57 }
 0x24b   :  { %14527 = vst [vmem:[#allocation16_spill] sm:$0xff] %v11443_v32 }
 0x24e   :  { %v4586_v60 = vpop.f32.mrf.mxu2  ;;  %v4251_v27 = vpop.f32.mrf.mxu0 }
 0x24f   :  { %v4755_v61 = vpop.f32.mrf.mxu3  ;;  %v4587_v18 = vadd.f32 %v4586_v60, %v4418_v44  ;;  %v4420_v15 = vpop.f32.mrf.mxu1  ;;  %v7217_v44 = vld [vmem:[%s14511_s0 + $0x210] sm:$0xf]  ;;  %v7222_v60 = vor.u32 %v9569_v22, %v7219_v47  ;;  %v9585_v22 = vld [vmem:[%s14511_s0 + $0x294] sm:$0xf] }
 0x250   :  { %v4421_v29 = vadd.f32 %v4420_v15, %v4251_v27  ;;  %v7218_v57 = vor.u32 %v9577_v63, %v7217_v44  ;;  %v9593_v63 = vld [vmem:[%s14511_s0 + $0x2cc] sm:$0xf0]  ;;  %v7283_v47 = vld [vmem:[%s14511_s0 + $0x2d0] sm:$0xf0] }
 0x251   :  { %v11472_v39 = vadd.f32 %v4755_v61, %v4587_v18  ;;  %4806 = vmatmul.bf16.gmra.mxu0 %v7154_v62 }
 0x252   :  { %4975 = vmatmul.bf16.gmra.mxu1 %v7158_v10 }
 0x253   :  { %14528 = vst [vmem:[#allocation17_spill] sm:$0xff] %v11472_v39  ;;  %5144 = vmatmul.bf16.gmra.mxu2 %v7162_v30 }
 0x254   :  { %5313 = vmatmul.bf16.gmra.mxu3 %v7166_v34 }
 0x256   :  { %v4589_v43 = vpop.f32.mrf.mxu2  ;;  %v4253_v12 = vpop.f32.mrf.mxu0 }
 0x257   :  { %v4758_v36 = vpop.f32.mrf.mxu3  ;;  %v4590_v32 = vadd.f32 %v4589_v43, %v4421_v29  ;;  %v4422_v6 = vpop.f32.mrf.mxu1 }
 0x258   :  { %v4423_v1 = vadd.f32 %v4422_v6, %v4253_v12  ;;  %v7225_v6 = vld [vmem:[%s14511_s0 + $0x218] sm:$0xf] }
 0x259   :  { %v11474_v20 = vadd.f32 %v4758_v36, %v4590_v32  ;;  %v9578_v12 = vld [vmem:[%s14511_s0 + $0x254] sm:$0xf0]  ;;  %v9570_v32 = vld [vmem:[%s14511_s0 + $0x21c] sm:$0xf] }
 0x25a   :  { %v7226_v18 = vor.u32 %v9578_v12, %v7225_v6  ;;  %v7230_v27 = vor.u32 %v9570_v32, %v7227_v48  ;;  %v9594_v6 = vld [vmem:[%s14511_s0 + $0x2d4] sm:$0xf0]  ;;  %v9586_v12 = vld [vmem:[%s14511_s0 + $0x29c] sm:$0xf] }
 0x25b   :  { %14529 = vst [vmem:[#allocation18_spill] sm:$0xff] %v11474_v20  ;;  %v7291_v32 = vld [vmem:[%s14511_s0 + $0x2d8] sm:$0xf0] }
 0x25e   :  { %v4591_v50 = vpop.f32.mrf.mxu2  ;;  %v4256_v62 = vpop.f32.mrf.mxu0 }
 0x25f   :  { %v4760_v56 = vpop.f32.mrf.mxu3  ;;  %v4592_v61 = vadd.f32 %v4591_v50, %v4423_v1  ;;  %v4425_v10 = vpop.f32.mrf.mxu1  ;;  %v7281_v1 = vld [vmem:[%s14511_s0 + $0x290] sm:$0xf] }
 0x260   :  { %v4426_v15 = vadd.f32 %v4425_v10, %v4256_v62 }
 0x261   :  { %v11500_v30 = vadd.f32 %v4760_v56, %v4592_v61  ;;  %4811 = vmatmul.bf16.gmra.mxu0 %v7218_v57  ;;  %v7282_v56 = vor.u32 %v9593_v63, %v7281_v1  ;;  %v7286_v57 = vor.u32 %v9585_v22, %v7283_v47  ;;  %v9609_v63 = vld [vmem:[%s14511_s0 + $0x34c] sm:$0xf0]  ;;  %v9601_v22 = vld [vmem:[%s14511_s0 + $0x314] sm:$0xf] }
 0x262   :  { %4980 = vmatmul.bf16.gmra.mxu1 %v7222_v60  ;;  %v7347_v47 = vld [vmem:[%s14511_s0 + $0x350] sm:$0xf0] }
 0x263   :  { %14530 = vst [vmem:[#allocation19_spill] sm:$0xff] %v11500_v30  ;;  %5149 = vmatmul.bf16.gmra.mxu2 %v7226_v18  ;;  %v7294_v18 = vor.u32 %v9586_v12, %v7291_v32  ;;  %v7355_v12 = vld [vmem:[%s14511_s0 + $0x358] sm:$0xf0] }
 0x264   :  { %5318 = vmatmul.bf16.gmra.mxu3 %v7230_v27 }
 0x266   :  { %v4594_v34 = vpop.f32.mrf.mxu2  ;;  %v4258_v36 = vpop.f32.mrf.mxu0 }
 0x267   :  { %v4763_v29 = vpop.f32.mrf.mxu3  ;;  %v4595_v43 = vadd.f32 %v4594_v34, %v4426_v15  ;;  %v4427_v20 = vpop.f32.mrf.mxu1 }
 0x268   :  { %v4428_v39 = vadd.f32 %v4427_v20, %v4258_v36  ;;  %v7289_v20 = vld [vmem:[%s14511_s0 + $0x298] sm:$0xf] }
 0x269   :  { %v11502_v44 = vadd.f32 %v4763_v29, %v4595_v43  ;;  %v7290_v10 = vor.u32 %v9594_v6, %v7289_v20  ;;  %v9610_v20 = vld [vmem:[%s14511_s0 + $0x354] sm:$0xf0]  ;;  %v9602_v6 = vld [vmem:[%s14511_s0 + $0x31c] sm:$0xf] }
 0x26b   :  { %14531 = vst [vmem:[#allocation20_spill] sm:$0xff] %v11502_v44 }
 0x26e   :  { %v4596_v48 = vpop.f32.mrf.mxu2  ;;  %v4261_v61 = vpop.f32.mrf.mxu0 }
 0x26f   :  { %v4765_v50 = vpop.f32.mrf.mxu3  ;;  %v4597_v60 = vadd.f32 %v4596_v48, %v4428_v39  ;;  %v4430_v62 = vpop.f32.mrf.mxu1  ;;  %v7345_v39 = vld [vmem:[%s14511_s0 + $0x310] sm:$0xf] }
 0x270   :  { %v4431_v27 = vadd.f32 %v4430_v62, %v4261_v61 }
 0x271   :  { %v11528_v15 = vadd.f32 %v4765_v50, %v4597_v60  ;;  %4816 = vmatmul.bf16.gmra.mxu0 %v7282_v56  ;;  %v7346_v50 = vor.u32 %v9609_v63, %v7345_v39  ;;  %v7350_v56 = vor.u32 %v9601_v22, %v7347_v47 }
 0x272   :  { %4985 = vmatmul.bf16.gmra.mxu1 %v7286_v57 }
 0x273   :  { %14532 = vst [vmem:[#allocation21_spill] sm:$0xff] %v11528_v15  ;;  %5154 = vmatmul.bf16.gmra.mxu2 %v7290_v10  ;;  %v7358_v10 = vor.u32 %v9602_v6, %v7355_v12  ;;  %v7409_v6 = vld [vmem:[%s14511_s0 + $0x390] sm:$0xf] }
 0x274   :  { %5323 = vmatmul.bf16.gmra.mxu3 %v7294_v18  ;;  %v9625_v12 = vld [vmem:[%s14511_s0 + $0x3cc] sm:$0xf0] }
 0x276   :  { %v4599_v34 = vpop.f32.mrf.mxu2  ;;  %v4263_v36 = vpop.f32.mrf.mxu0 }
 0x277   :  { %v4768_v29 = vpop.f32.mrf.mxu3  ;;  %v4600_v43 = vadd.f32 %v4599_v34, %v4431_v27  ;;  %v4432_v44 = vpop.f32.mrf.mxu1  ;;  %v10100_v34 = vld [vmem:[%s14510_s1 + $0x2a8] sm:$0xff] }
 0x278   :  { %v4433_v30 = vadd.f32 %v4432_v44, %v4263_v36  ;;  %v7353_v44 = vld [vmem:[%s14511_s0 + $0x318] sm:$0xf]  ;;  %5799 = vmatpush.bf16.msra.mxu2 %v10100_v34 }
 0x279   :  { %v11530_v1 = vadd.f32 %v4768_v29, %v4600_v43  ;;  %v7354_v62 = vor.u32 %v9610_v20, %v7353_v44  ;;  %v10084_v29 = vld [vmem:[%s14510_s1 + $0x228] sm:$0xff] }
 0x27a   :  { %5461 = vmatpush.bf16.msra.mxu0 %v10084_v29  ;;  %v10092_v20 = vld [vmem:[%s14510_s1 + $0x268] sm:$0xff] }
 0x27b   :  { %14533 = vst [vmem:[#allocation22_spill] sm:$0xff] %v11530_v1  ;;  %5630 = vmatpush.bf16.msra.mxu1 %v10092_v20 }
 0x27e   :  { %v4601_v32 = vpop.f32.mrf.mxu2  ;;  %v4266_v60 = vpop.f32.mrf.mxu0 }
 0x27f   :  { %v4770_v48 = vpop.f32.mrf.mxu3  ;;  %v4602_v57 = vadd.f32 %v4601_v32, %v4433_v30  ;;  %v4435_v61 = vpop.f32.mrf.mxu1  ;;  %v10108_v30 = vld [vmem:[%s14510_s1 + $0x2e8] sm:$0xff]  ;;  %v9617_v32 = vld [vmem:[%s14511_s0 + $0x394] sm:$0xf] }
 0x280   :  { %v4436_v18 = vadd.f32 %v4435_v61, %v4266_v60  ;;  %5968 = vmatpush.bf16.msra.mxu3 %v10108_v30  ;;  %v7419_v60 = vld [vmem:[%s14511_s0 + $0x3d8] sm:$0xf0] }
 0x281   :  { %v11556_v27 = vadd.f32 %v4770_v48, %v4602_v57  ;;  %4821 = vmatmul.bf16.gmra.mxu0 %v7346_v50  ;;  %v7411_v48 = vld [vmem:[%s14511_s0 + $0x3d0] sm:$0xf0]  ;;  %v7417_v50 = vld [vmem:[%s14511_s0 + $0x398] sm:$0xf]  ;;  %v9618_v57 = vld [vmem:[%s14511_s0 + $0x39c] sm:$0xf] }
 0x282   :  { %4990 = vmatmul.bf16.gmra.mxu1 %v7350_v56  ;;  %v9626_v56 = vld [vmem:[%s14511_s0 + $0x3d4] sm:$0xf0] }
 0x283   :  { %14534 = vst [vmem:[#allocation23_spill] sm:$0xff] %v11556_v27  ;;  %5159 = vmatmul.bf16.gmra.mxu2 %v7354_v62 }
 0x284   :  { %5328 = vmatmul.bf16.gmra.mxu3 %v7358_v10  ;;  %v7410_v10 = vor.u32 %v9625_v12, %v7409_v6  ;;  %v9641_v12 = vld [vmem:[%s14511_s0 + $0x44c] sm:$0xf0] }
 0x286   :  { %v4604_v43 = vpop.f32.mrf.mxu2  ;;  %v4268_v63 = vpop.f32.mrf.mxu0 }
 0x287   :  { %v4773_v36 = vpop.f32.mrf.mxu3  ;;  %v4605_v39 = vadd.f32 %v4604_v43, %v4436_v18  ;;  %v4437_v22 = vpop.f32.mrf.mxu1  ;;  %v7414_v18 = vor.u32 %v9617_v32, %v7411_v48  ;;  %v7418_v43 = vor.u32 %v9626_v56, %v7417_v50  ;;  %v9633_v32 = vld [vmem:[%s14511_s0 + $0x414] sm:$0xf]  ;;  %v7483_v50 = vld [vmem:[%s14511_s0 + $0x458] sm:$0xf0] }
 0x288   :  { %v4438_v47 = vadd.f32 %v4437_v22, %v4268_v63  ;;  %v7475_v48 = vld [vmem:[%s14511_s0 + $0x450] sm:$0xf0] }
 0x289   :  { %v11567_v44 = vadd.f32 %v4773_v36, %v4605_v39  ;;  %v7422_v36 = vor.u32 %v9618_v57, %v7419_v60 }
 0x28b   :  { %14535 = vst [vmem:[#allocation24_spill] sm:$0xff] %v11567_v44 }
 0x28e   :  { %v4606_v61 = vpop.f32.mrf.mxu2  ;;  %v4271_v29 = vpop.f32.mrf.mxu0 }
 0x28f   :  { %v4775_v62 = vpop.f32.mrf.mxu3  ;;  %v4607_v34 = vadd.f32 %v4606_v61, %v4438_v47  ;;  %v4440_v30 = vpop.f32.mrf.mxu1  ;;  %v7473_v47 = vld [vmem:[%s14511_s0 + $0x410] sm:$0xf]  ;;  %v7478_v61 = vor.u32 %v9633_v32, %v7475_v48 }
 0x290   :  { %v4441_v39 = vadd.f32 %v4440_v30, %v4271_v29  ;;  %v7474_v60 = vor.u32 %v9641_v12, %v7473_v47  ;;  %v9657_v48 = vld [vmem:[%s14511_s0 + $0x4cc] sm:$0xf0] }
 0x291   :  { %v11596_v63 = vadd.f32 %v4775_v62, %v4607_v34  ;;  %4826 = vmatmul.bf16.gmra.mxu0 %v7410_v10 }
 0x292   :  { %4995 = vmatmul.bf16.gmra.mxu1 %v7414_v18 }
 0x293   :  { %5164 = vmatmul.bf16.gmra.mxu2 %v7418_v43 }
 0x294   :  { %5333 = vmatmul.bf16.gmra.mxu3 %v7422_v36 }
 0x296   :  { %v4609_v22 = vpop.f32.mrf.mxu2  ;;  %v4273_v27 = vpop.f32.mrf.mxu0 }
 0x297   :  { %v4778_v20 = vpop.f32.mrf.mxu3  ;;  %v4610_v44 = vadd.f32 %v4609_v22, %v4441_v39  ;;  %v4442_v1 = vpop.f32.mrf.mxu1 }
 0x298   :  { %v4443_v15 = vadd.f32 %v4442_v1, %v4273_v27  ;;  %v7481_v1 = vld [vmem:[%s14511_s0 + $0x418] sm:$0xf] }
 0x299   :  { %v11598_v6 = vadd.f32 %v4778_v20, %v4610_v44  ;;  %v9642_v27 = vld [vmem:[%s14511_s0 + $0x454] sm:$0xf0]  ;;  %v9634_v44 = vld [vmem:[%s14511_s0 + $0x41c] sm:$0xf] }
 0x29a   :  { %v7482_v34 = vor.u32 %v9642_v27, %v7481_v1  ;;  %v7486_v29 = vor.u32 %v9634_v44, %v7483_v50  ;;  %v9649_v1 = vld [vmem:[%s14511_s0 + $0x494] sm:$0xf]  ;;  %v9650_v44 = vld [vmem:[%s14511_s0 + $0x49c] sm:$0xf] }
 0x29b   :  { %14536 = vst [vmem:[#allocation25_spill] sm:$0xff] %v11598_v6  ;;  %v7539_v27 = vld [vmem:[%s14511_s0 + $0x4d0] sm:$0xf0]  ;;  %v7547_v50 = vld [vmem:[%s14511_s0 + $0x4d8] sm:$0xf0] }
 0x29e   :  { %v4611_v56 = vpop.f32.mrf.mxu2  ;;  %v4792_v10 = vpop.f32.mrf.mxu0 }
 0x29f   :  { %v4780_v57 = vpop.f32.mrf.mxu3  ;;  %v4612_v62 = vadd.f32 %v4611_v56, %v4443_v15  ;;  %v4961_v18 = vpop.f32.mrf.mxu1  ;;  %v4793_v30 = vadd.f32 %v4792_v10, %v10634_v33  ;;  %v7537_v33 = vld [vmem:[%s14511_s0 + $0x490] sm:$0xf] }
 0x2a1   :  { %v11625_v43 = vadd.f32 %v4780_v57, %v4612_v62  ;;  %v4962_v36 = vadd.f32 %v4961_v18, %v4793_v30  ;;  %4831 = vmatmul.bf16.gmra.mxu0 %v7474_v60  ;;  %v7538_v60 = vor.u32 %v9657_v48, %v7537_v33 }
 0x2a2   :  { %5000 = vmatmul.bf16.gmra.mxu1 %v7478_v61  ;;  %v7542_v61 = vor.u32 %v9649_v1, %v7539_v27  ;;  %v9673_v27 = vld [vmem:[%s14511_s0 + $0x54c] sm:$0xf0] }
 0x2a3   :  { %5169 = vmatmul.bf16.gmra.mxu2 %v7482_v34 }
 0x2a4   :  { %5338 = vmatmul.bf16.gmra.mxu3 %v7486_v29  ;;  %v7550_v29 = vor.u32 %v9650_v44, %v7547_v50  ;;  %v9674_v44 = vld [vmem:[%s14511_s0 + $0x554] sm:$0xf0]  ;;  %v9666_v50 = vld [vmem:[%s14511_s0 + $0x51c] sm:$0xf] }
 0x2a6   :  { %v5130_v39 = vpop.f32.mrf.mxu2  ;;  %v4794_v6 = vpop.f32.mrf.mxu0 }
 0x2a7   :  { %v5299_v22 = vpop.f32.mrf.mxu3  ;;  %v5131_v20 = vadd.f32 %v5130_v39, %v4962_v36  ;;  %v4963_v47 = vpop.f32.mrf.mxu1  ;;  %v4795_v15 = vadd.f32 %v4794_v6, %v10660_v52  ;;  %v7545_v52 = vld [vmem:[%s14511_s0 + $0x498] sm:$0xf] }
 0x2a8   :  { %v9658_v6 = vld [vmem:[%s14511_s0 + $0x4d4] sm:$0xf0] }
 0x2a9   :  { %v11628_v12 = vadd.f32 %v5299_v22, %v5131_v20  ;;  %v4964_v32 = vadd.f32 %v4963_v47, %v4795_v15  ;;  %v7546_v34 = vor.u32 %v9658_v6, %v7545_v52  ;;  %v9665_v52 = vld [vmem:[%s14511_s0 + $0x514] sm:$0xf] }
 0x2aa   :  { %v7603_v6 = vld [vmem:[%s14511_s0 + $0x550] sm:$0xf0] }
 0x2ae   :  { %v5132_v56 = vpop.f32.mrf.mxu2  ;;  %v4797_v10 = vpop.f32.mrf.mxu0 }
 0x2af   :  { %v5301_v57 = vpop.f32.mrf.mxu3  ;;  %v5133_v62 = vadd.f32 %v5132_v56, %v4964_v32  ;;  %v4966_v18 = vpop.f32.mrf.mxu1  ;;  %v4798_v30 = vadd.f32 %v4797_v10, %v10662_v59  ;;  %v7601_v59 = vld [vmem:[%s14511_s0 + $0x510] sm:$0xf]  ;;  %v7611_v56 = vld [vmem:[%s14511_s0 + $0x558] sm:$0xf0] }
 0x2b1   :  { %v11655_v36 = vadd.f32 %v5301_v57, %v5133_v62  ;;  %v4967_v39 = vadd.f32 %v4966_v18, %v4798_v30  ;;  %4836 = vmatmul.bf16.gmra.mxu0 %v7538_v60  ;;  %v7606_v62 = vor.u32 %v9665_v52, %v7603_v6  ;;  %v7614_v30 = vor.u32 %v9666_v50, %v7611_v56  ;;  %v7665_v50 = vld [vmem:[%s14511_s0 + $0x590] sm:$0xf] }
 0x2b2   :  { %5005 = vmatmul.bf16.gmra.mxu1 %v7542_v61  ;;  %v7602_v61 = vor.u32 %v9673_v27, %v7601_v59  ;;  %v9689_v56 = vld [vmem:[%s14511_s0 + $0x5cc] sm:$0xf0] }
 0x2b3   :  { %5174 = vmatmul.bf16.gmra.mxu2 %v7546_v34 }
 0x2b4   :  { %5343 = vmatmul.bf16.gmra.mxu3 %v7550_v29 }
 0x2b6   :  { %v5135_v22 = vpop.f32.mrf.mxu2  ;;  %v4799_v15 = vpop.f32.mrf.mxu0 }
 0x2b7   :  { %v5304_v20 = vpop.f32.mrf.mxu3  ;;  %v5136_v47 = vadd.f32 %v5135_v22, %v4967_v39  ;;  %v4968_v33 = vpop.f32.mrf.mxu1  ;;  %v4800_v32 = vadd.f32 %v4799_v15, %v10688_v14  ;;  %v7609_v14 = vld [vmem:[%s14511_s0 + $0x518] sm:$0xf]  ;;  %v10083_v15 = vld [vmem:[%s14510_s1 + $0x220] sm:$0xff] }
 0x2b8   :  { %v7610_v29 = vor.u32 %v9674_v44, %v7609_v14  ;;  %5462 = vmatpush.bf16.msra.mxu0 %v10083_v15  ;;  %v10091_v14 = vld [vmem:[%s14510_s1 + $0x260] sm:$0xff] }
 0x2b9   :  { %v11658_v48 = vadd.f32 %v5304_v20, %v5136_v47  ;;  %v4969_v1 = vadd.f32 %v4968_v33, %v4800_v32  ;;  %v10099_v47 = vld [vmem:[%s14510_s1 + $0x2a0] sm:$0xff]  ;;  %5631 = vmatpush.bf16.msra.mxu1 %v10091_v14 }
 0x2ba   :  { %v10107_v33 = vld [vmem:[%s14510_s1 + $0x2e0] sm:$0xff]  ;;  %5800 = vmatpush.bf16.msra.mxu2 %v10099_v47 }
 0x2bb   :  { %5969 = vmatpush.bf16.msra.mxu3 %v10107_v33 }
 0x2be   :  { %v5137_v57 = vpop.f32.mrf.mxu2  ;;  %v4802_v18 = vpop.f32.mrf.mxu0 }
 0x2bf   :  { %v5306_v60 = vpop.f32.mrf.mxu3  ;;  %v5138_v10 = vadd.f32 %v5137_v57, %v4969_v1  ;;  %v4971_v34 = vpop.f32.mrf.mxu1  ;;  %v4803_v39 = vadd.f32 %v4802_v18, %v10699_v24  ;;  %v9681_v57 = vld [vmem:[%s14511_s0 + $0x594] sm:$0xf] }
 0x2c1   :  { %v11685_v22 = vadd.f32 %v5306_v60, %v5138_v10  ;;  %v4972_v20 = vadd.f32 %v4971_v34, %v4803_v39  ;;  %4841 = vmatmul.bf16.gmra.mxu0 %v7602_v61  ;;  %v7673_v60 = vld [vmem:[%s14511_s0 + $0x598] sm:$0xf]  ;;  %v7675_v10 = vld [vmem:[%s14511_s0 + $0x5d8] sm:$0xf0] }
 0x2c2   :  { %5010 = vmatmul.bf16.gmra.mxu1 %v7606_v62  ;;  %v9690_v61 = vld [vmem:[%s14511_s0 + $0x5d4] sm:$0xf0]  ;;  %v9682_v62 = vld [vmem:[%s14511_s0 + $0x59c] sm:$0xf] }
 0x2c3   :  { %5179 = vmatmul.bf16.gmra.mxu2 %v7610_v29  ;;  %v7666_v29 = vor.u32 %v9689_v56, %v7665_v50  ;;  %v7674_v15 = vor.u32 %v9690_v61, %v7673_v60  ;;  %v7678_v33 = vor.u32 %v9682_v62, %v7675_v10  ;;  %v9697_v60 = vld [vmem:[%s14511_s0 + $0x614] sm:$0xf]  ;;  %v9706_v62 = vld [vmem:[%s14511_s0 + $0x654] sm:$0xf0]  ;;  %v9698_v10 = vld [vmem:[%s14511_s0 + $0x61c] sm:$0xf] }
 0x2c4   :  { %5348 = vmatmul.bf16.gmra.mxu3 %v7614_v30  ;;  %v7731_v61 = vld [vmem:[%s14511_s0 + $0x650] sm:$0xf0] }
 0x2c6   :  { %v5140_v24 = vpop.f32.mrf.mxu2  ;;  %v4804_v59 = vpop.f32.mrf.mxu0 }
 0x2c7   :  { %v5309_v32 = vpop.f32.mrf.mxu3  ;;  %v5141_v1 = vadd.f32 %v5140_v24, %v4972_v20  ;;  %v4973_v27 = vpop.f32.mrf.mxu1  ;;  %v4805_v52 = vadd.f32 %v4804_v59, %v10728_v45  ;;  %v7667_v45 = vld [vmem:[%s14511_s0 + $0x5d0] sm:$0xf0] }
 0x2c8   :  { %v7670_v30 = vor.u32 %v9681_v57, %v7667_v45  ;;  %v9705_v45 = vld [vmem:[%s14511_s0 + $0x64c] sm:$0xf0] }
 0x2c9   :  { %v11697_v6 = vadd.f32 %v5309_v32, %v5141_v1  ;;  %v4974_v44 = vadd.f32 %v4973_v27, %v4805_v52 }
 0x2ce   :  { %v5142_v18 = vpop.f32.mrf.mxu2  ;;  %v4807_v20 = vpop.f32.mrf.mxu0 }
 0x2cf   :  { %v5311_v34 = vpop.f32.mrf.mxu3  ;;  %v5143_v39 = vadd.f32 %v5142_v18, %v4974_v44  ;;  %v4976_v47 = vpop.f32.mrf.mxu1  ;;  %v4808_v24 = vadd.f32 %v4807_v20, %v10730_v53  ;;  %v7729_v53 = vld [vmem:[%s14511_s0 + $0x610] sm:$0xf]  ;;  %v7739_v18 = vld [vmem:[%s14511_s0 + $0x658] sm:$0xf0] }
 0x2d1   :  { %v11727_v32 = vadd.f32 %v5311_v34, %v5143_v39  ;;  %v4977_v1 = vadd.f32 %v4976_v47, %v4808_v24  ;;  %4846 = vmatmul.bf16.gmra.mxu0 %v7666_v29  ;;  %v7734_v39 = vor.u32 %v9697_v60, %v7731_v61  ;;  %v7742_v24 = vor.u32 %v9698_v10, %v7739_v18  ;;  %v9721_v61 = vld [vmem:[%s14511_s0 + $0x6cc] sm:$0xf0]  ;;  %v9722_v10 = vld [vmem:[%s14511_s0 + $0x6d4] sm:$0xf0]  ;;  %v9714_v18 = vld [vmem:[%s14511_s0 + $0x69c] sm:$0xf] }
 0x2d2   :  { %5015 = vmatmul.bf16.gmra.mxu1 %v7670_v30  ;;  %v7730_v30 = vor.u32 %v9705_v45, %v7729_v53 }
 0x2d3   :  { %5184 = vmatmul.bf16.gmra.mxu2 %v7674_v15 }
 0x2d4   :  { %5353 = vmatmul.bf16.gmra.mxu3 %v7678_v33 }
 0x2d6   :  { %v5145_v59 = vpop.f32.mrf.mxu2  ;;  %v4809_v14 = vpop.f32.mrf.mxu0 }
 0x2d7   :  { %v5314_v27 = vpop.f32.mrf.mxu3  ;;  %v5146_v52 = vadd.f32 %v5145_v59, %v4977_v1  ;;  %v4978_v50 = vpop.f32.mrf.mxu1  ;;  %v4810_v44 = vadd.f32 %v4809_v14, %v10756_v9  ;;  %v7737_v9 = vld [vmem:[%s14511_s0 + $0x618] sm:$0xf] }
 0x2d8   :  { %v7738_v33 = vor.u32 %v9706_v62, %v7737_v9  ;;  %v9713_v9 = vld [vmem:[%s14511_s0 + $0x694] sm:$0xf] }
 0x2d9   :  { %v11730_v56 = vadd.f32 %v5314_v27, %v5146_v52  ;;  %v4979_v57 = vadd.f32 %v4978_v50, %v4810_v44  ;;  %v7795_v62 = vld [vmem:[%s14511_s0 + $0x6d0] sm:$0xf0] }
 0x2de   :  { %v5147_v34 = vpop.f32.mrf.mxu2  ;;  %v4812_v47 = vpop.f32.mrf.mxu0 }
 0x2df   :  { %v5316_v29 = vpop.f32.mrf.mxu3  ;;  %v5148_v20 = vadd.f32 %v5147_v34, %v4979_v57  ;;  %v4981_v15 = vpop.f32.mrf.mxu1  ;;  %v4813_v1 = vadd.f32 %v4812_v47, %v10758_v17  ;;  %v7793_v17 = vld [vmem:[%s14511_s0 + $0x690] sm:$0xf]  ;;  %v7803_v34 = vld [vmem:[%s14511_s0 + $0x6d8] sm:$0xf0] }
 0x2e1   :  { %v11757_v59 = vadd.f32 %v5316_v29, %v5148_v20  ;;  %v4982_v27 = vadd.f32 %v4981_v15, %v4813_v1  ;;  %4851 = vmatmul.bf16.gmra.mxu0 %v7730_v30  ;;  %v7798_v20 = vor.u32 %v9713_v9, %v7795_v62  ;;  %v7806_v1 = vor.u32 %v9714_v18, %v7803_v34  ;;  %v9737_v62 = vld [vmem:[%s14511_s0 + $0x74c] sm:$0xf0]  ;;  %v9738_v18 = vld [vmem:[%s14511_s0 + $0x754] sm:$0xf0]  ;;  %v9730_v34 = vld [vmem:[%s14511_s0 + $0x71c] sm:$0xf] }
 0x2e2   :  { %5020 = vmatmul.bf16.gmra.mxu1 %v7734_v39  ;;  %v7794_v39 = vor.u32 %v9721_v61, %v7793_v17 }
 0x2e3   :  { %5189 = vmatmul.bf16.gmra.mxu2 %v7738_v33 }
 0x2e4   :  { %5358 = vmatmul.bf16.gmra.mxu3 %v7742_v24 }
 0x2e6   :  { %v5150_v52 = vpop.f32.mrf.mxu2  ;;  %v4814_v44 = vpop.f32.mrf.mxu0 }
 0x2e7   :  { %v5319_v14 = vpop.f32.mrf.mxu3  ;;  %v5151_v50 = vadd.f32 %v5150_v52, %v4982_v27  ;;  %v4983_v53 = vpop.f32.mrf.mxu1  ;;  %v4815_v57 = vadd.f32 %v4814_v44, %v10784_v38  ;;  %v7801_v38 = vld [vmem:[%s14511_s0 + $0x698] sm:$0xf] }
 0x2e8   :  { %v7802_v24 = vor.u32 %v9722_v10, %v7801_v38  ;;  %v9729_v38 = vld [vmem:[%s14511_s0 + $0x714] sm:$0xf] }
 0x2e9   :  { %v11760_v45 = vadd.f32 %v5319_v14, %v5151_v50  ;;  %v4984_v60 = vadd.f32 %v4983_v53, %v4815_v57  ;;  %v7859_v10 = vld [vmem:[%s14511_s0 + $0x750] sm:$0xf0] }
 0x2ee   :  { %v5152_v29 = vpop.f32.mrf.mxu2  ;;  %v4817_v15 = vpop.f32.mrf.mxu0 }
 0x2ef   :  { %v5321_v30 = vpop.f32.mrf.mxu3  ;;  %v5153_v47 = vadd.f32 %v5152_v29, %v4984_v60  ;;  %v4986_v33 = vpop.f32.mrf.mxu1  ;;  %v4818_v27 = vadd.f32 %v4817_v15, %v10786_v46  ;;  %v7857_v46 = vld [vmem:[%s14511_s0 + $0x710] sm:$0xf]  ;;  %v7867_v29 = vld [vmem:[%s14511_s0 + $0x758] sm:$0xf0] }
 0x2f1   :  { %v11787_v52 = vadd.f32 %v5321_v30, %v5153_v47  ;;  %v4987_v14 = vadd.f32 %v4986_v33, %v4818_v27  ;;  %4856 = vmatmul.bf16.gmra.mxu0 %v7794_v39  ;;  %v7862_v47 = vor.u32 %v9729_v38, %v7859_v10  ;;  %v7870_v27 = vor.u32 %v9730_v34, %v7867_v29  ;;  %v7921_v34 = vld [vmem:[%s14511_s0 + $0x790] sm:$0xf] }
 0x2f2   :  { %5025 = vmatmul.bf16.gmra.mxu1 %v7798_v20  ;;  %v7858_v20 = vor.u32 %v9737_v62, %v7857_v46  ;;  %v9753_v29 = vld [vmem:[%s14511_s0 + $0x7cc] sm:$0xf0] }
 0x2f3   :  { %5194 = vmatmul.bf16.gmra.mxu2 %v7802_v24 }
 0x2f4   :  { %5363 = vmatmul.bf16.gmra.mxu3 %v7806_v1 }
 0x2f6   :  { %v5155_v50 = vpop.f32.mrf.mxu2  ;;  %v4819_v57 = vpop.f32.mrf.mxu0 }
 0x2f7   :  { %v5324_v44 = vpop.f32.mrf.mxu3  ;;  %v5156_v53 = vadd.f32 %v5155_v50, %v4987_v14  ;;  %v4988_v17 = vpop.f32.mrf.mxu1  ;;  %v4820_v60 = vadd.f32 %v4819_v57, %v10812_v4  ;;  %v7865_v4 = vld [vmem:[%s14511_s0 + $0x718] sm:$0xf] }
 0x2f8   :  { %v7866_v1 = vor.u32 %v9738_v18, %v7865_v4  ;;  %v10082_v57 = vld [vmem:[%s14510_s1 + $0x218] sm:$0xff] }
 0x2f9   :  { %v11790_v61 = vadd.f32 %v5324_v44, %v5156_v53  ;;  %v4989_v9 = vadd.f32 %v4988_v17, %v4820_v60  ;;  %v10098_v53 = vld [vmem:[%s14510_s1 + $0x298] sm:$0xff]  ;;  %5463 = vmatpush.bf16.msra.mxu0 %v10082_v57 }
 0x2fa   :  { %v10106_v17 = vld [vmem:[%s14510_s1 + $0x2d8] sm:$0xff]  ;;  %5801 = vmatpush.bf16.msra.mxu2 %v10098_v53 }
 0x2fb   :  { %5970 = vmatpush.bf16.msra.mxu3 %v10106_v17  ;;  %v10090_v4 = vld [vmem:[%s14510_s1 + $0x258] sm:$0xff] }
 0x2fc   :  { %5632 = vmatpush.bf16.msra.mxu1 %v10090_v4 }
 0x2fe   :  { %v5157_v30 = vpop.f32.mrf.mxu2  ;;  %v4822_v33 = vpop.f32.mrf.mxu0 }
 0x2ff   :  { %v5326_v39 = vpop.f32.mrf.mxu3  ;;  %v5158_v15 = vadd.f32 %v5157_v30, %v4989_v9  ;;  %v4991_v24 = vpop.f32.mrf.mxu1  ;;  %v4823_v14 = vadd.f32 %v4822_v33, %v10823_v16  ;;  %v9745_v30 = vld [vmem:[%s14511_s0 + $0x794] sm:$0xf] }
 0x301   :  { %v11817_v50 = vadd.f32 %v5326_v39, %v5158_v15  ;;  %v4992_v44 = vadd.f32 %v4991_v24, %v4823_v14  ;;  %4861 = vmatmul.bf16.gmra.mxu0 %v7858_v20  ;;  %v7929_v39 = vld [vmem:[%s14511_s0 + $0x798] sm:$0xf]  ;;  %v7931_v15 = vld [vmem:[%s14511_s0 + $0x7d8] sm:$0xf0] }
 0x302   :  { %5030 = vmatmul.bf16.gmra.mxu1 %v7862_v47  ;;  %v9754_v20 = vld [vmem:[%s14511_s0 + $0x7d4] sm:$0xf0]  ;;  %v9746_v47 = vld [vmem:[%s14511_s0 + $0x79c] sm:$0xf] }
 0x303   :  { %5199 = vmatmul.bf16.gmra.mxu2 %v7866_v1  ;;  %v7922_v1 = vor.u32 %v9753_v29, %v7921_v34  ;;  %v7930_v57 = vor.u32 %v9754_v20, %v7929_v39  ;;  %v7934_v17 = vor.u32 %v9746_v47, %v7931_v15  ;;  %v9761_v39 = vld [vmem:[%s14511_s0 + $0x814] sm:$0xf]  ;;  %v9770_v47 = vld [vmem:[%s14511_s0 + $0x854] sm:$0xf0]  ;;  %v9762_v15 = vld [vmem:[%s14511_s0 + $0x81c] sm:$0xf] }
 0x304   :  { %5368 = vmatmul.bf16.gmra.mxu3 %v7870_v27  ;;  %v7987_v20 = vld [vmem:[%s14511_s0 + $0x850] sm:$0xf0] }
 0x306   :  { %v5160_v16 = vpop.f32.mrf.mxu2  ;;  %v4824_v46 = vpop.f32.mrf.mxu0 }
 0x307   :  { %v5329_v60 = vpop.f32.mrf.mxu3  ;;  %v5161_v9 = vadd.f32 %v5160_v16, %v4992_v44  ;;  %v4993_v62 = vpop.f32.mrf.mxu1  ;;  %v4825_v38 = vadd.f32 %v4824_v46, %v10852_v40  ;;  %v7923_v40 = vld [vmem:[%s14511_s0 + $0x7d0] sm:$0xf0] }
 0x308   :  { %v7926_v27 = vor.u32 %v9745_v30, %v7923_v40  ;;  %v9769_v40 = vld [vmem:[%s14511_s0 + $0x84c] sm:$0xf0] }
 0x309   :  { %v11829_v10 = vadd.f32 %v5329_v60, %v5161_v9  ;;  %v4994_v18 = vadd.f32 %v4993_v62, %v4825_v38 }
 0x30e   :  { %v5162_v33 = vpop.f32.mrf.mxu2  ;;  %v4827_v44 = vpop.f32.mrf.mxu0 }
 0x30f   :  { %v5331_v24 = vpop.f32.mrf.mxu3  ;;  %v5163_v14 = vadd.f32 %v5162_v33, %v4994_v18  ;;  %v4996_v53 = vpop.f32.mrf.mxu1  ;;  %v4828_v16 = vadd.f32 %v4827_v44, %v10854_v49  ;;  %v7985_v49 = vld [vmem:[%s14511_s0 + $0x810] sm:$0xf]  ;;  %v7995_v33 = vld [vmem:[%s14511_s0 + $0x858] sm:$0xf0] }
 0x311   :  { %v11859_v60 = vadd.f32 %v5331_v24, %v5163_v14  ;;  %v4997_v9 = vadd.f32 %v4996_v53, %v4828_v16  ;;  %4866 = vmatmul.bf16.gmra.mxu0 %v7922_v1  ;;  %v7990_v14 = vor.u32 %v9761_v39, %v7987_v20  ;;  %v7998_v16 = vor.u32 %v9762_v15, %v7995_v33  ;;  %v9785_v20 = vld [vmem:[%s14511_s0 + $0x8cc] sm:$0xf0]  ;;  %v9786_v15 = vld [vmem:[%s14511_s0 + $0x8d4] sm:$0xf0]  ;;  %v9778_v33 = vld [vmem:[%s14511_s0 + $0x89c] sm:$0xf] }
 0x312   :  { %5035 = vmatmul.bf16.gmra.mxu1 %v7926_v27  ;;  %v7986_v27 = vor.u32 %v9769_v40, %v7985_v49 }
 0x313   :  { %5204 = vmatmul.bf16.gmra.mxu2 %v7930_v57 }
 0x314   :  { %5373 = vmatmul.bf16.gmra.mxu3 %v7934_v17 }
 0x316   :  { %v5165_v46 = vpop.f32.mrf.mxu2  ;;  %v4829_v4 = vpop.f32.mrf.mxu0 }
 0x317   :  { %v5334_v62 = vpop.f32.mrf.mxu3  ;;  %v5166_v38 = vadd.f32 %v5165_v46, %v4997_v9  ;;  %v4998_v34 = vpop.f32.mrf.mxu1  ;;  %v4830_v18 = vadd.f32 %v4829_v4, %v10880_v8  ;;  %v7993_v8 = vld [vmem:[%s14511_s0 + $0x818] sm:$0xf] }
 0x318   :  { %v7994_v17 = vor.u32 %v9770_v47, %v7993_v8  ;;  %v9777_v8 = vld [vmem:[%s14511_s0 + $0x894] sm:$0xf] }
 0x319   :  { %v11862_v29 = vadd.f32 %v5334_v62, %v5166_v38  ;;  %v4999_v30 = vadd.f32 %v4998_v34, %v4830_v18  ;;  %v8051_v47 = vld [vmem:[%s14511_s0 + $0x8d0] sm:$0xf0] }
 0x31e   :  { %v5167_v24 = vpop.f32.mrf.mxu2  ;;  %v4832_v53 = vpop.f32.mrf.mxu0 }
 0x31f   :  { %v5336_v1 = vpop.f32.mrf.mxu3  ;;  %v5168_v44 = vadd.f32 %v5167_v24, %v4999_v30  ;;  %v5001_v57 = vpop.f32.mrf.mxu1  ;;  %v4833_v9 = vadd.f32 %v4832_v53, %v10882_v19  ;;  %v8049_v19 = vld [vmem:[%s14511_s0 + $0x890] sm:$0xf]  ;;  %v8059_v24 = vld [vmem:[%s14511_s0 + $0x8d8] sm:$0xf0] }
 0x321   :  { %v11889_v46 = vadd.f32 %v5336_v1, %v5168_v44  ;;  %v5002_v62 = vadd.f32 %v5001_v57, %v4833_v9  ;;  %4871 = vmatmul.bf16.gmra.mxu0 %v7986_v27  ;;  %v8054_v44 = vor.u32 %v9777_v8, %v8051_v47  ;;  %v8062_v9 = vor.u32 %v9778_v33, %v8059_v24  ;;  %v9801_v47 = vld [vmem:[%s14511_s0 + $0x94c] sm:$0xf0]  ;;  %v9802_v33 = vld [vmem:[%s14511_s0 + $0x954] sm:$0xf0]  ;;  %v9794_v24 = vld [vmem:[%s14511_s0 + $0x91c] sm:$0xf] }
 0x322   :  { %5040 = vmatmul.bf16.gmra.mxu1 %v7990_v14  ;;  %v8050_v14 = vor.u32 %v9785_v20, %v8049_v19 }
 0x323   :  { %5209 = vmatmul.bf16.gmra.mxu2 %v7994_v17 }
 0x324   :  { %5378 = vmatmul.bf16.gmra.mxu3 %v7998_v16 }
 0x326   :  { %v5170_v38 = vpop.f32.mrf.mxu2  ;;  %v4834_v18 = vpop.f32.mrf.mxu0 }
 0x327   :  { %v5339_v4 = vpop.f32.mrf.mxu3  ;;  %v5171_v34 = vadd.f32 %v5170_v38, %v5002_v62  ;;  %v5003_v49 = vpop.f32.mrf.mxu1  ;;  %v4835_v30 = vadd.f32 %v4834_v18, %v10908_v42  ;;  %v8057_v42 = vld [vmem:[%s14511_s0 + $0x898] sm:$0xf] }
 0x328   :  { %v8058_v16 = vor.u32 %v9786_v15, %v8057_v42  ;;  %v9793_v42 = vld [vmem:[%s14511_s0 + $0x914] sm:$0xf] }
 0x329   :  { %v11892_v40 = vadd.f32 %v5339_v4, %v5171_v34  ;;  %v5004_v39 = vadd.f32 %v5003_v49, %v4835_v30  ;;  %v8115_v15 = vld [vmem:[%s14511_s0 + $0x950] sm:$0xf0] }
 0x32e   :  { %v5172_v1 = vpop.f32.mrf.mxu2  ;;  %v4837_v57 = vpop.f32.mrf.mxu0 }
 0x32f   :  { %v5341_v27 = vpop.f32.mrf.mxu3  ;;  %v5173_v53 = vadd.f32 %v5172_v1, %v5004_v39  ;;  %v5006_v17 = vpop.f32.mrf.mxu1  ;;  %v4838_v62 = vadd.f32 %v4837_v57, %v10910_v54  ;;  %v8113_v54 = vld [vmem:[%s14511_s0 + $0x910] sm:$0xf]  ;;  %v8123_v1 = vld [vmem:[%s14511_s0 + $0x958] sm:$0xf0] }
 0x331   :  { %v11919_v38 = vadd.f32 %v5341_v27, %v5173_v53  ;;  %v5007_v4 = vadd.f32 %v5006_v17, %v4838_v62  ;;  %4876 = vmatmul.bf16.gmra.mxu0 %v8050_v14  ;;  %v8118_v53 = vor.u32 %v9793_v42, %v8115_v15  ;;  %v8126_v62 = vor.u32 %v9794_v24, %v8123_v1  ;;  %v8177_v24 = vld [vmem:[%s14511_s0 + $0x990] sm:$0xf] }
 0x332   :  { %5045 = vmatmul.bf16.gmra.mxu1 %v8054_v44  ;;  %v8114_v44 = vor.u32 %v9801_v47, %v8113_v54  ;;  %v9817_v1 = vld [vmem:[%s14511_s0 + $0x9cc] sm:$0xf0] }
 0x333   :  { %5214 = vmatmul.bf16.gmra.mxu2 %v8058_v16 }
 0x334   :  { %5383 = vmatmul.bf16.gmra.mxu3 %v8062_v9 }
 0x336   :  { %v5175_v34 = vpop.f32.mrf.mxu2  ;;  %v4839_v30 = vpop.f32.mrf.mxu0 }
 0x337   :  { %v5344_v18 = vpop.f32.mrf.mxu3  ;;  %v5176_v49 = vadd.f32 %v5175_v34, %v5007_v4  ;;  %v5008_v19 = vpop.f32.mrf.mxu1  ;;  %v4840_v39 = vadd.f32 %v4839_v30, %v10936_v13  ;;  %v8121_v13 = vld [vmem:[%s14511_s0 + $0x918] sm:$0xf]  ;;  %v10081_v30 = vld [vmem:[%s14510_s1 + $0x210] sm:$0xff] }
 0x338   :  { %v8122_v9 = vor.u32 %v9802_v33, %v8121_v13  ;;  %5464 = vmatpush.bf16.msra.mxu0 %v10081_v30  ;;  %v10089_v13 = vld [vmem:[%s14510_s1 + $0x250] sm:$0xff] }
 0x339   :  { %v11922_v20 = vadd.f32 %v5344_v18, %v5176_v49  ;;  %v5009_v8 = vadd.f32 %v5008_v19, %v4840_v39  ;;  %v10097_v49 = vld [vmem:[%s14510_s1 + $0x290] sm:$0xff]  ;;  %5633 = vmatpush.bf16.msra.mxu1 %v10089_v13 }
 0x33a   :  { %v10105_v19 = vld [vmem:[%s14510_s1 + $0x2d0] sm:$0xff]  ;;  %5802 = vmatpush.bf16.msra.mxu2 %v10097_v49 }
 0x33b   :  { %5971 = vmatpush.bf16.msra.mxu3 %v10105_v19 }
 0x33e   :  { %v5177_v27 = vpop.f32.mrf.mxu2  ;;  %v4842_v17 = vpop.f32.mrf.mxu0 }
 0x33f   :  { %v5346_v14 = vpop.f32.mrf.mxu3  ;;  %v5178_v57 = vadd.f32 %v5177_v27, %v5009_v8  ;;  %v5011_v16 = vpop.f32.mrf.mxu1  ;;  %v4843_v4 = vadd.f32 %v4842_v17, %v10947_v28  ;;  %v9809_v27 = vld [vmem:[%s14511_s0 + $0x994] sm:$0xf] }
 0x341   :  { %v11949_v34 = vadd.f32 %v5346_v14, %v5178_v57  ;;  %v5012_v18 = vadd.f32 %v5011_v16, %v4843_v4  ;;  %4881 = vmatmul.bf16.gmra.mxu0 %v8114_v44  ;;  %v8185_v14 = vld [vmem:[%s14511_s0 + $0x998] sm:$0xf]  ;;  %v8187_v57 = vld [vmem:[%s14511_s0 + $0x9d8] sm:$0xf0] }
 0x342   :  { %5050 = vmatmul.bf16.gmra.mxu1 %v8118_v53  ;;  %v9818_v44 = vld [vmem:[%s14511_s0 + $0x9d4] sm:$0xf0]  ;;  %v9810_v53 = vld [vmem:[%s14511_s0 + $0x99c] sm:$0xf] }
 0x343   :  { %5219 = vmatmul.bf16.gmra.mxu2 %v8122_v9  ;;  %v8178_v9 = vor.u32 %v9817_v1, %v8177_v24  ;;  %v8186_v30 = vor.u32 %v9818_v44, %v8185_v14  ;;  %v8190_v19 = vor.u32 %v9810_v53, %v8187_v57  ;;  %v9825_v14 = vld [vmem:[%s14511_s0 + $0xa14] sm:$0xf]  ;;  %v9834_v53 = vld [vmem:[%s14511_s0 + $0xa54] sm:$0xf0]  ;;  %v9826_v57 = vld [vmem:[%s14511_s0 + $0xa1c] sm:$0xf] }
 0x344   :  { %5388 = vmatmul.bf16.gmra.mxu3 %v8126_v62  ;;  %v8243_v44 = vld [vmem:[%s14511_s0 + $0xa50] sm:$0xf0] }
 0x346   :  { %v5180_v28 = vpop.f32.mrf.mxu2  ;;  %v4844_v54 = vpop.f32.mrf.mxu0 }
 0x347   :  { %v5349_v39 = vpop.f32.mrf.mxu3  ;;  %v5181_v8 = vadd.f32 %v5180_v28, %v5012_v18  ;;  %v5013_v47 = vpop.f32.mrf.mxu1  ;;  %v4845_v42 = vadd.f32 %v4844_v54, %v10976_v58  ;;  %v8179_v58 = vld [vmem:[%s14511_s0 + $0x9d0] sm:$0xf0] }
 0x348   :  { %v8182_v62 = vor.u32 %v9809_v27, %v8179_v58  ;;  %v9833_v58 = vld [vmem:[%s14511_s0 + $0xa4c] sm:$0xf0] }
 0x349   :  { %v11961_v15 = vadd.f32 %v5349_v39, %v5181_v8  ;;  %v5014_v33 = vadd.f32 %v5013_v47, %v4845_v42 }
 0x34e   :  { %v5182_v17 = vpop.f32.mrf.mxu2  ;;  %v4847_v18 = vpop.f32.mrf.mxu0 }
 0x34f   :  { %v5351_v16 = vpop.f32.mrf.mxu3  ;;  %v5183_v4 = vadd.f32 %v5182_v17, %v5014_v33  ;;  %v5016_v49 = vpop.f32.mrf.mxu1  ;;  %v4848_v28 = vadd.f32 %v4847_v18, %v10978_v2  ;;  %v8241_v2 = vld [vmem:[%s14511_s0 + $0xa10] sm:$0xf]  ;;  %v8251_v17 = vld [vmem:[%s14511_s0 + $0xa58] sm:$0xf0] }
 0x351   :  { %v11991_v39 = vadd.f32 %v5351_v16, %v5183_v4  ;;  %v5017_v8 = vadd.f32 %v5016_v49, %v4848_v28  ;;  %4886 = vmatmul.bf16.gmra.mxu0 %v8178_v9  ;;  %v8246_v4 = vor.u32 %v9825_v14, %v8243_v44  ;;  %v8254_v28 = vor.u32 %v9826_v57, %v8251_v17  ;;  %v9849_v44 = vld [vmem:[%s14511_s0 + $0xacc] sm:$0xf0]  ;;  %v9850_v57 = vld [vmem:[%s14511_s0 + $0xad4] sm:$0xf0]  ;;  %v9842_v17 = vld [vmem:[%s14511_s0 + $0xa9c] sm:$0xf] }
 0x352   :  { %5055 = vmatmul.bf16.gmra.mxu1 %v8182_v62  ;;  %v8242_v62 = vor.u32 %v9833_v58, %v8241_v2 }
 0x353   :  { %5224 = vmatmul.bf16.gmra.mxu2 %v8186_v30 }
 0x354   :  { %5393 = vmatmul.bf16.gmra.mxu3 %v8190_v19 }
 0x356   :  { %v5185_v54 = vpop.f32.mrf.mxu2  ;;  %v4849_v13 = vpop.f32.mrf.mxu0 }
 0x357   :  { %v5354_v47 = vpop.f32.mrf.mxu3  ;;  %v5186_v42 = vadd.f32 %v5185_v54, %v5017_v8  ;;  %v5018_v24 = vpop.f32.mrf.mxu1  ;;  %v4850_v33 = vadd.f32 %v4849_v13, %v11004_v31  ;;  %v8249_v31 = vld [vmem:[%s14511_s0 + $0xa18] sm:$0xf] }
 0x358   :  { %v8250_v19 = vor.u32 %v9834_v53, %v8249_v31  ;;  %v9841_v31 = vld [vmem:[%s14511_s0 + $0xa94] sm:$0xf] }
 0x359   :  { %v11994_v1 = vadd.f32 %v5354_v47, %v5186_v42  ;;  %v5019_v27 = vadd.f32 %v5018_v24, %v4850_v33  ;;  %v8307_v53 = vld [vmem:[%s14511_s0 + $0xad0] sm:$0xf0] }
 0x35e   :  { %v5187_v16 = vpop.f32.mrf.mxu2  ;;  %v4852_v49 = vpop.f32.mrf.mxu0 }
 0x35f   :  { %v5356_v9 = vpop.f32.mrf.mxu3  ;;  %v5188_v18 = vadd.f32 %v5187_v16, %v5019_v27  ;;  %v5021_v30 = vpop.f32.mrf.mxu1  ;;  %v4853_v8 = vadd.f32 %v4852_v49, %v11006_v41  ;;  %v8305_v41 = vld [vmem:[%s14511_s0 + $0xa90] sm:$0xf]  ;;  %v8315_v16 = vld [vmem:[%s14511_s0 + $0xad8] sm:$0xf0] }
 0x361   :  { %v12021_v54 = vadd.f32 %v5356_v9, %v5188_v18  ;;  %v5022_v47 = vadd.f32 %v5021_v30, %v4853_v8  ;;  %4891 = vmatmul.bf16.gmra.mxu0 %v8242_v62  ;;  %v8310_v18 = vor.u32 %v9841_v31, %v8307_v53  ;;  %v8318_v8 = vor.u32 %v9842_v17, %v8315_v16  ;;  %v9865_v53 = vld [vmem:[%s14511_s0 + $0xb4c] sm:$0xf0]  ;;  %v9866_v17 = vld [vmem:[%s14511_s0 + $0xb54] sm:$0xf0]  ;;  %v9858_v16 = vld [vmem:[%s14511_s0 + $0xb1c] sm:$0xf] }
 0x362   :  { %5060 = vmatmul.bf16.gmra.mxu1 %v8246_v4  ;;  %v8306_v4 = vor.u32 %v9849_v44, %v8305_v41 }
 0x363   :  { %5229 = vmatmul.bf16.gmra.mxu2 %v8250_v19 }
 0x364   :  { %5398 = vmatmul.bf16.gmra.mxu3 %v8254_v28 }
 0x366   :  { %v5190_v42 = vpop.f32.mrf.mxu2  ;;  %v4854_v33 = vpop.f32.mrf.mxu0 }
 0x367   :  { %v5359_v13 = vpop.f32.mrf.mxu3  ;;  %v5191_v24 = vadd.f32 %v5190_v42, %v5022_v47  ;;  %v5023_v2 = vpop.f32.mrf.mxu1  ;;  %v4855_v27 = vadd.f32 %v4854_v33, %v11032_v7  ;;  %v8313_v7 = vld [vmem:[%s14511_s0 + $0xa98] sm:$0xf] }
 0x368   :  { %v8314_v28 = vor.u32 %v9850_v57, %v8313_v7  ;;  %v9857_v7 = vld [vmem:[%s14511_s0 + $0xb14] sm:$0xf] }
 0x369   :  { %v12024_v58 = vadd.f32 %v5359_v13, %v5191_v24  ;;  %v5024_v14 = vadd.f32 %v5023_v2, %v4855_v27  ;;  %v8371_v57 = vld [vmem:[%s14511_s0 + $0xb50] sm:$0xf0] }
 0x36e   :  { %v5192_v9 = vpop.f32.mrf.mxu2  ;;  %v4857_v30 = vpop.f32.mrf.mxu0 }
 0x36f   :  { %v5361_v62 = vpop.f32.mrf.mxu3  ;;  %v5193_v49 = vadd.f32 %v5192_v9, %v5024_v14  ;;  %v5026_v19 = vpop.f32.mrf.mxu1  ;;  %v4858_v47 = vadd.f32 %v4857_v30, %v11034_v21  ;;  %v8369_v21 = vld [vmem:[%s14511_s0 + $0xb10] sm:$0xf]  ;;  %v8379_v9 = vld [vmem:[%s14511_s0 + $0xb58] sm:$0xf0] }
 0x371   :  { %v12051_v42 = vadd.f32 %v5361_v62, %v5193_v49  ;;  %v5027_v13 = vadd.f32 %v5026_v19, %v4858_v47  ;;  %4896 = vmatmul.bf16.gmra.mxu0 %v8306_v4  ;;  %v8374_v49 = vor.u32 %v9857_v7, %v8371_v57  ;;  %v8382_v47 = vor.u32 %v9858_v16, %v8379_v9  ;;  %v8433_v16 = vld [vmem:[%s14511_s0 + $0xb90] sm:$0xf] }
 0x372   :  { %5065 = vmatmul.bf16.gmra.mxu1 %v8310_v18  ;;  %v8370_v18 = vor.u32 %v9865_v53, %v8369_v21  ;;  %v9881_v9 = vld [vmem:[%s14511_s0 + $0xbcc] sm:$0xf0] }
 0x373   :  { %5234 = vmatmul.bf16.gmra.mxu2 %v8314_v28 }
 0x374   :  { %5403 = vmatmul.bf16.gmra.mxu3 %v8318_v8 }
 0x376   :  { %v5195_v24 = vpop.f32.mrf.mxu2  ;;  %v4859_v27 = vpop.f32.mrf.mxu0 }
 0x377   :  { %v5364_v33 = vpop.f32.mrf.mxu3  ;;  %v5196_v2 = vadd.f32 %v5195_v24, %v5027_v13  ;;  %v5028_v41 = vpop.f32.mrf.mxu1  ;;  %v4860_v14 = vadd.f32 %v4859_v27, %v11060_v51  ;;  %v8377_v51 = vld [vmem:[%s14511_s0 + $0xb18] sm:$0xf]  ;;  %v10080_v27 = vld [vmem:[%s14510_s1 + $0x208] sm:$0xff] }
 0x378   :  { %v8378_v8 = vor.u32 %v9866_v17, %v8377_v51  ;;  %5465 = vmatpush.bf16.msra.mxu0 %v10080_v27  ;;  %v10088_v51 = vld [vmem:[%s14510_s1 + $0x248] sm:$0xff] }
 0x379   :  { %v12054_v44 = vadd.f32 %v5364_v33, %v5196_v2  ;;  %v5029_v31 = vadd.f32 %v5028_v41, %v4860_v14  ;;  %v10096_v2 = vld [vmem:[%s14510_s1 + $0x288] sm:$0xff]  ;;  %5634 = vmatpush.bf16.msra.mxu1 %v10088_v51 }
 0x37a   :  { %v10104_v41 = vld [vmem:[%s14510_s1 + $0x2c8] sm:$0xff]  ;;  %5803 = vmatpush.bf16.msra.mxu2 %v10096_v2 }
 0x37b   :  { %5972 = vmatpush.bf16.msra.mxu3 %v10104_v41 }
 0x37e   :  { %v5197_v62 = vpop.f32.mrf.mxu2  ;;  %v4862_v19 = vpop.f32.mrf.mxu0 }
 0x37f   :  { %v5366_v4 = vpop.f32.mrf.mxu3  ;;  %v5198_v30 = vadd.f32 %v5197_v62, %v5029_v31  ;;  %v5031_v28 = vpop.f32.mrf.mxu1  ;;  %v4863_v13 = vadd.f32 %v4862_v19, %v11071_v3  ;;  %v9873_v62 = vld [vmem:[%s14511_s0 + $0xb94] sm:$0xf] }
 0x381   :  { %v12081_v24 = vadd.f32 %v5366_v4, %v5198_v30  ;;  %v5032_v33 = vadd.f32 %v5031_v28, %v4863_v13  ;;  %4901 = vmatmul.bf16.gmra.mxu0 %v8370_v18  ;;  %v8441_v4 = vld [vmem:[%s14511_s0 + $0xb98] sm:$0xf]  ;;  %v8443_v30 = vld [vmem:[%s14511_s0 + $0xbd8] sm:$0xf0] }
 0x382   :  { %5070 = vmatmul.bf16.gmra.mxu1 %v8374_v49  ;;  %v9882_v18 = vld [vmem:[%s14511_s0 + $0xbd4] sm:$0xf0]  ;;  %v9874_v49 = vld [vmem:[%s14511_s0 + $0xb9c] sm:$0xf] }
 0x383   :  { %5239 = vmatmul.bf16.gmra.mxu2 %v8378_v8  ;;  %v8434_v8 = vor.u32 %v9881_v9, %v8433_v16  ;;  %v8442_v27 = vor.u32 %v9882_v18, %v8441_v4  ;;  %v8446_v41 = vor.u32 %v9874_v49, %v8443_v30  ;;  %v9889_v4 = vld [vmem:[%s14511_s0 + $0xc14] sm:$0xf]  ;;  %v9898_v49 = vld [vmem:[%s14511_s0 + $0xc54] sm:$0xf0]  ;;  %v9890_v30 = vld [vmem:[%s14511_s0 + $0xc1c] sm:$0xf] }
 0x384   :  { %5408 = vmatmul.bf16.gmra.mxu3 %v8382_v47  ;;  %v8499_v18 = vld [vmem:[%s14511_s0 + $0xc50] sm:$0xf0] }
 0x386   :  { %v5200_v3 = vpop.f32.mrf.mxu2  ;;  %v4864_v21 = vpop.f32.mrf.mxu0 }
 0x387   :  { %v5369_v14 = vpop.f32.mrf.mxu3  ;;  %v5201_v31 = vadd.f32 %v5200_v3, %v5032_v33  ;;  %v5033_v53 = vpop.f32.mrf.mxu1  ;;  %v4865_v7 = vadd.f32 %v4864_v21, %v11100_v37  ;;  %v8435_v37 = vld [vmem:[%s14511_s0 + $0xbd0] sm:$0xf0] }
 0x388   :  { %v8438_v47 = vor.u32 %v9873_v62, %v8435_v37  ;;  %v9897_v37 = vld [vmem:[%s14511_s0 + $0xc4c] sm:$0xf0] }
 0x389   :  { %v12093_v57 = vadd.f32 %v5369_v14, %v5201_v31  ;;  %v5034_v17 = vadd.f32 %v5033_v53, %v4865_v7 }
 0x38e   :  { %v5202_v19 = vpop.f32.mrf.mxu2  ;;  %v4867_v33 = vpop.f32.mrf.mxu0 }
 0x38f   :  { %v5371_v28 = vpop.f32.mrf.mxu3  ;;  %v5203_v13 = vadd.f32 %v5202_v19, %v5034_v17  ;;  %v5036_v2 = vpop.f32.mrf.mxu1  ;;  %v4868_v3 = vadd.f32 %v4867_v33, %v11102_v55  ;;  %v8497_v55 = vld [vmem:[%s14511_s0 + $0xc10] sm:$0xf]  ;;  %v8507_v19 = vld [vmem:[%s14511_s0 + $0xc58] sm:$0xf0] }
 0x391   :  { %v12123_v14 = vadd.f32 %v5371_v28, %v5203_v13  ;;  %v5037_v31 = vadd.f32 %v5036_v2, %v4868_v3  ;;  %4906 = vmatmul.bf16.gmra.mxu0 %v8434_v8  ;;  %v8502_v13 = vor.u32 %v9889_v4, %v8499_v18  ;;  %v8510_v3 = vor.u32 %v9890_v30, %v8507_v19  ;;  %v9913_v18 = vld [vmem:[%s14511_s0 + $0xccc] sm:$0xf0]  ;;  %v9914_v30 = vld [vmem:[%s14511_s0 + $0xcd4] sm:$0xf0]  ;;  %v9906_v19 = vld [vmem:[%s14511_s0 + $0xc9c] sm:$0xf] }
 0x392   :  { %5075 = vmatmul.bf16.gmra.mxu1 %v8438_v47  ;;  %v8498_v47 = vor.u32 %v9897_v37, %v8497_v55 }
 0x393   :  { %5244 = vmatmul.bf16.gmra.mxu2 %v8442_v27 }
 0x394   :  { %5413 = vmatmul.bf16.gmra.mxu3 %v8446_v41 }
 0x396   :  { %v5205_v21 = vpop.f32.mrf.mxu2  ;;  %v4869_v51 = vpop.f32.mrf.mxu0 }
 0x397   :  { %v5374_v53 = vpop.f32.mrf.mxu3  ;;  %v5206_v7 = vadd.f32 %v5205_v21, %v5037_v31  ;;  %v5038_v16 = vpop.f32.mrf.mxu1  ;;  %v4870_v17 = vadd.f32 %v4869_v51, %v11128_v25  ;;  %v8505_v25 = vld [vmem:[%s14511_s0 + $0xc18] sm:$0xf] }
 0x398   :  { %v8506_v41 = vor.u32 %v9898_v49, %v8505_v25  ;;  %v9905_v25 = vld [vmem:[%s14511_s0 + $0xc94] sm:$0xf] }
 0x399   :  { %v12126_v9 = vadd.f32 %v5374_v53, %v5206_v7  ;;  %v5039_v62 = vadd.f32 %v5038_v16, %v4870_v17  ;;  %v8563_v49 = vld [vmem:[%s14511_s0 + $0xcd0] sm:$0xf0] }
 0x39e   :  { %v5207_v28 = vpop.f32.mrf.mxu2  ;;  %v4872_v2 = vpop.f32.mrf.mxu0 }
 0x39f   :  { %v5376_v8 = vpop.f32.mrf.mxu3  ;;  %v5208_v33 = vadd.f32 %v5207_v28, %v5039_v62  ;;  %v5041_v27 = vpop.f32.mrf.mxu1  ;;  %v4873_v31 = vadd.f32 %v4872_v2, %v11130_v35  ;;  %v8561_v35 = vld [vmem:[%s14511_s0 + $0xc90] sm:$0xf]  ;;  %v8571_v28 = vld [vmem:[%s14511_s0 + $0xcd8] sm:$0xf0] }
 0x3a1   :  { %v12153_v21 = vadd.f32 %v5376_v8, %v5208_v33  ;;  %v5042_v53 = vadd.f32 %v5041_v27, %v4873_v31  ;;  %4911 = vmatmul.bf16.gmra.mxu0 %v8498_v47  ;;  %v8566_v33 = vor.u32 %v9905_v25, %v8563_v49  ;;  %v8574_v31 = vor.u32 %v9906_v19, %v8571_v28  ;;  %v9929_v49 = vld [vmem:[%s14511_s0 + $0xd4c] sm:$0xf0]  ;;  %v9930_v19 = vld [vmem:[%s14511_s0 + $0xd54] sm:$0xf0]  ;;  %v9922_v28 = vld [vmem:[%s14511_s0 + $0xd1c] sm:$0xf] }
 0x3a2   :  { %5080 = vmatmul.bf16.gmra.mxu1 %v8502_v13  ;;  %v8562_v13 = vor.u32 %v9913_v18, %v8561_v35 }
 0x3a3   :  { %5249 = vmatmul.bf16.gmra.mxu2 %v8506_v41 }
 0x3a4   :  { %5418 = vmatmul.bf16.gmra.mxu3 %v8510_v3 }
 0x3a6   :  { %v5210_v7 = vpop.f32.mrf.mxu2  ;;  %v4874_v17 = vpop.f32.mrf.mxu0 }
 0x3a7   :  { %v5379_v51 = vpop.f32.mrf.mxu3  ;;  %v5211_v16 = vadd.f32 %v5210_v7, %v5042_v53  ;;  %v5043_v55 = vpop.f32.mrf.mxu1  ;;  %v4875_v62 = vadd.f32 %v4874_v17, %v11156_v11  ;;  %v8569_v11 = vld [vmem:[%s14511_s0 + $0xc98] sm:$0xf] }
 0x3a8   :  { %v8570_v3 = vor.u32 %v9914_v30, %v8569_v11  ;;  %v9921_v11 = vld [vmem:[%s14511_s0 + $0xd14] sm:$0xf] }
 0x3a9   :  { %v12156_v37 = vadd.f32 %v5379_v51, %v5211_v16  ;;  %v5044_v4 = vadd.f32 %v5043_v55, %v4875_v62  ;;  %v8627_v30 = vld [vmem:[%s14511_s0 + $0xd50] sm:$0xf0] }
 0x3ae   :  { %v5212_v8 = vpop.f32.mrf.mxu2  ;;  %v4877_v27 = vpop.f32.mrf.mxu0 }
 0x3af   :  { %v5381_v47 = vpop.f32.mrf.mxu3  ;;  %v5213_v2 = vadd.f32 %v5212_v8, %v5044_v4  ;;  %v5046_v41 = vpop.f32.mrf.mxu1  ;;  %v4878_v53 = vadd.f32 %v4877_v27, %v11158_v26  ;;  %v8625_v26 = vld [vmem:[%s14511_s0 + $0xd10] sm:$0xf]  ;;  %v8635_v8 = vld [vmem:[%s14511_s0 + $0xd58] sm:$0xf0] }
 0x3b1   :  { %v12183_v7 = vadd.f32 %v5381_v47, %v5213_v2  ;;  %v5047_v51 = vadd.f32 %v5046_v41, %v4878_v53  ;;  %4916 = vmatmul.bf16.gmra.mxu0 %v8562_v13  ;;  %v8630_v2 = vor.u32 %v9921_v11, %v8627_v30  ;;  %v8638_v53 = vor.u32 %v9922_v28, %v8635_v8  ;;  %v8689_v28 = vld [vmem:[%s14511_s0 + $0xd90] sm:$0xf] }
 0x3b2   :  { %5085 = vmatmul.bf16.gmra.mxu1 %v8566_v33  ;;  %v8626_v33 = vor.u32 %v9929_v49, %v8625_v26  ;;  %v9945_v8 = vld [vmem:[%s14511_s0 + $0xdcc] sm:$0xf0] }
 0x3b3   :  { %5254 = vmatmul.bf16.gmra.mxu2 %v8570_v3 }
 0x3b4   :  { %5423 = vmatmul.bf16.gmra.mxu3 %v8574_v31 }
 0x3b6   :  { %v5215_v16 = vpop.f32.mrf.mxu2  ;;  %v4879_v62 = vpop.f32.mrf.mxu0 }
 0x3b7   :  { %v5384_v17 = vpop.f32.mrf.mxu3  ;;  %v5216_v55 = vadd.f32 %v5215_v16, %v5047_v51  ;;  %v5048_v35 = vpop.f32.mrf.mxu1  ;;  %v4880_v4 = vadd.f32 %v4879_v62, %v11184_v0  ;;  %v8633_v0 = vld [vmem:[%s14511_s0 + $0xd18] sm:$0xf]  ;;  %v10079_v62 = vld [vmem:[%s14510_s1 + $0x200] sm:$0xff] }
 0x3b8   :  { %v8634_v31 = vor.u32 %v9930_v19, %v8633_v0  ;;  %5466 = vmatpush.bf16.msra.mxu0 %v10079_v62  ;;  %v10087_v0 = vld [vmem:[%s14510_s1 + $0x240] sm:$0xff] }
 0x3b9   :  { %v12186_v18 = vadd.f32 %v5384_v17, %v5216_v55  ;;  %v5049_v25 = vadd.f32 %v5048_v35, %v4880_v4  ;;  %v10095_v55 = vld [vmem:[%s14510_s1 + $0x280] sm:$0xff]  ;;  %5635 = vmatpush.bf16.msra.mxu1 %v10087_v0 }
 0x3ba   :  { %v10103_v35 = vld [vmem:[%s14510_s1 + $0x2c0] sm:$0xff]  ;;  %5804 = vmatpush.bf16.msra.mxu2 %v10095_v55 }
 0x3bb   :  { %5973 = vmatpush.bf16.msra.mxu3 %v10103_v35 }
 0x3be   :  { %v5217_v47 = vpop.f32.mrf.mxu2  ;;  %v4882_v41 = vpop.f32.mrf.mxu0 }
 0x3bf   :  { %v5386_v13 = vpop.f32.mrf.mxu3  ;;  %v5218_v27 = vadd.f32 %v5217_v47, %v5049_v25  ;;  %v5051_v3 = vpop.f32.mrf.mxu1  ;;  %v4883_v51 = vadd.f32 %v4882_v41, %v11195_v23  ;;  %v9937_v47 = vld [vmem:[%s14511_s0 + $0xd94] sm:$0xf] }
 0x3c1   :  { %v12213_v16 = vadd.f32 %v5386_v13, %v5218_v27  ;;  %v5052_v17 = vadd.f32 %v5051_v3, %v4883_v51  ;;  %4921 = vmatmul.bf16.gmra.mxu0 %v8626_v33  ;;  %v8697_v13 = vld [vmem:[%s14511_s0 + $0xd98] sm:$0xf]  ;;  %v8699_v27 = vld [vmem:[%s14511_s0 + $0xdd8] sm:$0xf0] }
 0x3c2   :  { %5090 = vmatmul.bf16.gmra.mxu1 %v8630_v2  ;;  %v9946_v33 = vld [vmem:[%s14511_s0 + $0xdd4] sm:$0xf0]  ;;  %v9938_v2 = vld [vmem:[%s14511_s0 + $0xd9c] sm:$0xf] }
 0x3c3   :  { %5259 = vmatmul.bf16.gmra.mxu2 %v8634_v31  ;;  %v8690_v31 = vor.u32 %v9945_v8, %v8689_v28  ;;  %v8698_v62 = vor.u32 %v9946_v33, %v8697_v13  ;;  %v8702_v35 = vor.u32 %v9938_v2, %v8699_v27  ;;  %v14540_v8 = vld [vmem:[#allocation3_spill] sm:$0xff]  ;;  %v8753_v13 = vld [vmem:[%s14511_s0 + $0xe10] sm:$0xf]  ;;  %v9953_v2 = vld [vmem:[%s14511_s0 + $0xe14] sm:$0xf] }
 0x3c4   :  { %5428 = vmatmul.bf16.gmra.mxu3 %v8638_v53  ;;  %v9961_v33 = vld [vmem:[%s14511_s0 + $0xe4c] sm:$0xf0]  ;;  %v8755_v27 = vld [vmem:[%s14511_s0 + $0xe50] sm:$0xf0] }
 0x3c6   :  { %v5220_v23 = vpop.f32.mrf.mxu2  ;;  %v4884_v26 = vpop.f32.mrf.mxu0 }
 0x3c7   :  { %v5389_v4 = vpop.f32.mrf.mxu3  ;;  %v5221_v25 = vadd.f32 %v5220_v23, %v5052_v17  ;;  %v5053_v49 = vpop.f32.mrf.mxu1  ;;  %v4885_v11 = vadd.f32 %v4884_v26, %v11224_v5  ;;  %v8691_v5 = vld [vmem:[%s14511_s0 + $0xdd0] sm:$0xf0]  ;;  %v14538_v23 = vld [vmem:[#allocation2_spill] sm:$0xff] }
 0x3c8   :  { %v8694_v53 = vor.u32 %v9937_v47, %v8691_v5 }
 0x3c9   :  { %v12225_v30 = vadd.f32 %v5389_v4, %v5221_v25  ;;  %v5054_v19 = vadd.f32 %v5053_v49, %v4885_v11 }
 0x3cb   :  { %14537 = vst [vmem:[#allocation26_spill] sm:$0xff] %v12225_v30 }
 0x3ce   :  { %v5222_v41 = vpop.f32.mrf.mxu2  ;;  %v4887_v17 = vpop.f32.mrf.mxu0 }
 0x3cf   :  { %v5391_v3 = vpop.f32.mrf.mxu3  ;;  %v5223_v51 = vadd.f32 %v5222_v41, %v5054_v19  ;;  %v5056_v55 = vpop.f32.mrf.mxu1  ;;  %v4888_v4 = vadd.f32 %v4887_v17, %v14538_v23  ;;  %v9962_v41 = vld [vmem:[%s14511_s0 + $0xe54] sm:$0xf0]  ;;  %v8754_v17 = vor.u32 %v9961_v33, %v8753_v13 }
 0x3d0   :  { %v14544_v33 = vld [vmem:[#allocation5_spill] sm:$0xff] }
 0x3d1   :  { %v12255_v25 = vadd.f32 %v5391_v3, %v5223_v51  ;;  %v5057_v26 = vadd.f32 %v5056_v55, %v4888_v4  ;;  %4926 = vmatmul.bf16.gmra.mxu0 %v8690_v31  ;;  %v9954_v3 = vld [vmem:[%s14511_s0 + $0xe1c] sm:$0xf]  ;;  %v8758_v55 = vor.u32 %v9953_v2, %v8755_v27 }
 0x3d2   :  { %5095 = vmatmul.bf16.gmra.mxu1 %v8694_v53  ;;  %v8763_v31 = vld [vmem:[%s14511_s0 + $0xe58] sm:$0xf0] }
 0x3d3   :  { %14539 = vst [vmem:[#allocation2_spill] sm:$0xff] %v12255_v25  ;;  %5264 = vmatmul.bf16.gmra.mxu2 %v8698_v62 }
 0x3d4   :  { %5433 = vmatmul.bf16.gmra.mxu3 %v8702_v35 }
 0x3d6   :  { %v5225_v49 = vpop.f32.mrf.mxu2  ;;  %v4889_v30 = vpop.f32.mrf.mxu0 }
 0x3d7   :  { %v5394_v11 = vpop.f32.mrf.mxu3  ;;  %v5226_v0 = vadd.f32 %v5225_v49, %v5057_v26  ;;  %v5058_v28 = vpop.f32.mrf.mxu1  ;;  %v4890_v19 = vadd.f32 %v4889_v30, %v14540_v8  ;;  %v8761_v30 = vld [vmem:[%s14511_s0 + $0xe18] sm:$0xf]  ;;  %v8766_v26 = vor.u32 %v9954_v3, %v8763_v31  ;;  %v14542_v49 = vld [vmem:[#allocation4_spill] sm:$0xff] }
 0x3d8   :  { %v8762_v4 = vor.u32 %v9962_v41, %v8761_v30  ;;  %v8817_v30 = vld [vmem:[%s14511_s0 + $0xe90] sm:$0xf]  ;;  %v9969_v3 = vld [vmem:[%s14511_s0 + $0xe94] sm:$0xf] }
 0x3d9   :  { %v12258_v47 = vadd.f32 %v5394_v11, %v5226_v0  ;;  %v5059_v5 = vadd.f32 %v5058_v28, %v4890_v19  ;;  %v9977_v41 = vld [vmem:[%s14511_s0 + $0xecc] sm:$0xf0]  ;;  %v8819_v31 = vld [vmem:[%s14511_s0 + $0xed0] sm:$0xf0] }
 0x3db   :  { %14541 = vst [vmem:[#allocation3_spill] sm:$0xff] %v12258_v47 }
 0x3de   :  { %v5227_v53 = vpop.f32.mrf.mxu2  ;;  %v4892_v35 = vpop.f32.mrf.mxu0 }
 0x3df   :  { %v5396_v51 = vpop.f32.mrf.mxu3  ;;  %v5228_v62 = vadd.f32 %v5227_v53, %v5059_v5  ;;  %v5061_v23 = vpop.f32.mrf.mxu1  ;;  %v4893_v11 = vadd.f32 %v4892_v35, %v14542_v49  ;;  %v9970_v53 = vld [vmem:[%s14511_s0 + $0xe9c] sm:$0xf]  ;;  %v8822_v35 = vor.u32 %v9969_v3, %v8819_v31 }
 0x3e1   :  { %v12285_v0 = vadd.f32 %v5396_v51, %v5228_v62  ;;  %v5062_v28 = vadd.f32 %v5061_v23, %v4893_v11  ;;  %4931 = vmatmul.bf16.gmra.mxu0 %v8754_v17  ;;  %v8827_v51 = vld [vmem:[%s14511_s0 + $0xed8] sm:$0xf0]  ;;  %v8818_v62 = vor.u32 %v9977_v41, %v8817_v30  ;;  %v14548_v41 = vld [vmem:[#allocation7_spill] sm:$0xff] }
 0x3e2   :  { %5100 = vmatmul.bf16.gmra.mxu1 %v8758_v55  ;;  %v8830_v11 = vor.u32 %v9970_v53, %v8827_v51  ;;  %v9985_v53 = vld [vmem:[%s14511_s0 + $0xf14] sm:$0xf] }
 0x3e3   :  { %14543 = vst [vmem:[#allocation4_spill] sm:$0xff] %v12285_v0  ;;  %5269 = vmatmul.bf16.gmra.mxu2 %v8762_v4  ;;  %v8883_v51 = vld [vmem:[%s14511_s0 + $0xf50] sm:$0xf0] }
 0x3e4   :  { %5438 = vmatmul.bf16.gmra.mxu3 %v8766_v26 }
 0x3e6   :  { %v5230_v8 = vpop.f32.mrf.mxu2  ;;  %v4894_v25 = vpop.f32.mrf.mxu0 }
 0x3e7   :  { %v5399_v19 = vpop.f32.mrf.mxu3  ;;  %v5231_v47 = vadd.f32 %v5230_v8, %v5062_v28  ;;  %v5063_v13 = vpop.f32.mrf.mxu1  ;;  %v4895_v5 = vadd.f32 %v4894_v25, %v14544_v33  ;;  %v8825_v25 = vld [vmem:[%s14511_s0 + $0xe98] sm:$0xf]  ;;  %v14546_v28 = vld [vmem:[#allocation6_spill] sm:$0xff] }
 0x3e9   :  { %v12288_v2 = vadd.f32 %v5399_v19, %v5231_v47  ;;  %v5064_v27 = vadd.f32 %v5063_v13, %v4895_v5  ;;  %v9978_v47 = vld [vmem:[%s14511_s0 + $0xed4] sm:$0xf0] }
 0x3ea   :  { %v8826_v49 = vor.u32 %v9978_v47, %v8825_v25  ;;  %v8881_v25 = vld [vmem:[%s14511_s0 + $0xf10] sm:$0xf] }
 0x3eb   :  { %14545 = vst [vmem:[#allocation5_spill] sm:$0xff] %v12288_v2  ;;  %v9993_v47 = vld [vmem:[%s14511_s0 + $0xf4c] sm:$0xf0] }
 0x3ee   :  { %v5232_v17 = vpop.f32.mrf.mxu2  ;;  %v4897_v4 = vpop.f32.mrf.mxu0 }
 0x3ef   :  { %v5401_v55 = vpop.f32.mrf.mxu3  ;;  %v5233_v23 = vadd.f32 %v5232_v17, %v5064_v27  ;;  %v5066_v26 = vpop.f32.mrf.mxu1  ;;  %v4898_v8 = vadd.f32 %v4897_v4, %v14546_v28  ;;  %v9986_v17 = vld [vmem:[%s14511_s0 + $0xf1c] sm:$0xf]  ;;  %v8886_v4 = vor.u32 %v9985_v53, %v8883_v51 }
 0x3f1   :  { %v12315_v19 = vadd.f32 %v5401_v55, %v5233_v23  ;;  %v5067_v13 = vadd.f32 %v5066_v26, %v4898_v8  ;;  %4936 = vmatmul.bf16.gmra.mxu0 %v8818_v62  ;;  %v8891_v55 = vld [vmem:[%s14511_s0 + $0xf58] sm:$0xf0]  ;;  %v8882_v23 = vor.u32 %v9993_v47, %v8881_v25 }
 0x3f2   :  { %5105 = vmatmul.bf16.gmra.mxu1 %v8822_v35  ;;  %v8894_v8 = vor.u32 %v9986_v17, %v8891_v55 }
 0x3f3   :  { %14547 = vst [vmem:[#allocation6_spill] sm:$0xff] %v12315_v19  ;;  %5274 = vmatmul.bf16.gmra.mxu2 %v8826_v49 }
 0x3f4   :  { %5443 = vmatmul.bf16.gmra.mxu3 %v8830_v11 }
 0x3f6   :  { %v5235_v33 = vpop.f32.mrf.mxu2  ;;  %v4899_v0 = vpop.f32.mrf.mxu0 }
 0x3f7   :  { %v5404_v5 = vpop.f32.mrf.mxu3  ;;  %v5236_v2 = vadd.f32 %v5235_v33, %v5067_v13  ;;  %v5068_v30 = vpop.f32.mrf.mxu1  ;;  %v4900_v27 = vadd.f32 %v4899_v0, %v14548_v41  ;;  %v8889_v0 = vld [vmem:[%s14511_s0 + $0xf18] sm:$0xf]  ;;  %v14550_v13 = vld [vmem:[#allocation8_spill] sm:$0xff] }
 0x3f8   :  { %v10134_v41 = vld [vmem:[%s14510_s1 + $0x3b8] sm:$0xff] }
 0x3f9   :  { %v12318_v3 = vadd.f32 %v5404_v5, %v5236_v2  ;;  %v5069_v31 = vadd.f32 %v5068_v30, %v4900_v27  ;;  %v9994_v2 = vld [vmem:[%s14511_s0 + $0xf54] sm:$0xf0]  ;;  %6473 = vmatpush.bf16.msrb.mxu2 %v10134_v41 }
 0x3fa   :  { %v8890_v28 = vor.u32 %v9994_v2, %v8889_v0  ;;  %v10118_v27 = vld [vmem:[%s14510_s1 + $0x338] sm:$0xff] }
 0x3fb   :  { %14549 = vst [vmem:[#allocation7_spill] sm:$0xff] %v12318_v3  ;;  %6135 = vmatpush.bf16.msrb.mxu0 %v10118_v27  ;;  %v14552_v2 = vld [vmem:[#allocation9_spill] sm:$0xff] }
 0x3fe   :  { %v5237_v62 = vpop.f32.mrf.mxu2  ;;  %v4902_v49 = vpop.f32.mrf.mxu0 }
 0x3ff   :  { %v5406_v35 = vpop.f32.mrf.mxu3  ;;  %v5238_v26 = vadd.f32 %v5237_v62, %v5069_v31  ;;  %v5071_v11 = vpop.f32.mrf.mxu1  ;;  %v4903_v33 = vadd.f32 %v4902_v49, %v14550_v13  ;;  %v10142_v31 = vld [vmem:[%s14510_s1 + $0x3f8] sm:$0xff]  ;;  %v8947_v49 = vld [vmem:[%s14511_s0 + $0xfd0] sm:$0xf0] }
 0x400   :  { %6642 = vmatpush.bf16.msrb.mxu3 %v10142_v31  ;;  %v10126_v62 = vld [vmem:[%s14510_s1 + $0x378] sm:$0xff] }
 0x401   :  { %v12345_v5 = vadd.f32 %v5406_v35, %v5238_v26  ;;  %v5072_v30 = vadd.f32 %v5071_v11, %v4903_v33  ;;  %4941 = vmatmul.bf16.gmra.mxu0 %v8882_v23  ;;  %v8945_v23 = vld [vmem:[%s14511_s0 + $0xf90] sm:$0xf]  ;;  %v10001_v26 = vld [vmem:[%s14511_s0 + $0xf94] sm:$0xf]  ;;  %v8953_v11 = vld [vmem:[%s14511_s0 + $0xf98] sm:$0xf]  ;;  %6304 = vmatpush.bf16.msrb.mxu1 %v10126_v62 }
 0x402   :  { %5110 = vmatmul.bf16.gmra.mxu1 %v8886_v4  ;;  %v10009_v4 = vld [vmem:[%s14511_s0 + $0xfcc] sm:$0xf0]  ;;  %v8955_v13 = vld [vmem:[%s14511_s0 + $0xfd8] sm:$0xf0]  ;;  %v8950_v27 = vor.u32 %v10001_v26, %v8947_v49 }
 0x403   :  { %14551 = vst [vmem:[#allocation8_spill] sm:$0xff] %v12345_v5  ;;  %5279 = vmatmul.bf16.gmra.mxu2 %v8890_v28  ;;  %v10010_v28 = vld [vmem:[%s14511_s0 + $0xfd4] sm:$0xf0]  ;;  %v8946_v41 = vor.u32 %v10009_v4, %v8945_v23  ;;  %v14556_v4 = vld [vmem:[#allocation11_spill] sm:$0xff] }
 0x404   :  { %5448 = vmatmul.bf16.gmra.mxu3 %v8894_v8  ;;  %v10002_v8 = vld [vmem:[%s14511_s0 + $0xf9c] sm:$0xf] }
 0x406   :  { %v5240_v25 = vpop.f32.mrf.mxu2  ;;  %v4904_v51 = vpop.f32.mrf.mxu0 }
 0x407   :  { %v5409_v47 = vpop.f32.mrf.mxu3  ;;  %v5241_v53 = vadd.f32 %v5240_v25, %v5072_v30  ;;  %v5073_v0 = vpop.f32.mrf.mxu1  ;;  %v4905_v17 = vadd.f32 %v4904_v51, %v14552_v2  ;;  %v8958_v51 = vor.u32 %v10002_v8, %v8955_v13  ;;  %v9507_v8 = vld [vmem:[%s14511_s0 + $0x24] sm:$0xf]  ;;  %v6987_v13 = vld [vmem:[%s14511_s0 + $0x68] sm:$0xf0] }
 0x409   :  { %v12357_v55 = vadd.f32 %v5409_v47, %v5241_v53  ;;  %v5074_v35 = vadd.f32 %v5073_v0, %v4905_v17  ;;  %v8954_v53 = vor.u32 %v10010_v28, %v8953_v11  ;;  %v14554_v0 = vld [vmem:[#allocation10_spill] sm:$0xff] }
 0x40a   :  { %v6977_v11 = vld [vmem:[%s14511_s0 + $0x20] sm:$0xf] }
 0x40b   :  { %14553 = vst [vmem:[#allocation9_spill] sm:$0xff] %v12357_v55  ;;  %v9515_v28 = vld [vmem:[%s14511_s0 + $0x5c] sm:$0xf0] }
 0x40e   :  { %v5242_v33 = vpop.f32.mrf.mxu2  ;;  %v4907_v25 = vpop.f32.mrf.mxu0 }
 0x40f   :  { %v5411_v30 = vpop.f32.mrf.mxu3  ;;  %v5243_v31 = vadd.f32 %v5242_v33, %v5074_v35  ;;  %v5076_v47 = vpop.f32.mrf.mxu1  ;;  %v4908_v2 = vadd.f32 %v4907_v25, %v14554_v0  ;;  %v14558_v0 = vld [vmem:[#allocation12_spill] sm:$0xff] }
 0x411   :  { %v12387_v17 = vadd.f32 %v5411_v30, %v5243_v31  ;;  %v5077_v62 = vadd.f32 %v5076_v47, %v4908_v2  ;;  %4946 = vmatmul.bf16.gmra.mxu0 %v8946_v41  ;;  %v6978_v41 = vor.u32 %v9515_v28, %v6977_v11  ;;  %v14560_v28 = vld [vmem:[#allocation13_spill] sm:$0xff] }
 0x412   :  { %5115 = vmatmul.bf16.gmra.mxu1 %v8950_v27 }
 0x413   :  { %14555 = vst [vmem:[#allocation10_spill] sm:$0xff] %v12387_v17  ;;  %5284 = vmatmul.bf16.gmra.mxu2 %v8954_v53 }
 0x414   :  { %5453 = vmatmul.bf16.gmra.mxu3 %v8958_v51 }
 0x416   :  { %v5245_v55 = vpop.f32.mrf.mxu2  ;;  %v4909_v19 = vpop.f32.mrf.mxu0 }
 0x417   :  { %v5414_v5 = vpop.f32.mrf.mxu3  ;;  %v5246_v3 = vadd.f32 %v5245_v55, %v5077_v62  ;;  %v5078_v23 = vpop.f32.mrf.mxu1  ;;  %v4910_v35 = vadd.f32 %v4909_v19, %v14556_v4  ;;  %v6979_v55 = vld [vmem:[%s14511_s0 + $0x60] sm:$0xf0]  ;;  %v6985_v19 = vld [vmem:[%s14511_s0 + $0x28] sm:$0xf] }
 0x418   :  { %v6982_v27 = vor.u32 %v9507_v8, %v6979_v55 }
 0x419   :  { %v12390_v26 = vadd.f32 %v5414_v5, %v5246_v3  ;;  %v5079_v49 = vadd.f32 %v5078_v23, %v4910_v35  ;;  %v9516_v3 = vld [vmem:[%s14511_s0 + $0x64] sm:$0xf0]  ;;  %v9508_v5 = vld [vmem:[%s14511_s0 + $0x2c] sm:$0xf] }
 0x41a   :  { %v6986_v53 = vor.u32 %v9516_v3, %v6985_v19  ;;  %v6990_v51 = vor.u32 %v9508_v5, %v6987_v13  ;;  %v7041_v19 = vld [vmem:[%s14511_s0 + $0xa0] sm:$0xf]  ;;  %v9523_v5 = vld [vmem:[%s14511_s0 + $0xa4] sm:$0xf] }
 0x41b   :  { %14557 = vst [vmem:[#allocation11_spill] sm:$0xff] %v12390_v26  ;;  %v9531_v3 = vld [vmem:[%s14511_s0 + $0xdc] sm:$0xf0]  ;;  %v7043_v13 = vld [vmem:[%s14511_s0 + $0xe0] sm:$0xf0] }
 0x41e   :  { %v5247_v33 = vpop.f32.mrf.mxu2  ;;  %v4912_v25 = vpop.f32.mrf.mxu0 }
 0x41f   :  { %v5416_v30 = vpop.f32.mrf.mxu3  ;;  %v5248_v31 = vadd.f32 %v5247_v33, %v5079_v49  ;;  %v5081_v47 = vpop.f32.mrf.mxu1  ;;  %v4913_v2 = vadd.f32 %v4912_v25, %v14558_v0  ;;  %v9524_v33 = vld [vmem:[%s14511_s0 + $0xac] sm:$0xf]  ;;  %v7046_v25 = vor.u32 %v9523_v5, %v7043_v13 }
 0x421   :  { %v12417_v62 = vadd.f32 %v5416_v30, %v5248_v31  ;;  %v5082_v23 = vadd.f32 %v5081_v47, %v4913_v2  ;;  %5467 = vmatmul.bf16.vlgmr.msra.gmra.mxu0 %v6978_v41  ;;  %v7051_v30 = vld [vmem:[%s14511_s0 + $0xe8] sm:$0xf0]  ;;  %v7042_v31 = vor.u32 %v9531_v3, %v7041_v19 }
 0x422   :  { %5636 = vmatmul.bf16.vlgmr.msra.gmra.mxu1 %v6982_v27  ;;  %v7054_v2 = vor.u32 %v9524_v33, %v7051_v30  ;;  %v14564_v3 = vld [vmem:[#allocation15_spill] sm:$0xff]  ;;  %v9539_v33 = vld [vmem:[%s14511_s0 + $0x124] sm:$0xf] }
 0x423   :  { %14559 = vst [vmem:[#allocation12_spill] sm:$0xff] %v12417_v62  ;;  %5805 = vmatmul.bf16.vlgmr.msra.gmra.mxu2 %v6986_v53  ;;  %v7107_v30 = vld [vmem:[%s14511_s0 + $0x160] sm:$0xf0] }
 0x424   :  { %5974 = vmatmul.bf16.vlgmr.msra.gmra.mxu3 %v6990_v51 }
 0x426   :  { %v5250_v4 = vpop.f32.mrf.mxu2  ;;  %v4914_v17 = vpop.f32.mrf.mxu0 }
 0x427   :  { %v5419_v35 = vpop.f32.mrf.mxu3  ;;  %v5251_v26 = vadd.f32 %v5250_v4, %v5082_v23  ;;  %v5083_v11 = vpop.f32.mrf.mxu1  ;;  %v4915_v49 = vadd.f32 %v4914_v17, %v14560_v28  ;;  %v7049_v17 = vld [vmem:[%s14511_s0 + $0xa8] sm:$0xf]  ;;  %v14562_v23 = vld [vmem:[#allocation14_spill] sm:$0xff] }
 0x429   :  { %v12420_v8 = vadd.f32 %v5419_v35, %v5251_v26  ;;  %v5084_v55 = vadd.f32 %v5083_v11, %v4915_v49  ;;  %v9532_v26 = vld [vmem:[%s14511_s0 + $0xe4] sm:$0xf0] }
 0x42a   :  { %v7050_v0 = vor.u32 %v9532_v26, %v7049_v17  ;;  %v7105_v17 = vld [vmem:[%s14511_s0 + $0x120] sm:$0xf] }
 0x42b   :  { %14561 = vst [vmem:[#allocation13_spill] sm:$0xff] %v12420_v8  ;;  %v9547_v26 = vld [vmem:[%s14511_s0 + $0x15c] sm:$0xf0] }
 0x42e   :  { %v5252_v41 = vpop.f32.mrf.mxu2  ;;  %v4917_v53 = vpop.f32.mrf.mxu0 }
 0x42f   :  { %v5421_v27 = vpop.f32.mrf.mxu3  ;;  %v5253_v47 = vadd.f32 %v5252_v41, %v5084_v55  ;;  %v5086_v51 = vpop.f32.mrf.mxu1  ;;  %v4918_v4 = vadd.f32 %v4917_v53, %v14562_v23  ;;  %v9540_v41 = vld [vmem:[%s14511_s0 + $0x12c] sm:$0xf]  ;;  %v7110_v53 = vor.u32 %v9539_v33, %v7107_v30 }
 0x431   :  { %v12447_v35 = vadd.f32 %v5421_v27, %v5253_v47  ;;  %v5087_v11 = vadd.f32 %v5086_v51, %v4918_v4  ;;  %5472 = vmatmul.bf16.gmra.mxu0 %v7042_v31  ;;  %v7115_v27 = vld [vmem:[%s14511_s0 + $0x168] sm:$0xf0]  ;;  %v7106_v47 = vor.u32 %v9547_v26, %v7105_v17 }
 0x432   :  { %5641 = vmatmul.bf16.gmra.mxu1 %v7046_v25  ;;  %v7118_v4 = vor.u32 %v9540_v41, %v7115_v27 }
 0x433   :  { %14563 = vst [vmem:[#allocation14_spill] sm:$0xff] %v12447_v35  ;;  %5810 = vmatmul.bf16.gmra.mxu2 %v7050_v0 }
 0x434   :  { %5979 = vmatmul.bf16.gmra.mxu3 %v7054_v2 }
 0x436   :  { %v5255_v28 = vpop.f32.mrf.mxu2  ;;  %v4919_v62 = vpop.f32.mrf.mxu0 }
 0x437   :  { %v5424_v49 = vpop.f32.mrf.mxu3  ;;  %v5256_v8 = vadd.f32 %v5255_v28, %v5087_v11  ;;  %v5088_v19 = vpop.f32.mrf.mxu1  ;;  %v4920_v55 = vadd.f32 %v4919_v62, %v14564_v3  ;;  %v7113_v62 = vld [vmem:[%s14511_s0 + $0x128] sm:$0xf]  ;;  %v14566_v11 = vld [vmem:[#allocation16_spill] sm:$0xff] }
 0x438   :  { %v10133_v3 = vld [vmem:[%s14510_s1 + $0x3b0] sm:$0xff] }
 0x439   :  { %v12450_v5 = vadd.f32 %v5424_v49, %v5256_v8  ;;  %v5089_v13 = vadd.f32 %v5088_v19, %v4920_v55  ;;  %v9548_v8 = vld [vmem:[%s14511_s0 + $0x164] sm:$0xf0]  ;;  %v10117_v55 = vld [vmem:[%s14510_s1 + $0x330] sm:$0xff]  ;;  %6474 = vmatpush.bf16.msrb.mxu2 %v10133_v3 }
 0x43a   :  { %v7114_v23 = vor.u32 %v9548_v8, %v7113_v62  ;;  %6136 = vmatpush.bf16.msrb.mxu0 %v10117_v55  ;;  %v14568_v8 = vld [vmem:[#allocation17_spill] sm:$0xff] }
 0x43b   :  { %14565 = vst [vmem:[#allocation15_spill] sm:$0xff] %v12450_v5 }
 0x43e   :  { %v5257_v31 = vpop.f32.mrf.mxu2  ;;  %v4922_v0 = vpop.f32.mrf.mxu0 }
 0x43f   :  { %v5426_v25 = vpop.f32.mrf.mxu3  ;;  %v5258_v51 = vadd.f32 %v5257_v31, %v5089_v13  ;;  %v5091_v2 = vpop.f32.mrf.mxu1  ;;  %v4923_v28 = vadd.f32 %v4922_v0, %v14566_v11  ;;  %v10141_v13 = vld [vmem:[%s14510_s1 + $0x3f0] sm:$0xff]  ;;  %v7171_v0 = vld [vmem:[%s14511_s0 + $0x1e0] sm:$0xf0]  ;;  %v7179_v11 = vld [vmem:[%s14511_s0 + $0x1e8] sm:$0xf0] }
 0x440   :  { %6643 = vmatpush.bf16.msrb.mxu3 %v10141_v13  ;;  %v10125_v31 = vld [vmem:[%s14510_s1 + $0x370] sm:$0xff] }
 0x441   :  { %v12477_v49 = vadd.f32 %v5426_v25, %v5258_v51  ;;  %v5092_v19 = vadd.f32 %v5091_v2, %v4923_v28  ;;  %5477 = vmatmul.bf16.gmra.mxu0 %v7106_v47  ;;  %v7169_v47 = vld [vmem:[%s14511_s0 + $0x1a0] sm:$0xf]  ;;  %v9555_v51 = vld [vmem:[%s14511_s0 + $0x1a4] sm:$0xf]  ;;  %v7177_v2 = vld [vmem:[%s14511_s0 + $0x1a8] sm:$0xf]  ;;  %6305 = vmatpush.bf16.msrb.mxu1 %v10125_v31 }
 0x442   :  { %5646 = vmatmul.bf16.gmra.mxu1 %v7110_v53  ;;  %v9563_v53 = vld [vmem:[%s14511_s0 + $0x1dc] sm:$0xf0]  ;;  %v7174_v55 = vor.u32 %v9555_v51, %v7171_v0 }
 0x443   :  { %14567 = vst [vmem:[#allocation16_spill] sm:$0xff] %v12477_v49  ;;  %5815 = vmatmul.bf16.gmra.mxu2 %v7114_v23  ;;  %v9564_v23 = vld [vmem:[%s14511_s0 + $0x1e4] sm:$0xf0]  ;;  %v7170_v3 = vor.u32 %v9563_v53, %v7169_v47 }
 0x444   :  { %5984 = vmatmul.bf16.gmra.mxu3 %v7118_v4  ;;  %v9556_v4 = vld [vmem:[%s14511_s0 + $0x1ac] sm:$0xf] }
 0x445   :  { %v14572_v53 = vld [vmem:[#allocation19_spill] sm:$0xff] }
 0x446   :  { %v5260_v17 = vpop.f32.mrf.mxu2  ;;  %v4924_v30 = vpop.f32.mrf.mxu0 }
 0x447   :  { %v5429_v26 = vpop.f32.mrf.mxu3  ;;  %v5261_v33 = vadd.f32 %v5260_v17, %v5092_v19  ;;  %v5093_v62 = vpop.f32.mrf.mxu1  ;;  %v4925_v41 = vadd.f32 %v4924_v30, %v14568_v8  ;;  %v7182_v30 = vor.u32 %v9556_v4, %v7179_v11  ;;  %v9571_v4 = vld [vmem:[%s14511_s0 + $0x224] sm:$0xf]  ;;  %v7243_v11 = vld [vmem:[%s14511_s0 + $0x268] sm:$0xf0] }
 0x449   :  { %v12489_v27 = vadd.f32 %v5429_v26, %v5261_v33  ;;  %v5094_v25 = vadd.f32 %v5093_v62, %v4925_v41  ;;  %v7178_v33 = vor.u32 %v9564_v23, %v7177_v2  ;;  %v14570_v62 = vld [vmem:[#allocation18_spill] sm:$0xff] }
 0x44a   :  { %v7233_v2 = vld [vmem:[%s14511_s0 + $0x220] sm:$0xf] }
 0x44b   :  { %14569 = vst [vmem:[#allocation17_spill] sm:$0xff] %v12489_v27  ;;  %v9579_v23 = vld [vmem:[%s14511_s0 + $0x25c] sm:$0xf0] }
 0x44e   :  { %v5262_v28 = vpop.f32.mrf.mxu2  ;;  %v4927_v17 = vpop.f32.mrf.mxu0 }
 0x44f   :  { %v5431_v19 = vpop.f32.mrf.mxu3  ;;  %v5263_v13 = vadd.f32 %v5262_v28, %v5094_v25  ;;  %v5096_v26 = vpop.f32.mrf.mxu1  ;;  %v4928_v8 = vadd.f32 %v4927_v17, %v14570_v62  ;;  %v14574_v62 = vld [vmem:[#allocation20_spill] sm:$0xff] }
 0x451   :  { %v12519_v41 = vadd.f32 %v5431_v19, %v5263_v13  ;;  %v5097_v31 = vadd.f32 %v5096_v26, %v4928_v8  ;;  %5482 = vmatmul.bf16.gmra.mxu0 %v7170_v3  ;;  %v7234_v3 = vor.u32 %v9579_v23, %v7233_v2  ;;  %v14576_v23 = vld [vmem:[#allocation21_spill] sm:$0xff] }
 0x452   :  { %5651 = vmatmul.bf16.gmra.mxu1 %v7174_v55 }
 0x453   :  { %14571 = vst [vmem:[#allocation18_spill] sm:$0xff] %v12519_v41  ;;  %5820 = vmatmul.bf16.gmra.mxu2 %v7178_v33 }
 0x454   :  { %5989 = vmatmul.bf16.gmra.mxu3 %v7182_v30 }
 0x456   :  { %v5265_v27 = vpop.f32.mrf.mxu2  ;;  %v4929_v35 = vpop.f32.mrf.mxu0 }
 0x457   :  { %v5434_v49 = vpop.f32.mrf.mxu3  ;;  %v5266_v5 = vadd.f32 %v5265_v27, %v5097_v31  ;;  %v5098_v47 = vpop.f32.mrf.mxu1  ;;  %v4930_v25 = vadd.f32 %v4929_v35, %v14572_v53  ;;  %v7235_v27 = vld [vmem:[%s14511_s0 + $0x260] sm:$0xf0]  ;;  %v7241_v35 = vld [vmem:[%s14511_s0 + $0x228] sm:$0xf] }
 0x458   :  { %v7238_v55 = vor.u32 %v9571_v4, %v7235_v27 }
 0x459   :  { %v12522_v51 = vadd.f32 %v5434_v49, %v5266_v5  ;;  %v5099_v0 = vadd.f32 %v5098_v47, %v4930_v25  ;;  %v9580_v5 = vld [vmem:[%s14511_s0 + $0x264] sm:$0xf0]  ;;  %v9572_v49 = vld [vmem:[%s14511_s0 + $0x22c] sm:$0xf] }
 0x45a   :  { %v7242_v33 = vor.u32 %v9580_v5, %v7241_v35  ;;  %v7246_v30 = vor.u32 %v9572_v49, %v7243_v11  ;;  %v7297_v35 = vld [vmem:[%s14511_s0 + $0x2a0] sm:$0xf]  ;;  %v9587_v49 = vld [vmem:[%s14511_s0 + $0x2a4] sm:$0xf] }
 0x45b   :  { %14573 = vst [vmem:[#allocation19_spill] sm:$0xff] %v12522_v51  ;;  %v9595_v5 = vld [vmem:[%s14511_s0 + $0x2dc] sm:$0xf0]  ;;  %v7299_v11 = vld [vmem:[%s14511_s0 + $0x2e0] sm:$0xf0] }
 0x45e   :  { %v5267_v28 = vpop.f32.mrf.mxu2  ;;  %v4932_v17 = vpop.f32.mrf.mxu0 }
 0x45f   :  { %v5436_v19 = vpop.f32.mrf.mxu3  ;;  %v5268_v13 = vadd.f32 %v5267_v28, %v5099_v0  ;;  %v5101_v26 = vpop.f32.mrf.mxu1  ;;  %v4933_v8 = vadd.f32 %v4932_v17, %v14574_v62  ;;  %v9588_v28 = vld [vmem:[%s14511_s0 + $0x2ac] sm:$0xf]  ;;  %v7302_v17 = vor.u32 %v9587_v49, %v7299_v11 }
 0x461   :  { %v12549_v31 = vadd.f32 %v5436_v19, %v5268_v13  ;;  %v5102_v47 = vadd.f32 %v5101_v26, %v4933_v8  ;;  %5487 = vmatmul.bf16.gmra.mxu0 %v7234_v3  ;;  %v7307_v19 = vld [vmem:[%s14511_s0 + $0x2e8] sm:$0xf0]  ;;  %v7298_v13 = vor.u32 %v9595_v5, %v7297_v35 }
 0x462   :  { %5656 = vmatmul.bf16.gmra.mxu1 %v7238_v55  ;;  %v7310_v8 = vor.u32 %v9588_v28, %v7307_v19  ;;  %v14579_v5 = vld [vmem:[#allocation23_spill] sm:$0xff]  ;;  %v9603_v28 = vld [vmem:[%s14511_s0 + $0x324] sm:$0xf] }
 0x463   :  { %14575 = vst [vmem:[#allocation20_spill] sm:$0xff] %v12549_v31  ;;  %5825 = vmatmul.bf16.gmra.mxu2 %v7242_v33  ;;  %v7363_v19 = vld [vmem:[%s14511_s0 + $0x360] sm:$0xf0] }
 0x464   :  { %5994 = vmatmul.bf16.gmra.mxu3 %v7246_v30 }
 0x466   :  { %v5270_v53 = vpop.f32.mrf.mxu2  ;;  %v4934_v41 = vpop.f32.mrf.mxu0 }
 0x467   :  { %v5439_v25 = vpop.f32.mrf.mxu3  ;;  %v5271_v51 = vadd.f32 %v5270_v53, %v5102_v47  ;;  %v5103_v2 = vpop.f32.mrf.mxu1  ;;  %v4935_v0 = vadd.f32 %v4934_v41, %v14576_v23  ;;  %v7305_v41 = vld [vmem:[%s14511_s0 + $0x2a8] sm:$0xf]  ;;  %v14578_v47 = vld [vmem:[#allocation22_spill] sm:$0xff] }
 0x469   :  { %v12552_v4 = vadd.f32 %v5439_v25, %v5271_v51  ;;  %v5104_v27 = vadd.f32 %v5103_v2, %v4935_v0  ;;  %v9596_v51 = vld [vmem:[%s14511_s0 + $0x2e4] sm:$0xf0] }
 0x46a   :  { %v7306_v62 = vor.u32 %v9596_v51, %v7305_v41  ;;  %v7361_v41 = vld [vmem:[%s14511_s0 + $0x320] sm:$0xf] }
 0x46b   :  { %14577 = vst [vmem:[#allocation21_spill] sm:$0xff] %v12552_v4  ;;  %v9611_v51 = vld [vmem:[%s14511_s0 + $0x35c] sm:$0xf0] }
 0x46e   :  { %v5272_v3 = vpop.f32.mrf.mxu2  ;;  %v4937_v33 = vpop.f32.mrf.mxu0 }
 0x46f   :  { %v5441_v55 = vpop.f32.mrf.mxu3  ;;  %v5273_v26 = vadd.f32 %v5272_v3, %v5104_v27  ;;  %v5106_v30 = vpop.f32.mrf.mxu1  ;;  %v4938_v53 = vadd.f32 %v4937_v33, %v14578_v47  ;;  %v9604_v3 = vld [vmem:[%s14511_s0 + $0x32c] sm:$0xf]  ;;  %v7366_v33 = vor.u32 %v9603_v28, %v7363_v19 }
 0x471   :  { %v12579_v25 = vadd.f32 %v5441_v55, %v5273_v26  ;;  %v5107_v2 = vadd.f32 %v5106_v30, %v4938_v53  ;;  %5492 = vmatmul.bf16.gmra.mxu0 %v7298_v13  ;;  %v7371_v55 = vld [vmem:[%s14511_s0 + $0x368] sm:$0xf0]  ;;  %v7362_v26 = vor.u32 %v9611_v51, %v7361_v41 }
 0x472   :  { %5661 = vmatmul.bf16.gmra.mxu1 %v7302_v17  ;;  %v7374_v53 = vor.u32 %v9604_v3, %v7371_v55  ;;  %v10124_v55 = vld [vmem:[%s14510_s1 + $0x368] sm:$0xff] }
 0x473   :  { %5830 = vmatmul.bf16.gmra.mxu2 %v7306_v62  ;;  %6306 = vmatpush.bf16.msrb.mxu1 %v10124_v55 }
 0x474   :  { %5999 = vmatmul.bf16.gmra.mxu3 %v7310_v8 }
 0x476   :  { %v5275_v23 = vpop.f32.mrf.mxu2  ;;  %v4939_v31 = vpop.f32.mrf.mxu0 }
 0x477   :  { %v5444_v0 = vpop.f32.mrf.mxu3  ;;  %v5276_v4 = vadd.f32 %v5275_v23, %v5107_v2  ;;  %v5108_v35 = vpop.f32.mrf.mxu1  ;;  %v4940_v27 = vadd.f32 %v4939_v31, %v14579_v5  ;;  %v7369_v31 = vld [vmem:[%s14511_s0 + $0x328] sm:$0xf]  ;;  %v14581_v2 = vld [vmem:[#allocation24_spill] sm:$0xff] }
 0x478   :  { %v10132_v5 = vld [vmem:[%s14510_s1 + $0x3a8] sm:$0xff] }
 0x479   :  { %v12582_v49 = vadd.f32 %v5444_v0, %v5276_v4  ;;  %v5109_v11 = vadd.f32 %v5108_v35, %v4940_v27  ;;  %v9612_v4 = vld [vmem:[%s14511_s0 + $0x364] sm:$0xf0]  ;;  %6475 = vmatpush.bf16.msrb.mxu2 %v10132_v5 }
 0x47a   :  { %v7370_v47 = vor.u32 %v9612_v4, %v7369_v31  ;;  %v10116_v27 = vld [vmem:[%s14510_s1 + $0x328] sm:$0xff] }
 0x47b   :  { %14580 = vst [vmem:[#allocation22_spill] sm:$0xff] %v12582_v49  ;;  %6137 = vmatpush.bf16.msrb.mxu0 %v10116_v27 }
 0x47e   :  { %v5277_v13 = vpop.f32.mrf.mxu2  ;;  %v4942_v62 = vpop.f32.mrf.mxu0 }
 0x47f   :  { %v5446_v17 = vpop.f32.mrf.mxu3  ;;  %v5278_v30 = vadd.f32 %v5277_v13, %v5109_v11  ;;  %v5111_v8 = vpop.f32.mrf.mxu1  ;;  %v4943_v23 = vadd.f32 %v4942_v62, %v14581_v2  ;;  %v10140_v11 = vld [vmem:[%s14510_s1 + $0x3e8] sm:$0xff] }
 0x480   :  { %6644 = vmatpush.bf16.msrb.mxu3 %v10140_v11  ;;  %v9628_v62 = vld [vmem:[%s14511_s0 + $0x3e4] sm:$0xf0] }
 0x481   :  { %v12609_v0 = vadd.f32 %v5446_v17, %v5278_v30  ;;  %v5112_v35 = vadd.f32 %v5111_v8, %v4943_v23  ;;  %5497 = vmatmul.bf16.gmra.mxu0 %v7362_v26  ;;  %v7425_v17 = vld [vmem:[%s14511_s0 + $0x3a0] sm:$0xf]  ;;  %v7433_v30 = vld [vmem:[%s14511_s0 + $0x3a8] sm:$0xf]  ;;  %v9620_v8 = vld [vmem:[%s14511_s0 + $0x3ac] sm:$0xf] }
 0x482   :  { %5666 = vmatmul.bf16.gmra.mxu1 %v7366_v33  ;;  %v9627_v26 = vld [vmem:[%s14511_s0 + $0x3dc] sm:$0xf0]  ;;  %v9619_v33 = vld [vmem:[%s14511_s0 + $0x3a4] sm:$0xf] }
 0x483   :  { %14582 = vst [vmem:[#allocation23_spill] sm:$0xff] %v12609_v0  ;;  %5835 = vmatmul.bf16.gmra.mxu2 %v7370_v47  ;;  %v7435_v47 = vld [vmem:[%s14511_s0 + $0x3e8] sm:$0xf0]  ;;  %v7426_v23 = vor.u32 %v9627_v26, %v7425_v17 }
 0x484   :  { %6004 = vmatmul.bf16.gmra.mxu3 %v7374_v53 }
 0x486   :  { %v5280_v41 = vpop.f32.mrf.mxu2  ;;  %v4944_v19 = vpop.f32.mrf.mxu0 }
 0x487   :  { %v5449_v51 = vpop.f32.mrf.mxu3  ;;  %v5281_v28 = vadd.f32 %v5280_v41, %v5112_v35  ;;  %v5113_v31 = vpop.f32.mrf.mxu1  ;;  %v4945_v4 = vadd.f32 %v4944_v19, %v11596_v63  ;;  %v7427_v63 = vld [vmem:[%s14511_s0 + $0x3e0] sm:$0xf0]  ;;  %v7434_v41 = vor.u32 %v9628_v62, %v7433_v30  ;;  %v9643_v30 = vld [vmem:[%s14511_s0 + $0x45c] sm:$0xf0] }
 0x488   :  { %v7430_v35 = vor.u32 %v9619_v33, %v7427_v63  ;;  %v7489_v63 = vld [vmem:[%s14511_s0 + $0x420] sm:$0xf]  ;;  %v9635_v62 = vld [vmem:[%s14511_s0 + $0x424] sm:$0xf] }
 0x489   :  { %v12621_v3 = vadd.f32 %v5449_v51, %v5281_v28  ;;  %v5114_v13 = vadd.f32 %v5113_v31, %v4945_v4  ;;  %v7438_v51 = vor.u32 %v9620_v8, %v7435_v47  ;;  %v14584_v28 = vld [vmem:[#allocation25_spill] sm:$0xff]  ;;  %v7491_v8 = vld [vmem:[%s14511_s0 + $0x460] sm:$0xf0] }
 0x48b   :  { %14583 = vst [vmem:[#allocation24_spill] sm:$0xff] %v12621_v3 }
 0x48e   :  { %v5282_v53 = vpop.f32.mrf.mxu2  ;;  %v4947_v27 = vpop.f32.mrf.mxu0 }
 0x48f   :  { %v5451_v2 = vpop.f32.mrf.mxu3  ;;  %v5283_v5 = vadd.f32 %v5282_v53, %v5114_v13  ;;  %v5116_v11 = vpop.f32.mrf.mxu1  ;;  %v4948_v19 = vadd.f32 %v4947_v27, %v14584_v28 }
 0x491   :  { %v12651_v31 = vadd.f32 %v5451_v2, %v5283_v5  ;;  %v5117_v4 = vadd.f32 %v5116_v11, %v4948_v19  ;;  %5502 = vmatmul.bf16.gmra.mxu0 %v7426_v23  ;;  %v7490_v2 = vor.u32 %v9643_v30, %v7489_v63  ;;  %v7494_v23 = vor.u32 %v9635_v62, %v7491_v8  ;;  %v9659_v8 = vld [vmem:[%s14511_s0 + $0x4dc] sm:$0xf0] }
 0x492   :  { %5671 = vmatmul.bf16.gmra.mxu1 %v7430_v35 }
 0x493   :  { %5840 = vmatmul.bf16.gmra.mxu2 %v7434_v41 }
 0x494   :  { %6009 = vmatmul.bf16.gmra.mxu3 %v7438_v51 }
 0x496   :  { %v5285_v55 = vpop.f32.mrf.mxu2  ;;  %v4949_v49 = vpop.f32.mrf.mxu0 }
 0x497   :  { %v5454_v3 = vpop.f32.mrf.mxu3  ;;  %v5286_v0 = vadd.f32 %v5285_v55, %v5117_v4  ;;  %v5118_v17 = vpop.f32.mrf.mxu1  ;;  %v4950_v13 = vadd.f32 %v4949_v49, %v11625_v43  ;;  %v7497_v43 = vld [vmem:[%s14511_s0 + $0x428] sm:$0xf] }
 0x498   :  { %v9644_v49 = vld [vmem:[%s14511_s0 + $0x464] sm:$0xf0] }
 0x499   :  { %v12654_v26 = vadd.f32 %v5454_v3, %v5286_v0  ;;  %v5119_v33 = vadd.f32 %v5118_v17, %v4950_v13  ;;  %v9636_v0 = vld [vmem:[%s14511_s0 + $0x42c] sm:$0xf]  ;;  %v7498_v11 = vor.u32 %v9644_v49, %v7497_v43  ;;  %v9651_v43 = vld [vmem:[%s14511_s0 + $0x4a4] sm:$0xf] }
 0x49a   :  { %v7499_v3 = vld [vmem:[%s14511_s0 + $0x468] sm:$0xf0]  ;;  %v7555_v49 = vld [vmem:[%s14511_s0 + $0x4e0] sm:$0xf0] }
 0x49b   :  { %v7502_v41 = vor.u32 %v9636_v0, %v7499_v3  ;;  %v9660_v0 = vld [vmem:[%s14511_s0 + $0x4e4] sm:$0xf0]  ;;  %v9652_v3 = vld [vmem:[%s14511_s0 + $0x4ac] sm:$0xf] }
 0x49e   :  { %v5287_v47 = vpop.f32.mrf.mxu2  ;;  %v5468_v5 = vpop.f32.mrf.mxu0 }
 0x49f   :  { %v5456_v53 = vpop.f32.mrf.mxu3  ;;  %v5288_v35 = vadd.f32 %v5287_v47, %v5119_v33  ;;  %v5637_v27 = vpop.f32.mrf.mxu1  ;;  %v5469_v51 = vadd.f32 %v5468_v5, %v11628_v12  ;;  %v7553_v12 = vld [vmem:[%s14511_s0 + $0x4a0] sm:$0xf]  ;;  %v7563_v47 = vld [vmem:[%s14511_s0 + $0x4e8] sm:$0xf0] }
 0x4a1   :  { %v12681_v28 = vadd.f32 %v5456_v53, %v5288_v35  ;;  %v5638_v19 = vadd.f32 %v5637_v27, %v5469_v51  ;;  %5507 = vmatmul.bf16.gmra.mxu0 %v7490_v2  ;;  %v7558_v35 = vor.u32 %v9651_v43, %v7555_v49  ;;  %v7566_v51 = vor.u32 %v9652_v3, %v7563_v47  ;;  %v9675_v49 = vld [vmem:[%s14511_s0 + $0x55c] sm:$0xf0]  ;;  %v9676_v3 = vld [vmem:[%s14511_s0 + $0x564] sm:$0xf0]  ;;  %v9668_v47 = vld [vmem:[%s14511_s0 + $0x52c] sm:$0xf] }
 0x4a2   :  { %5676 = vmatmul.bf16.gmra.mxu1 %v7494_v23  ;;  %v7554_v23 = vor.u32 %v9659_v8, %v7553_v12 }
 0x4a3   :  { %5845 = vmatmul.bf16.gmra.mxu2 %v7498_v11 }
 0x4a4   :  { %6014 = vmatmul.bf16.gmra.mxu3 %v7502_v41 }
 0x4a6   :  { %v5806_v4 = vpop.f32.mrf.mxu2  ;;  %v5470_v13 = vpop.f32.mrf.mxu0 }
 0x4a7   :  { %v5975_v55 = vpop.f32.mrf.mxu3  ;;  %v5807_v17 = vadd.f32 %v5806_v4, %v5638_v19  ;;  %v5639_v63 = vpop.f32.mrf.mxu1  ;;  %v5471_v33 = vadd.f32 %v5470_v13, %v11655_v36  ;;  %v7561_v36 = vld [vmem:[%s14511_s0 + $0x4a8] sm:$0xf] }
 0x4a8   :  { %v7562_v41 = vor.u32 %v9660_v0, %v7561_v36  ;;  %v9667_v36 = vld [vmem:[%s14511_s0 + $0x524] sm:$0xf] }
 0x4a9   :  { %v12684_v30 = vadd.f32 %v5975_v55, %v5807_v17  ;;  %v5640_v62 = vadd.f32 %v5639_v63, %v5471_v33  ;;  %v7619_v0 = vld [vmem:[%s14511_s0 + $0x560] sm:$0xf0] }
 0x4ae   :  { %v5808_v53 = vpop.f32.mrf.mxu2  ;;  %v5473_v27 = vpop.f32.mrf.mxu0 }
 0x4af   :  { %v5977_v2 = vpop.f32.mrf.mxu3  ;;  %v5809_v5 = vadd.f32 %v5808_v53, %v5640_v62  ;;  %v5642_v11 = vpop.f32.mrf.mxu1  ;;  %v5474_v19 = vadd.f32 %v5473_v27, %v11658_v48  ;;  %v7617_v48 = vld [vmem:[%s14511_s0 + $0x520] sm:$0xf]  ;;  %v7627_v53 = vld [vmem:[%s14511_s0 + $0x568] sm:$0xf0] }
 0x4b1   :  { %v12711_v4 = vadd.f32 %v5977_v2, %v5809_v5  ;;  %v5643_v55 = vadd.f32 %v5642_v11, %v5474_v19  ;;  %5512 = vmatmul.bf16.gmra.mxu0 %v7554_v23  ;;  %v7622_v5 = vor.u32 %v9667_v36, %v7619_v0  ;;  %v7630_v19 = vor.u32 %v9668_v47, %v7627_v53  ;;  %v7681_v47 = vld [vmem:[%s14511_s0 + $0x5a0] sm:$0xf] }
 0x4b2   :  { %5681 = vmatmul.bf16.gmra.mxu1 %v7558_v35  ;;  %v7618_v35 = vor.u32 %v9675_v49, %v7617_v48  ;;  %v9691_v53 = vld [vmem:[%s14511_s0 + $0x5dc] sm:$0xf0] }
 0x4b3   :  { %5850 = vmatmul.bf16.gmra.mxu2 %v7562_v41 }
 0x4b4   :  { %6019 = vmatmul.bf16.gmra.mxu3 %v7566_v51 }
 0x4b6   :  { %v5811_v17 = vpop.f32.mrf.mxu2  ;;  %v5475_v33 = vpop.f32.mrf.mxu0 }
 0x4b7   :  { %v5980_v13 = vpop.f32.mrf.mxu3  ;;  %v5812_v63 = vadd.f32 %v5811_v17, %v5643_v55  ;;  %v5644_v12 = vpop.f32.mrf.mxu1  ;;  %v5476_v62 = vadd.f32 %v5475_v33, %v11685_v22  ;;  %v7625_v22 = vld [vmem:[%s14511_s0 + $0x528] sm:$0xf]  ;;  %v10115_v33 = vld [vmem:[%s14510_s1 + $0x320] sm:$0xff] }
 0x4b8   :  { %v7626_v51 = vor.u32 %v9676_v3, %v7625_v22  ;;  %6138 = vmatpush.bf16.msrb.mxu0 %v10115_v33  ;;  %v10123_v22 = vld [vmem:[%s14510_s1 + $0x360] sm:$0xff] }
 0x4b9   :  { %v12714_v8 = vadd.f32 %v5980_v13, %v5812_v63  ;;  %v5645_v43 = vadd.f32 %v5644_v12, %v5476_v62  ;;  %v10131_v63 = vld [vmem:[%s14510_s1 + $0x3a0] sm:$0xff]  ;;  %6307 = vmatpush.bf16.msrb.mxu1 %v10123_v22 }
 0x4ba   :  { %v10139_v12 = vld [vmem:[%s14510_s1 + $0x3e0] sm:$0xff]  ;;  %6476 = vmatpush.bf16.msrb.mxu2 %v10131_v63 }
 0x4bb   :  { %6645 = vmatpush.bf16.msrb.mxu3 %v10139_v12 }
 0x4be   :  { %v5813_v2 = vpop.f32.mrf.mxu2  ;;  %v5478_v11 = vpop.f32.mrf.mxu0 }
 0x4bf   :  { %v5982_v23 = vpop.f32.mrf.mxu3  ;;  %v5814_v27 = vadd.f32 %v5813_v2, %v5645_v43  ;;  %v5647_v41 = vpop.f32.mrf.mxu1  ;;  %v5479_v55 = vadd.f32 %v5478_v11, %v11697_v6  ;;  %v9683_v2 = vld [vmem:[%s14511_s0 + $0x5a4] sm:$0xf] }
 0x4c1   :  { %v12741_v17 = vadd.f32 %v5982_v23, %v5814_v27  ;;  %v5648_v13 = vadd.f32 %v5647_v41, %v5479_v55  ;;  %5517 = vmatmul.bf16.gmra.mxu0 %v7618_v35  ;;  %v7689_v23 = vld [vmem:[%s14511_s0 + $0x5a8] sm:$0xf]  ;;  %v7691_v27 = vld [vmem:[%s14511_s0 + $0x5e8] sm:$0xf0] }
 0x4c2   :  { %5686 = vmatmul.bf16.gmra.mxu1 %v7622_v5  ;;  %v9692_v35 = vld [vmem:[%s14511_s0 + $0x5e4] sm:$0xf0]  ;;  %v9684_v5 = vld [vmem:[%s14511_s0 + $0x5ac] sm:$0xf] }
 0x4c3   :  { %5855 = vmatmul.bf16.gmra.mxu2 %v7626_v51  ;;  %v7682_v51 = vor.u32 %v9691_v53, %v7681_v47  ;;  %v7690_v33 = vor.u32 %v9692_v35, %v7689_v23  ;;  %v7694_v12 = vor.u32 %v9684_v5, %v7691_v27  ;;  %v9699_v23 = vld [vmem:[%s14511_s0 + $0x624] sm:$0xf]  ;;  %v9708_v5 = vld [vmem:[%s14511_s0 + $0x664] sm:$0xf0]  ;;  %v9700_v27 = vld [vmem:[%s14511_s0 + $0x62c] sm:$0xf] }
 0x4c4   :  { %6024 = vmatmul.bf16.gmra.mxu3 %v7630_v19  ;;  %v7747_v35 = vld [vmem:[%s14511_s0 + $0x660] sm:$0xf0] }
 0x4c6   :  { %v5816_v6 = vpop.f32.mrf.mxu2  ;;  %v5480_v48 = vpop.f32.mrf.mxu0 }
 0x4c7   :  { %v5985_v62 = vpop.f32.mrf.mxu3  ;;  %v5817_v43 = vadd.f32 %v5816_v6, %v5648_v13  ;;  %v5649_v49 = vpop.f32.mrf.mxu1  ;;  %v5481_v36 = vadd.f32 %v5480_v48, %v11727_v32  ;;  %v7683_v32 = vld [vmem:[%s14511_s0 + $0x5e0] sm:$0xf0] }
 0x4c8   :  { %v7686_v19 = vor.u32 %v9683_v2, %v7683_v32  ;;  %v9707_v32 = vld [vmem:[%s14511_s0 + $0x65c] sm:$0xf0] }
 0x4c9   :  { %v12753_v0 = vadd.f32 %v5985_v62, %v5817_v43  ;;  %v5650_v3 = vadd.f32 %v5649_v49, %v5481_v36 }
 0x4ce   :  { %v5818_v11 = vpop.f32.mrf.mxu2  ;;  %v5483_v13 = vpop.f32.mrf.mxu0 }
 0x4cf   :  { %v5987_v41 = vpop.f32.mrf.mxu3  ;;  %v5819_v55 = vadd.f32 %v5818_v11, %v5650_v3  ;;  %v5652_v63 = vpop.f32.mrf.mxu1  ;;  %v5484_v6 = vadd.f32 %v5483_v13, %v11730_v56  ;;  %v7745_v56 = vld [vmem:[%s14511_s0 + $0x620] sm:$0xf]  ;;  %v7755_v11 = vld [vmem:[%s14511_s0 + $0x668] sm:$0xf0] }
 0x4d1   :  { %v12783_v62 = vadd.f32 %v5987_v41, %v5819_v55  ;;  %v5653_v43 = vadd.f32 %v5652_v63, %v5484_v6  ;;  %5522 = vmatmul.bf16.gmra.mxu0 %v7682_v51  ;;  %v7750_v55 = vor.u32 %v9699_v23, %v7747_v35  ;;  %v7758_v6 = vor.u32 %v9700_v27, %v7755_v11  ;;  %v9723_v35 = vld [vmem:[%s14511_s0 + $0x6dc] sm:$0xf0]  ;;  %v9724_v27 = vld [vmem:[%s14511_s0 + $0x6e4] sm:$0xf0]  ;;  %v9716_v11 = vld [vmem:[%s14511_s0 + $0x6ac] sm:$0xf] }
 0x4d2   :  { %5691 = vmatmul.bf16.gmra.mxu1 %v7686_v19  ;;  %v7746_v19 = vor.u32 %v9707_v32, %v7745_v56 }
 0x4d3   :  { %5860 = vmatmul.bf16.gmra.mxu2 %v7690_v33 }
 0x4d4   :  { %6029 = vmatmul.bf16.gmra.mxu3 %v7694_v12 }
 0x4d6   :  { %v5821_v48 = vpop.f32.mrf.mxu2  ;;  %v5485_v22 = vpop.f32.mrf.mxu0 }
 0x4d7   :  { %v5990_v49 = vpop.f32.mrf.mxu3  ;;  %v5822_v36 = vadd.f32 %v5821_v48, %v5653_v43  ;;  %v5654_v47 = vpop.f32.mrf.mxu1  ;;  %v5486_v3 = vadd.f32 %v5485_v22, %v11757_v59  ;;  %v7753_v59 = vld [vmem:[%s14511_s0 + $0x628] sm:$0xf] }
 0x4d8   :  { %v7754_v12 = vor.u32 %v9708_v5, %v7753_v59  ;;  %v9715_v59 = vld [vmem:[%s14511_s0 + $0x6a4] sm:$0xf] }
 0x4d9   :  { %v12786_v53 = vadd.f32 %v5990_v49, %v5822_v36  ;;  %v5655_v2 = vadd.f32 %v5654_v47, %v5486_v3  ;;  %v7811_v5 = vld [vmem:[%s14511_s0 + $0x6e0] sm:$0xf0] }
 0x4de   :  { %v5823_v41 = vpop.f32.mrf.mxu2  ;;  %v5488_v63 = vpop.f32.mrf.mxu0 }
 0x4df   :  { %v5992_v51 = vpop.f32.mrf.mxu3  ;;  %v5824_v13 = vadd.f32 %v5823_v41, %v5655_v2  ;;  %v5657_v33 = vpop.f32.mrf.mxu1  ;;  %v5489_v43 = vadd.f32 %v5488_v63, %v11760_v45  ;;  %v7809_v45 = vld [vmem:[%s14511_s0 + $0x6a0] sm:$0xf]  ;;  %v7819_v41 = vld [vmem:[%s14511_s0 + $0x6e8] sm:$0xf0] }
 0x4e1   :  { %v12813_v48 = vadd.f32 %v5992_v51, %v5824_v13  ;;  %v5658_v49 = vadd.f32 %v5657_v33, %v5489_v43  ;;  %5527 = vmatmul.bf16.gmra.mxu0 %v7746_v19  ;;  %v7814_v13 = vor.u32 %v9715_v59, %v7811_v5  ;;  %v7822_v43 = vor.u32 %v9716_v11, %v7819_v41  ;;  %v9739_v5 = vld [vmem:[%s14511_s0 + $0x75c] sm:$0xf0]  ;;  %v9740_v11 = vld [vmem:[%s14511_s0 + $0x764] sm:$0xf0]  ;;  %v9732_v41 = vld [vmem:[%s14511_s0 + $0x72c] sm:$0xf] }
 0x4e2   :  { %5696 = vmatmul.bf16.gmra.mxu1 %v7750_v55  ;;  %v7810_v55 = vor.u32 %v9723_v35, %v7809_v45 }
 0x4e3   :  { %5865 = vmatmul.bf16.gmra.mxu2 %v7754_v12 }
 0x4e4   :  { %6034 = vmatmul.bf16.gmra.mxu3 %v7758_v6 }
 0x4e6   :  { %v5826_v36 = vpop.f32.mrf.mxu2  ;;  %v5490_v3 = vpop.f32.mrf.mxu0 }
 0x4e7   :  { %v5995_v22 = vpop.f32.mrf.mxu3  ;;  %v5827_v47 = vadd.f32 %v5826_v36, %v5658_v49  ;;  %v5659_v56 = vpop.f32.mrf.mxu1  ;;  %v5491_v2 = vadd.f32 %v5490_v3, %v11787_v52  ;;  %v7817_v52 = vld [vmem:[%s14511_s0 + $0x6a8] sm:$0xf] }
 0x4e8   :  { %v7818_v6 = vor.u32 %v9724_v27, %v7817_v52  ;;  %v9731_v52 = vld [vmem:[%s14511_s0 + $0x724] sm:$0xf] }
 0x4e9   :  { %v12816_v32 = vadd.f32 %v5995_v22, %v5827_v47  ;;  %v5660_v23 = vadd.f32 %v5659_v56, %v5491_v2  ;;  %v7875_v27 = vld [vmem:[%s14511_s0 + $0x760] sm:$0xf0] }
 0x4ee   :  { %v5828_v51 = vpop.f32.mrf.mxu2  ;;  %v5493_v33 = vpop.f32.mrf.mxu0 }
 0x4ef   :  { %v5997_v19 = vpop.f32.mrf.mxu3  ;;  %v5829_v63 = vadd.f32 %v5828_v51, %v5660_v23  ;;  %v5662_v12 = vpop.f32.mrf.mxu1  ;;  %v5494_v49 = vadd.f32 %v5493_v33, %v11790_v61  ;;  %v7873_v61 = vld [vmem:[%s14511_s0 + $0x720] sm:$0xf]  ;;  %v7883_v51 = vld [vmem:[%s14511_s0 + $0x768] sm:$0xf0] }
 0x4f1   :  { %v12843_v36 = vadd.f32 %v5997_v19, %v5829_v63  ;;  %v5663_v22 = vadd.f32 %v5662_v12, %v5494_v49  ;;  %5532 = vmatmul.bf16.gmra.mxu0 %v7810_v55  ;;  %v7878_v63 = vor.u32 %v9731_v52, %v7875_v27  ;;  %v7886_v49 = vor.u32 %v9732_v41, %v7883_v51  ;;  %v7937_v41 = vld [vmem:[%s14511_s0 + $0x7a0] sm:$0xf] }
 0x4f2   :  { %5701 = vmatmul.bf16.gmra.mxu1 %v7814_v13  ;;  %v7874_v13 = vor.u32 %v9739_v5, %v7873_v61  ;;  %v9755_v51 = vld [vmem:[%s14511_s0 + $0x7dc] sm:$0xf0] }
 0x4f3   :  { %5870 = vmatmul.bf16.gmra.mxu2 %v7818_v6 }
 0x4f4   :  { %6039 = vmatmul.bf16.gmra.mxu3 %v7822_v43 }
 0x4f6   :  { %v5831_v47 = vpop.f32.mrf.mxu2  ;;  %v5495_v2 = vpop.f32.mrf.mxu0 }
 0x4f7   :  { %v6000_v3 = vpop.f32.mrf.mxu3  ;;  %v5832_v56 = vadd.f32 %v5831_v47, %v5663_v22  ;;  %v5664_v45 = vpop.f32.mrf.mxu1  ;;  %v5496_v23 = vadd.f32 %v5495_v2, %v11817_v50  ;;  %v7881_v50 = vld [vmem:[%s14511_s0 + $0x728] sm:$0xf]  ;;  %v10114_v2 = vld [vmem:[%s14510_s1 + $0x318] sm:$0xff] }
 0x4f8   :  { %v7882_v43 = vor.u32 %v9740_v11, %v7881_v50  ;;  %6139 = vmatpush.bf16.msrb.mxu0 %v10114_v2  ;;  %v10122_v50 = vld [vmem:[%s14510_s1 + $0x358] sm:$0xff] }
 0x4f9   :  { %v12846_v35 = vadd.f32 %v6000_v3, %v5832_v56  ;;  %v5665_v59 = vadd.f32 %v5664_v45, %v5496_v23  ;;  %v10130_v56 = vld [vmem:[%s14510_s1 + $0x398] sm:$0xff]  ;;  %6308 = vmatpush.bf16.msrb.mxu1 %v10122_v50 }
 0x4fa   :  { %v10138_v45 = vld [vmem:[%s14510_s1 + $0x3d8] sm:$0xff]  ;;  %6477 = vmatpush.bf16.msrb.mxu2 %v10130_v56 }
 0x4fb   :  { %6646 = vmatpush.bf16.msrb.mxu3 %v10138_v45 }
 0x4fe   :  { %v5833_v19 = vpop.f32.mrf.mxu2  ;;  %v5498_v12 = vpop.f32.mrf.mxu0 }
 0x4ff   :  { %v6002_v55 = vpop.f32.mrf.mxu3  ;;  %v5834_v33 = vadd.f32 %v5833_v19, %v5665_v59  ;;  %v5667_v6 = vpop.f32.mrf.mxu1  ;;  %v5499_v22 = vadd.f32 %v5498_v12, %v11829_v10  ;;  %v9747_v19 = vld [vmem:[%s14511_s0 + $0x7a4] sm:$0xf] }
 0x501   :  { %v12873_v47 = vadd.f32 %v6002_v55, %v5834_v33  ;;  %v5668_v3 = vadd.f32 %v5667_v6, %v5499_v22  ;;  %5537 = vmatmul.bf16.gmra.mxu0 %v7874_v13  ;;  %v7945_v55 = vld [vmem:[%s14511_s0 + $0x7a8] sm:$0xf]  ;;  %v7947_v33 = vld [vmem:[%s14511_s0 + $0x7e8] sm:$0xf0] }
 0x502   :  { %5706 = vmatmul.bf16.gmra.mxu1 %v7878_v63  ;;  %v9756_v13 = vld [vmem:[%s14511_s0 + $0x7e4] sm:$0xf0]  ;;  %v9748_v63 = vld [vmem:[%s14511_s0 + $0x7ac] sm:$0xf] }
 0x503   :  { %5875 = vmatmul.bf16.gmra.mxu2 %v7882_v43  ;;  %v7938_v43 = vor.u32 %v9755_v51, %v7937_v41  ;;  %v7946_v2 = vor.u32 %v9756_v13, %v7945_v55  ;;  %v7950_v45 = vor.u32 %v9748_v63, %v7947_v33  ;;  %v9763_v55 = vld [vmem:[%s14511_s0 + $0x824] sm:$0xf]  ;;  %v9772_v63 = vld [vmem:[%s14511_s0 + $0x864] sm:$0xf0]  ;;  %v9764_v33 = vld [vmem:[%s14511_s0 + $0x82c] sm:$0xf] }
 0x504   :  { %6044 = vmatmul.bf16.gmra.mxu3 %v7886_v49  ;;  %v8003_v13 = vld [vmem:[%s14511_s0 + $0x860] sm:$0xf0] }
 0x506   :  { %v5836_v10 = vpop.f32.mrf.mxu2  ;;  %v5500_v61 = vpop.f32.mrf.mxu0 }
 0x507   :  { %v6005_v23 = vpop.f32.mrf.mxu3  ;;  %v5837_v59 = vadd.f32 %v5836_v10, %v5668_v3  ;;  %v5669_v5 = vpop.f32.mrf.mxu1  ;;  %v5501_v52 = vadd.f32 %v5500_v61, %v11859_v60  ;;  %v7939_v60 = vld [vmem:[%s14511_s0 + $0x7e0] sm:$0xf0] }
 0x508   :  { %v7942_v49 = vor.u32 %v9747_v19, %v7939_v60  ;;  %v9771_v60 = vld [vmem:[%s14511_s0 + $0x85c] sm:$0xf0] }
 0x509   :  { %v12885_v27 = vadd.f32 %v6005_v23, %v5837_v59  ;;  %v5670_v11 = vadd.f32 %v5669_v5, %v5501_v52 }
 0x50e   :  { %v5838_v12 = vpop.f32.mrf.mxu2  ;;  %v5503_v3 = vpop.f32.mrf.mxu0 }
 0x50f   :  { %v6007_v6 = vpop.f32.mrf.mxu3  ;;  %v5839_v22 = vadd.f32 %v5838_v12, %v5670_v11  ;;  %v5672_v56 = vpop.f32.mrf.mxu1  ;;  %v5504_v10 = vadd.f32 %v5503_v3, %v11862_v29  ;;  %v8001_v29 = vld [vmem:[%s14511_s0 + $0x820] sm:$0xf]  ;;  %v8011_v12 = vld [vmem:[%s14511_s0 + $0x868] sm:$0xf0] }
 0x511   :  { %v12915_v23 = vadd.f32 %v6007_v6, %v5839_v22  ;;  %v5673_v59 = vadd.f32 %v5672_v56, %v5504_v10  ;;  %5542 = vmatmul.bf16.gmra.mxu0 %v7938_v43  ;;  %v8006_v22 = vor.u32 %v9763_v55, %v8003_v13  ;;  %v8014_v10 = vor.u32 %v9764_v33, %v8011_v12  ;;  %v9787_v13 = vld [vmem:[%s14511_s0 + $0x8dc] sm:$0xf0]  ;;  %v9788_v33 = vld [vmem:[%s14511_s0 + $0x8e4] sm:$0xf0]  ;;  %v9780_v12 = vld [vmem:[%s14511_s0 + $0x8ac] sm:$0xf] }
 0x512   :  { %5711 = vmatmul.bf16.gmra.mxu1 %v7942_v49  ;;  %v8002_v49 = vor.u32 %v9771_v60, %v8001_v29 }
 0x513   :  { %5880 = vmatmul.bf16.gmra.mxu2 %v7946_v2 }
 0x514   :  { %6049 = vmatmul.bf16.gmra.mxu3 %v7950_v45 }
 0x516   :  { %v5841_v61 = vpop.f32.mrf.mxu2  ;;  %v5505_v50 = vpop.f32.mrf.mxu0 }
 0x517   :  { %v6010_v5 = vpop.f32.mrf.mxu3  ;;  %v5842_v52 = vadd.f32 %v5841_v61, %v5673_v59  ;;  %v5674_v41 = vpop.f32.mrf.mxu1  ;;  %v5506_v11 = vadd.f32 %v5505_v50, %v11889_v46  ;;  %v8009_v46 = vld [vmem:[%s14511_s0 + $0x828] sm:$0xf] }
 0x518   :  { %v8010_v45 = vor.u32 %v9772_v63, %v8009_v46  ;;  %v9779_v46 = vld [vmem:[%s14511_s0 + $0x8a4] sm:$0xf] }
 0x519   :  { %v12918_v51 = vadd.f32 %v6010_v5, %v5842_v52  ;;  %v5675_v19 = vadd.f32 %v5674_v41, %v5506_v11  ;;  %v8067_v63 = vld [vmem:[%s14511_s0 + $0x8e0] sm:$0xf0] }
 0x51e   :  { %v5843_v6 = vpop.f32.mrf.mxu2  ;;  %v5508_v56 = vpop.f32.mrf.mxu0 }
 0x51f   :  { %v6012_v43 = vpop.f32.mrf.mxu3  ;;  %v5844_v3 = vadd.f32 %v5843_v6, %v5675_v19  ;;  %v5677_v2 = vpop.f32.mrf.mxu1  ;;  %v5509_v59 = vadd.f32 %v5508_v56, %v11892_v40  ;;  %v8065_v40 = vld [vmem:[%s14511_s0 + $0x8a0] sm:$0xf]  ;;  %v8075_v6 = vld [vmem:[%s14511_s0 + $0x8e8] sm:$0xf0] }
 0x521   :  { %v12945_v61 = vadd.f32 %v6012_v43, %v5844_v3  ;;  %v5678_v5 = vadd.f32 %v5677_v2, %v5509_v59  ;;  %5547 = vmatmul.bf16.gmra.mxu0 %v8002_v49  ;;  %v8070_v3 = vor.u32 %v9779_v46, %v8067_v63  ;;  %v8078_v59 = vor.u32 %v9780_v12, %v8075_v6  ;;  %v9803_v63 = vld [vmem:[%s14511_s0 + $0x95c] sm:$0xf0]  ;;  %v9804_v12 = vld [vmem:[%s14511_s0 + $0x964] sm:$0xf0]  ;;  %v9796_v6 = vld [vmem:[%s14511_s0 + $0x92c] sm:$0xf] }
 0x522   :  { %5716 = vmatmul.bf16.gmra.mxu1 %v8006_v22  ;;  %v8066_v22 = vor.u32 %v9787_v13, %v8065_v40 }
 0x523   :  { %5885 = vmatmul.bf16.gmra.mxu2 %v8010_v45 }
 0x524   :  { %6054 = vmatmul.bf16.gmra.mxu3 %v8014_v10 }
 0x526   :  { %v5846_v52 = vpop.f32.mrf.mxu2  ;;  %v5510_v11 = vpop.f32.mrf.mxu0 }
 0x527   :  { %v6015_v50 = vpop.f32.mrf.mxu3  ;;  %v5847_v41 = vadd.f32 %v5846_v52, %v5678_v5  ;;  %v5679_v29 = vpop.f32.mrf.mxu1  ;;  %v5511_v19 = vadd.f32 %v5510_v11, %v11919_v38  ;;  %v8073_v38 = vld [vmem:[%s14511_s0 + $0x8a8] sm:$0xf] }
 0x528   :  { %v8074_v10 = vor.u32 %v9788_v33, %v8073_v38  ;;  %v9795_v38 = vld [vmem:[%s14511_s0 + $0x924] sm:$0xf] }
 0x529   :  { %v12948_v60 = vadd.f32 %v6015_v50, %v5847_v41  ;;  %v5680_v55 = vadd.f32 %v5679_v29, %v5511_v19  ;;  %v8131_v33 = vld [vmem:[%s14511_s0 + $0x960] sm:$0xf0] }
 0x52e   :  { %v5848_v43 = vpop.f32.mrf.mxu2  ;;  %v5513_v2 = vpop.f32.mrf.mxu0 }
 0x52f   :  { %v6017_v49 = vpop.f32.mrf.mxu3  ;;  %v5849_v56 = vadd.f32 %v5848_v43, %v5680_v55  ;;  %v5682_v45 = vpop.f32.mrf.mxu1  ;;  %v5514_v5 = vadd.f32 %v5513_v2, %v11922_v20  ;;  %v8129_v20 = vld [vmem:[%s14511_s0 + $0x920] sm:$0xf]  ;;  %v8139_v43 = vld [vmem:[%s14511_s0 + $0x968] sm:$0xf0] }
 0x531   :  { %v12975_v52 = vadd.f32 %v6017_v49, %v5849_v56  ;;  %v5683_v50 = vadd.f32 %v5682_v45, %v5514_v5  ;;  %5552 = vmatmul.bf16.gmra.mxu0 %v8066_v22  ;;  %v8134_v56 = vor.u32 %v9795_v38, %v8131_v33  ;;  %v8142_v5 = vor.u32 %v9796_v6, %v8139_v43  ;;  %v8193_v6 = vld [vmem:[%s14511_s0 + $0x9a0] sm:$0xf] }
 0x532   :  { %5721 = vmatmul.bf16.gmra.mxu1 %v8070_v3  ;;  %v8130_v3 = vor.u32 %v9803_v63, %v8129_v20  ;;  %v9819_v43 = vld [vmem:[%s14511_s0 + $0x9dc] sm:$0xf0] }
 0x533   :  { %5890 = vmatmul.bf16.gmra.mxu2 %v8074_v10 }
 0x534   :  { %6059 = vmatmul.bf16.gmra.mxu3 %v8078_v59 }
 0x536   :  { %v5851_v41 = vpop.f32.mrf.mxu2  ;;  %v5515_v19 = vpop.f32.mrf.mxu0 }
 0x537   :  { %v6020_v11 = vpop.f32.mrf.mxu3  ;;  %v5852_v29 = vadd.f32 %v5851_v41, %v5683_v50  ;;  %v5684_v40 = vpop.f32.mrf.mxu1  ;;  %v5516_v55 = vadd.f32 %v5515_v19, %v11949_v34  ;;  %v8137_v34 = vld [vmem:[%s14511_s0 + $0x928] sm:$0xf]  ;;  %v10113_v19 = vld [vmem:[%s14510_s1 + $0x310] sm:$0xff] }
 0x538   :  { %v8138_v59 = vor.u32 %v9804_v12, %v8137_v34  ;;  %6140 = vmatpush.bf16.msrb.mxu0 %v10113_v19  ;;  %v10121_v34 = vld [vmem:[%s14510_s1 + $0x350] sm:$0xff] }
 0x539   :  { %v12978_v13 = vadd.f32 %v6020_v11, %v5852_v29  ;;  %v5685_v46 = vadd.f32 %v5684_v40, %v5516_v55  ;;  %v10129_v29 = vld [vmem:[%s14510_s1 + $0x390] sm:$0xff]  ;;  %6309 = vmatpush.bf16.msrb.mxu1 %v10121_v34 }
 0x53a   :  { %v10137_v40 = vld [vmem:[%s14510_s1 + $0x3d0] sm:$0xff]  ;;  %6478 = vmatpush.bf16.msrb.mxu2 %v10129_v29 }
 0x53b   :  { %6647 = vmatpush.bf16.msrb.mxu3 %v10137_v40 }
 0x53e   :  { %v5853_v49 = vpop.f32.mrf.mxu2  ;;  %v5518_v45 = vpop.f32.mrf.mxu0 }
 0x53f   :  { %v6022_v22 = vpop.f32.mrf.mxu3  ;;  %v5854_v2 = vadd.f32 %v5853_v49, %v5685_v46  ;;  %v5687_v10 = vpop.f32.mrf.mxu1  ;;  %v5519_v50 = vadd.f32 %v5518_v45, %v11961_v15  ;;  %v9811_v49 = vld [vmem:[%s14511_s0 + $0x9a4] sm:$0xf] }
 0x541   :  { %v13005_v41 = vadd.f32 %v6022_v22, %v5854_v2  ;;  %v5688_v11 = vadd.f32 %v5687_v10, %v5519_v50  ;;  %5557 = vmatmul.bf16.gmra.mxu0 %v8130_v3  ;;  %v8201_v22 = vld [vmem:[%s14511_s0 + $0x9a8] sm:$0xf]  ;;  %v8203_v2 = vld [vmem:[%s14511_s0 + $0x9e8] sm:$0xf0] }
 0x542   :  { %5726 = vmatmul.bf16.gmra.mxu1 %v8134_v56  ;;  %v9820_v3 = vld [vmem:[%s14511_s0 + $0x9e4] sm:$0xf0]  ;;  %v9812_v56 = vld [vmem:[%s14511_s0 + $0x9ac] sm:$0xf] }
 0x543   :  { %5895 = vmatmul.bf16.gmra.mxu2 %v8138_v59  ;;  %v8194_v59 = vor.u32 %v9819_v43, %v8193_v6  ;;  %v8202_v19 = vor.u32 %v9820_v3, %v8201_v22  ;;  %v8206_v40 = vor.u32 %v9812_v56, %v8203_v2  ;;  %v9827_v22 = vld [vmem:[%s14511_s0 + $0xa24] sm:$0xf]  ;;  %v9836_v56 = vld [vmem:[%s14511_s0 + $0xa64] sm:$0xf0]  ;;  %v9828_v2 = vld [vmem:[%s14511_s0 + $0xa2c] sm:$0xf] }
 0x544   :  { %6064 = vmatmul.bf16.gmra.mxu3 %v8142_v5  ;;  %v8259_v3 = vld [vmem:[%s14511_s0 + $0xa60] sm:$0xf0] }
 0x546   :  { %v5856_v15 = vpop.f32.mrf.mxu2  ;;  %v5520_v20 = vpop.f32.mrf.mxu0 }
 0x547   :  { %v6025_v55 = vpop.f32.mrf.mxu3  ;;  %v5857_v46 = vadd.f32 %v5856_v15, %v5688_v11  ;;  %v5689_v63 = vpop.f32.mrf.mxu1  ;;  %v5521_v38 = vadd.f32 %v5520_v20, %v11991_v39  ;;  %v8195_v39 = vld [vmem:[%s14511_s0 + $0x9e0] sm:$0xf0] }
 0x548   :  { %v8198_v5 = vor.u32 %v9811_v49, %v8195_v39  ;;  %v9835_v39 = vld [vmem:[%s14511_s0 + $0xa5c] sm:$0xf0] }
 0x549   :  { %v13017_v33 = vadd.f32 %v6025_v55, %v5857_v46  ;;  %v5690_v12 = vadd.f32 %v5689_v63, %v5521_v38 }
 0x54e   :  { %v5858_v45 = vpop.f32.mrf.mxu2  ;;  %v5523_v11 = vpop.f32.mrf.mxu0 }
 0x54f   :  { %v6027_v10 = vpop.f32.mrf.mxu3  ;;  %v5859_v50 = vadd.f32 %v5858_v45, %v5690_v12  ;;  %v5692_v29 = vpop.f32.mrf.mxu1  ;;  %v5524_v15 = vadd.f32 %v5523_v11, %v11994_v1  ;;  %v8257_v1 = vld [vmem:[%s14511_s0 + $0xa20] sm:$0xf]  ;;  %v8267_v45 = vld [vmem:[%s14511_s0 + $0xa68] sm:$0xf0] }
 0x551   :  { %v13047_v55 = vadd.f32 %v6027_v10, %v5859_v50  ;;  %v5693_v46 = vadd.f32 %v5692_v29, %v5524_v15  ;;  %5562 = vmatmul.bf16.gmra.mxu0 %v8194_v59  ;;  %v8262_v50 = vor.u32 %v9827_v22, %v8259_v3  ;;  %v8270_v15 = vor.u32 %v9828_v2, %v8267_v45  ;;  %v9851_v3 = vld [vmem:[%s14511_s0 + $0xadc] sm:$0xf0]  ;;  %v9852_v2 = vld [vmem:[%s14511_s0 + $0xae4] sm:$0xf0]  ;;  %v9844_v45 = vld [vmem:[%s14511_s0 + $0xaac] sm:$0xf] }
 0x552   :  { %5731 = vmatmul.bf16.gmra.mxu1 %v8198_v5  ;;  %v8258_v5 = vor.u32 %v9835_v39, %v8257_v1 }
 0x553   :  { %5900 = vmatmul.bf16.gmra.mxu2 %v8202_v19 }
 0x554   :  { %6069 = vmatmul.bf16.gmra.mxu3 %v8206_v40 }
 0x556   :  { %v5861_v20 = vpop.f32.mrf.mxu2  ;;  %v5525_v34 = vpop.f32.mrf.mxu0 }
 0x557   :  { %v6030_v63 = vpop.f32.mrf.mxu3  ;;  %v5862_v38 = vadd.f32 %v5861_v20, %v5693_v46  ;;  %v5694_v6 = vpop.f32.mrf.mxu1  ;;  %v5526_v12 = vadd.f32 %v5525_v34, %v12021_v54  ;;  %v8265_v54 = vld [vmem:[%s14511_s0 + $0xa28] sm:$0xf] }
 0x558   :  { %v8266_v40 = vor.u32 %v9836_v56, %v8265_v54  ;;  %v9843_v54 = vld [vmem:[%s14511_s0 + $0xaa4] sm:$0xf] }
 0x559   :  { %v13050_v43 = vadd.f32 %v6030_v63, %v5862_v38  ;;  %v5695_v49 = vadd.f32 %v5694_v6, %v5526_v12  ;;  %v8323_v56 = vld [vmem:[%s14511_s0 + $0xae0] sm:$0xf0] }
 0x55e   :  { %v5863_v10 = vpop.f32.mrf.mxu2  ;;  %v5528_v29 = vpop.f32.mrf.mxu0 }
 0x55f   :  { %v6032_v59 = vpop.f32.mrf.mxu3  ;;  %v5864_v11 = vadd.f32 %v5863_v10, %v5695_v49  ;;  %v5697_v19 = vpop.f32.mrf.mxu1  ;;  %v5529_v46 = vadd.f32 %v5528_v29, %v12024_v58  ;;  %v8321_v58 = vld [vmem:[%s14511_s0 + $0xaa0] sm:$0xf]  ;;  %v8331_v10 = vld [vmem:[%s14511_s0 + $0xae8] sm:$0xf0] }
 0x561   :  { %v13077_v20 = vadd.f32 %v6032_v59, %v5864_v11  ;;  %v5698_v63 = vadd.f32 %v5697_v19, %v5529_v46  ;;  %5567 = vmatmul.bf16.gmra.mxu0 %v8258_v5  ;;  %v8326_v11 = vor.u32 %v9843_v54, %v8323_v56  ;;  %v8334_v46 = vor.u32 %v9844_v45, %v8331_v10  ;;  %v9867_v56 = vld [vmem:[%s14511_s0 + $0xb5c] sm:$0xf0]  ;;  %v9868_v45 = vld [vmem:[%s14511_s0 + $0xb64] sm:$0xf0]  ;;  %v9860_v10 = vld [vmem:[%s14511_s0 + $0xb2c] sm:$0xf] }
 0x562   :  { %5736 = vmatmul.bf16.gmra.mxu1 %v8262_v50  ;;  %v8322_v50 = vor.u32 %v9851_v3, %v8321_v58 }
 0x563   :  { %5905 = vmatmul.bf16.gmra.mxu2 %v8266_v40 }
 0x564   :  { %6074 = vmatmul.bf16.gmra.mxu3 %v8270_v15 }
 0x566   :  { %v5866_v38 = vpop.f32.mrf.mxu2  ;;  %v5530_v12 = vpop.f32.mrf.mxu0 }
 0x567   :  { %v6035_v34 = vpop.f32.mrf.mxu3  ;;  %v5867_v6 = vadd.f32 %v5866_v38, %v5698_v63  ;;  %v5699_v1 = vpop.f32.mrf.mxu1  ;;  %v5531_v49 = vadd.f32 %v5530_v12, %v12051_v42  ;;  %v8329_v42 = vld [vmem:[%s14511_s0 + $0xaa8] sm:$0xf] }
 0x568   :  { %v8330_v15 = vor.u32 %v9852_v2, %v8329_v42  ;;  %v9859_v42 = vld [vmem:[%s14511_s0 + $0xb24] sm:$0xf] }
 0x569   :  { %v13080_v39 = vadd.f32 %v6035_v34, %v5867_v6  ;;  %v5700_v22 = vadd.f32 %v5699_v1, %v5531_v49  ;;  %v8387_v2 = vld [vmem:[%s14511_s0 + $0xb60] sm:$0xf0] }
 0x56e   :  { %v5868_v59 = vpop.f32.mrf.mxu2  ;;  %v5533_v19 = vpop.f32.mrf.mxu0 }
 0x56f   :  { %v6037_v5 = vpop.f32.mrf.mxu3  ;;  %v5869_v29 = vadd.f32 %v5868_v59, %v5700_v22  ;;  %v5702_v40 = vpop.f32.mrf.mxu1  ;;  %v5534_v63 = vadd.f32 %v5533_v19, %v12054_v44  ;;  %v8385_v44 = vld [vmem:[%s14511_s0 + $0xb20] sm:$0xf]  ;;  %v8395_v59 = vld [vmem:[%s14511_s0 + $0xb68] sm:$0xf0] }
 0x571   :  { %v13107_v38 = vadd.f32 %v6037_v5, %v5869_v29  ;;  %v5703_v34 = vadd.f32 %v5702_v40, %v5534_v63  ;;  %5572 = vmatmul.bf16.gmra.mxu0 %v8322_v50  ;;  %v8390_v29 = vor.u32 %v9859_v42, %v8387_v2  ;;  %v8398_v63 = vor.u32 %v9860_v10, %v8395_v59  ;;  %v8449_v10 = vld [vmem:[%s14511_s0 + $0xba0] sm:$0xf] }
 0x572   :  { %5741 = vmatmul.bf16.gmra.mxu1 %v8326_v11  ;;  %v8386_v11 = vor.u32 %v9867_v56, %v8385_v44  ;;  %v9883_v59 = vld [vmem:[%s14511_s0 + $0xbdc] sm:$0xf0] }
 0x573   :  { %5910 = vmatmul.bf16.gmra.mxu2 %v8330_v15 }
 0x574   :  { %6079 = vmatmul.bf16.gmra.mxu3 %v8334_v46 }
 0x576   :  { %v5871_v6 = vpop.f32.mrf.mxu2  ;;  %v5535_v49 = vpop.f32.mrf.mxu0 }
 0x577   :  { %v6040_v12 = vpop.f32.mrf.mxu3  ;;  %v5872_v1 = vadd.f32 %v5871_v6, %v5703_v34  ;;  %v5704_v58 = vpop.f32.mrf.mxu1  ;;  %v5536_v22 = vadd.f32 %v5535_v49, %v12081_v24  ;;  %v8393_v24 = vld [vmem:[%s14511_s0 + $0xb28] sm:$0xf] }
 0x578   :  { %v8394_v46 = vor.u32 %v9868_v45, %v8393_v24  ;;  %v10112_v49 = vld [vmem:[%s14510_s1 + $0x308] sm:$0xff] }
 0x579   :  { %v13110_v3 = vadd.f32 %v6040_v12, %v5872_v1  ;;  %v5705_v54 = vadd.f32 %v5704_v58, %v5536_v22  ;;  %v10128_v1 = vld [vmem:[%s14510_s1 + $0x388] sm:$0xff]  ;;  %6141 = vmatpush.bf16.msrb.mxu0 %v10112_v49 }
 0x57a   :  { %v10136_v58 = vld [vmem:[%s14510_s1 + $0x3c8] sm:$0xff]  ;;  %6479 = vmatpush.bf16.msrb.mxu2 %v10128_v1 }
 0x57b   :  { %6648 = vmatpush.bf16.msrb.mxu3 %v10136_v58  ;;  %v10120_v24 = vld [vmem:[%s14510_s1 + $0x348] sm:$0xff] }
 0x57c   :  { %6310 = vmatpush.bf16.msrb.mxu1 %v10120_v24 }
 0x57e   :  { %v5873_v5 = vpop.f32.mrf.mxu2  ;;  %v5538_v40 = vpop.f32.mrf.mxu0 }
 0x57f   :  { %v6042_v50 = vpop.f32.mrf.mxu3  ;;  %v5874_v19 = vadd.f32 %v5873_v5, %v5705_v54  ;;  %v5707_v15 = vpop.f32.mrf.mxu1  ;;  %v5539_v34 = vadd.f32 %v5538_v40, %v12093_v57  ;;  %v9875_v5 = vld [vmem:[%s14511_s0 + $0xba4] sm:$0xf] }
 0x581   :  { %v13137_v6 = vadd.f32 %v6042_v50, %v5874_v19  ;;  %v5708_v12 = vadd.f32 %v5707_v15, %v5539_v34  ;;  %5577 = vmatmul.bf16.gmra.mxu0 %v8386_v11  ;;  %v8457_v50 = vld [vmem:[%s14511_s0 + $0xba8] sm:$0xf]  ;;  %v8459_v19 = vld [vmem:[%s14511_s0 + $0xbe8] sm:$0xf0] }
 0x582   :  { %5746 = vmatmul.bf16.gmra.mxu1 %v8390_v29  ;;  %v9884_v11 = vld [vmem:[%s14511_s0 + $0xbe4] sm:$0xf0]  ;;  %v9876_v29 = vld [vmem:[%s14511_s0 + $0xbac] sm:$0xf] }
 0x583   :  { %5915 = vmatmul.bf16.gmra.mxu2 %v8394_v46  ;;  %v8450_v46 = vor.u32 %v9883_v59, %v8449_v10  ;;  %v8458_v49 = vor.u32 %v9884_v11, %v8457_v50  ;;  %v8462_v58 = vor.u32 %v9876_v29, %v8459_v19  ;;  %v9891_v50 = vld [vmem:[%s14511_s0 + $0xc24] sm:$0xf]  ;;  %v9900_v29 = vld [vmem:[%s14511_s0 + $0xc64] sm:$0xf0]  ;;  %v9892_v19 = vld [vmem:[%s14511_s0 + $0xc2c] sm:$0xf] }
 0x584   :  { %6084 = vmatmul.bf16.gmra.mxu3 %v8398_v63  ;;  %v8515_v11 = vld [vmem:[%s14511_s0 + $0xc60] sm:$0xf0] }
 0x586   :  { %v5876_v57 = vpop.f32.mrf.mxu2  ;;  %v5540_v44 = vpop.f32.mrf.mxu0 }
 0x587   :  { %v6045_v22 = vpop.f32.mrf.mxu3  ;;  %v5877_v54 = vadd.f32 %v5876_v57, %v5708_v12  ;;  %v5709_v56 = vpop.f32.mrf.mxu1  ;;  %v5541_v42 = vadd.f32 %v5540_v44, %v12123_v14  ;;  %v8451_v14 = vld [vmem:[%s14511_s0 + $0xbe0] sm:$0xf0] }
 0x588   :  { %v8454_v63 = vor.u32 %v9875_v5, %v8451_v14  ;;  %v9899_v14 = vld [vmem:[%s14511_s0 + $0xc5c] sm:$0xf0] }
 0x589   :  { %v13149_v2 = vadd.f32 %v6045_v22, %v5877_v54  ;;  %v5710_v45 = vadd.f32 %v5709_v56, %v5541_v42 }
 0x58e   :  { %v5878_v40 = vpop.f32.mrf.mxu2  ;;  %v5543_v12 = vpop.f32.mrf.mxu0 }
 0x58f   :  { %v6047_v15 = vpop.f32.mrf.mxu3  ;;  %v5879_v34 = vadd.f32 %v5878_v40, %v5710_v45  ;;  %v5712_v1 = vpop.f32.mrf.mxu1  ;;  %v5544_v57 = vadd.f32 %v5543_v12, %v12126_v9  ;;  %v8513_v9 = vld [vmem:[%s14511_s0 + $0xc20] sm:$0xf]  ;;  %v8523_v40 = vld [vmem:[%s14511_s0 + $0xc68] sm:$0xf0] }
 0x591   :  { %v13179_v22 = vadd.f32 %v6047_v15, %v5879_v34  ;;  %v5713_v54 = vadd.f32 %v5712_v1, %v5544_v57  ;;  %5582 = vmatmul.bf16.gmra.mxu0 %v8450_v46  ;;  %v8518_v34 = vor.u32 %v9891_v50, %v8515_v11  ;;  %v8526_v57 = vor.u32 %v9892_v19, %v8523_v40  ;;  %v9915_v11 = vld [vmem:[%s14511_s0 + $0xcdc] sm:$0xf0]  ;;  %v9916_v19 = vld [vmem:[%s14511_s0 + $0xce4] sm:$0xf0]  ;;  %v9908_v40 = vld [vmem:[%s14511_s0 + $0xcac] sm:$0xf] }
 0x592   :  { %5751 = vmatmul.bf16.gmra.mxu1 %v8454_v63  ;;  %v8514_v63 = vor.u32 %v9899_v14, %v8513_v9 }
 0x593   :  { %5920 = vmatmul.bf16.gmra.mxu2 %v8458_v49 }
 0x594   :  { %6089 = vmatmul.bf16.gmra.mxu3 %v8462_v58 }
 0x596   :  { %v5881_v44 = vpop.f32.mrf.mxu2  ;;  %v5545_v24 = vpop.f32.mrf.mxu0 }
 0x597   :  { %v6050_v56 = vpop.f32.mrf.mxu3  ;;  %v5882_v42 = vadd.f32 %v5881_v44, %v5713_v54  ;;  %v5714_v10 = vpop.f32.mrf.mxu1  ;;  %v5546_v45 = vadd.f32 %v5545_v24, %v12153_v21  ;;  %v8521_v21 = vld [vmem:[%s14511_s0 + $0xc28] sm:$0xf] }
 0x598   :  { %v8522_v58 = vor.u32 %v9900_v29, %v8521_v21  ;;  %v9907_v21 = vld [vmem:[%s14511_s0 + $0xca4] sm:$0xf] }
 0x599   :  { %v13182_v59 = vadd.f32 %v6050_v56, %v5882_v42  ;;  %v5715_v5 = vadd.f32 %v5714_v10, %v5546_v45  ;;  %v8579_v29 = vld [vmem:[%s14511_s0 + $0xce0] sm:$0xf0] }
 0x59e   :  { %v5883_v15 = vpop.f32.mrf.mxu2  ;;  %v5548_v1 = vpop.f32.mrf.mxu0 }
 0x59f   :  { %v6052_v46 = vpop.f32.mrf.mxu3  ;;  %v5884_v12 = vadd.f32 %v5883_v15, %v5715_v5  ;;  %v5717_v49 = vpop.f32.mrf.mxu1  ;;  %v5549_v54 = vadd.f32 %v5548_v1, %v12156_v37  ;;  %v8577_v37 = vld [vmem:[%s14511_s0 + $0xca0] sm:$0xf]  ;;  %v8587_v15 = vld [vmem:[%s14511_s0 + $0xce8] sm:$0xf0] }
 0x5a1   :  { %v13209_v44 = vadd.f32 %v6052_v46, %v5884_v12  ;;  %v5718_v56 = vadd.f32 %v5717_v49, %v5549_v54  ;;  %5587 = vmatmul.bf16.gmra.mxu0 %v8514_v63  ;;  %v8582_v12 = vor.u32 %v9907_v21, %v8579_v29  ;;  %v8590_v54 = vor.u32 %v9908_v40, %v8587_v15  ;;  %v9931_v29 = vld [vmem:[%s14511_s0 + $0xd5c] sm:$0xf0]  ;;  %v9932_v40 = vld [vmem:[%s14511_s0 + $0xd64] sm:$0xf0]  ;;  %v9924_v15 = vld [vmem:[%s14511_s0 + $0xd2c] sm:$0xf] }
 0x5a2   :  { %5756 = vmatmul.bf16.gmra.mxu1 %v8518_v34  ;;  %v8578_v34 = vor.u32 %v9915_v11, %v8577_v37 }
 0x5a3   :  { %5925 = vmatmul.bf16.gmra.mxu2 %v8522_v58 }
 0x5a4   :  { %6094 = vmatmul.bf16.gmra.mxu3 %v8526_v57 }
 0x5a6   :  { %v5886_v42 = vpop.f32.mrf.mxu2  ;;  %v5550_v45 = vpop.f32.mrf.mxu0 }
 0x5a7   :  { %v6055_v24 = vpop.f32.mrf.mxu3  ;;  %v5887_v10 = vadd.f32 %v5886_v42, %v5718_v56  ;;  %v5719_v9 = vpop.f32.mrf.mxu1  ;;  %v5551_v5 = vadd.f32 %v5550_v45, %v12183_v7  ;;  %v8585_v7 = vld [vmem:[%s14511_s0 + $0xca8] sm:$0xf] }
 0x5a8   :  { %v8586_v57 = vor.u32 %v9916_v19, %v8585_v7  ;;  %v9923_v7 = vld [vmem:[%s14511_s0 + $0xd24] sm:$0xf] }
 0x5a9   :  { %v13212_v14 = vadd.f32 %v6055_v24, %v5887_v10  ;;  %v5720_v50 = vadd.f32 %v5719_v9, %v5551_v5  ;;  %v8643_v19 = vld [vmem:[%s14511_s0 + $0xd60] sm:$0xf0] }
 0x5ae   :  { %v5888_v46 = vpop.f32.mrf.mxu2  ;;  %v5553_v49 = vpop.f32.mrf.mxu0 }
 0x5af   :  { %v6057_v63 = vpop.f32.mrf.mxu3  ;;  %v5889_v1 = vadd.f32 %v5888_v46, %v5720_v50  ;;  %v5722_v58 = vpop.f32.mrf.mxu1  ;;  %v5554_v56 = vadd.f32 %v5553_v49, %v12186_v18  ;;  %v8641_v18 = vld [vmem:[%s14511_s0 + $0xd20] sm:$0xf]  ;;  %v8651_v46 = vld [vmem:[%s14511_s0 + $0xd68] sm:$0xf0] }
 0x5b1   :  { %v13239_v42 = vadd.f32 %v6057_v63, %v5889_v1  ;;  %v5723_v24 = vadd.f32 %v5722_v58, %v5554_v56  ;;  %5592 = vmatmul.bf16.gmra.mxu0 %v8578_v34  ;;  %v8646_v1 = vor.u32 %v9923_v7, %v8643_v19  ;;  %v8654_v56 = vor.u32 %v9924_v15, %v8651_v46  ;;  %v10119_v46 = vld [vmem:[%s14510_s1 + $0x340] sm:$0xff] }
 0x5b2   :  { %5761 = vmatmul.bf16.gmra.mxu1 %v8582_v12  ;;  %v8642_v12 = vor.u32 %v9931_v29, %v8641_v18 }
 0x5b3   :  { %5930 = vmatmul.bf16.gmra.mxu2 %v8586_v57  ;;  %6311 = vmatpush.bf16.msrb.mxu1 %v10119_v46 }
 0x5b4   :  { %6099 = vmatmul.bf16.gmra.mxu3 %v8590_v54 }
 0x5b6   :  { %v5891_v10 = vpop.f32.mrf.mxu2  ;;  %v5555_v5 = vpop.f32.mrf.mxu0 }
 0x5b7   :  { %v6060_v45 = vpop.f32.mrf.mxu3  ;;  %v5892_v9 = vadd.f32 %v5891_v10, %v5723_v24  ;;  %v5724_v37 = vpop.f32.mrf.mxu1  ;;  %v5556_v50 = vadd.f32 %v5555_v5, %v12213_v16  ;;  %v8649_v16 = vld [vmem:[%s14511_s0 + $0xd28] sm:$0xf]  ;;  %v14586_v24 = vld [vmem:[#allocation26_spill] sm:$0xff] }
 0x5b8   :  { %v8650_v54 = vor.u32 %v9932_v40, %v8649_v16  ;;  %v10127_v5 = vld [vmem:[%s14510_s1 + $0x380] sm:$0xff] }
 0x5b9   :  { %v13242_v11 = vadd.f32 %v6060_v45, %v5892_v9  ;;  %v5725_v21 = vadd.f32 %v5724_v37, %v5556_v50  ;;  %v10111_v37 = vld [vmem:[%s14510_s1 + $0x300] sm:$0xff]  ;;  %6480 = vmatpush.bf16.msrb.mxu2 %v10127_v5 }
 0x5ba   :  { %v10135_v50 = vld [vmem:[%s14510_s1 + $0x3c0] sm:$0xff]  ;;  %6142 = vmatpush.bf16.msrb.mxu0 %v10111_v37 }
 0x5bb   :  { %14585 = vst [vmem:[#allocation25_spill] sm:$0xff] %v13242_v11  ;;  %6649 = vmatpush.bf16.msrb.mxu3 %v10135_v50  ;;  %v14588_v16 = vld [vmem:[#allocation2_spill] sm:$0xff] }
 0x5be   :  { %v5893_v63 = vpop.f32.mrf.mxu2  ;;  %v5558_v58 = vpop.f32.mrf.mxu0 }
 0x5bf   :  { %v6062_v34 = vpop.f32.mrf.mxu3  ;;  %v5894_v49 = vadd.f32 %v5893_v63, %v5725_v21  ;;  %v5727_v57 = vpop.f32.mrf.mxu1  ;;  %v5559_v10 = vadd.f32 %v5558_v58, %v14586_v24  ;;  %v8713_v58 = vld [vmem:[%s14511_s0 + $0xda8] sm:$0xf] }
 0x5c1   :  { %v13269_v45 = vadd.f32 %v6062_v34, %v5894_v49  ;;  %v5728_v9 = vadd.f32 %v5727_v57, %v5559_v10  ;;  %5597 = vmatmul.bf16.gmra.mxu0 %v8642_v12  ;;  %v8705_v34 = vld [vmem:[%s14511_s0 + $0xda0] sm:$0xf]  ;;  %v8707_v49 = vld [vmem:[%s14511_s0 + $0xde0] sm:$0xf0]  ;;  %v9948_v57 = vld [vmem:[%s14511_s0 + $0xde4] sm:$0xf0] }
 0x5c2   :  { %5766 = vmatmul.bf16.gmra.mxu1 %v8646_v1  ;;  %v9947_v12 = vld [vmem:[%s14511_s0 + $0xddc] sm:$0xf0]  ;;  %v9939_v1 = vld [vmem:[%s14511_s0 + $0xda4] sm:$0xf] }
 0x5c3   :  { %14587 = vst [vmem:[#allocation26_spill] sm:$0xff] %v13269_v45  ;;  %5935 = vmatmul.bf16.gmra.mxu2 %v8650_v54  ;;  %v9940_v54 = vld [vmem:[%s14511_s0 + $0xdac] sm:$0xf]  ;;  %v8710_v5 = vor.u32 %v9939_v1, %v8707_v49 }
 0x5c4   :  { %6104 = vmatmul.bf16.gmra.mxu3 %v8654_v56  ;;  %v8715_v56 = vld [vmem:[%s14511_s0 + $0xde8] sm:$0xf0] }
 0x5c6   :  { %v5896_v21 = vpop.f32.mrf.mxu2  ;;  %v5560_v7 = vpop.f32.mrf.mxu0 }
 0x5c7   :  { %v6065_v18 = vpop.f32.mrf.mxu3  ;;  %v5897_v29 = vadd.f32 %v5896_v21, %v5728_v9  ;;  %v5729_v19 = vpop.f32.mrf.mxu1  ;;  %v5561_v40 = vadd.f32 %v5560_v7, %v14588_v16  ;;  %v8706_v9 = vor.u32 %v9947_v12, %v8705_v34  ;;  %v14590_v7 = vld [vmem:[#allocation3_spill] sm:$0xff]  ;;  %v14592_v12 = vld [vmem:[#allocation4_spill] sm:$0xff] }
 0x5c9   :  { %v13281_v15 = vadd.f32 %v6065_v18, %v5897_v29  ;;  %v5730_v63 = vadd.f32 %v5729_v19, %v5561_v40  ;;  %v8714_v18 = vor.u32 %v9948_v57, %v8713_v58  ;;  %v8718_v29 = vor.u32 %v9940_v54, %v8715_v56  ;;  %v8769_v58 = vld [vmem:[%s14511_s0 + $0xe20] sm:$0xf]  ;;  %v9955_v54 = vld [vmem:[%s14511_s0 + $0xe24] sm:$0xf] }
 0x5ca   :  { %v9963_v57 = vld [vmem:[%s14511_s0 + $0xe5c] sm:$0xf0]  ;;  %v8771_v56 = vld [vmem:[%s14511_s0 + $0xe60] sm:$0xf0] }
 0x5cb   :  { %14589 = vst [vmem:[#allocation2_spill] sm:$0xff] %v13281_v15 }
 0x5ce   :  { %v5898_v24 = vpop.f32.mrf.mxu2  ;;  %v5563_v50 = vpop.f32.mrf.mxu0 }
 0x5cf   :  { %v6067_v10 = vpop.f32.mrf.mxu3  ;;  %v5899_v37 = vadd.f32 %v5898_v24, %v5730_v63  ;;  %v5732_v21 = vpop.f32.mrf.mxu1  ;;  %v5564_v19 = vadd.f32 %v5563_v50, %v14590_v7  ;;  %v8779_v24 = vld [vmem:[%s14511_s0 + $0xe68] sm:$0xf0] }
 0x5d1   :  { %v13311_v16 = vadd.f32 %v6067_v10, %v5899_v37  ;;  %v5733_v40 = vadd.f32 %v5732_v21, %v5564_v19  ;;  %5602 = vmatmul.bf16.gmra.mxu0 %v8706_v9  ;;  %v8774_v37 = vor.u32 %v9955_v54, %v8771_v56  ;;  %v14594_v19 = vld [vmem:[#allocation5_spill] sm:$0xff] }
 0x5d2   :  { %5771 = vmatmul.bf16.gmra.mxu1 %v8710_v5  ;;  %v8770_v5 = vor.u32 %v9963_v57, %v8769_v58  ;;  %v14596_v57 = vld [vmem:[#allocation6_spill] sm:$0xff] }
 0x5d3   :  { %14591 = vst [vmem:[#allocation3_spill] sm:$0xff] %v13311_v16  ;;  %5940 = vmatmul.bf16.gmra.mxu2 %v8714_v18 }
 0x5d4   :  { %6109 = vmatmul.bf16.gmra.mxu3 %v8718_v29 }
 0x5d6   :  { %v5901_v46 = vpop.f32.mrf.mxu2  ;;  %v5565_v11 = vpop.f32.mrf.mxu0 }
 0x5d7   :  { %v6070_v15 = vpop.f32.mrf.mxu3  ;;  %v5902_v45 = vadd.f32 %v5901_v46, %v5733_v40  ;;  %v5734_v34 = vpop.f32.mrf.mxu1  ;;  %v5566_v63 = vadd.f32 %v5565_v11, %v14592_v12  ;;  %v8777_v11 = vld [vmem:[%s14511_s0 + $0xe28] sm:$0xf] }
 0x5d9   :  { %v13314_v1 = vadd.f32 %v6070_v15, %v5902_v45  ;;  %v5735_v49 = vadd.f32 %v5734_v34, %v5566_v63  ;;  %v9964_v45 = vld [vmem:[%s14511_s0 + $0xe64] sm:$0xf0]  ;;  %v9956_v15 = vld [vmem:[%s14511_s0 + $0xe2c] sm:$0xf] }
 0x5da   :  { %v8778_v29 = vor.u32 %v9964_v45, %v8777_v11  ;;  %v8782_v7 = vor.u32 %v9956_v15, %v8779_v24  ;;  %v8833_v11 = vld [vmem:[%s14511_s0 + $0xea0] sm:$0xf]  ;;  %v9971_v15 = vld [vmem:[%s14511_s0 + $0xea4] sm:$0xf] }
 0x5db   :  { %14593 = vst [vmem:[#allocation4_spill] sm:$0xff] %v13314_v1  ;;  %v9979_v45 = vld [vmem:[%s14511_s0 + $0xedc] sm:$0xf0]  ;;  %v8835_v24 = vld [vmem:[%s14511_s0 + $0xee0] sm:$0xf0] }
 0x5de   :  { %v5903_v10 = vpop.f32.mrf.mxu2  ;;  %v5568_v21 = vpop.f32.mrf.mxu0 }
 0x5df   :  { %v6072_v9 = vpop.f32.mrf.mxu3  ;;  %v5904_v50 = vadd.f32 %v5903_v10, %v5735_v49  ;;  %v5737_v18 = vpop.f32.mrf.mxu1  ;;  %v5569_v40 = vadd.f32 %v5568_v21, %v14594_v19  ;;  %v9972_v10 = vld [vmem:[%s14511_s0 + $0xeac] sm:$0xf]  ;;  %v8838_v21 = vor.u32 %v9971_v15, %v8835_v24 }
 0x5e1   :  { %v13341_v46 = vadd.f32 %v6072_v9, %v5904_v50  ;;  %v5738_v34 = vadd.f32 %v5737_v18, %v5569_v40  ;;  %5607 = vmatmul.bf16.gmra.mxu0 %v8770_v5  ;;  %v8843_v9 = vld [vmem:[%s14511_s0 + $0xee8] sm:$0xf0]  ;;  %v8834_v50 = vor.u32 %v9979_v45, %v8833_v11  ;;  %v14600_v45 = vld [vmem:[#allocation8_spill] sm:$0xff] }
 0x5e2   :  { %5776 = vmatmul.bf16.gmra.mxu1 %v8774_v37  ;;  %v8846_v40 = vor.u32 %v9972_v10, %v8843_v9  ;;  %v9987_v10 = vld [vmem:[%s14511_s0 + $0xf24] sm:$0xf] }
 0x5e3   :  { %14595 = vst [vmem:[#allocation5_spill] sm:$0xff] %v13341_v46  ;;  %5945 = vmatmul.bf16.gmra.mxu2 %v8778_v29  ;;  %v8899_v9 = vld [vmem:[%s14511_s0 + $0xf60] sm:$0xf0] }
 0x5e4   :  { %6114 = vmatmul.bf16.gmra.mxu3 %v8782_v7 }
 0x5e6   :  { %v5906_v12 = vpop.f32.mrf.mxu2  ;;  %v5570_v16 = vpop.f32.mrf.mxu0 }
 0x5e7   :  { %v6075_v63 = vpop.f32.mrf.mxu3  ;;  %v5907_v1 = vadd.f32 %v5906_v12, %v5738_v34  ;;  %v5739_v58 = vpop.f32.mrf.mxu1  ;;  %v5571_v49 = vadd.f32 %v5570_v16, %v14596_v57  ;;  %v8841_v16 = vld [vmem:[%s14511_s0 + $0xea8] sm:$0xf] }
 0x5e8   :  { %v14598_v34 = vld [vmem:[#allocation7_spill] sm:$0xff] }
 0x5e9   :  { %v13344_v54 = vadd.f32 %v6075_v63, %v5907_v1  ;;  %v5740_v56 = vadd.f32 %v5739_v58, %v5571_v49  ;;  %v9980_v1 = vld [vmem:[%s14511_s0 + $0xee4] sm:$0xf0] }
 0x5ea   :  { %v8842_v19 = vor.u32 %v9980_v1, %v8841_v16  ;;  %v8897_v16 = vld [vmem:[%s14511_s0 + $0xf20] sm:$0xf] }
 0x5eb   :  { %14597 = vst [vmem:[#allocation6_spill] sm:$0xff] %v13344_v54  ;;  %v9995_v1 = vld [vmem:[%s14511_s0 + $0xf5c] sm:$0xf0] }
 0x5ee   :  { %v5908_v5 = vpop.f32.mrf.mxu2  ;;  %v5573_v29 = vpop.f32.mrf.mxu0 }
 0x5ef   :  { %v6077_v37 = vpop.f32.mrf.mxu3  ;;  %v5909_v18 = vadd.f32 %v5908_v5, %v5740_v56  ;;  %v5742_v7 = vpop.f32.mrf.mxu1  ;;  %v5574_v12 = vadd.f32 %v5573_v29, %v14598_v34  ;;  %v9988_v5 = vld [vmem:[%s14511_s0 + $0xf2c] sm:$0xf]  ;;  %v8902_v29 = vor.u32 %v9987_v10, %v8899_v9 }
 0x5f1   :  { %v13371_v63 = vadd.f32 %v6077_v37, %v5909_v18  ;;  %v5743_v58 = vadd.f32 %v5742_v7, %v5574_v12  ;;  %5612 = vmatmul.bf16.gmra.mxu0 %v8834_v50  ;;  %v8907_v37 = vld [vmem:[%s14511_s0 + $0xf68] sm:$0xf0]  ;;  %v8898_v18 = vor.u32 %v9995_v1, %v8897_v16  ;;  %v14604_v1 = vld [vmem:[#allocation10_spill] sm:$0xff] }
 0x5f2   :  { %5781 = vmatmul.bf16.gmra.mxu1 %v8838_v21  ;;  %v8910_v12 = vor.u32 %v9988_v5, %v8907_v37  ;;  %v10003_v5 = vld [vmem:[%s14511_s0 + $0xfa4] sm:$0xf] }
 0x5f3   :  { %14599 = vst [vmem:[#allocation7_spill] sm:$0xff] %v13371_v63  ;;  %5950 = vmatmul.bf16.gmra.mxu2 %v8842_v19  ;;  %v8963_v37 = vld [vmem:[%s14511_s0 + $0xfe0] sm:$0xf0] }
 0x5f4   :  { %6119 = vmatmul.bf16.gmra.mxu3 %v8846_v40 }
 0x5f6   :  { %v5911_v57 = vpop.f32.mrf.mxu2  ;;  %v5575_v46 = vpop.f32.mrf.mxu0 }
 0x5f7   :  { %v6080_v49 = vpop.f32.mrf.mxu3  ;;  %v5912_v54 = vadd.f32 %v5911_v57, %v5743_v58  ;;  %v5744_v11 = vpop.f32.mrf.mxu1  ;;  %v5576_v56 = vadd.f32 %v5575_v46, %v14600_v45  ;;  %v8905_v46 = vld [vmem:[%s14511_s0 + $0xf28] sm:$0xf]  ;;  %v14602_v58 = vld [vmem:[#allocation9_spill] sm:$0xff] }
 0x5f9   :  { %v13374_v15 = vadd.f32 %v6080_v49, %v5912_v54  ;;  %v5745_v24 = vadd.f32 %v5744_v11, %v5576_v56  ;;  %v9996_v54 = vld [vmem:[%s14511_s0 + $0xf64] sm:$0xf0] }
 0x5fa   :  { %v8906_v34 = vor.u32 %v9996_v54, %v8905_v46  ;;  %v8961_v46 = vld [vmem:[%s14511_s0 + $0xfa0] sm:$0xf] }
 0x5fb   :  { %14601 = vst [vmem:[#allocation8_spill] sm:$0xff] %v13374_v15  ;;  %v10011_v54 = vld [vmem:[%s14511_s0 + $0xfdc] sm:$0xf0] }
 0x5fe   :  { %v5913_v50 = vpop.f32.mrf.mxu2  ;;  %v5578_v19 = vpop.f32.mrf.mxu0 }
 0x5ff   :  { %v6082_v21 = vpop.f32.mrf.mxu3  ;;  %v5914_v7 = vadd.f32 %v5913_v50, %v5745_v24  ;;  %v5747_v40 = vpop.f32.mrf.mxu1  ;;  %v5579_v57 = vadd.f32 %v5578_v19, %v14602_v58  ;;  %v10004_v50 = vld [vmem:[%s14511_s0 + $0xfac] sm:$0xf]  ;;  %v8966_v19 = vor.u32 %v10003_v5, %v8963_v37 }
 0x601   :  { %v13401_v49 = vadd.f32 %v6082_v21, %v5914_v7  ;;  %v5748_v11 = vadd.f32 %v5747_v40, %v5579_v57  ;;  %5617 = vmatmul.bf16.gmra.mxu0 %v8898_v18  ;;  %v8971_v21 = vld [vmem:[%s14511_s0 + $0xfe8] sm:$0xf0]  ;;  %v8962_v7 = vor.u32 %v10011_v54, %v8961_v46  ;;  %v14608_v54 = vld [vmem:[#allocation12_spill] sm:$0xff] }
 0x602   :  { %5786 = vmatmul.bf16.gmra.mxu1 %v8902_v29  ;;  %v8974_v57 = vor.u32 %v10004_v50, %v8971_v21  ;;  %v9509_v50 = vld [vmem:[%s14511_s0 + $0x34] sm:$0xf] }
 0x603   :  { %14603 = vst [vmem:[#allocation9_spill] sm:$0xff] %v13401_v49  ;;  %5955 = vmatmul.bf16.gmra.mxu2 %v8906_v34  ;;  %v6995_v21 = vld [vmem:[%s14511_s0 + $0x70] sm:$0xf0] }
 0x604   :  { %6124 = vmatmul.bf16.gmra.mxu3 %v8910_v12 }
 0x606   :  { %v5916_v45 = vpop.f32.mrf.mxu2  ;;  %v5580_v63 = vpop.f32.mrf.mxu0 }
 0x607   :  { %v6085_v56 = vpop.f32.mrf.mxu3  ;;  %v5917_v15 = vadd.f32 %v5916_v45, %v5748_v11  ;;  %v5749_v16 = vpop.f32.mrf.mxu1  ;;  %v5581_v24 = vadd.f32 %v5580_v63, %v14604_v1  ;;  %v8969_v63 = vld [vmem:[%s14511_s0 + $0xfa8] sm:$0xf] }
 0x608   :  { %v14606_v11 = vld [vmem:[#allocation11_spill] sm:$0xff] }
 0x609   :  { %v13404_v10 = vadd.f32 %v6085_v56, %v5917_v15  ;;  %v5750_v9 = vadd.f32 %v5749_v16, %v5581_v24  ;;  %v10012_v15 = vld [vmem:[%s14511_s0 + $0xfe4] sm:$0xf0] }
 0x60a   :  { %v8970_v58 = vor.u32 %v10012_v15, %v8969_v63  ;;  %v6993_v63 = vld [vmem:[%s14511_s0 + $0x30] sm:$0xf] }
 0x60b   :  { %14605 = vst [vmem:[#allocation10_spill] sm:$0xff] %v13404_v10  ;;  %v9517_v15 = vld [vmem:[%s14511_s0 + $0x6c] sm:$0xf0] }
 0x60e   :  { %v5918_v18 = vpop.f32.mrf.mxu2  ;;  %v5583_v34 = vpop.f32.mrf.mxu0 }
 0x60f   :  { %v6087_v29 = vpop.f32.mrf.mxu3  ;;  %v5919_v40 = vadd.f32 %v5918_v18, %v5750_v9  ;;  %v5752_v12 = vpop.f32.mrf.mxu1  ;;  %v5584_v45 = vadd.f32 %v5583_v34, %v14606_v11  ;;  %v9510_v18 = vld [vmem:[%s14511_s0 + $0x3c] sm:$0xf]  ;;  %v6998_v34 = vor.u32 %v9509_v50, %v6995_v21 }
 0x611   :  { %v13431_v56 = vadd.f32 %v6087_v29, %v5919_v40  ;;  %v5753_v16 = vadd.f32 %v5752_v12, %v5584_v45  ;;  %5622 = vmatmul.bf16.gmra.mxu0 %v8962_v7  ;;  %v7003_v29 = vld [vmem:[%s14511_s0 + $0x78] sm:$0xf0]  ;;  %v6994_v40 = vor.u32 %v9517_v15, %v6993_v63  ;;  %v14612_v15 = vld [vmem:[#allocation14_spill] sm:$0xff] }
 0x612   :  { %5791 = vmatmul.bf16.gmra.mxu1 %v8966_v19  ;;  %v7006_v45 = vor.u32 %v9510_v18, %v7003_v29  ;;  %v9525_v18 = vld [vmem:[%s14511_s0 + $0xb4] sm:$0xf] }
 0x613   :  { %14607 = vst [vmem:[#allocation11_spill] sm:$0xff] %v13431_v56  ;;  %5960 = vmatmul.bf16.gmra.mxu2 %v8970_v58  ;;  %v7059_v29 = vld [vmem:[%s14511_s0 + $0xf0] sm:$0xf0] }
 0x614   :  { %6129 = vmatmul.bf16.gmra.mxu3 %v8974_v57 }
 0x616   :  { %v5921_v1 = vpop.f32.mrf.mxu2  ;;  %v5585_v49 = vpop.f32.mrf.mxu0 }
 0x617   :  { %v6090_v24 = vpop.f32.mrf.mxu3  ;;  %v5922_v10 = vadd.f32 %v5921_v1, %v5753_v16  ;;  %v5754_v46 = vpop.f32.mrf.mxu1  ;;  %v5586_v9 = vadd.f32 %v5585_v49, %v14608_v54  ;;  %v7001_v49 = vld [vmem:[%s14511_s0 + $0x38] sm:$0xf] }
 0x618   :  { %v14610_v16 = vld [vmem:[#allocation13_spill] sm:$0xff] }
 0x619   :  { %v13434_v5 = vadd.f32 %v6090_v24, %v5922_v10  ;;  %v5755_v37 = vadd.f32 %v5754_v46, %v5586_v9  ;;  %v9518_v10 = vld [vmem:[%s14511_s0 + $0x74] sm:$0xf0] }
 0x61a   :  { %v7002_v11 = vor.u32 %v9518_v10, %v7001_v49  ;;  %v7057_v49 = vld [vmem:[%s14511_s0 + $0xb0] sm:$0xf] }
 0x61b   :  { %14609 = vst [vmem:[#allocation12_spill] sm:$0xff] %v13434_v5  ;;  %v9533_v10 = vld [vmem:[%s14511_s0 + $0xec] sm:$0xf0] }
 0x61e   :  { %v5923_v7 = vpop.f32.mrf.mxu2  ;;  %v5588_v58 = vpop.f32.mrf.mxu0 }
 0x61f   :  { %v6092_v19 = vpop.f32.mrf.mxu3  ;;  %v5924_v12 = vadd.f32 %v5923_v7, %v5755_v37  ;;  %v5757_v57 = vpop.f32.mrf.mxu1  ;;  %v5589_v1 = vadd.f32 %v5588_v58, %v14610_v16  ;;  %v9526_v7 = vld [vmem:[%s14511_s0 + $0xbc] sm:$0xf]  ;;  %v7062_v58 = vor.u32 %v9525_v18, %v7059_v29 }
 0x621   :  { %v13461_v24 = vadd.f32 %v6092_v19, %v5924_v12  ;;  %v5758_v46 = vadd.f32 %v5757_v57, %v5589_v1  ;;  %6143 = vmatmul.bf16.vlgmr.msrb.gmra.mxu0 %v6994_v40  ;;  %v7067_v19 = vld [vmem:[%s14511_s0 + $0xf8] sm:$0xf0]  ;;  %v7058_v12 = vor.u32 %v9533_v10, %v7057_v49  ;;  %v14616_v10 = vld [vmem:[#allocation16_spill] sm:$0xff] }
 0x622   :  { %6312 = vmatmul.bf16.vlgmr.msrb.gmra.mxu1 %v6998_v34  ;;  %v7070_v1 = vor.u32 %v9526_v7, %v7067_v19  ;;  %v9541_v7 = vld [vmem:[%s14511_s0 + $0x134] sm:$0xf] }
 0x623   :  { %14611 = vst [vmem:[#allocation13_spill] sm:$0xff] %v13461_v24  ;;  %6481 = vmatmul.bf16.vlgmr.msrb.gmra.mxu2 %v7002_v11  ;;  %v7123_v19 = vld [vmem:[%s14511_s0 + $0x170] sm:$0xf0] }
 0x624   :  { %6650 = vmatmul.bf16.vlgmr.msrb.gmra.mxu3 %v7006_v45 }
 0x626   :  { %v5926_v54 = vpop.f32.mrf.mxu2  ;;  %v5590_v56 = vpop.f32.mrf.mxu0 }
 0x627   :  { %v6095_v9 = vpop.f32.mrf.mxu3  ;;  %v5927_v5 = vadd.f32 %v5926_v54, %v5758_v46  ;;  %v5759_v63 = vpop.f32.mrf.mxu1  ;;  %v5591_v37 = vadd.f32 %v5590_v56, %v14612_v15  ;;  %v7065_v56 = vld [vmem:[%s14511_s0 + $0xb8] sm:$0xf]  ;;  %v14614_v46 = vld [vmem:[#allocation15_spill] sm:$0xff] }
 0x629   :  { %v13464_v50 = vadd.f32 %v6095_v9, %v5927_v5  ;;  %v5760_v21 = vadd.f32 %v5759_v63, %v5591_v37  ;;  %v9534_v5 = vld [vmem:[%s14511_s0 + $0xf4] sm:$0xf0] }
 0x62a   :  { %v7066_v16 = vor.u32 %v9534_v5, %v7065_v56  ;;  %v7121_v56 = vld [vmem:[%s14511_s0 + $0x130] sm:$0xf] }
 0x62b   :  { %14613 = vst [vmem:[#allocation14_spill] sm:$0xff] %v13464_v50  ;;  %v9549_v5 = vld [vmem:[%s14511_s0 + $0x16c] sm:$0xf0] }
 0x62e   :  { %v5928_v40 = vpop.f32.mrf.mxu2  ;;  %v5593_v11 = vpop.f32.mrf.mxu0 }
 0x62f   :  { %v6097_v34 = vpop.f32.mrf.mxu3  ;;  %v5929_v57 = vadd.f32 %v5928_v40, %v5760_v21  ;;  %v5762_v45 = vpop.f32.mrf.mxu1  ;;  %v5594_v54 = vadd.f32 %v5593_v11, %v14614_v46  ;;  %v9542_v40 = vld [vmem:[%s14511_s0 + $0x13c] sm:$0xf]  ;;  %v7126_v11 = vor.u32 %v9541_v7, %v7123_v19 }
 0x631   :  { %v13491_v9 = vadd.f32 %v6097_v34, %v5929_v57  ;;  %v5763_v63 = vadd.f32 %v5762_v45, %v5594_v54  ;;  %6148 = vmatmul.bf16.gmra.mxu0 %v7058_v12  ;;  %v7131_v34 = vld [vmem:[%s14511_s0 + $0x178] sm:$0xf0]  ;;  %v7122_v57 = vor.u32 %v9549_v5, %v7121_v56  ;;  %v14620_v5 = vld [vmem:[#allocation18_spill] sm:$0xff] }
 0x632   :  { %6317 = vmatmul.bf16.gmra.mxu1 %v7062_v58  ;;  %v7134_v54 = vor.u32 %v9542_v40, %v7131_v34  ;;  %v9557_v40 = vld [vmem:[%s14511_s0 + $0x1b4] sm:$0xf] }
 0x633   :  { %14615 = vst [vmem:[#allocation15_spill] sm:$0xff] %v13491_v9  ;;  %6486 = vmatmul.bf16.gmra.mxu2 %v7066_v16  ;;  %v7187_v34 = vld [vmem:[%s14511_s0 + $0x1f0] sm:$0xf0] }
 0x634   :  { %6655 = vmatmul.bf16.gmra.mxu3 %v7070_v1 }
 0x636   :  { %v5931_v15 = vpop.f32.mrf.mxu2  ;;  %v5595_v24 = vpop.f32.mrf.mxu0 }
 0x637   :  { %v6100_v37 = vpop.f32.mrf.mxu3  ;;  %v5932_v50 = vadd.f32 %v5931_v15, %v5763_v63  ;;  %v5764_v49 = vpop.f32.mrf.mxu1  ;;  %v5596_v21 = vadd.f32 %v5595_v24, %v14616_v10  ;;  %v7129_v24 = vld [vmem:[%s14511_s0 + $0x138] sm:$0xf] }
 0x638   :  { %v14618_v63 = vld [vmem:[#allocation17_spill] sm:$0xff] }
 0x639   :  { %v13494_v18 = vadd.f32 %v6100_v37, %v5932_v50  ;;  %v5765_v29 = vadd.f32 %v5764_v49, %v5596_v21  ;;  %v9550_v50 = vld [vmem:[%s14511_s0 + $0x174] sm:$0xf0] }
 0x63a   :  { %v7130_v46 = vor.u32 %v9550_v50, %v7129_v24  ;;  %v7185_v24 = vld [vmem:[%s14511_s0 + $0x1b0] sm:$0xf] }
 0x63b   :  { %14617 = vst [vmem:[#allocation16_spill] sm:$0xff] %v13494_v18  ;;  %v9565_v50 = vld [vmem:[%s14511_s0 + $0x1ec] sm:$0xf0] }
 0x63e   :  { %v5933_v12 = vpop.f32.mrf.mxu2  ;;  %v5598_v16 = vpop.f32.mrf.mxu0 }
 0x63f   :  { %v6102_v58 = vpop.f32.mrf.mxu3  ;;  %v5934_v45 = vadd.f32 %v5933_v12, %v5765_v29  ;;  %v5767_v1 = vpop.f32.mrf.mxu1  ;;  %v5599_v15 = vadd.f32 %v5598_v16, %v14618_v63  ;;  %v9558_v12 = vld [vmem:[%s14511_s0 + $0x1bc] sm:$0xf]  ;;  %v7190_v16 = vor.u32 %v9557_v40, %v7187_v34 }
 0x641   :  { %v13521_v37 = vadd.f32 %v6102_v58, %v5934_v45  ;;  %v5768_v49 = vadd.f32 %v5767_v1, %v5599_v15  ;;  %6153 = vmatmul.bf16.gmra.mxu0 %v7122_v57  ;;  %v7195_v58 = vld [vmem:[%s14511_s0 + $0x1f8] sm:$0xf0]  ;;  %v7186_v45 = vor.u32 %v9565_v50, %v7185_v24  ;;  %v14624_v50 = vld [vmem:[#allocation20_spill] sm:$0xff] }
 0x642   :  { %6322 = vmatmul.bf16.gmra.mxu1 %v7126_v11  ;;  %v7198_v15 = vor.u32 %v9558_v12, %v7195_v58  ;;  %v9573_v12 = vld [vmem:[%s14511_s0 + $0x234] sm:$0xf] }
 0x643   :  { %14619 = vst [vmem:[#allocation17_spill] sm:$0xff] %v13521_v37  ;;  %6491 = vmatmul.bf16.gmra.mxu2 %v7130_v46  ;;  %v7251_v58 = vld [vmem:[%s14511_s0 + $0x270] sm:$0xf0] }
 0x644   :  { %6660 = vmatmul.bf16.gmra.mxu3 %v7134_v54 }
 0x646   :  { %v5936_v10 = vpop.f32.mrf.mxu2  ;;  %v5600_v9 = vpop.f32.mrf.mxu0 }
 0x647   :  { %v6105_v21 = vpop.f32.mrf.mxu3  ;;  %v5937_v18 = vadd.f32 %v5936_v10, %v5768_v49  ;;  %v5769_v56 = vpop.f32.mrf.mxu1  ;;  %v5601_v29 = vadd.f32 %v5600_v9, %v14620_v5  ;;  %v7193_v9 = vld [vmem:[%s14511_s0 + $0x1b8] sm:$0xf]  ;;  %v14622_v49 = vld [vmem:[#allocation19_spill] sm:$0xff] }
 0x649   :  { %v13524_v7 = vadd.f32 %v6105_v21, %v5937_v18  ;;  %v5770_v19 = vadd.f32 %v5769_v56, %v5601_v29  ;;  %v9566_v18 = vld [vmem:[%s14511_s0 + $0x1f4] sm:$0xf0] }
 0x64a   :  { %v7194_v63 = vor.u32 %v9566_v18, %v7193_v9  ;;  %v7249_v9 = vld [vmem:[%s14511_s0 + $0x230] sm:$0xf] }
 0x64b   :  { %14621 = vst [vmem:[#allocation18_spill] sm:$0xff] %v13524_v7  ;;  %v9581_v18 = vld [vmem:[%s14511_s0 + $0x26c] sm:$0xf0] }
 0x64e   :  { %v5938_v57 = vpop.f32.mrf.mxu2  ;;  %v5603_v46 = vpop.f32.mrf.mxu0 }
 0x64f   :  { %v6107_v11 = vpop.f32.mrf.mxu3  ;;  %v5939_v1 = vadd.f32 %v5938_v57, %v5770_v19  ;;  %v5772_v54 = vpop.f32.mrf.mxu1  ;;  %v5604_v10 = vadd.f32 %v5603_v46, %v14622_v49  ;;  %v9574_v57 = vld [vmem:[%s14511_s0 + $0x23c] sm:$0xf]  ;;  %v7254_v46 = vor.u32 %v9573_v12, %v7251_v58  ;;  %v7313_v58 = vld [vmem:[%s14511_s0 + $0x2b0] sm:$0xf] }
 0x651   :  { %v13551_v21 = vadd.f32 %v6107_v11, %v5939_v1  ;;  %v5773_v56 = vadd.f32 %v5772_v54, %v5604_v10  ;;  %6158 = vmatmul.bf16.gmra.mxu0 %v7186_v45  ;;  %v7259_v11 = vld [vmem:[%s14511_s0 + $0x278] sm:$0xf0]  ;;  %v7250_v1 = vor.u32 %v9581_v18, %v7249_v9 }
 0x652   :  { %6327 = vmatmul.bf16.gmra.mxu1 %v7190_v16  ;;  %v7262_v10 = vor.u32 %v9574_v57, %v7259_v11  ;;  %v7315_v57 = vld [vmem:[%s14511_s0 + $0x2f0] sm:$0xf0]  ;;  %v7323_v11 = vld [vmem:[%s14511_s0 + $0x2f8] sm:$0xf0] }
 0x653   :  { %14623 = vst [vmem:[#allocation19_spill] sm:$0xff] %v13551_v21  ;;  %6496 = vmatmul.bf16.gmra.mxu2 %v7194_v63 }
 0x654   :  { %6665 = vmatmul.bf16.gmra.mxu3 %v7198_v15 }
 0x656   :  { %v5941_v5 = vpop.f32.mrf.mxu2  ;;  %v5605_v37 = vpop.f32.mrf.mxu0 }
 0x657   :  { %v6110_v29 = vpop.f32.mrf.mxu3  ;;  %v5942_v7 = vadd.f32 %v5941_v5, %v5773_v56  ;;  %v5774_v24 = vpop.f32.mrf.mxu1  ;;  %v5606_v19 = vadd.f32 %v5605_v37, %v14624_v50  ;;  %v7257_v37 = vld [vmem:[%s14511_s0 + $0x238] sm:$0xf] }
 0x658   :  { %v14626_v56 = vld [vmem:[#allocation21_spill] sm:$0xff] }
 0x659   :  { %v13554_v40 = vadd.f32 %v6110_v29, %v5942_v7  ;;  %v5775_v34 = vadd.f32 %v5774_v24, %v5606_v19  ;;  %v9582_v7 = vld [vmem:[%s14511_s0 + $0x274] sm:$0xf0] }
 0x65a   :  { %v7258_v49 = vor.u32 %v9582_v7, %v7257_v37  ;;  %v9597_v37 = vld [vmem:[%s14511_s0 + $0x2ec] sm:$0xf0]  ;;  %v9589_v7 = vld [vmem:[%s14511_s0 + $0x2b4] sm:$0xf] }
 0x65b   :  { %14625 = vst [vmem:[#allocation20_spill] sm:$0xff] %v13554_v40 }
 0x65e   :  { %v5943_v45 = vpop.f32.mrf.mxu2  ;;  %v5608_v63 = vpop.f32.mrf.mxu0 }
 0x65f   :  { %v6112_v16 = vpop.f32.mrf.mxu3  ;;  %v5944_v54 = vadd.f32 %v5943_v45, %v5775_v34  ;;  %v5777_v15 = vpop.f32.mrf.mxu1  ;;  %v5609_v5 = vadd.f32 %v5608_v63, %v14626_v56  ;;  %v14628_v56 = vld [vmem:[#allocation22_spill] sm:$0xff] }
 0x661   :  { %v13581_v29 = vadd.f32 %v6112_v16, %v5944_v54  ;;  %v5778_v24 = vadd.f32 %v5777_v15, %v5609_v5  ;;  %6163 = vmatmul.bf16.gmra.mxu0 %v7250_v1  ;;  %v7314_v1 = vor.u32 %v9597_v37, %v7313_v58  ;;  %v14630_v37 = vld [vmem:[#allocation23_spill] sm:$0xff] }
 0x662   :  { %6332 = vmatmul.bf16.gmra.mxu1 %v7254_v46  ;;  %v7318_v46 = vor.u32 %v9589_v7, %v7315_v57 }
 0x663   :  { %6501 = vmatmul.bf16.gmra.mxu2 %v7258_v49 }
 0x664   :  { %6670 = vmatmul.bf16.gmra.mxu3 %v7262_v10 }
 0x666   :  { %v5946_v50 = vpop.f32.mrf.mxu2  ;;  %v5610_v21 = vpop.f32.mrf.mxu0 }
 0x667   :  { %v6115_v19 = vpop.f32.mrf.mxu3  ;;  %v5947_v40 = vadd.f32 %v5946_v50, %v5778_v24  ;;  %v5779_v9 = vpop.f32.mrf.mxu1  ;;  %v5611_v34 = vadd.f32 %v5610_v21, %v12579_v25  ;;  %v7321_v25 = vld [vmem:[%s14511_s0 + $0x2b8] sm:$0xf] }
 0x668   :  { %v9598_v21 = vld [vmem:[%s14511_s0 + $0x2f4] sm:$0xf0] }
 0x669   :  { %v13584_v18 = vadd.f32 %v6115_v19, %v5947_v40  ;;  %v5780_v12 = vadd.f32 %v5779_v9, %v5611_v34  ;;  %v9590_v40 = vld [vmem:[%s14511_s0 + $0x2bc] sm:$0xf]  ;;  %v7322_v49 = vor.u32 %v9598_v21, %v7321_v25  ;;  %v7377_v25 = vld [vmem:[%s14511_s0 + $0x330] sm:$0xf] }
 0x66a   :  { %v7326_v10 = vor.u32 %v9590_v40, %v7323_v11  ;;  %v9613_v21 = vld [vmem:[%s14511_s0 + $0x36c] sm:$0xf0]  ;;  %v9605_v40 = vld [vmem:[%s14511_s0 + $0x334] sm:$0xf] }
 0x66b   :  { %14627 = vst [vmem:[#allocation21_spill] sm:$0xff] %v13584_v18  ;;  %v7379_v11 = vld [vmem:[%s14511_s0 + $0x370] sm:$0xf0] }
 0x66e   :  { %v5948_v45 = vpop.f32.mrf.mxu2  ;;  %v5613_v63 = vpop.f32.mrf.mxu0 }
 0x66f   :  { %v6117_v16 = vpop.f32.mrf.mxu3  ;;  %v5949_v54 = vadd.f32 %v5948_v45, %v5780_v12  ;;  %v5782_v15 = vpop.f32.mrf.mxu1  ;;  %v5614_v5 = vadd.f32 %v5613_v63, %v14628_v56  ;;  %v9614_v45 = vld [vmem:[%s14511_s0 + $0x374] sm:$0xf0]  ;;  %v7378_v63 = vor.u32 %v9613_v21, %v7377_v25 }
 0x671   :  { %v13611_v24 = vadd.f32 %v6117_v16, %v5949_v54  ;;  %v5783_v50 = vadd.f32 %v5782_v15, %v5614_v5  ;;  %6168 = vmatmul.bf16.gmra.mxu0 %v7314_v1  ;;  %v9606_v16 = vld [vmem:[%s14511_s0 + $0x33c] sm:$0xf]  ;;  %v7382_v15 = vor.u32 %v9605_v40, %v7379_v11  ;;  %v7441_v11 = vld [vmem:[%s14511_s0 + $0x3b0] sm:$0xf] }
 0x672   :  { %6337 = vmatmul.bf16.gmra.mxu1 %v7318_v46  ;;  %v7387_v1 = vld [vmem:[%s14511_s0 + $0x378] sm:$0xf0] }
 0x673   :  { %14629 = vst [vmem:[#allocation22_spill] sm:$0xff] %v13611_v24  ;;  %6506 = vmatmul.bf16.gmra.mxu2 %v7322_v49 }
 0x674   :  { %6675 = vmatmul.bf16.gmra.mxu3 %v7326_v10 }
 0x676   :  { %v5951_v19 = vpop.f32.mrf.mxu2  ;;  %v5615_v18 = vpop.f32.mrf.mxu0 }
 0x677   :  { %v6120_v9 = vpop.f32.mrf.mxu3  ;;  %v5952_v34 = vadd.f32 %v5951_v19, %v5783_v50  ;;  %v5784_v58 = vpop.f32.mrf.mxu1  ;;  %v5616_v12 = vadd.f32 %v5615_v18, %v14630_v37  ;;  %v7385_v18 = vld [vmem:[%s14511_s0 + $0x338] sm:$0xf]  ;;  %v7390_v50 = vor.u32 %v9606_v16, %v7387_v1  ;;  %v14632_v19 = vld [vmem:[#allocation24_spill] sm:$0xff]  ;;  %v7451_v1 = vld [vmem:[%s14511_s0 + $0x3f8] sm:$0xf0] }
 0x678   :  { %v7386_v5 = vor.u32 %v9614_v45, %v7385_v18  ;;  %v9629_v18 = vld [vmem:[%s14511_s0 + $0x3ec] sm:$0xf0]  ;;  %v9621_v45 = vld [vmem:[%s14511_s0 + $0x3b4] sm:$0xf] }
 0x679   :  { %v13614_v7 = vadd.f32 %v6120_v9, %v5952_v34  ;;  %v5785_v57 = vadd.f32 %v5784_v58, %v5616_v12  ;;  %v7443_v16 = vld [vmem:[%s14511_s0 + $0x3f0] sm:$0xf0] }
 0x67b   :  { %14631 = vst [vmem:[#allocation23_spill] sm:$0xff] %v13614_v7 }
 0x67e   :  { %v5953_v46 = vpop.f32.mrf.mxu2  ;;  %v5618_v10 = vpop.f32.mrf.mxu0 }
 0x67f   :  { %v6122_v54 = vpop.f32.mrf.mxu3  ;;  %v5954_v49 = vadd.f32 %v5953_v46, %v5785_v57  ;;  %v5787_v56 = vpop.f32.mrf.mxu1  ;;  %v5619_v9 = vadd.f32 %v5618_v10, %v14632_v19 }
 0x681   :  { %v13641_v34 = vadd.f32 %v6122_v54, %v5954_v49  ;;  %v5788_v58 = vadd.f32 %v5787_v56, %v5619_v9  ;;  %6173 = vmatmul.bf16.gmra.mxu0 %v7378_v63  ;;  %v7442_v63 = vor.u32 %v9629_v18, %v7441_v11 }
 0x682   :  { %6342 = vmatmul.bf16.gmra.mxu1 %v7382_v15  ;;  %v7446_v15 = vor.u32 %v9621_v45, %v7443_v16  ;;  %v9645_v16 = vld [vmem:[%s14511_s0 + $0x46c] sm:$0xf0] }
 0x683   :  { %6511 = vmatmul.bf16.gmra.mxu2 %v7386_v5 }
 0x684   :  { %6680 = vmatmul.bf16.gmra.mxu3 %v7390_v50 }
 0x686   :  { %v5956_v37 = vpop.f32.mrf.mxu2  ;;  %v5620_v24 = vpop.f32.mrf.mxu0 }
 0x687   :  { %v6125_v12 = vpop.f32.mrf.mxu3  ;;  %v5957_v7 = vadd.f32 %v5956_v37, %v5788_v58  ;;  %v5789_v25 = vpop.f32.mrf.mxu1  ;;  %v5621_v57 = vadd.f32 %v5620_v24, %v12651_v31  ;;  %v7449_v31 = vld [vmem:[%s14511_s0 + $0x3b8] sm:$0xf] }
 0x688   :  { %v9630_v24 = vld [vmem:[%s14511_s0 + $0x3f4] sm:$0xf0] }
 0x689   :  { %v13644_v21 = vadd.f32 %v6125_v12, %v5957_v7  ;;  %v5790_v40 = vadd.f32 %v5789_v25, %v5621_v57  ;;  %v9622_v7 = vld [vmem:[%s14511_s0 + $0x3bc] sm:$0xf]  ;;  %v7450_v5 = vor.u32 %v9630_v24, %v7449_v31  ;;  %v9637_v31 = vld [vmem:[%s14511_s0 + $0x434] sm:$0xf] }
 0x68a   :  { %v7454_v50 = vor.u32 %v9622_v7, %v7451_v1  ;;  %v7507_v24 = vld [vmem:[%s14511_s0 + $0x470] sm:$0xf0]  ;;  %v9646_v7 = vld [vmem:[%s14511_s0 + $0x474] sm:$0xf0]  ;;  %v9638_v1 = vld [vmem:[%s14511_s0 + $0x43c] sm:$0xf] }
 0x68e   :  { %v5958_v46 = vpop.f32.mrf.mxu2  ;;  %v5623_v10 = vpop.f32.mrf.mxu0 }
 0x68f   :  { %v6127_v54 = vpop.f32.mrf.mxu3  ;;  %v5959_v49 = vadd.f32 %v5958_v46, %v5790_v40  ;;  %v5792_v56 = vpop.f32.mrf.mxu1  ;;  %v5624_v19 = vadd.f32 %v5623_v10, %v12654_v26  ;;  %v7505_v26 = vld [vmem:[%s14511_s0 + $0x430] sm:$0xf]  ;;  %v7515_v46 = vld [vmem:[%s14511_s0 + $0x478] sm:$0xf0] }
 0x691   :  { %v13671_v9 = vadd.f32 %v6127_v54, %v5959_v49  ;;  %v5793_v58 = vadd.f32 %v5792_v56, %v5624_v19  ;;  %6178 = vmatmul.bf16.gmra.mxu0 %v7442_v63  ;;  %v7510_v49 = vor.u32 %v9637_v31, %v7507_v24  ;;  %v7518_v19 = vor.u32 %v9638_v1, %v7515_v46  ;;  %v7569_v31 = vld [vmem:[%s14511_s0 + $0x4b0] sm:$0xf]  ;;  %v9653_v24 = vld [vmem:[%s14511_s0 + $0x4b4] sm:$0xf]  ;;  %v9654_v1 = vld [vmem:[%s14511_s0 + $0x4bc] sm:$0xf] }
 0x692   :  { %6347 = vmatmul.bf16.gmra.mxu1 %v7446_v15  ;;  %v7506_v15 = vor.u32 %v9645_v16, %v7505_v26  ;;  %v7579_v46 = vld [vmem:[%s14511_s0 + $0x4f8] sm:$0xf0] }
 0x693   :  { %6516 = vmatmul.bf16.gmra.mxu2 %v7450_v5 }
 0x694   :  { %6685 = vmatmul.bf16.gmra.mxu3 %v7454_v50 }
 0x696   :  { %v5961_v37 = vpop.f32.mrf.mxu2  ;;  %v5625_v57 = vpop.f32.mrf.mxu0 }
 0x697   :  { %v6130_v12 = vpop.f32.mrf.mxu3  ;;  %v5962_v25 = vadd.f32 %v5961_v37, %v5793_v58  ;;  %v5794_v11 = vpop.f32.mrf.mxu1  ;;  %v5626_v40 = vadd.f32 %v5625_v57, %v12681_v28  ;;  %v7513_v28 = vld [vmem:[%s14511_s0 + $0x438] sm:$0xf] }
 0x698   :  { %v7514_v50 = vor.u32 %v9646_v7, %v7513_v28  ;;  %v7571_v28 = vld [vmem:[%s14511_s0 + $0x4f0] sm:$0xf0]  ;;  %v9662_v7 = vld [vmem:[%s14511_s0 + $0x4f4] sm:$0xf0] }
 0x699   :  { %v13674_v18 = vadd.f32 %v6130_v12, %v5962_v25  ;;  %v5795_v45 = vadd.f32 %v5794_v11, %v5626_v40 }
 0x69e   :  { %v5963_v54 = vpop.f32.mrf.mxu2  ;;  %v6144_v56 = vpop.f32.mrf.mxu0 }
 0x69f   :  { %v6132_v63 = vpop.f32.mrf.mxu3  ;;  %v5964_v10 = vadd.f32 %v5963_v54, %v5795_v45  ;;  %v6313_v5 = vpop.f32.mrf.mxu1  ;;  %v6145_v37 = vadd.f32 %v6144_v56, %v12684_v30  ;;  %v9661_v30 = vld [vmem:[%s14511_s0 + $0x4ec] sm:$0xf0] }
 0x6a1   :  { %v13700_v58 = vadd.f32 %v6132_v63, %v5964_v10  ;;  %6183 = vmatmul.bf16.gmra.mxu0 %v7506_v15  ;;  %v6314_v12 = vadd.f32 %v6313_v5, %v6145_v37  ;;  %v7574_v10 = vor.u32 %v9653_v24, %v7571_v28  ;;  %v7582_v37 = vor.u32 %v9654_v1, %v7579_v46  ;;  %v7641_v1 = vld [vmem:[%s14511_s0 + $0x538] sm:$0xf] }
 0x6a2   :  { %6352 = vmatmul.bf16.gmra.mxu1 %v7510_v49  ;;  %v7570_v49 = vor.u32 %v9661_v30, %v7569_v31  ;;  %v9678_v46 = vld [vmem:[%s14511_s0 + $0x574] sm:$0xf0] }
 0x6a3   :  { %6521 = vmatmul.bf16.gmra.mxu2 %v7514_v50 }
 0x6a4   :  { %6690 = vmatmul.bf16.gmra.mxu3 %v7518_v19 }
 0x6a6   :  { %v6482_v25 = vpop.f32.mrf.mxu2  ;;  %v6146_v40 = vpop.f32.mrf.mxu0 }
 0x6a7   :  { %v6651_v57 = vpop.f32.mrf.mxu3  ;;  %v6483_v11 = vadd.f32 %v6482_v25, %v6314_v12  ;;  %v6315_v26 = vpop.f32.mrf.mxu1  ;;  %v6147_v45 = vadd.f32 %v6146_v40, %v12711_v4  ;;  %v7577_v4 = vld [vmem:[%s14511_s0 + $0x4b8] sm:$0xf] }
 0x6a8   :  { %v7578_v19 = vor.u32 %v9662_v7, %v7577_v4  ;;  %v9677_v4 = vld [vmem:[%s14511_s0 + $0x56c] sm:$0xf0]  ;;  %v9669_v7 = vld [vmem:[%s14511_s0 + $0x534] sm:$0xf] }
 0x6a9   :  { %v6652_v16 = vadd.f32 %v6651_v57, %v6483_v11  ;;  %v6316_v54 = vadd.f32 %v6315_v26, %v6147_v45 }
 0x6ab   :  { %10143 = vtanh.f32 %v6652_v16 }
 0x6ae   :  { %v6484_v63 = vpop.f32.mrf.mxu2  ;;  %v6149_v5 = vpop.f32.mrf.mxu0 }
 0x6af   :  { %v6653_v15 = vpop.f32.mrf.mxu3  ;;  %v6485_v56 = vadd.f32 %v6484_v63, %v6316_v54  ;;  %v6318_v50 = vpop.f32.mrf.mxu1  ;;  %v6150_v57 = vadd.f32 %v6149_v5, %v12714_v8  ;;  %v7633_v8 = vld [vmem:[%s14511_s0 + $0x530] sm:$0xf]  ;;  %v9670_v54 = vld [vmem:[%s14511_s0 + $0x53c] sm:$0xf] }
 0x6b0   :  { %v7643_v63 = vld [vmem:[%s14511_s0 + $0x578] sm:$0xf0] }
 0x6b1   :  { %v10144_v12 = vpop.eup %10143  ;;  %v6654_v25 = vadd.f32 %v6653_v15, %v6485_v56  ;;  %6188 = vmatmul.bf16.gmra.mxu0 %v7570_v49  ;;  %v6319_v11 = vadd.f32 %v6318_v50, %v6150_v57  ;;  %v7634_v56 = vor.u32 %v9677_v4, %v7633_v8 }
 0x6b2   :  { %6875 = vst [vmem:[%s14512_s2] sm:$0xff] %v10144_v12  ;;  %6357 = vmatmul.bf16.gmra.mxu1 %v7574_v10  ;;  %v7642_v12 = vor.u32 %v9678_v46, %v7641_v1  ;;  %v7705_v1 = vld [vmem:[%s14511_s0 + $0x5b8] sm:$0xf] }
 0x6b3   :  { %10145 = vtanh.f32 %v6654_v25  ;;  %6526 = vmatmul.bf16.gmra.mxu2 %v7578_v19  ;;  %v7646_v25 = vor.u32 %v9670_v54, %v7643_v63  ;;  %v9694_v46 = vld [vmem:[%s14511_s0 + $0x5f4] sm:$0xf0]  ;;  %v9686_v54 = vld [vmem:[%s14511_s0 + $0x5bc] sm:$0xf] }
 0x6b4   :  { %6695 = vmatmul.bf16.gmra.mxu3 %v7582_v37  ;;  %v7707_v63 = vld [vmem:[%s14511_s0 + $0x5f8] sm:$0xf0] }
 0x6b6   :  { %v6487_v40 = vpop.f32.mrf.mxu2  ;;  %v6151_v45 = vpop.f32.mrf.mxu0 }
 0x6b7   :  { %v6656_v26 = vpop.f32.mrf.mxu3  ;;  %v6488_v16 = vadd.f32 %v6487_v40, %v6319_v11  ;;  %v6320_v31 = vpop.f32.mrf.mxu1  ;;  %v6152_v28 = vadd.f32 %v6151_v45, %v12741_v17  ;;  %v7635_v17 = vld [vmem:[%s14511_s0 + $0x570] sm:$0xf0] }
 0x6b8   :  { %v7638_v5 = vor.u32 %v9669_v7, %v7635_v17  ;;  %v9693_v7 = vld [vmem:[%s14511_s0 + $0x5ec] sm:$0xf0]  ;;  %v9685_v17 = vld [vmem:[%s14511_s0 + $0x5b4] sm:$0xf] }
 0x6b9   :  { %v10146_v30 = vpop.eup %10145  ;;  %v6657_v24 = vadd.f32 %v6656_v26, %v6488_v16  ;;  %v6321_v15 = vadd.f32 %v6320_v31, %v6152_v28 }
 0x6ba   :  { %6876 = vst [vmem:[%s14512_s2 + $0x8] sm:$0xff] %v10146_v30 }
 0x6bb   :  { %10147 = vtanh.f32 %v6657_v24 }
 0x6be   :  { %v6489_v49 = vpop.f32.mrf.mxu2  ;;  %v6154_v19 = vpop.f32.mrf.mxu0 }
 0x6bf   :  { %v6658_v10 = vpop.f32.mrf.mxu3  ;;  %v6490_v50 = vadd.f32 %v6489_v49, %v6321_v15  ;;  %v6323_v37 = vpop.f32.mrf.mxu1  ;;  %v6155_v40 = vadd.f32 %v6154_v19, %v12753_v0  ;;  %v7697_v0 = vld [vmem:[%s14511_s0 + $0x5b0] sm:$0xf] }
 0x6c1   :  { %v10148_v57 = vpop.eup %10147  ;;  %v6659_v11 = vadd.f32 %v6658_v10, %v6490_v50  ;;  %6193 = vmatmul.bf16.gmra.mxu0 %v7634_v56  ;;  %v6324_v26 = vadd.f32 %v6323_v37, %v6155_v40  ;;  %v7698_v56 = vor.u32 %v9693_v7, %v7697_v0  ;;  %v9709_v0 = vld [vmem:[%s14511_s0 + $0x66c] sm:$0xf0]  ;;  %v9701_v7 = vld [vmem:[%s14511_s0 + $0x634] sm:$0xf] }
 0x6c2   :  { %6877 = vst [vmem:[%s14512_s2 + $0x10] sm:$0xff] %v10148_v57  ;;  %6362 = vmatmul.bf16.gmra.mxu1 %v7638_v5 }
 0x6c3   :  { %10149 = vtanh.f32 %v6659_v11  ;;  %6531 = vmatmul.bf16.gmra.mxu2 %v7642_v12  ;;  %v7706_v12 = vor.u32 %v9694_v46, %v7705_v1  ;;  %v9702_v1 = vld [vmem:[%s14511_s0 + $0x63c] sm:$0xf] }
 0x6c4   :  { %6700 = vmatmul.bf16.gmra.mxu3 %v7646_v25  ;;  %v7710_v25 = vor.u32 %v9686_v54, %v7707_v63  ;;  %v7771_v46 = vld [vmem:[%s14511_s0 + $0x678] sm:$0xf0] }
 0x6c6   :  { %v6492_v16 = vpop.f32.mrf.mxu2  ;;  %v6156_v30 = vpop.f32.mrf.mxu0 }
 0x6c7   :  { %v6661_v45 = vpop.f32.mrf.mxu3  ;;  %v6493_v31 = vadd.f32 %v6492_v16, %v6324_v26  ;;  %v6325_v24 = vpop.f32.mrf.mxu1  ;;  %v6157_v4 = vadd.f32 %v6156_v30, %v12783_v62  ;;  %v7699_v62 = vld [vmem:[%s14511_s0 + $0x5f0] sm:$0xf0] }
 0x6c8   :  { %v7702_v5 = vor.u32 %v9685_v17, %v7699_v62  ;;  %v7769_v17 = vld [vmem:[%s14511_s0 + $0x638] sm:$0xf] }
 0x6c9   :  { %v10150_v28 = vpop.eup %10149  ;;  %v6662_v8 = vadd.f32 %v6661_v45, %v6493_v31  ;;  %v6326_v15 = vadd.f32 %v6325_v24, %v6157_v4  ;;  %v9710_v62 = vld [vmem:[%s14511_s0 + $0x674] sm:$0xf0] }
 0x6ca   :  { %6878 = vst [vmem:[%s14512_s2 + $0x18] sm:$0xff] %v10150_v28 }
 0x6cb   :  { %10151 = vtanh.f32 %v6662_v8 }
 0x6ce   :  { %v6494_v49 = vpop.f32.mrf.mxu2  ;;  %v6159_v19 = vpop.f32.mrf.mxu0 }
 0x6cf   :  { %v6663_v10 = vpop.f32.mrf.mxu3  ;;  %v6495_v50 = vadd.f32 %v6494_v49, %v6326_v15  ;;  %v6328_v37 = vpop.f32.mrf.mxu1  ;;  %v6160_v40 = vadd.f32 %v6159_v19, %v12786_v53  ;;  %v7761_v53 = vld [vmem:[%s14511_s0 + $0x630] sm:$0xf]  ;;  %v7770_v19 = vor.u32 %v9710_v62, %v7769_v17 }
 0x6d0   :  { %v7762_v49 = vor.u32 %v9709_v0, %v7761_v53  ;;  %v7833_v53 = vld [vmem:[%s14511_s0 + $0x6b8] sm:$0xf] }
 0x6d1   :  { %v10152_v57 = vpop.eup %10151  ;;  %v6664_v11 = vadd.f32 %v6663_v10, %v6495_v50  ;;  %6198 = vmatmul.bf16.gmra.mxu0 %v7698_v56  ;;  %v6329_v26 = vadd.f32 %v6328_v37, %v6160_v40  ;;  %v7774_v37 = vor.u32 %v9702_v1, %v7771_v46  ;;  %v9726_v0 = vld [vmem:[%s14511_s0 + $0x6f4] sm:$0xf0] }
 0x6d2   :  { %6879 = vst [vmem:[%s14512_s2 + $0x20] sm:$0xff] %v10152_v57  ;;  %6367 = vmatmul.bf16.gmra.mxu1 %v7702_v5 }
 0x6d3   :  { %10153 = vtanh.f32 %v6664_v11  ;;  %6536 = vmatmul.bf16.gmra.mxu2 %v7706_v12 }
 0x6d4   :  { %6705 = vmatmul.bf16.gmra.mxu3 %v7710_v25 }
 0x6d6   :  { %v6497_v16 = vpop.f32.mrf.mxu2  ;;  %v6161_v30 = vpop.f32.mrf.mxu0 }
 0x6d7   :  { %v6666_v45 = vpop.f32.mrf.mxu3  ;;  %v6498_v31 = vadd.f32 %v6497_v16, %v6329_v26  ;;  %v6330_v24 = vpop.f32.mrf.mxu1  ;;  %v6162_v4 = vadd.f32 %v6161_v30, %v12813_v48  ;;  %v7763_v48 = vld [vmem:[%s14511_s0 + $0x670] sm:$0xf0] }
 0x6d8   :  { %v7766_v10 = vor.u32 %v9701_v7, %v7763_v48  ;;  %v9718_v7 = vld [vmem:[%s14511_s0 + $0x6bc] sm:$0xf] }
 0x6d9   :  { %v10154_v28 = vpop.eup %10153  ;;  %v6667_v8 = vadd.f32 %v6666_v45, %v6498_v31  ;;  %v6331_v54 = vadd.f32 %v6330_v24, %v6162_v4  ;;  %v9717_v4 = vld [vmem:[%s14511_s0 + $0x6b4] sm:$0xf]  ;;  %v7835_v48 = vld [vmem:[%s14511_s0 + $0x6f8] sm:$0xf0] }
 0x6da   :  { %6880 = vst [vmem:[%s14512_s2 + $0x28] sm:$0xff] %v10154_v28 }
 0x6db   :  { %10155 = vtanh.f32 %v6667_v8  ;;  %v9725_v8 = vld [vmem:[%s14511_s0 + $0x6ec] sm:$0xf0] }
 0x6de   :  { %v6499_v63 = vpop.f32.mrf.mxu2  ;;  %v6164_v5 = vpop.f32.mrf.mxu0 }
 0x6df   :  { %v6668_v15 = vpop.f32.mrf.mxu3  ;;  %v6500_v56 = vadd.f32 %v6499_v63, %v6331_v54  ;;  %v6333_v50 = vpop.f32.mrf.mxu1  ;;  %v6165_v57 = vadd.f32 %v6164_v5, %v12816_v32  ;;  %v7825_v32 = vld [vmem:[%s14511_s0 + $0x6b0] sm:$0xf] }
 0x6e0   :  { %v7826_v46 = vor.u32 %v9725_v8, %v7825_v32  ;;  %v9734_v32 = vld [vmem:[%s14511_s0 + $0x73c] sm:$0xf] }
 0x6e1   :  { %v10156_v12 = vpop.eup %10155  ;;  %v6669_v25 = vadd.f32 %v6668_v15, %v6500_v56  ;;  %6203 = vmatmul.bf16.gmra.mxu0 %v7762_v49  ;;  %v6334_v11 = vadd.f32 %v6333_v50, %v6165_v57  ;;  %v7838_v56 = vor.u32 %v9718_v7, %v7835_v48  ;;  %v7899_v8 = vld [vmem:[%s14511_s0 + $0x778] sm:$0xf0] }
 0x6e2   :  { %6881 = vst [vmem:[%s14512_s2 + $0x30] sm:$0xff] %v10156_v12  ;;  %6372 = vmatmul.bf16.gmra.mxu1 %v7766_v10  ;;  %v7834_v10 = vor.u32 %v9726_v0, %v7833_v53 }
 0x6e3   :  { %10157 = vtanh.f32 %v6669_v25  ;;  %6541 = vmatmul.bf16.gmra.mxu2 %v7770_v19 }
 0x6e4   :  { %6710 = vmatmul.bf16.gmra.mxu3 %v7774_v37 }
 0x6e6   :  { %v6502_v40 = vpop.f32.mrf.mxu2  ;;  %v6166_v45 = vpop.f32.mrf.mxu0 }
 0x6e7   :  { %v6671_v26 = vpop.f32.mrf.mxu3  ;;  %v6503_v16 = vadd.f32 %v6502_v40, %v6334_v11  ;;  %v6335_v31 = vpop.f32.mrf.mxu1  ;;  %v6167_v28 = vadd.f32 %v6166_v45, %v12843_v36  ;;  %v7827_v36 = vld [vmem:[%s14511_s0 + $0x6f0] sm:$0xf0] }
 0x6e8   :  { %v7830_v54 = vor.u32 %v9717_v4, %v7827_v36 }
 0x6e9   :  { %v10158_v30 = vpop.eup %10157  ;;  %v6672_v24 = vadd.f32 %v6671_v26, %v6503_v16  ;;  %v6336_v17 = vadd.f32 %v6335_v31, %v6167_v28  ;;  %v9741_v31 = vld [vmem:[%s14511_s0 + $0x76c] sm:$0xf0]  ;;  %v9742_v28 = vld [vmem:[%s14511_s0 + $0x774] sm:$0xf0] }
 0x6ea   :  { %6882 = vst [vmem:[%s14512_s2 + $0x38] sm:$0xff] %v10158_v30  ;;  %v9733_v30 = vld [vmem:[%s14511_s0 + $0x734] sm:$0xf] }
 0x6eb   :  { %10159 = vtanh.f32 %v6672_v24  ;;  %v7897_v24 = vld [vmem:[%s14511_s0 + $0x738] sm:$0xf] }
 0x6ee   :  { %v6504_v62 = vpop.f32.mrf.mxu2  ;;  %v6169_v15 = vpop.f32.mrf.mxu0 }
 0x6ef   :  { %v6673_v1 = vpop.f32.mrf.mxu3  ;;  %v6505_v63 = vadd.f32 %v6504_v62, %v6336_v17  ;;  %v6338_v49 = vpop.f32.mrf.mxu1  ;;  %v6170_v19 = vadd.f32 %v6169_v15, %v12846_v35  ;;  %v7889_v35 = vld [vmem:[%s14511_s0 + $0x730] sm:$0xf] }
 0x6f0   :  { %v7890_v0 = vor.u32 %v9741_v31, %v7889_v35 }
 0x6f1   :  { %v10160_v5 = vpop.eup %10159  ;;  %v6674_v50 = vadd.f32 %v6673_v1, %v6505_v63  ;;  %6208 = vmatmul.bf16.gmra.mxu0 %v7826_v46  ;;  %v6339_v37 = vadd.f32 %v6338_v49, %v6170_v19  ;;  %v7898_v1 = vor.u32 %v9742_v28, %v7897_v24  ;;  %v7902_v46 = vor.u32 %v9734_v32, %v7899_v8 }
 0x6f2   :  { %6883 = vst [vmem:[%s14512_s2 + $0x40] sm:$0xff] %v10160_v5  ;;  %6377 = vmatmul.bf16.gmra.mxu1 %v7830_v54 }
 0x6f3   :  { %10161 = vtanh.f32 %v6674_v50  ;;  %6546 = vmatmul.bf16.gmra.mxu2 %v7834_v10 }
 0x6f4   :  { %6715 = vmatmul.bf16.gmra.mxu3 %v7838_v56 }
 0x6f6   :  { %v6507_v12 = vpop.f32.mrf.mxu2  ;;  %v6171_v11 = vpop.f32.mrf.mxu0 }
 0x6f7   :  { %v6676_v25 = vpop.f32.mrf.mxu3  ;;  %v6508_v57 = vadd.f32 %v6507_v12, %v6339_v37  ;;  %v6340_v40 = vpop.f32.mrf.mxu1  ;;  %v6172_v45 = vadd.f32 %v6171_v11, %v12873_v47  ;;  %v7891_v47 = vld [vmem:[%s14511_s0 + $0x770] sm:$0xf0] }
 0x6f8   :  { %v7894_v7 = vor.u32 %v9733_v30, %v7891_v47  ;;  %v9749_v11 = vld [vmem:[%s14511_s0 + $0x7b4] sm:$0xf] }
 0x6f9   :  { %v10162_v26 = vpop.eup %10161  ;;  %v6677_v16 = vadd.f32 %v6676_v25, %v6508_v57  ;;  %v6341_v4 = vadd.f32 %v6340_v40, %v6172_v45  ;;  %v9757_v57 = vld [vmem:[%s14511_s0 + $0x7ec] sm:$0xf0]  ;;  %v7961_v40 = vld [vmem:[%s14511_s0 + $0x7b8] sm:$0xf]  ;;  %v7963_v45 = vld [vmem:[%s14511_s0 + $0x7f8] sm:$0xf0] }
 0x6fa   :  { %6884 = vst [vmem:[%s14512_s2 + $0x48] sm:$0xff] %v10162_v26  ;;  %v9758_v26 = vld [vmem:[%s14511_s0 + $0x7f4] sm:$0xf0] }
 0x6fb   :  { %10163 = vtanh.f32 %v6677_v16  ;;  %v9750_v16 = vld [vmem:[%s14511_s0 + $0x7bc] sm:$0xf] }
 0x6fe   :  { %v6509_v36 = vpop.f32.mrf.mxu2  ;;  %v6174_v17 = vpop.f32.mrf.mxu0 }
 0x6ff   :  { %v6678_v53 = vpop.f32.mrf.mxu3  ;;  %v6510_v48 = vadd.f32 %v6509_v36, %v6341_v4  ;;  %v6343_v62 = vpop.f32.mrf.mxu1  ;;  %v6175_v15 = vadd.f32 %v6174_v17, %v12885_v27  ;;  %v7953_v27 = vld [vmem:[%s14511_s0 + $0x7b0] sm:$0xf]  ;;  %v7962_v4 = vor.u32 %v9758_v26, %v7961_v40  ;;  %v7966_v36 = vor.u32 %v9750_v16, %v7963_v45 }
 0x700   :  { %v7954_v47 = vor.u32 %v9757_v57, %v7953_v27 }
 0x701   :  { %v10164_v54 = vpop.eup %10163  ;;  %v6679_v63 = vadd.f32 %v6678_v53, %v6510_v48  ;;  %6213 = vmatmul.bf16.gmra.mxu0 %v7890_v0  ;;  %v6344_v49 = vadd.f32 %v6343_v62, %v6175_v15 }
 0x702   :  { %6885 = vst [vmem:[%s14512_s2 + $0x50] sm:$0xff] %v10164_v54  ;;  %6382 = vmatmul.bf16.gmra.mxu1 %v7894_v7 }
 0x703   :  { %10165 = vtanh.f32 %v6679_v63  ;;  %6551 = vmatmul.bf16.gmra.mxu2 %v7898_v1 }
 0x704   :  { %6720 = vmatmul.bf16.gmra.mxu3 %v7902_v46 }
 0x706   :  { %v6512_v10 = vpop.f32.mrf.mxu2  ;;  %v6176_v50 = vpop.f32.mrf.mxu0 }
 0x707   :  { %v6681_v56 = vpop.f32.mrf.mxu3  ;;  %v6513_v5 = vadd.f32 %v6512_v10, %v6344_v49  ;;  %v6345_v19 = vpop.f32.mrf.mxu1  ;;  %v6177_v25 = vadd.f32 %v6176_v50, %v12915_v23  ;;  %v7955_v23 = vld [vmem:[%s14511_s0 + $0x7f0] sm:$0xf0]  ;;  %v9773_v10 = vld [vmem:[%s14511_s0 + $0x86c] sm:$0xf0]  ;;  %v9774_v50 = vld [vmem:[%s14511_s0 + $0x874] sm:$0xf0] }
 0x708   :  { %v7958_v24 = vor.u32 %v9749_v11, %v7955_v23 }
 0x709   :  { %v10166_v37 = vpop.eup %10165  ;;  %v6682_v12 = vadd.f32 %v6681_v56, %v6513_v5  ;;  %v6346_v35 = vadd.f32 %v6345_v19, %v6177_v25  ;;  %v9765_v56 = vld [vmem:[%s14511_s0 + $0x834] sm:$0xf]  ;;  %v8025_v5 = vld [vmem:[%s14511_s0 + $0x838] sm:$0xf]  ;;  %v9766_v19 = vld [vmem:[%s14511_s0 + $0x83c] sm:$0xf] }
 0x70a   :  { %6886 = vst [vmem:[%s14512_s2 + $0x58] sm:$0xff] %v10166_v37  ;;  %v8027_v37 = vld [vmem:[%s14511_s0 + $0x878] sm:$0xf0]  ;;  %v8026_v16 = vor.u32 %v9774_v50, %v8025_v5 }
 0x70b   :  { %10167 = vtanh.f32 %v6682_v12  ;;  %v8030_v45 = vor.u32 %v9766_v19, %v8027_v37 }
 0x70e   :  { %v6514_v31 = vpop.f32.mrf.mxu2  ;;  %v6179_v32 = vpop.f32.mrf.mxu0 }
 0x70f   :  { %v6683_v30 = vpop.f32.mrf.mxu3  ;;  %v6515_v28 = vadd.f32 %v6514_v31, %v6346_v35  ;;  %v6348_v8 = vpop.f32.mrf.mxu1  ;;  %v6180_v7 = vadd.f32 %v6179_v32, %v12918_v51  ;;  %v8017_v51 = vld [vmem:[%s14511_s0 + $0x830] sm:$0xf] }
 0x710   :  { %v8018_v57 = vor.u32 %v9773_v10, %v8017_v51 }
 0x711   :  { %v10168_v53 = vpop.eup %10167  ;;  %v6684_v0 = vadd.f32 %v6683_v30, %v6515_v28  ;;  %6218 = vmatmul.bf16.gmra.mxu0 %v7954_v47  ;;  %v6349_v48 = vadd.f32 %v6348_v8, %v6180_v7  ;;  %v9789_v7 = vld [vmem:[%s14511_s0 + $0x8ec] sm:$0xf0] }
 0x712   :  { %6887 = vst [vmem:[%s14512_s2 + $0x60] sm:$0xff] %v10168_v53  ;;  %6387 = vmatmul.bf16.gmra.mxu1 %v7958_v24 }
 0x713   :  { %10169 = vtanh.f32 %v6684_v0  ;;  %6556 = vmatmul.bf16.gmra.mxu2 %v7962_v4 }
 0x714   :  { %6725 = vmatmul.bf16.gmra.mxu3 %v7966_v36 }
 0x716   :  { %v6517_v17 = vpop.f32.mrf.mxu2  ;;  %v6181_v46 = vpop.f32.mrf.mxu0 }
 0x717   :  { %v6686_v62 = vpop.f32.mrf.mxu3  ;;  %v6518_v1 = vadd.f32 %v6517_v17, %v6349_v48  ;;  %v6350_v54 = vpop.f32.mrf.mxu1  ;;  %v6182_v49 = vadd.f32 %v6181_v46, %v12945_v61  ;;  %v8019_v61 = vld [vmem:[%s14511_s0 + $0x870] sm:$0xf0]  ;;  %v8089_v17 = vld [vmem:[%s14511_s0 + $0x8b8] sm:$0xf]  ;;  %v8091_v46 = vld [vmem:[%s14511_s0 + $0x8f8] sm:$0xf0] }
 0x718   :  { %v8022_v11 = vor.u32 %v9765_v56, %v8019_v61  ;;  %v9781_v48 = vld [vmem:[%s14511_s0 + $0x8b4] sm:$0xf] }
 0x719   :  { %v10170_v63 = vpop.eup %10169  ;;  %v6687_v15 = vadd.f32 %v6686_v62, %v6518_v1  ;;  %v6351_v12 = vadd.f32 %v6350_v54, %v6182_v49  ;;  %v9790_v62 = vld [vmem:[%s14511_s0 + $0x8f4] sm:$0xf0]  ;;  %v9782_v1 = vld [vmem:[%s14511_s0 + $0x8bc] sm:$0xf] }
 0x71a   :  { %6888 = vst [vmem:[%s14512_s2 + $0x68] sm:$0xff] %v10170_v63  ;;  %v8090_v5 = vor.u32 %v9790_v62, %v8089_v17  ;;  %v8094_v50 = vor.u32 %v9782_v1, %v8091_v46 }
 0x71b   :  { %10171 = vtanh.f32 %v6687_v15 }
 0x71e   :  { %v6519_v25 = vpop.f32.mrf.mxu2  ;;  %v6184_v40 = vpop.f32.mrf.mxu0 }
 0x71f   :  { %v6688_v27 = vpop.f32.mrf.mxu3  ;;  %v6520_v23 = vadd.f32 %v6519_v25, %v6351_v12  ;;  %v6353_v26 = vpop.f32.mrf.mxu1  ;;  %v6185_v30 = vadd.f32 %v6184_v40, %v12948_v60  ;;  %v8081_v60 = vld [vmem:[%s14511_s0 + $0x8b0] sm:$0xf] }
 0x720   :  { %v8082_v49 = vor.u32 %v9789_v7, %v8081_v60 }
 0x721   :  { %v10172_v35 = vpop.eup %10171  ;;  %v6689_v31 = vadd.f32 %v6688_v27, %v6520_v23  ;;  %6223 = vmatmul.bf16.gmra.mxu0 %v8018_v57  ;;  %v6354_v47 = vadd.f32 %v6353_v26, %v6185_v30  ;;  %v8153_v30 = vld [vmem:[%s14511_s0 + $0x938] sm:$0xf] }
 0x722   :  { %6889 = vst [vmem:[%s14512_s2 + $0x70] sm:$0xff] %v10172_v35  ;;  %6392 = vmatmul.bf16.gmra.mxu1 %v8022_v11  ;;  %v9805_v35 = vld [vmem:[%s14511_s0 + $0x96c] sm:$0xf0] }
 0x723   :  { %10173 = vtanh.f32 %v6689_v31  ;;  %6561 = vmatmul.bf16.gmra.mxu2 %v8026_v16  ;;  %v9797_v31 = vld [vmem:[%s14511_s0 + $0x934] sm:$0xf] }
 0x724   :  { %6730 = vmatmul.bf16.gmra.mxu3 %v8030_v45 }
 0x726   :  { %v6522_v24 = vpop.f32.mrf.mxu2  ;;  %v6186_v8 = vpop.f32.mrf.mxu0 }
 0x727   :  { %v6691_v28 = vpop.f32.mrf.mxu3  ;;  %v6523_v32 = vadd.f32 %v6522_v24, %v6354_v47  ;;  %v6355_v4 = vpop.f32.mrf.mxu1  ;;  %v6187_v0 = vadd.f32 %v6186_v8, %v12975_v52  ;;  %v8083_v52 = vld [vmem:[%s14511_s0 + $0x8f0] sm:$0xf0]  ;;  %v9806_v47 = vld [vmem:[%s14511_s0 + $0x974] sm:$0xf0]  ;;  %v9798_v24 = vld [vmem:[%s14511_s0 + $0x93c] sm:$0xf] }
 0x728   :  { %v8086_v51 = vor.u32 %v9781_v48, %v8083_v52  ;;  %v8154_v48 = vor.u32 %v9806_v47, %v8153_v30 }
 0x729   :  { %v10174_v36 = vpop.eup %10173  ;;  %v6692_v53 = vadd.f32 %v6691_v28, %v6523_v32  ;;  %v6356_v54 = vadd.f32 %v6355_v4, %v6187_v0  ;;  %v8155_v28 = vld [vmem:[%s14511_s0 + $0x978] sm:$0xf0] }
 0x72a   :  { %6890 = vst [vmem:[%s14512_s2 + $0x78] sm:$0xff] %v10174_v36  ;;  %v8158_v52 = vor.u32 %v9798_v24, %v8155_v28 }
 0x72b   :  { %10175 = vtanh.f32 %v6692_v53 }
 0x72e   :  { %v6524_v63 = vpop.f32.mrf.mxu2  ;;  %v6189_v56 = vpop.f32.mrf.mxu0 }
 0x72f   :  { %v6693_v15 = vpop.f32.mrf.mxu3  ;;  %v6525_v10 = vadd.f32 %v6524_v63, %v6356_v54  ;;  %v6358_v61 = vpop.f32.mrf.mxu1  ;;  %v6190_v12 = vadd.f32 %v6189_v56, %v12978_v13  ;;  %v8145_v13 = vld [vmem:[%s14511_s0 + $0x930] sm:$0xf] }
 0x730   :  { %v8146_v36 = vor.u32 %v9805_v35, %v8145_v13 }
 0x731   :  { %v10176_v19 = vpop.eup %10175  ;;  %v6694_v37 = vadd.f32 %v6693_v15, %v6525_v10  ;;  %6228 = vmatmul.bf16.gmra.mxu0 %v8082_v49  ;;  %v6359_v25 = vadd.f32 %v6358_v61, %v6190_v12  ;;  %v9814_v12 = vld [vmem:[%s14511_s0 + $0x9bc] sm:$0xf] }
 0x732   :  { %6891 = vst [vmem:[%s14512_s2 + $0x80] sm:$0xff] %v10176_v19  ;;  %6397 = vmatmul.bf16.gmra.mxu1 %v8086_v51  ;;  %v8217_v19 = vld [vmem:[%s14511_s0 + $0x9b8] sm:$0xf] }
 0x733   :  { %10177 = vtanh.f32 %v6694_v37  ;;  %6566 = vmatmul.bf16.gmra.mxu2 %v8090_v5  ;;  %v9821_v5 = vld [vmem:[%s14511_s0 + $0x9ec] sm:$0xf0]  ;;  %v9822_v37 = vld [vmem:[%s14511_s0 + $0x9f4] sm:$0xf0] }
 0x734   :  { %6735 = vmatmul.bf16.gmra.mxu3 %v8094_v50  ;;  %v9813_v50 = vld [vmem:[%s14511_s0 + $0x9b4] sm:$0xf]  ;;  %v8218_v13 = vor.u32 %v9822_v37, %v8217_v19 }
 0x736   :  { %v6527_v27 = vpop.f32.mrf.mxu2  ;;  %v6191_v23 = vpop.f32.mrf.mxu0 }
 0x737   :  { %v6696_v57 = vpop.f32.mrf.mxu3  ;;  %v6528_v11 = vadd.f32 %v6527_v27, %v6359_v25  ;;  %v6360_v40 = vpop.f32.mrf.mxu1  ;;  %v6192_v45 = vadd.f32 %v6191_v23, %v13005_v41  ;;  %v8147_v41 = vld [vmem:[%s14511_s0 + $0x970] sm:$0xf0]  ;;  %v8219_v25 = vld [vmem:[%s14511_s0 + $0x9f8] sm:$0xf0] }
 0x738   :  { %v8150_v53 = vor.u32 %v9797_v31, %v8147_v41  ;;  %v8222_v35 = vor.u32 %v9814_v12, %v8219_v25 }
 0x739   :  { %v10178_v26 = vpop.eup %10177  ;;  %v6697_v16 = vadd.f32 %v6696_v57, %v6528_v11  ;;  %v6361_v32 = vadd.f32 %v6360_v40, %v6192_v45 }
 0x73a   :  { %6892 = vst [vmem:[%s14512_s2 + $0x88] sm:$0xff] %v10178_v26 }
 0x73b   :  { %10179 = vtanh.f32 %v6697_v16 }
 0x73e   :  { %v6529_v8 = vpop.f32.mrf.mxu2  ;;  %v6194_v60 = vpop.f32.mrf.mxu0 }
 0x73f   :  { %v6698_v4 = vpop.f32.mrf.mxu3  ;;  %v6530_v0 = vadd.f32 %v6529_v8, %v6361_v32  ;;  %v6363_v7 = vpop.f32.mrf.mxu1  ;;  %v6195_v1 = vadd.f32 %v6194_v60, %v13017_v33  ;;  %v8209_v33 = vld [vmem:[%s14511_s0 + $0x9b0] sm:$0xf] }
 0x740   :  { %v8210_v23 = vor.u32 %v9821_v5, %v8209_v33  ;;  %v9837_v60 = vld [vmem:[%s14511_s0 + $0xa6c] sm:$0xf0] }
 0x741   :  { %v10180_v17 = vpop.eup %10179  ;;  %v6699_v62 = vadd.f32 %v6698_v4, %v6530_v0  ;;  %6233 = vmatmul.bf16.gmra.mxu0 %v8146_v36  ;;  %v6364_v46 = vadd.f32 %v6363_v7, %v6195_v1  ;;  %v9829_v7 = vld [vmem:[%s14511_s0 + $0xa34] sm:$0xf] }
 0x742   :  { %6893 = vst [vmem:[%s14512_s2 + $0x90] sm:$0xff] %v10180_v17  ;;  %6402 = vmatmul.bf16.gmra.mxu1 %v8150_v53  ;;  %v9830_v17 = vld [vmem:[%s14511_s0 + $0xa3c] sm:$0xf] }
 0x743   :  { %10181 = vtanh.f32 %v6699_v62  ;;  %6571 = vmatmul.bf16.gmra.mxu2 %v8154_v48  ;;  %v8281_v48 = vld [vmem:[%s14511_s0 + $0xa38] sm:$0xf]  ;;  %v8283_v62 = vld [vmem:[%s14511_s0 + $0xa78] sm:$0xf0] }
 0x744   :  { %6740 = vmatmul.bf16.gmra.mxu3 %v8158_v52  ;;  %v9838_v52 = vld [vmem:[%s14511_s0 + $0xa74] sm:$0xf0] }
 0x746   :  { %v6532_v54 = vpop.f32.mrf.mxu2  ;;  %v6196_v49 = vpop.f32.mrf.mxu0 }
 0x747   :  { %v6701_v63 = vpop.f32.mrf.mxu3  ;;  %v6533_v15 = vadd.f32 %v6532_v54, %v6364_v46  ;;  %v6365_v51 = vpop.f32.mrf.mxu1  ;;  %v6197_v61 = vadd.f32 %v6196_v49, %v13047_v55  ;;  %v8211_v55 = vld [vmem:[%s14511_s0 + $0x9f0] sm:$0xf0] }
 0x748   :  { %v8214_v40 = vor.u32 %v9813_v50, %v8211_v55 }
 0x749   :  { %v10182_v10 = vpop.eup %10181  ;;  %v6702_v56 = vadd.f32 %v6701_v63, %v6533_v15  ;;  %v6366_v27 = vadd.f32 %v6365_v51, %v6197_v61  ;;  %v8286_v61 = vor.u32 %v9830_v17, %v8283_v62 }
 0x74a   :  { %6894 = vst [vmem:[%s14512_s2 + $0x98] sm:$0xff] %v10182_v10 }
 0x74b   :  { %10183 = vtanh.f32 %v6702_v56  ;;  %v8282_v56 = vor.u32 %v9838_v52, %v8281_v48 }
 0x74e   :  { %v6534_v57 = vpop.f32.mrf.mxu2  ;;  %v6199_v16 = vpop.f32.mrf.mxu0 }
 0x74f   :  { %v6703_v11 = vpop.f32.mrf.mxu3  ;;  %v6535_v26 = vadd.f32 %v6534_v57, %v6366_v27  ;;  %v6368_v45 = vpop.f32.mrf.mxu1  ;;  %v6200_v30 = vadd.f32 %v6199_v16, %v13050_v43  ;;  %v8273_v43 = vld [vmem:[%s14511_s0 + $0xa30] sm:$0xf]  ;;  %v8345_v16 = vld [vmem:[%s14511_s0 + $0xab8] sm:$0xf] }
 0x750   :  { %v8274_v63 = vor.u32 %v9837_v60, %v8273_v43 }
 0x751   :  { %v10184_v31 = vpop.eup %10183  ;;  %v6704_v41 = vadd.f32 %v6703_v11, %v6535_v26  ;;  %6238 = vmatmul.bf16.gmra.mxu0 %v8210_v23  ;;  %v6369_v47 = vadd.f32 %v6368_v45, %v6200_v30  ;;  %v9845_v26 = vld [vmem:[%s14511_s0 + $0xab4] sm:$0xf]  ;;  %v9854_v45 = vld [vmem:[%s14511_s0 + $0xaf4] sm:$0xf0] }
 0x752   :  { %6895 = vst [vmem:[%s14512_s2 + $0xa0] sm:$0xff] %v10184_v31  ;;  %6407 = vmatmul.bf16.gmra.mxu1 %v8214_v40  ;;  %v9853_v40 = vld [vmem:[%s14511_s0 + $0xaec] sm:$0xf0] }
 0x753   :  { %10185 = vtanh.f32 %v6704_v41  ;;  %6576 = vmatmul.bf16.gmra.mxu2 %v8218_v13  ;;  %v9846_v13 = vld [vmem:[%s14511_s0 + $0xabc] sm:$0xf] }
 0x754   :  { %6745 = vmatmul.bf16.gmra.mxu3 %v8222_v35  ;;  %v8347_v35 = vld [vmem:[%s14511_s0 + $0xaf8] sm:$0xf0] }
 0x756   :  { %v6537_v24 = vpop.f32.mrf.mxu2  ;;  %v6201_v8 = vpop.f32.mrf.mxu0 }
 0x757   :  { %v6706_v28 = vpop.f32.mrf.mxu3  ;;  %v6538_v32 = vadd.f32 %v6537_v24, %v6369_v47  ;;  %v6370_v4 = vpop.f32.mrf.mxu1  ;;  %v6202_v0 = vadd.f32 %v6201_v8, %v13077_v20  ;;  %v8275_v20 = vld [vmem:[%s14511_s0 + $0xa70] sm:$0xf0] }
 0x758   :  { %v8278_v15 = vor.u32 %v9829_v7, %v8275_v20 }
 0x759   :  { %v10186_v36 = vpop.eup %10185  ;;  %v6707_v53 = vadd.f32 %v6706_v28, %v6538_v32  ;;  %v6371_v1 = vadd.f32 %v6370_v4, %v6202_v0  ;;  %v8346_v4 = vor.u32 %v9854_v45, %v8345_v16 }
 0x75a   :  { %6896 = vst [vmem:[%s14512_s2 + $0xa8] sm:$0xff] %v10186_v36  ;;  %v8350_v36 = vor.u32 %v9846_v13, %v8347_v35 }
 0x75b   :  { %10187 = vtanh.f32 %v6707_v53 }
 0x75e   :  { %v6539_v46 = vpop.f32.mrf.mxu2  ;;  %v6204_v51 = vpop.f32.mrf.mxu0 }
 0x75f   :  { %v6708_v54 = vpop.f32.mrf.mxu3  ;;  %v6540_v49 = vadd.f32 %v6539_v46, %v6371_v1  ;;  %v6373_v10 = vpop.f32.mrf.mxu1  ;;  %v6205_v50 = vadd.f32 %v6204_v51, %v13080_v39  ;;  %v8337_v39 = vld [vmem:[%s14511_s0 + $0xab0] sm:$0xf]  ;;  %v9862_v51 = vld [vmem:[%s14511_s0 + $0xb3c] sm:$0xf] }
 0x760   :  { %v8338_v47 = vor.u32 %v9853_v40, %v8337_v39 }
 0x761   :  { %v10188_v33 = vpop.eup %10187  ;;  %v6709_v5 = vadd.f32 %v6708_v54, %v6540_v49  ;;  %6243 = vmatmul.bf16.gmra.mxu0 %v8274_v63  ;;  %v6374_v55 = vadd.f32 %v6373_v10, %v6205_v50  ;;  %v9869_v54 = vld [vmem:[%s14511_s0 + $0xb6c] sm:$0xf0]  ;;  %v9861_v63 = vld [vmem:[%s14511_s0 + $0xb34] sm:$0xf]  ;;  %v9870_v49 = vld [vmem:[%s14511_s0 + $0xb74] sm:$0xf0] }
 0x762   :  { %6897 = vst [vmem:[%s14512_s2 + $0xb0] sm:$0xff] %v10188_v33  ;;  %6412 = vmatmul.bf16.gmra.mxu1 %v8278_v15  ;;  %v8409_v15 = vld [vmem:[%s14511_s0 + $0xb38] sm:$0xf]  ;;  %v8411_v10 = vld [vmem:[%s14511_s0 + $0xb78] sm:$0xf0] }
 0x763   :  { %10189 = vtanh.f32 %v6709_v5  ;;  %6581 = vmatmul.bf16.gmra.mxu2 %v8282_v56 }
 0x764   :  { %6750 = vmatmul.bf16.gmra.mxu3 %v8286_v61 }
 0x766   :  { %v6542_v19 = vpop.f32.mrf.mxu2  ;;  %v6206_v25 = vpop.f32.mrf.mxu0 }
 0x767   :  { %v6711_v37 = vpop.f32.mrf.mxu3  ;;  %v6543_v12 = vadd.f32 %v6542_v19, %v6374_v55  ;;  %v6375_v27 = vpop.f32.mrf.mxu1  ;;  %v6207_v23 = vadd.f32 %v6206_v25, %v13107_v38  ;;  %v8339_v38 = vld [vmem:[%s14511_s0 + $0xaf0] sm:$0xf0]  ;;  %v8414_v25 = vor.u32 %v9862_v51, %v8411_v10  ;;  %v9901_v51 = vld [vmem:[%s14511_s0 + $0xc6c] sm:$0xf0] }
 0x768   :  { %v8342_v24 = vor.u32 %v9845_v26, %v8339_v38  ;;  %v9893_v10 = vld [vmem:[%s14511_s0 + $0xc34] sm:$0xf] }
 0x769   :  { %v10190_v57 = vpop.eup %10189  ;;  %v6712_v11 = vadd.f32 %v6711_v37, %v6543_v12  ;;  %v6376_v31 = vadd.f32 %v6375_v27, %v6207_v23  ;;  %v8410_v12 = vor.u32 %v9870_v49, %v8409_v15 }
 0x76a   :  { %6898 = vst [vmem:[%s14512_s2 + $0xb8] sm:$0xff] %v10190_v57 }
 0x76b   :  { %10191 = vtanh.f32 %v6712_v11 }
 0x76e   :  { %v6544_v41 = vpop.f32.mrf.mxu2  ;;  %v6209_v32 = vpop.f32.mrf.mxu0 }
 0x76f   :  { %v6713_v30 = vpop.f32.mrf.mxu3  ;;  %v6545_v28 = vadd.f32 %v6544_v41, %v6376_v31  ;;  %v6378_v8 = vpop.f32.mrf.mxu1  ;;  %v6210_v43 = vadd.f32 %v6209_v32, %v13110_v3  ;;  %v8401_v3 = vld [vmem:[%s14511_s0 + $0xb30] sm:$0xf]  ;;  %v9877_v41 = vld [vmem:[%s14511_s0 + $0xbb4] sm:$0xf] }
 0x770   :  { %v8402_v5 = vor.u32 %v9869_v54, %v8401_v3  ;;  %v9885_v31 = vld [vmem:[%s14511_s0 + $0xbec] sm:$0xf0] }
 0x771   :  { %v10192_v53 = vpop.eup %10191  ;;  %v6714_v0 = vadd.f32 %v6713_v30, %v6545_v28  ;;  %6248 = vmatmul.bf16.gmra.mxu0 %v8338_v47  ;;  %v6379_v60 = vadd.f32 %v6378_v8, %v6210_v43  ;;  %v8473_v30 = vld [vmem:[%s14511_s0 + $0xbb8] sm:$0xf]  ;;  %v8475_v28 = vld [vmem:[%s14511_s0 + $0xbf8] sm:$0xf0] }
 0x772   :  { %6899 = vst [vmem:[%s14512_s2 + $0xc0] sm:$0xff] %v10192_v53  ;;  %6417 = vmatmul.bf16.gmra.mxu1 %v8342_v24  ;;  %v9886_v47 = vld [vmem:[%s14511_s0 + $0xbf4] sm:$0xf0]  ;;  %v9878_v24 = vld [vmem:[%s14511_s0 + $0xbbc] sm:$0xf] }
 0x773   :  { %10193 = vtanh.f32 %v6714_v0  ;;  %6586 = vmatmul.bf16.gmra.mxu2 %v8346_v4 }
 0x774   :  { %6755 = vmatmul.bf16.gmra.mxu3 %v8350_v36 }
 0x776   :  { %v6547_v7 = vpop.f32.mrf.mxu2  ;;  %v6211_v52 = vpop.f32.mrf.mxu0 }
 0x777   :  { %v6716_v20 = vpop.f32.mrf.mxu3  ;;  %v6548_v48 = vadd.f32 %v6547_v7, %v6379_v60  ;;  %v6380_v17 = vpop.f32.mrf.mxu1  ;;  %v6212_v46 = vadd.f32 %v6211_v52, %v13137_v6  ;;  %v8403_v6 = vld [vmem:[%s14511_s0 + $0xb70] sm:$0xf0]  ;;  %v8474_v7 = vor.u32 %v9886_v47, %v8473_v30  ;;  %v9917_v30 = vld [vmem:[%s14511_s0 + $0xcec] sm:$0xf0] }
 0x778   :  { %v8406_v50 = vor.u32 %v9861_v63, %v8403_v6  ;;  %v9909_v47 = vld [vmem:[%s14511_s0 + $0xcb4] sm:$0xf] }
 0x779   :  { %v10194_v62 = vpop.eup %10193  ;;  %v6717_v1 = vadd.f32 %v6716_v20, %v6548_v48  ;;  %v6381_v56 = vadd.f32 %v6380_v17, %v6212_v46  ;;  %v8478_v20 = vor.u32 %v9878_v24, %v8475_v28  ;;  %v8601_v24 = vld [vmem:[%s14511_s0 + $0xcb8] sm:$0xf] }
 0x77a   :  { %6900 = vst [vmem:[%s14512_s2 + $0xc8] sm:$0xff] %v10194_v62  ;;  %v9918_v28 = vld [vmem:[%s14511_s0 + $0xcf4] sm:$0xf0] }
 0x77b   :  { %10195 = vtanh.f32 %v6717_v1 }
 0x77e   :  { %v6549_v61 = vpop.f32.mrf.mxu2  ;;  %v6214_v19 = vpop.f32.mrf.mxu0 }
 0x77f   :  { %v6718_v33 = vpop.f32.mrf.mxu3  ;;  %v6550_v55 = vadd.f32 %v6549_v61, %v6381_v56  ;;  %v6383_v37 = vpop.f32.mrf.mxu1  ;;  %v6215_v11 = vadd.f32 %v6214_v19, %v13149_v2  ;;  %v8465_v2 = vld [vmem:[%s14511_s0 + $0xbb0] sm:$0xf]  ;;  %v8537_v56 = vld [vmem:[%s14511_s0 + $0xc38] sm:$0xf] }
 0x780   :  { %v8466_v36 = vor.u32 %v9885_v31, %v8465_v2  ;;  %v9902_v61 = vld [vmem:[%s14511_s0 + $0xc74] sm:$0xf0] }
 0x781   :  { %v10196_v27 = vpop.eup %10195  ;;  %v6719_v57 = vadd.f32 %v6718_v33, %v6550_v55  ;;  %6253 = vmatmul.bf16.gmra.mxu0 %v8402_v5  ;;  %v6384_v23 = vadd.f32 %v6383_v37, %v6215_v11  ;;  %v9894_v33 = vld [vmem:[%s14511_s0 + $0xc3c] sm:$0xf]  ;;  %v8538_v11 = vor.u32 %v9902_v61, %v8537_v56  ;;  %v8657_v56 = vld [vmem:[%s14511_s0 + $0xd30] sm:$0xf] }
 0x782   :  { %6901 = vst [vmem:[%s14512_s2 + $0xd0] sm:$0xff] %v10196_v27  ;;  %6422 = vmatmul.bf16.gmra.mxu1 %v8406_v50  ;;  %v8539_v5 = vld [vmem:[%s14511_s0 + $0xc78] sm:$0xf0]  ;;  %v9933_v61 = vld [vmem:[%s14511_s0 + $0xd6c] sm:$0xf0] }
 0x783   :  { %10197 = vtanh.f32 %v6719_v57  ;;  %6591 = vmatmul.bf16.gmra.mxu2 %v8410_v12 }
 0x784   :  { %6760 = vmatmul.bf16.gmra.mxu3 %v8414_v25 }
 0x786   :  { %v6552_v39 = vpop.f32.mrf.mxu2  ;;  %v6216_v38 = vpop.f32.mrf.mxu0 }
 0x787   :  { %v6721_v40 = vpop.f32.mrf.mxu3  ;;  %v6553_v26 = vadd.f32 %v6552_v39, %v6384_v23  ;;  %v6385_v16 = vpop.f32.mrf.mxu1  ;;  %v6217_v35 = vadd.f32 %v6216_v38, %v13179_v22  ;;  %v8467_v22 = vld [vmem:[%s14511_s0 + $0xbf0] sm:$0xf0]  ;;  %v8542_v23 = vor.u32 %v9894_v33, %v8539_v5 }
 0x788   :  { %v8470_v53 = vor.u32 %v9877_v41, %v8467_v22  ;;  %v9925_v33 = vld [vmem:[%s14511_s0 + $0xd34] sm:$0xf] }
 0x789   :  { %v10198_v45 = vpop.eup %10197  ;;  %v6722_v13 = vadd.f32 %v6721_v40, %v6553_v26  ;;  %v6386_v32 = vadd.f32 %v6385_v16, %v6217_v35  ;;  %v8659_v5 = vld [vmem:[%s14511_s0 + $0xd70] sm:$0xf0] }
 0x78a   :  { %6902 = vst [vmem:[%s14512_s2 + $0xd8] sm:$0xff] %v10198_v45 }
 0x78b   :  { %10199 = vtanh.f32 %v6722_v13 }
 0x78e   :  { %v6554_v8 = vpop.f32.mrf.mxu2  ;;  %v6219_v43 = vpop.f32.mrf.mxu0 }
 0x78f   :  { %v6723_v4 = vpop.f32.mrf.mxu3  ;;  %v6555_v0 = vadd.f32 %v6554_v8, %v6386_v32  ;;  %v6388_v60 = vpop.f32.mrf.mxu1  ;;  %v6220_v17 = vadd.f32 %v6219_v43, %v13182_v59  ;;  %v8529_v59 = vld [vmem:[%s14511_s0 + $0xc30] sm:$0xf]  ;;  %v9910_v32 = vld [vmem:[%s14511_s0 + $0xcbc] sm:$0xf] }
 0x790   :  { %v8530_v37 = vor.u32 %v9901_v51, %v8529_v59  ;;  %v8603_v8 = vld [vmem:[%s14511_s0 + $0xcf8] sm:$0xf0] }
 0x791   :  { %v10200_v48 = vpop.eup %10199  ;;  %v6724_v52 = vadd.f32 %v6723_v4, %v6555_v0  ;;  %6258 = vmatmul.bf16.gmra.mxu0 %v8466_v36  ;;  %v6389_v62 = vadd.f32 %v6388_v60, %v6220_v17 }
 0x792   :  { %6903 = vst [vmem:[%s14512_s2 + $0xe0] sm:$0xff] %v10200_v48  ;;  %6427 = vmatmul.bf16.gmra.mxu1 %v8470_v53  ;;  %v8602_v48 = vor.u32 %v9918_v28, %v8601_v24  ;;  %v14636_v24 = vld [vmem:[#allocation3_spill] sm:$0xff] }
 0x793   :  { %10201 = vtanh.f32 %v6724_v52  ;;  %6596 = vmatmul.bf16.gmra.mxu2 %v8474_v7  ;;  %v8606_v52 = vor.u32 %v9910_v32, %v8603_v8  ;;  %v8721_v32 = vld [vmem:[%s14511_s0 + $0xdb0] sm:$0xf] }
 0x794   :  { %6765 = vmatmul.bf16.gmra.mxu3 %v8478_v20  ;;  %v9949_v8 = vld [vmem:[%s14511_s0 + $0xdec] sm:$0xf0] }
 0x796   :  { %v6557_v1 = vpop.f32.mrf.mxu2  ;;  %v6221_v54 = vpop.f32.mrf.mxu0 }
 0x797   :  { %v6726_v46 = vpop.f32.mrf.mxu3  ;;  %v6558_v3 = vadd.f32 %v6557_v1, %v6389_v62  ;;  %v6390_v63 = vpop.f32.mrf.mxu1  ;;  %v6222_v49 = vadd.f32 %v6221_v54, %v13209_v44  ;;  %v8531_v44 = vld [vmem:[%s14511_s0 + $0xc70] sm:$0xf0]  ;;  %v14633_v1 = vld [vmem:[#allocation25_spill] sm:$0xff] }
 0x798   :  { %v8534_v12 = vor.u32 %v9893_v10, %v8531_v44  ;;  %v14634_v10 = vld [vmem:[#allocation26_spill] sm:$0xff] }
 0x799   :  { %v10202_v6 = vpop.eup %10201  ;;  %v6727_v15 = vadd.f32 %v6726_v46, %v6558_v3  ;;  %v6391_v50 = vadd.f32 %v6390_v63, %v6222_v49 }
 0x79a   :  { %6904 = vst [vmem:[%s14512_s2 + $0xe8] sm:$0xff] %v10202_v6 }
 0x79b   :  { %10203 = vtanh.f32 %v6727_v15 }
 0x79e   :  { %v6559_v55 = vpop.f32.mrf.mxu2  ;;  %v6224_v27 = vpop.f32.mrf.mxu0 }
 0x79f   :  { %v6728_v19 = vpop.f32.mrf.mxu3  ;;  %v6560_v25 = vadd.f32 %v6559_v55, %v6391_v50  ;;  %v6393_v57 = vpop.f32.mrf.mxu1  ;;  %v6225_v26 = vadd.f32 %v6224_v27, %v13212_v14  ;;  %v8593_v14 = vld [vmem:[%s14511_s0 + $0xcb0] sm:$0xf]  ;;  %v8665_v50 = vld [vmem:[%s14511_s0 + $0xd38] sm:$0xf] }
 0x7a0   :  { %v8594_v0 = vor.u32 %v9917_v30, %v8593_v14  ;;  %v9934_v55 = vld [vmem:[%s14511_s0 + $0xd74] sm:$0xf0] }
 0x7a1   :  { %v10204_v39 = vpop.eup %10203  ;;  %v6729_v40 = vadd.f32 %v6728_v19, %v6560_v25  ;;  %6263 = vmatmul.bf16.gmra.mxu0 %v8530_v37  ;;  %v6394_v38 = vadd.f32 %v6393_v57, %v6225_v26  ;;  %v9926_v19 = vld [vmem:[%s14511_s0 + $0xd3c] sm:$0xf]  ;;  %v8658_v57 = vor.u32 %v9933_v61, %v8657_v56  ;;  %v8666_v26 = vor.u32 %v9934_v55, %v8665_v50 }
 0x7a2   :  { %6905 = vst [vmem:[%s14512_s2 + $0xf0] sm:$0xff] %v10204_v39  ;;  %6432 = vmatmul.bf16.gmra.mxu1 %v8534_v12  ;;  %v8667_v37 = vld [vmem:[%s14511_s0 + $0xd78] sm:$0xf0] }
 0x7a3   :  { %10205 = vtanh.f32 %v6729_v40  ;;  %6601 = vmatmul.bf16.gmra.mxu2 %v8538_v11  ;;  %v8662_v11 = vor.u32 %v9925_v33, %v8659_v5  ;;  %v14638_v50 = vld [vmem:[#allocation5_spill] sm:$0xff] }
 0x7a4   :  { %6770 = vmatmul.bf16.gmra.mxu3 %v8542_v23 }
 0x7a6   :  { %v6562_v16 = vpop.f32.mrf.mxu2  ;;  %v6226_v35 = vpop.f32.mrf.mxu0 }
 0x7a7   :  { %v6731_v45 = vpop.f32.mrf.mxu3  ;;  %v6563_v13 = vadd.f32 %v6562_v16, %v6394_v38  ;;  %v6395_v2 = vpop.f32.mrf.mxu1  ;;  %v6227_v22 = vadd.f32 %v6226_v35, %v13239_v42  ;;  %v8595_v42 = vld [vmem:[%s14511_s0 + $0xcf0] sm:$0xf0]  ;;  %v8670_v38 = vor.u32 %v9926_v19, %v8667_v37  ;;  %v8785_v19 = vld [vmem:[%s14511_s0 + $0xe30] sm:$0xf] }
 0x7a8   :  { %v8598_v43 = vor.u32 %v9909_v47, %v8595_v42  ;;  %v9965_v37 = vld [vmem:[%s14511_s0 + $0xe6c] sm:$0xf0] }
 0x7a9   :  { %v10206_v31 = vpop.eup %10205  ;;  %v6732_v41 = vadd.f32 %v6731_v45, %v6563_v13  ;;  %v6396_v4 = vadd.f32 %v6395_v2, %v6227_v22  ;;  %v14635_v13 = vld [vmem:[#allocation2_spill] sm:$0xff] }
 0x7aa   :  { %6906 = vst [vmem:[%s14512_s2 + $0xf8] sm:$0xff] %v10206_v31 }
 0x7ab   :  { %10207 = vtanh.f32 %v6732_v41 }
 0x7ae   :  { %v6564_v36 = vpop.f32.mrf.mxu2  ;;  %v6229_v7 = vpop.f32.mrf.mxu0 }
 0x7af   :  { %v6733_v53 = vpop.f32.mrf.mxu3  ;;  %v6565_v60 = vadd.f32 %v6564_v36, %v6396_v4  ;;  %v6398_v20 = vpop.f32.mrf.mxu1  ;;  %v6230_v46 = vadd.f32 %v6229_v7, %v14633_v1  ;;  %v9941_v4 = vld [vmem:[%s14511_s0 + $0xdb4] sm:$0xf] }
 0x7b0   :  { %v8723_v36 = vld [vmem:[%s14511_s0 + $0xdf0] sm:$0xf0] }
 0x7b1   :  { %v10208_v17 = vpop.eup %10207  ;;  %v6734_v62 = vadd.f32 %v6733_v53, %v6565_v60  ;;  %6268 = vmatmul.bf16.gmra.mxu0 %v8594_v0  ;;  %v6399_v3 = vadd.f32 %v6398_v20, %v6230_v46  ;;  %v8729_v53 = vld [vmem:[%s14511_s0 + $0xdb8] sm:$0xf]  ;;  %v8731_v60 = vld [vmem:[%s14511_s0 + $0xdf8] sm:$0xf0] }
 0x7b2   :  { %6907 = vst [vmem:[%s14512_s2 + $0x100] sm:$0xff] %v10208_v17  ;;  %6437 = vmatmul.bf16.gmra.mxu1 %v8598_v43  ;;  %v9950_v0 = vld [vmem:[%s14511_s0 + $0xdf4] sm:$0xf0]  ;;  %v9942_v43 = vld [vmem:[%s14511_s0 + $0xdbc] sm:$0xf]  ;;  %v8726_v17 = vor.u32 %v9941_v4, %v8723_v36 }
 0x7b3   :  { %10209 = vtanh.f32 %v6734_v62  ;;  %6606 = vmatmul.bf16.gmra.mxu2 %v8602_v48 }
 0x7b4   :  { %6775 = vmatmul.bf16.gmra.mxu3 %v8606_v52  ;;  %v8722_v52 = vor.u32 %v9949_v8, %v8721_v32 }
 0x7b6   :  { %v6567_v54 = vpop.f32.mrf.mxu2  ;;  %v6231_v15 = vpop.f32.mrf.mxu0 }
 0x7b7   :  { %v6736_v63 = vpop.f32.mrf.mxu3  ;;  %v6568_v6 = vadd.f32 %v6567_v54, %v6399_v3  ;;  %v6400_v49 = vpop.f32.mrf.mxu1  ;;  %v6232_v44 = vadd.f32 %v6231_v15, %v14634_v10  ;;  %v8730_v3 = vor.u32 %v9950_v0, %v8729_v53  ;;  %v8734_v54 = vor.u32 %v9942_v43, %v8731_v60  ;;  %v14637_v15 = vld [vmem:[#allocation4_spill] sm:$0xff]  ;;  %v14640_v53 = vld [vmem:[#allocation7_spill] sm:$0xff] }
 0x7b8   :  { %v8849_v43 = vld [vmem:[%s14511_s0 + $0xeb0] sm:$0xf] }
 0x7b9   :  { %v10210_v59 = vpop.eup %10209  ;;  %v6737_v51 = vadd.f32 %v6736_v63, %v6568_v6  ;;  %v6401_v12 = vadd.f32 %v6400_v49, %v6232_v44  ;;  %v9981_v60 = vld [vmem:[%s14511_s0 + $0xeec] sm:$0xf0] }
 0x7ba   :  { %6908 = vst [vmem:[%s14512_s2 + $0x108] sm:$0xff] %v10210_v59 }
 0x7bb   :  { %10211 = vtanh.f32 %v6737_v51 }
 0x7be   :  { %v6569_v25 = vpop.f32.mrf.mxu2  ;;  %v6234_v39 = vpop.f32.mrf.mxu0 }
 0x7bf   :  { %v6738_v27 = vpop.f32.mrf.mxu3  ;;  %v6570_v23 = vadd.f32 %v6569_v25, %v6401_v12  ;;  %v6403_v40 = vpop.f32.mrf.mxu1  ;;  %v6235_v35 = vadd.f32 %v6234_v39, %v14635_v13  ;;  %v9957_v12 = vld [vmem:[%s14511_s0 + $0xe34] sm:$0xf] }
 0x7c0   :  { %v8787_v25 = vld [vmem:[%s14511_s0 + $0xe70] sm:$0xf0] }
 0x7c1   :  { %v10212_v16 = vpop.eup %10211  ;;  %v6739_v45 = vadd.f32 %v6738_v27, %v6570_v23  ;;  %6273 = vmatmul.bf16.gmra.mxu0 %v8658_v57  ;;  %v6404_v2 = vadd.f32 %v6403_v40, %v6235_v35  ;;  %v8793_v27 = vld [vmem:[%s14511_s0 + $0xe38] sm:$0xf]  ;;  %v8795_v23 = vld [vmem:[%s14511_s0 + $0xe78] sm:$0xf0] }
 0x7c2   :  { %6909 = vst [vmem:[%s14512_s2 + $0x110] sm:$0xff] %v10212_v16  ;;  %6442 = vmatmul.bf16.gmra.mxu1 %v8662_v11  ;;  %v9966_v57 = vld [vmem:[%s14511_s0 + $0xe74] sm:$0xf0]  ;;  %v9958_v11 = vld [vmem:[%s14511_s0 + $0xe3c] sm:$0xf]  ;;  %v8790_v16 = vor.u32 %v9957_v12, %v8787_v25 }
 0x7c3   :  { %10213 = vtanh.f32 %v6739_v45  ;;  %6611 = vmatmul.bf16.gmra.mxu2 %v8666_v26 }
 0x7c4   :  { %6780 = vmatmul.bf16.gmra.mxu3 %v8670_v38  ;;  %v8786_v38 = vor.u32 %v9965_v37, %v8785_v19 }
 0x7c6   :  { %v6572_v31 = vpop.f32.mrf.mxu2  ;;  %v6236_v14 = vpop.f32.mrf.mxu0 }
 0x7c7   :  { %v6741_v41 = vpop.f32.mrf.mxu3  ;;  %v6573_v22 = vadd.f32 %v6572_v31, %v6404_v2  ;;  %v6405_v30 = vpop.f32.mrf.mxu1  ;;  %v6237_v28 = vadd.f32 %v6236_v14, %v14636_v24  ;;  %v8794_v2 = vor.u32 %v9966_v57, %v8793_v27  ;;  %v8798_v31 = vor.u32 %v9958_v11, %v8795_v23  ;;  %v14639_v14 = vld [vmem:[#allocation6_spill] sm:$0xff]  ;;  %v14642_v27 = vld [vmem:[#allocation9_spill] sm:$0xff]  ;;  %v8913_v11 = vld [vmem:[%s14511_s0 + $0xf30] sm:$0xf] }
 0x7c8   :  { %v9997_v23 = vld [vmem:[%s14511_s0 + $0xf6c] sm:$0xf0] }
 0x7c9   :  { %v10214_v47 = vpop.eup %10213  ;;  %v6742_v42 = vadd.f32 %v6741_v41, %v6573_v22  ;;  %v6406_v7 = vadd.f32 %v6405_v30, %v6237_v28 }
 0x7ca   :  { %6910 = vst [vmem:[%s14512_s2 + $0x118] sm:$0xff] %v10214_v47 }
 0x7cb   :  { %10215 = vtanh.f32 %v6742_v42 }
 0x7ce   :  { %v6574_v20 = vpop.f32.mrf.mxu2  ;;  %v6239_v1 = vpop.f32.mrf.mxu0 }
 0x7cf   :  { %v6743_v48 = vpop.f32.mrf.mxu3  ;;  %v6575_v62 = vadd.f32 %v6574_v20, %v6406_v7  ;;  %v6408_v46 = vpop.f32.mrf.mxu1  ;;  %v6240_v49 = vadd.f32 %v6239_v1, %v14637_v15  ;;  %v9973_v7 = vld [vmem:[%s14511_s0 + $0xeb4] sm:$0xf] }
 0x7d0   :  { %v8851_v20 = vld [vmem:[%s14511_s0 + $0xef0] sm:$0xf0] }
 0x7d1   :  { %v10216_v63 = vpop.eup %10215  ;;  %v6744_v6 = vadd.f32 %v6743_v48, %v6575_v62  ;;  %6278 = vmatmul.bf16.gmra.mxu0 %v8722_v52  ;;  %v6409_v59 = vadd.f32 %v6408_v46, %v6240_v49  ;;  %v8857_v48 = vld [vmem:[%s14511_s0 + $0xeb8] sm:$0xf]  ;;  %v8859_v62 = vld [vmem:[%s14511_s0 + $0xef8] sm:$0xf0] }
 0x7d2   :  { %6911 = vst [vmem:[%s14512_s2 + $0x120] sm:$0xff] %v10216_v63  ;;  %6447 = vmatmul.bf16.gmra.mxu1 %v8726_v17  ;;  %v9982_v52 = vld [vmem:[%s14511_s0 + $0xef4] sm:$0xf0]  ;;  %v9974_v17 = vld [vmem:[%s14511_s0 + $0xebc] sm:$0xf]  ;;  %v8854_v63 = vor.u32 %v9973_v7, %v8851_v20 }
 0x7d3   :  { %10217 = vtanh.f32 %v6744_v6  ;;  %6616 = vmatmul.bf16.gmra.mxu2 %v8730_v3 }
 0x7d4   :  { %6785 = vmatmul.bf16.gmra.mxu3 %v8734_v54  ;;  %v8850_v54 = vor.u32 %v9981_v60, %v8849_v43 }
 0x7d6   :  { %v6577_v51 = vpop.f32.mrf.mxu2  ;;  %v6241_v56 = vpop.f32.mrf.mxu0 }
 0x7d7   :  { %v6746_v10 = vpop.f32.mrf.mxu3  ;;  %v6578_v44 = vadd.f32 %v6577_v51, %v6409_v59  ;;  %v6410_v61 = vpop.f32.mrf.mxu1  ;;  %v6242_v55 = vadd.f32 %v6241_v56, %v14638_v50  ;;  %v8858_v59 = vor.u32 %v9982_v52, %v8857_v48  ;;  %v8862_v51 = vor.u32 %v9974_v17, %v8859_v62  ;;  %v14641_v56 = vld [vmem:[#allocation8_spill] sm:$0xff]  ;;  %v14644_v48 = vld [vmem:[#allocation11_spill] sm:$0xff] }
 0x7d8   :  { %v8977_v17 = vld [vmem:[%s14511_s0 + $0xfb0] sm:$0xf] }
 0x7d9   :  { %v10218_v33 = vpop.eup %10217  ;;  %v6747_v5 = vadd.f32 %v6746_v10, %v6578_v44  ;;  %v6411_v39 = vadd.f32 %v6410_v61, %v6242_v55  ;;  %v10013_v62 = vld [vmem:[%s14511_s0 + $0xfec] sm:$0xf0] }
 0x7da   :  { %6912 = vst [vmem:[%s14512_s2 + $0x128] sm:$0xff] %v10218_v33 }
 0x7db   :  { %10219 = vtanh.f32 %v6747_v5 }
 0x7de   :  { %v6579_v40 = vpop.f32.mrf.mxu2  ;;  %v6244_v13 = vpop.f32.mrf.mxu0 }
 0x7df   :  { %v6748_v26 = vpop.f32.mrf.mxu3  ;;  %v6580_v45 = vadd.f32 %v6579_v40, %v6411_v39  ;;  %v6413_v35 = vpop.f32.mrf.mxu1  ;;  %v6245_v30 = vadd.f32 %v6244_v13, %v14639_v14  ;;  %v9989_v39 = vld [vmem:[%s14511_s0 + $0xf34] sm:$0xf] }
 0x7e0   :  { %v8915_v40 = vld [vmem:[%s14511_s0 + $0xf70] sm:$0xf0] }
 0x7e1   :  { %v10220_v41 = vpop.eup %10219  ;;  %v6749_v22 = vadd.f32 %v6748_v26, %v6580_v45  ;;  %6283 = vmatmul.bf16.gmra.mxu0 %v8786_v38  ;;  %v6414_v47 = vadd.f32 %v6413_v35, %v6245_v30  ;;  %v8921_v26 = vld [vmem:[%s14511_s0 + $0xf38] sm:$0xf]  ;;  %v8923_v45 = vld [vmem:[%s14511_s0 + $0xf78] sm:$0xf0] }
 0x7e2   :  { %6913 = vst [vmem:[%s14512_s2 + $0x130] sm:$0xff] %v10220_v41  ;;  %6452 = vmatmul.bf16.gmra.mxu1 %v8790_v16  ;;  %v9998_v38 = vld [vmem:[%s14511_s0 + $0xf74] sm:$0xf0]  ;;  %v9990_v16 = vld [vmem:[%s14511_s0 + $0xf3c] sm:$0xf]  ;;  %v8918_v41 = vor.u32 %v9989_v39, %v8915_v40 }
 0x7e3   :  { %10221 = vtanh.f32 %v6749_v22  ;;  %6621 = vmatmul.bf16.gmra.mxu2 %v8794_v2 }
 0x7e4   :  { %6790 = vmatmul.bf16.gmra.mxu3 %v8798_v31  ;;  %v8914_v31 = vor.u32 %v9997_v23, %v8913_v11 }
 0x7e6   :  { %v6582_v42 = vpop.f32.mrf.mxu2  ;;  %v6246_v32 = vpop.f32.mrf.mxu0 }
 0x7e7   :  { %v6751_v24 = vpop.f32.mrf.mxu3  ;;  %v6583_v28 = vadd.f32 %v6582_v42, %v6414_v47  ;;  %v6415_v8 = vpop.f32.mrf.mxu1  ;;  %v6247_v0 = vadd.f32 %v6246_v32, %v14640_v53  ;;  %v8922_v47 = vor.u32 %v9998_v38, %v8921_v26  ;;  %v8926_v42 = vor.u32 %v9990_v16, %v8923_v45  ;;  %v14643_v32 = vld [vmem:[#allocation10_spill] sm:$0xff]  ;;  %v14646_v26 = vld [vmem:[#allocation13_spill] sm:$0xff] }
 0x7e9   :  { %v10222_v4 = vpop.eup %10221  ;;  %v6752_v36 = vadd.f32 %v6751_v24, %v6583_v28  ;;  %v6416_v1 = vadd.f32 %v6415_v8, %v6247_v0 }
 0x7ea   :  { %6914 = vst [vmem:[%s14512_s2 + $0x138] sm:$0xff] %v10222_v4 }
 0x7eb   :  { %10223 = vtanh.f32 %v6752_v36 }
 0x7ee   :  { %v6584_v46 = vpop.f32.mrf.mxu2  ;;  %v6249_v15 = vpop.f32.mrf.mxu0 }
 0x7ef   :  { %v6753_v3 = vpop.f32.mrf.mxu3  ;;  %v6585_v6 = vadd.f32 %v6584_v46, %v6416_v1  ;;  %v6418_v49 = vpop.f32.mrf.mxu1  ;;  %v6250_v61 = vadd.f32 %v6249_v15, %v14641_v56  ;;  %v10005_v1 = vld [vmem:[%s14511_s0 + $0xfb4] sm:$0xf] }
 0x7f0   :  { %v8979_v46 = vld [vmem:[%s14511_s0 + $0xff0] sm:$0xf0] }
 0x7f1   :  { %v10224_v10 = vpop.eup %10223  ;;  %v6754_v44 = vadd.f32 %v6753_v3, %v6585_v6  ;;  %6288 = vmatmul.bf16.gmra.mxu0 %v8850_v54  ;;  %v6419_v33 = vadd.f32 %v6418_v49, %v6250_v61  ;;  %v8985_v3 = vld [vmem:[%s14511_s0 + $0xfb8] sm:$0xf]  ;;  %v8987_v6 = vld [vmem:[%s14511_s0 + $0xff8] sm:$0xf0] }
 0x7f2   :  { %6915 = vst [vmem:[%s14512_s2 + $0x140] sm:$0xff] %v10224_v10  ;;  %6457 = vmatmul.bf16.gmra.mxu1 %v8854_v63  ;;  %v10014_v54 = vld [vmem:[%s14511_s0 + $0xff4] sm:$0xf0]  ;;  %v10006_v63 = vld [vmem:[%s14511_s0 + $0xfbc] sm:$0xf]  ;;  %v8982_v10 = vor.u32 %v10005_v1, %v8979_v46  ;;  %v14649_v1 = vld [vmem:[#allocation16_spill] sm:$0xff] }
 0x7f3   :  { %10225 = vtanh.f32 %v6754_v44  ;;  %6626 = vmatmul.bf16.gmra.mxu2 %v8858_v59 }
 0x7f4   :  { %6795 = vmatmul.bf16.gmra.mxu3 %v8862_v51  ;;  %v8978_v51 = vor.u32 %v10013_v62, %v8977_v17 }
 0x7f6   :  { %v6587_v5 = vpop.f32.mrf.mxu2  ;;  %v6251_v19 = vpop.f32.mrf.mxu0 }
 0x7f7   :  { %v6756_v50 = vpop.f32.mrf.mxu3  ;;  %v6588_v55 = vadd.f32 %v6587_v5, %v6419_v33  ;;  %v6420_v37 = vpop.f32.mrf.mxu1  ;;  %v6252_v57 = vadd.f32 %v6251_v19, %v14642_v27  ;;  %v8986_v33 = vor.u32 %v10014_v54, %v8985_v3  ;;  %v8990_v5 = vor.u32 %v10006_v63, %v8987_v6  ;;  %v14645_v19 = vld [vmem:[#allocation12_spill] sm:$0xff] }
 0x7f9   :  { %v10226_v12 = vpop.eup %10225  ;;  %v6757_v25 = vadd.f32 %v6756_v50, %v6588_v55  ;;  %v6421_v13 = vadd.f32 %v6420_v37, %v6252_v57 }
 0x7fa   :  { %6916 = vst [vmem:[%s14512_s2 + $0x148] sm:$0xff] %v10226_v12 }
 0x7fb   :  { %10227 = vtanh.f32 %v6757_v25 }
 0x7fe   :  { %v6589_v35 = vpop.f32.mrf.mxu2  ;;  %v6254_v14 = vpop.f32.mrf.mxu0 }
 0x7ff   :  { %v6758_v2 = vpop.f32.mrf.mxu3  ;;  %v6590_v22 = vadd.f32 %v6589_v35, %v6421_v13  ;;  %v6423_v30 = vpop.f32.mrf.mxu1  ;;  %v6255_v8 = vadd.f32 %v6254_v14, %v14643_v32  ;;  %v14647_v14 = vld [vmem:[#allocation14_spill] sm:$0xff] }
 0x801   :  { %v10228_v24 = vpop.eup %10227  ;;  %v6759_v28 = vadd.f32 %v6758_v2, %v6590_v22  ;;  %6293 = vmatmul.bf16.gmra.mxu0 %v8914_v31  ;;  %v6424_v4 = vadd.f32 %v6423_v30, %v6255_v8 }
 0x802   :  { %6917 = vst [vmem:[%s14512_s2 + $0x150] sm:$0xff] %v10228_v24  ;;  %6462 = vmatmul.bf16.gmra.mxu1 %v8918_v41 }
 0x803   :  { %10229 = vtanh.f32 %v6759_v28  ;;  %6631 = vmatmul.bf16.gmra.mxu2 %v8922_v47 }
 0x804   :  { %6800 = vmatmul.bf16.gmra.mxu3 %v8926_v42 }
 0x806   :  { %v6592_v36 = vpop.f32.mrf.mxu2  ;;  %v6256_v43 = vpop.f32.mrf.mxu0 }
 0x807   :  { %v6761_v53 = vpop.f32.mrf.mxu3  ;;  %v6593_v0 = vadd.f32 %v6592_v36, %v6424_v4  ;;  %v6425_v60 = vpop.f32.mrf.mxu1  ;;  %v6257_v52 = vadd.f32 %v6256_v43, %v14644_v48 }
 0x809   :  { %v10230_v7 = vpop.eup %10229  ;;  %v6762_v20 = vadd.f32 %v6761_v53, %v6593_v0  ;;  %v6426_v15 = vadd.f32 %v6425_v60, %v6257_v52  ;;  %v14648_v53 = vld [vmem:[#allocation15_spill] sm:$0xff] }
 0x80a   :  { %6918 = vst [vmem:[%s14512_s2 + $0x158] sm:$0xff] %v10230_v7 }
 0x80b   :  { %10231 = vtanh.f32 %v6762_v20 }
 0x80e   :  { %v6594_v49 = vpop.f32.mrf.mxu2  ;;  %v6259_v56 = vpop.f32.mrf.mxu0 }
 0x80f   :  { %v6763_v59 = vpop.f32.mrf.mxu3  ;;  %v6595_v44 = vadd.f32 %v6594_v49, %v6426_v15  ;;  %v6428_v61 = vpop.f32.mrf.mxu1  ;;  %v6260_v37 = vadd.f32 %v6259_v56, %v14645_v19 }
 0x811   :  { %v10232_v50 = vpop.eup %10231  ;;  %v6764_v55 = vadd.f32 %v6763_v59, %v6595_v44  ;;  %6298 = vmatmul.bf16.gmra.mxu0 %v8978_v51  ;;  %v6429_v12 = vadd.f32 %v6428_v61, %v6260_v37 }
 0x812   :  { %6919 = vst [vmem:[%s14512_s2 + $0x160] sm:$0xff] %v10232_v50  ;;  %6467 = vmatmul.bf16.gmra.mxu1 %v8982_v10  ;;  %v14650_v10 = vld [vmem:[#allocation17_spill] sm:$0xff] }
 0x813   :  { %10233 = vtanh.f32 %v6764_v55  ;;  %6636 = vmatmul.bf16.gmra.mxu2 %v8986_v33 }
 0x814   :  { %6805 = vmatmul.bf16.gmra.mxu3 %v8990_v5 }
 0x816   :  { %v6597_v25 = vpop.f32.mrf.mxu2  ;;  %v6261_v11 = vpop.f32.mrf.mxu0 }
 0x817   :  { %v6766_v27 = vpop.f32.mrf.mxu3  ;;  %v6598_v57 = vadd.f32 %v6597_v25, %v6429_v12  ;;  %v6430_v23 = vpop.f32.mrf.mxu1  ;;  %v6262_v38 = vadd.f32 %v6261_v11, %v14646_v26  ;;  %v14651_v12 = vld [vmem:[#allocation18_spill] sm:$0xff] }
 0x819   :  { %v10234_v39 = vpop.eup %10233  ;;  %v6767_v40 = vadd.f32 %v6766_v27, %v6598_v57  ;;  %v6431_v16 = vadd.f32 %v6430_v23, %v6262_v38 }
 0x81a   :  { %6920 = vst [vmem:[%s14512_s2 + $0x168] sm:$0xff] %v10234_v39 }
 0x81b   :  { %10235 = vtanh.f32 %v6767_v40 }
 0x81e   :  { %v6599_v45 = vpop.f32.mrf.mxu2  ;;  %v6264_v2 = vpop.f32.mrf.mxu0 }
 0x81f   :  { %v6768_v13 = vpop.f32.mrf.mxu3  ;;  %v6600_v35 = vadd.f32 %v6599_v45, %v6431_v16  ;;  %v6433_v31 = vpop.f32.mrf.mxu1  ;;  %v6265_v30 = vadd.f32 %v6264_v2, %v14647_v14  ;;  %v14652_v16 = vld [vmem:[#allocation19_spill] sm:$0xff] }
 0x821   :  { %v10236_v41 = vpop.eup %10235  ;;  %v6769_v22 = vadd.f32 %v6768_v13, %v6600_v35  ;;  %v6434_v47 = vadd.f32 %v6433_v31, %v6265_v30 }
 0x822   :  { %6921 = vst [vmem:[%s14512_s2 + $0x170] sm:$0xff] %v10236_v41 }
 0x823   :  { %10237 = vtanh.f32 %v6769_v22 }
 0x826   :  { %v6602_v42 = vpop.f32.mrf.mxu2  ;;  %v6266_v32 = vpop.f32.mrf.mxu0 }
 0x827   :  { %v6771_v24 = vpop.f32.mrf.mxu3  ;;  %v6603_v28 = vadd.f32 %v6602_v42, %v6434_v47  ;;  %v6435_v8 = vpop.f32.mrf.mxu1  ;;  %v6267_v0 = vadd.f32 %v6266_v32, %v14648_v53  ;;  %v14653_v47 = vld [vmem:[#allocation20_spill] sm:$0xff] }
 0x829   :  { %v10238_v4 = vpop.eup %10237  ;;  %v6772_v36 = vadd.f32 %v6771_v24, %v6603_v28  ;;  %v6436_v43 = vadd.f32 %v6435_v8, %v6267_v0 }
 0x82a   :  { %6922 = vst [vmem:[%s14512_s2 + $0x178] sm:$0xff] %v10238_v4 }
 0x82b   :  { %10239 = vtanh.f32 %v6772_v36 }
 0x82e   :  { %v6604_v60 = vpop.f32.mrf.mxu2  ;;  %v6269_v48 = vpop.f32.mrf.mxu0 }
 0x82f   :  { %v6773_v7 = vpop.f32.mrf.mxu3  ;;  %v6605_v20 = vadd.f32 %v6604_v60, %v6436_v43  ;;  %v6438_v52 = vpop.f32.mrf.mxu1  ;;  %v6270_v46 = vadd.f32 %v6269_v48, %v14649_v1 }
 0x831   :  { %v10240_v17 = vpop.eup %10239  ;;  %v6774_v62 = vadd.f32 %v6773_v7, %v6605_v20  ;;  %v6439_v3 = vadd.f32 %v6438_v52, %v6270_v46  ;;  %v14654_v46 = vld [vmem:[#allocation21_spill] sm:$0xff] }
 0x832   :  { %6923 = vst [vmem:[%s14512_s2 + $0x180] sm:$0xff] %v10240_v17 }
 0x833   :  { %10241 = vtanh.f32 %v6774_v62 }
 0x836   :  { %v6607_v54 = vpop.f32.mrf.mxu2  ;;  %v6271_v15 = vpop.f32.mrf.mxu0 }
 0x837   :  { %v6776_v63 = vpop.f32.mrf.mxu3  ;;  %v6608_v6 = vadd.f32 %v6607_v54, %v6439_v3  ;;  %v6440_v49 = vpop.f32.mrf.mxu1  ;;  %v6272_v44 = vadd.f32 %v6271_v15, %v14650_v10  ;;  %v14655_v10 = vld [vmem:[#allocation22_spill] sm:$0xff] }
 0x839   :  { %v10242_v59 = vpop.eup %10241  ;;  %v6777_v51 = vadd.f32 %v6776_v63, %v6608_v6  ;;  %v6441_v56 = vadd.f32 %v6440_v49, %v6272_v44 }
 0x83a   :  { %6924 = vst [vmem:[%s14512_s2 + $0x188] sm:$0xff] %v10242_v59 }
 0x83b   :  { %10243 = vtanh.f32 %v6777_v51 }
 0x83e   :  { %v6609_v61 = vpop.f32.mrf.mxu2  ;;  %v6274_v50 = vpop.f32.mrf.mxu0 }
 0x83f   :  { %v6778_v33 = vpop.f32.mrf.mxu3  ;;  %v6610_v5 = vadd.f32 %v6609_v61, %v6441_v56  ;;  %v6443_v55 = vpop.f32.mrf.mxu1  ;;  %v6275_v25 = vadd.f32 %v6274_v50, %v14651_v12  ;;  %v14656_v12 = vld [vmem:[#allocation23_spill] sm:$0xff] }
 0x841   :  { %v10244_v19 = vpop.eup %10243  ;;  %v6779_v37 = vadd.f32 %v6778_v33, %v6610_v5  ;;  %v6444_v27 = vadd.f32 %v6443_v55, %v6275_v25 }
 0x842   :  { %6925 = vst [vmem:[%s14512_s2 + $0x190] sm:$0xff] %v10244_v19 }
 0x843   :  { %10245 = vtanh.f32 %v6779_v37 }
 0x846   :  { %v6612_v57 = vpop.f32.mrf.mxu2  ;;  %v6276_v39 = vpop.f32.mrf.mxu0 }
 0x847   :  { %v6781_v11 = vpop.f32.mrf.mxu3  ;;  %v6613_v23 = vadd.f32 %v6612_v57, %v6444_v27  ;;  %v6445_v40 = vpop.f32.mrf.mxu1  ;;  %v6277_v45 = vadd.f32 %v6276_v39, %v14652_v16 }
 0x849   :  { %v10246_v26 = vpop.eup %10245  ;;  %v6782_v38 = vadd.f32 %v6781_v11, %v6613_v23  ;;  %v6446_v13 = vadd.f32 %v6445_v40, %v6277_v45 }
 0x84a   :  { %6926 = vst [vmem:[%s14512_s2 + $0x198] sm:$0xff] %v10246_v26 }
 0x84b   :  { %10247 = vtanh.f32 %v6782_v38 }
 0x84e   :  { %v6614_v35 = vpop.f32.mrf.mxu2  ;;  %v6279_v41 = vpop.f32.mrf.mxu0 }
 0x84f   :  { %v6783_v2 = vpop.f32.mrf.mxu3  ;;  %v6615_v31 = vadd.f32 %v6614_v35, %v6446_v13  ;;  %v6448_v22 = vpop.f32.mrf.mxu1  ;;  %v6280_v42 = vadd.f32 %v6279_v41, %v14653_v47 }
 0x851   :  { %v10248_v14 = vpop.eup %10247  ;;  %v6784_v30 = vadd.f32 %v6783_v2, %v6615_v31  ;;  %v6449_v24 = vadd.f32 %v6448_v22, %v6280_v42 }
 0x852   :  { %6927 = vst [vmem:[%s14512_s2 + $0x1a0] sm:$0xff] %v10248_v14 }
 0x853   :  { %10249 = vtanh.f32 %v6784_v30 }
 0x856   :  { %v6617_v28 = vpop.f32.mrf.mxu2  ;;  %v6281_v4 = vpop.f32.mrf.mxu0 }
 0x857   :  { %v6786_v32 = vpop.f32.mrf.mxu3  ;;  %v6618_v8 = vadd.f32 %v6617_v28, %v6449_v24  ;;  %v6450_v36 = vpop.f32.mrf.mxu1  ;;  %v6282_v43 = vadd.f32 %v6281_v4, %v13581_v29 }
 0x859   :  { %v10250_v53 = vpop.eup %10249  ;;  %v6787_v0 = vadd.f32 %v6786_v32, %v6618_v8  ;;  %v6451_v60 = vadd.f32 %v6450_v36, %v6282_v43 }
 0x85a   :  { %6928 = vst [vmem:[%s14512_s2 + $0x1a8] sm:$0xff] %v10250_v53 }
 0x85b   :  { %10251 = vtanh.f32 %v6787_v0 }
 0x85e   :  { %v6619_v7 = vpop.f32.mrf.mxu2  ;;  %v6284_v52 = vpop.f32.mrf.mxu0 }
 0x85f   :  { %v6788_v20 = vpop.f32.mrf.mxu3  ;;  %v6620_v48 = vadd.f32 %v6619_v7, %v6451_v60  ;;  %v6453_v17 = vpop.f32.mrf.mxu1  ;;  %v6285_v3 = vadd.f32 %v6284_v52, %v14654_v46 }
 0x861   :  { %v10252_v62 = vpop.eup %10251  ;;  %v6789_v1 = vadd.f32 %v6788_v20, %v6620_v48  ;;  %v6454_v29 = vadd.f32 %v6453_v17, %v6285_v3 }
 0x862   :  { %6929 = vst [vmem:[%s14512_s2 + $0x1b0] sm:$0xff] %v10252_v62 }
 0x863   :  { %10253 = vtanh.f32 %v6789_v1 }
 0x866   :  { %v6622_v54 = vpop.f32.mrf.mxu2  ;;  %v6286_v15 = vpop.f32.mrf.mxu0 }
 0x867   :  { %v6791_v63 = vpop.f32.mrf.mxu3  ;;  %v6623_v6 = vadd.f32 %v6622_v54, %v6454_v29  ;;  %v6455_v49 = vpop.f32.mrf.mxu1  ;;  %v6287_v44 = vadd.f32 %v6286_v15, %v14655_v10 }
 0x869   :  { %v10254_v59 = vpop.eup %10253  ;;  %v6792_v51 = vadd.f32 %v6791_v63, %v6623_v6  ;;  %v6456_v56 = vadd.f32 %v6455_v49, %v6287_v44 }
 0x86a   :  { %6930 = vst [vmem:[%s14512_s2 + $0x1b8] sm:$0xff] %v10254_v59 }
 0x86b   :  { %10255 = vtanh.f32 %v6792_v51 }
 0x86e   :  { %v6624_v61 = vpop.f32.mrf.mxu2  ;;  %v6289_v50 = vpop.f32.mrf.mxu0 }
 0x86f   :  { %v6793_v33 = vpop.f32.mrf.mxu3  ;;  %v6625_v5 = vadd.f32 %v6624_v61, %v6456_v56  ;;  %v6458_v55 = vpop.f32.mrf.mxu1  ;;  %v6290_v25 = vadd.f32 %v6289_v50, %v14656_v12 }
 0x871   :  { %v10256_v19 = vpop.eup %10255  ;;  %v6794_v37 = vadd.f32 %v6793_v33, %v6625_v5  ;;  %v6459_v27 = vadd.f32 %v6458_v55, %v6290_v25 }
 0x872   :  { %6931 = vst [vmem:[%s14512_s2 + $0x1c0] sm:$0xff] %v10256_v19 }
 0x873   :  { %10257 = vtanh.f32 %v6794_v37 }
 0x876   :  { %v6627_v57 = vpop.f32.mrf.mxu2  ;;  %v6291_v39 = vpop.f32.mrf.mxu0 }
 0x877   :  { %v6796_v11 = vpop.f32.mrf.mxu3  ;;  %v6628_v23 = vadd.f32 %v6627_v57, %v6459_v27  ;;  %v6460_v40 = vpop.f32.mrf.mxu1  ;;  %v6292_v16 = vadd.f32 %v6291_v39, %v13641_v34 }
 0x879   :  { %v10258_v26 = vpop.eup %10257  ;;  %v6797_v38 = vadd.f32 %v6796_v11, %v6628_v23  ;;  %v6461_v45 = vadd.f32 %v6460_v40, %v6292_v16 }
 0x87a   :  { %6932 = vst [vmem:[%s14512_s2 + $0x1c8] sm:$0xff] %v10258_v26 }
 0x87b   :  { %10259 = vtanh.f32 %v6797_v38 }
 0x87e   :  { %v6629_v13 = vpop.f32.mrf.mxu2  ;;  %v6294_v31 = vpop.f32.mrf.mxu0 }
 0x87f   :  { %v6798_v35 = vpop.f32.mrf.mxu3  ;;  %v6630_v2 = vadd.f32 %v6629_v13, %v6461_v45  ;;  %v6463_v41 = vpop.f32.mrf.mxu1  ;;  %v6295_v30 = vadd.f32 %v6294_v31, %v13644_v21 }
 0x881   :  { %v10260_v22 = vpop.eup %10259  ;;  %v6799_v14 = vadd.f32 %v6798_v35, %v6630_v2  ;;  %v6464_v34 = vadd.f32 %v6463_v41, %v6295_v30 }
 0x882   :  { %6933 = vst [vmem:[%s14512_s2 + $0x1d0] sm:$0xff] %v10260_v22 }
 0x883   :  { %10261 = vtanh.f32 %v6799_v14 }
 0x886   :  { %v6632_v47 = vpop.f32.mrf.mxu2  ;;  %v6296_v28 = vpop.f32.mrf.mxu0 }
 0x887   :  { %v6801_v42 = vpop.f32.mrf.mxu3  ;;  %v6633_v24 = vadd.f32 %v6632_v47, %v6464_v34  ;;  %v6465_v32 = vpop.f32.mrf.mxu1  ;;  %v6297_v36 = vadd.f32 %v6296_v28, %v13671_v9 }
 0x889   :  { %v10262_v8 = vpop.eup %10261  ;;  %v6802_v4 = vadd.f32 %v6801_v42, %v6633_v24  ;;  %v6466_v21 = vadd.f32 %v6465_v32, %v6297_v36 }
 0x88a   :  { %6934 = vst [vmem:[%s14512_s2 + $0x1d8] sm:$0xff] %v10262_v8 }
 0x88b   :  { %10263 = vtanh.f32 %v6802_v4 }
 0x88e   :  { %v6634_v53 = vpop.f32.mrf.mxu2  ;;  %v6299_v60 = vpop.f32.mrf.mxu0 }
 0x88f   :  { %v6803_v0 = vpop.f32.mrf.mxu3  ;;  %v6635_v43 = vadd.f32 %v6634_v53, %v6466_v21  ;;  %v6300_v48 = vadd.f32 %v6299_v60, %v13674_v18  ;;  %v6468_v52 = vpop.f32.mrf.mxu1 }
 0x891   :  { %v10264_v7 = vpop.eup %10263  ;;  %v6804_v20 = vadd.f32 %v6803_v0, %v6635_v43  ;;  %v6469_v9 = vadd.f32 %v6468_v52, %v6300_v48 }
 0x892   :  { %6935 = vst [vmem:[%s14512_s2 + $0x1e0] sm:$0xff] %v10264_v7 }
 0x893   :  { %10265 = vtanh.f32 %v6804_v20 }
 0x896   :  { %v6637_v17 = vpop.f32.mrf.mxu2  ;;  %v6301_v46 = vpop.f32.mrf.mxu0 }
 0x897   :  { %v6806_v62 = vpop.f32.mrf.mxu3  ;;  %v6638_v1 = vadd.f32 %v6637_v17, %v6469_v9  ;;  %v6302_v54 = vadd.f32 %v6301_v46, %v13700_v58  ;;  %v6470_v18 = vpop.f32.mrf.mxu1 }
 0x899   :  { %v10266_v3 = vpop.eup %10265  ;;  %v6807_v29 = vadd.f32 %v6806_v62, %v6638_v1  ;;  %v6471_v63 = vadd.f32 %v6470_v18, %v6302_v54 }
 0x89a   :  { %6936 = vst [vmem:[%s14512_s2 + $0x1e8] sm:$0xff] %v10266_v3 }
 0x89b   :  { %10267 = vtanh.f32 %v6807_v29 }
 0x89e   :  { %v6639_v6 = vpop.f32.mrf.mxu2 }
 0x89f   :  { %v6640_v15 = vadd.f32 %v6639_v6, %v6471_v63  ;;  %v6808_v49 = vpop.f32.mrf.mxu3 }
 0x8a1   :  { %v10268_v59 = vpop.eup %10267  ;;  %v6809_v51 = vadd.f32 %v6808_v49, %v6640_v15 }
 0x8a2   :  { %6937 = vst [vmem:[%s14512_s2 + $0x1f0] sm:$0xff] %v10268_v59 }
 0x8a3   :  { %10269 = vtanh.f32 %v6809_v51 }
 0x8a9   :  { %v10270_v10 = vpop.eup %10269 }
 0x8aa   :  { %6938 = vst [vmem:[%s14512_s2 + $0x1f8] sm:$0xff] %v10270_v10 }

</bundles_post_ra>
